<compile_context>
chip_gen: v7x
topology: tpu7x:2x2x1
jax: 0.10.0
libtpu: 0.0.40
codegen_flags: <defaults>
</compile_context>

<pallas_src>
import functools

import jax
import jax.numpy as jnp
from jax.experimental import pallas as pl
from jax.experimental.pallas import tpu as pltpu

WIDTH = 20
MODES = 4
EPS = 1e-5           # PyTorch BatchNorm3d default eps
ROW_TILE = 512       # target rows per block (fits easily in VMEM on v5e/v6e/v7x)


# --------------------------------------------------------------------------
# helpers
# --------------------------------------------------------------------------
def _pick_tile(m, target=ROW_TILE):
    """Largest divisor of m that is <= target and a multiple of 8 (else m)."""
    if m <= target:
        return m
    for d in range(target, 7, -1):
        if m % d == 0 and d % 8 == 0:
            return d
    return m


def _cparams(sem):
    return pltpu.CompilerParams(
        dimension_semantics=sem,
        vmem_limit_bytes=32 * 1024 * 1024,
    )


# --------------------------------------------------------------------------
# Pallas kernels
# --------------------------------------------------------------------------
def _linear_kernel(x_ref, w_ref, b_ref, o_ref):
    # fc0:  o = x @ w + b       x:(TM,K)  w:(K,N)  b:(1,N)
    y = jnp.dot(x_ref[...], w_ref[...], preferred_element_type=jnp.float32)
    o_ref[...] = (y + b_ref[...]).astype(o_ref.dtype)


def _conv_res_stats_kernel(x_ref, w_ref, b_ref, r_ref, y_ref, s_ref, q_ref):
    # y = x @ w + b + r   (1x1 Conv1d channel mix + spectral-conv residual)
    # and accumulate per-channel sum / sum-of-squares for BatchNorm across the
    # M grid (s_ref / q_ref map to the same (1,W) block every step).
    y = jnp.dot(x_ref[...], w_ref[...], preferred_element_type=jnp.float32)
    y = y + b_ref[...] + r_ref[...]
    y_ref[...] = y.astype(y_ref.dtype)

    ps = jnp.sum(y, axis=0, keepdims=True)
    pq = jnp.sum(y * y, axis=0, keepdims=True)

    @pl.when(pl.program_id(0) == 0)
    def _():
        s_ref[...] = jnp.zeros_like(s_ref)
        q_ref[...] = jnp.zeros_like(q_ref)

    s_ref[...] += ps
    q_ref[...] += pq


def _bn_apply_kernel(y_ref, s_ref, q_ref, g_ref, b_ref, o_ref, *, inv_count, relu):
    # BatchNorm (training-mode batch stats, biased variance) + optional ReLU.
    # scale/shift recomputed per tile from the raw sums: a handful of (1,W)
    # VALU/EUP ops, kept on-chip instead of XLA glue.
    # TODO(synk): E[x^2]-E[x]^2 can cancel for very large M; fine at these scales.
    mean = s_ref[...] * inv_count
    var = q_ref[...] * inv_count - mean * mean
    scale = g_ref[...] * jax.lax.rsqrt(var + EPS)
    shift = b_ref[...] - mean * scale
    z = y_ref[...] * scale + shift
    if relu:
        z = jnp.maximum(z, 0.0)
    o_ref[...] = z.astype(o_ref.dtype)


def _head_kernel(x_ref, w1_ref, b1_ref, w2_ref, b2_ref, o_ref):
    # fused fc1 (+ReLU) and fc2: the (TM,128) hidden stays in VMEM/vregs.
    h = jnp.dot(x_ref[...], w1_ref[...], preferred_element_type=jnp.float32)
    h = jnp.maximum(h + b1_ref[...], 0.0)
    y = jnp.dot(h, w2_ref[...], preferred_element_type=jnp.float32) + b2_ref[...]
    o_ref[...] = y.astype(o_ref.dtype)


def _spectral_kernel(ar_ref, ai_ref, wr_ref, wi_ref, or_ref, oi_ref):
    # compl_mul3d for ONE corner (corner axis is the grid, squeezed away):
    #   out[b,o,p] = sum_i a[b,i,p] * w[i,o,p]   (complex)
    # a: (B, Cin, P)   w: (Cin, Cout, P)   out: (B, Cout, P),  P on lanes.
    ar = ar_ref[...]
    ai = ai_ref[...]
    B, Cin, P = ar.shape
    Cout = wr_ref.shape[1]
    acc_r = jnp.zeros((B, Cout, P), jnp.float32)
    acc_i = jnp.zeros((B, Cout, P), jnp.float32)
    for i in range(Cin):                      # static unroll, Cin == WIDTH
        a_r = ar[:, i:i + 1, :]               # (B, 1, P)
        a_i = ai[:, i:i + 1, :]
        w_r = wr_ref[i][None]                 # (1, Cout, P)
        w_i = wi_ref[i][None]
        acc_r = acc_r + a_r * w_r - a_i * w_i
        acc_i = acc_i + a_r * w_i + a_i * w_r
    or_ref[...] = acc_r
    oi_ref[...] = acc_i


# --------------------------------------------------------------------------
# pallas_call wrappers
# --------------------------------------------------------------------------
def linear(x, w, b):
    M, K = x.shape
    N = w.shape[1]
    tm = _pick_tile(M)
    return pl.pallas_call(
        _linear_kernel,
        out_shape=jax.ShapeDtypeStruct((M, N), jnp.float32),
        grid=(M // tm,),
        in_specs=[pl.BlockSpec((tm, K), lambda i: (i, 0)),
                  pl.BlockSpec((K, N), lambda i: (0, 0)),
                  pl.BlockSpec((1, N), lambda i: (0, 0))],
        out_specs=pl.BlockSpec((tm, N), lambda i: (i, 0)),
        compiler_params=_cparams(("parallel",)),
    )(x, w, b)


def conv_residual_stats(x, w, b, r):
    M, K = x.shape
    N = w.shape[1]
    tm = _pick_tile(M)
    return pl.pallas_call(
        _conv_res_stats_kernel,
        out_shape=(jax.ShapeDtypeStruct((M, N), jnp.float32),
                   jax.ShapeDtypeStruct((1, N), jnp.float32),
                   jax.ShapeDtypeStruct((1, N), jnp.float32)),
        grid=(M // tm,),
        in_specs=[pl.BlockSpec((tm, K), lambda i: (i, 0)),
                  pl.BlockSpec((K, N), lambda i: (0, 0)),
                  pl.BlockSpec((1, N), lambda i: (0, 0)),
                  pl.BlockSpec((tm, N), lambda i: (i, 0))],
        out_specs=(pl.BlockSpec((tm, N), lambda i: (i, 0)),
                   pl.BlockSpec((1, N), lambda i: (0, 0)),
                   pl.BlockSpec((1, N), lambda i: (0, 0))),
        # stats outputs are accumulated across the M grid -> reduction axis
        compiler_params=_cparams(("arbitrary",)),
    )(x, w, b, r)


def bn_apply(y, s, q, gamma, beta, *, count, relu):
    M, C = y.shape
    tm = _pick_tile(M)
    kern = functools.partial(_bn_apply_kernel,
                             inv_count=1.0 / float(count), relu=relu)
    return pl.pallas_call(
        kern,
        out_shape=jax.ShapeDtypeStruct((M, C), jnp.float32),
        grid=(M // tm,),
        in_specs=[pl.BlockSpec((tm, C), lambda i: (i, 0)),
                  pl.BlockSpec((1, C), lambda i: (0, 0)),
                  pl.BlockSpec((1, C), lambda i: (0, 0)),
                  pl.BlockSpec((1, C), lambda i: (0, 0)),
                  pl.BlockSpec((1, C), lambda i: (0, 0))],
        out_specs=pl.BlockSpec((tm, C), lambda i: (i, 0)),
        compiler_params=_cparams(("parallel",)),
    )(y, s, q, gamma, beta)


def head(x, w1, b1, w2, b2):
    M, K = x.shape
    tm = _pick_tile(M)
    return pl.pallas_call(
        _head_kernel,
        out_shape=jax.ShapeDtypeStruct((M, 1), jnp.float32),
        grid=(M // tm,),
        in_specs=[pl.BlockSpec((tm, K), lambda i: (i, 0)),
                  pl.BlockSpec(w1.shape, lambda i: (0, 0)),
                  pl.BlockSpec(b1.shape, lambda i: (0, 0)),
                  pl.BlockSpec(w2.shape, lambda i: (0, 0)),
                  pl.BlockSpec(b2.shape, lambda i: (0, 0))],
        out_specs=pl.BlockSpec((tm, 1), lambda i: (i, 0)),
        compiler_params=_cparams(("parallel",)),
    )(x, w1, b1, w2, b2)


def spectral_mul(ar, ai, wr, wi):
    # ar/ai: (4, B, Cin, P)   wr/wi: (4, Cin, Cout, P) -> (4, B, Cout, P) x2
    ncorner, B, Cin, P = ar.shape
    Cout = wr.shape[2]
    out_sd = jax.ShapeDtypeStruct((ncorner, B, Cout, P), jnp.float32)
    spec_a = pl.BlockSpec((None, B, Cin, P), lambda k: (k, 0, 0, 0))
    spec_w = pl.BlockSpec((None, Cin, Cout, P), lambda k: (k, 0, 0, 0))
    spec_o = pl.BlockSpec((None, B, Cout, P), lambda k: (k, 0, 0, 0))
    return pl.pallas_call(
        _spectral_kernel,
        out_shape=(out_sd, out_sd),
        grid=(ncorner,),
        in_specs=[spec_a, spec_a, spec_w, spec_w],
        out_specs=(spec_o, spec_o),
        compiler_params=_cparams(("parallel",)),
    )(ar, ai, wr, wi)


# --------------------------------------------------------------------------
# Model (parameter init + forward; glue in plain JAX)
# --------------------------------------------------------------------------
def init_params(key):
    keys = iter(jax.random.split(key, 32))

    def uni(shape, scale=0.1):
        return scale * jax.random.uniform(next(keys), shape, jnp.float32)

    P = MODES * MODES * MODES * 2          # flattened (m1, m2, m3, 2) modes
    spec_scale = 1.0 / (WIDTH * WIDTH)

    params = {
        "fc0_w": uni((13, WIDTH)), "fc0_b": uni((1, WIDTH)),
        "fc1_w": uni((WIDTH, 128)), "fc1_b": uni((1, 128)),
        "fc2_w": uni((128, 1)), "fc2_b": uni((1, 1)),
        "spec_wr": [], "spec_wi": [],
        "conv_w": [], "conv_b": [], "gamma": [], "beta": [],
    }
    for _layer in range(4):
        # 4 corners stacked on a leading axis -> one pallas_call per layer
        params["spec_wr"].append(
            spec_scale * jax.random.uniform(next(keys), (4, WIDTH, WIDTH, P), jnp.float32))
        params["spec_wi"].append(
            spec_scale * jax.random.uniform(next(keys), (4, WIDTH, WIDTH, P), jnp.float32))
        params["conv_w"].append(uni((WIDTH, WIDTH)))
        params["conv_b"].append(uni((1, WIDTH)))
        params["gamma"].append(jnp.ones((1, WIDTH), jnp.float32))
        params["beta"].append(jnp.zeros((1, WIDTH), jnp.float32))
    return params


def spectral_conv3d(x6, wr, wi):
    # x6: (B, X, Y, T, C, W) float32 -> same shape; FFT over X, Y, T.
    B, X, Y, T, C, W = x6.shape
    m = MODES
    Th = T // 2 + 1
    x_ft = jnp.fft.rfftn(x6, axes=(1, 2, 3), norm="forward")        # complex64

    corners = [
        (slice(0, m), slice(0, m)),          # weights1
        (slice(X - m, X), slice(0, m)),      # weights2
        (slice(0, m), slice(Y - m, Y)),      # weights3
        (slice(X - m, X), slice(Y - m, Y)),  # weights4
    ]
    a_r, a_i = [], []
    for sx, sy in corners:
        a = x_ft[:, sx, sy, :m, :, :]                                # (B,m,m,m,C,W)
        a = jnp.moveaxis(a, -1, 1).reshape(B, W, -1)                 # (B, W, P)
        a_r.append(jnp.real(a).astype(jnp.float32))
        a_i.append(jnp.imag(a).astype(jnp.float32))
    ar = jnp.stack(a_r, axis=0)                                      # (4, B, W, P)
    ai = jnp.stack(a_i, axis=0)

    or_, oi_ = spectral_mul(ar, ai, wr, wi)                          # Pallas

    out_ft = jnp.zeros((B, X, Y, Th, C, W), jnp.complex64)
    for k, (sx, sy) in enumerate(corners):
        blk = (or_[k] + 1j * oi_[k]).astype(jnp.complex64)           # (B, W, P)
        blk = jnp.moveaxis(blk.reshape(B, W, m, m, m, C), 1, -1)     # (B,m,m,m,C,W)
        out_ft = out_ft.at[:, sx, sy, :m, :, :].set(blk)

    x1 = jnp.fft.irfftn(out_ft, s=(X, Y, T), axes=(1, 2, 3), norm="forward")
    return x1.astype(jnp.float32)


def fourier_layer(h6, layer, params, *, relu):
    B, X, Y, T, C, W = h6.shape
    M = B * X * Y * T * C
    x1 = spectral_conv3d(h6, params["spec_wr"][layer], params["spec_wi"][layer])
    # channels-last row slabs; pure reshapes, no transposes
    x_rows = h6.reshape(M, W)
    x1_rows = x1.reshape(M, W)
    # y = w_l(x) + bias + x1   and per-channel BN sums, in one Pallas pass
    y_rows, s, q = conv_residual_stats(
        x_rows, params["conv_w"][layer], params["conv_b"][layer], x1_rows)
    # BatchNorm3d (training mode batch statistics) + optional ReLU
    z_rows = bn_apply(y_rows, s, q, params["gamma"][layer], params["beta"][layer],
                      count=M, relu=relu)
    return z_rows.reshape(B, X, Y, T, C, W)


def net3d_forward(params, x):
    # x: (B, X, Y, C, T, 13)
    B, X, Y, C, T, F = x.shape
    # channels-last working layout (B, X, Y, T, C, ...): the only full-tensor
    # transposes in the whole forward are this one and the final output one.
    xt = jnp.transpose(x, (0, 1, 2, 4, 3, 5))                        # (B,X,Y,T,C,13)
    rows = xt.reshape(-1, F)
    M = rows.shape[0]

    h = linear(rows, params["fc0_w"], params["fc0_b"])               # fc0 (Pallas)
    h6 = h.reshape(B, X, Y, T, C, WIDTH)

    for layer in range(4):
        h6 = fourier_layer(h6, layer, params, relu=(layer < 3))

    rows2 = h6.reshape(M, WIDTH)
    out_col = head(rows2, params["fc1_w"], params["fc1_b"],
                   params["fc2_w"], params["fc2_b"])                 # fc1+ReLU+fc2
    out = out_col.reshape(B, X, Y, T, C)
    out = jnp.transpose(out, (0, 1, 2, 4, 3))                        # (B,X,Y,C,T)
    # PyTorch Net3d returns x.squeeze() on (B,X,Y,C,T,1): all size-1 dims drop.
    return jnp.squeeze(out)


# --------------------------------------------------------------------------
if __name__ == "__main__":
    key = jax.random.PRNGKey(0)
    kp, kx = jax.random.split(key)
    params = init_params(kp)

    # (B, X, Y, C, T, 13); C must be 2 to match the model's hardcoded complex
    # trailing dimension.
    B, X, Y, C, T = 2, 8, 8, 2, 8
    x = jax.random.normal(kx, (B, X, Y, C, T, 13), dtype=jnp.float32)

    out = jax.jit(net3d_forward)(params, x)
    jax.block_until_ready(out)
    assert out.shape == (B, X, Y, C, T), out.shape
    assert out.dtype == jnp.float32
    assert bool(jnp.all(jnp.isfinite(out)))
    print("KERNEL_OK")
</pallas_src>

<mosaic_0001>
module attributes {stable_mosaic.version = 11 : i64} {
  func.func @_linear_kernel(%arg0: i32, %arg1: memref<512x13xf32, #tpu.memory_space<vmem>>, %arg2: memref<13x20xf32, #tpu.memory_space<vmem>>, %arg3: memref<1x20xf32, #tpu.memory_space<vmem>>, %arg4: memref<512x20xf32, #tpu.memory_space<vmem>>) attributes {dimension_semantics = [#tpu.dimension_semantics<parallel>], iteration_bounds = array<i64: 4>, scalar_prefetch = 0 : i64, scratch_operands = 0 : i64, tpu.core_type = #tpu.core_type<tc>, window_params = [{transform_indices = @transform_0, window_bounds = array<i64: 512, 13>}, {pipeline_mode = #tpu.pipeline_mode<synchronous>, transform_indices = @transform_1, window_bounds = array<i64: 13, 20>}, {pipeline_mode = #tpu.pipeline_mode<synchronous>, transform_indices = @transform_2, window_bounds = array<i64: 1, 20>}, {transform_indices = @transform_3, window_bounds = array<i64: 512, 20>}]} {
    %c0 = arith.constant 0 : index
    %c0_0 = arith.constant 0 : index
    %0 = vector.load %arg1[%c0, %c0_0] : memref<512x13xf32, #tpu.memory_space<vmem>>, vector<512x13xf32>
    %c0_1 = arith.constant 0 : index
    %c0_2 = arith.constant 0 : index
    %1 = vector.load %arg2[%c0_1, %c0_2] : memref<13x20xf32, #tpu.memory_space<vmem>>, vector<13x20xf32>
    %cst = arith.constant dense<0.000000e+00> : vector<512x20xf32>
    %2 = tpu.matmul %0, %1, %cst {dimension_numbers = #tpu.dot_dimension_numbers<[1], [0], [0], [1], [0, 0, 1, 1], [], []>} : vector<512x13xf32>, vector<13x20xf32>, vector<512x20xf32> -> vector<512x20xf32>
    %c0_3 = arith.constant 0 : index
    %c0_4 = arith.constant 0 : index
    %3 = vector.load %arg3[%c0_3, %c0_4] : memref<1x20xf32, #tpu.memory_space<vmem>>, vector<1x20xf32>
    %4 = vector.broadcast %3 : vector<1x20xf32> to vector<512x20xf32>
    %5 = arith.addf %2, %4 : vector<512x20xf32>
    %c0_5 = arith.constant 0 : index
    %c0_6 = arith.constant 0 : index
    %6 = vector.load %arg4[%c0_5, %c0_6] : memref<512x20xf32, #tpu.memory_space<vmem>>, vector<512x20xf32>
    tpu.vector_store %arg4[%c0_5, %c0_6], %5 {strides = array<i32>} : memref<512x20xf32, #tpu.memory_space<vmem>>, vector<512x20xf32>,
    return
  }
  func.func @transform_0(%arg0: i32) -> (i32, i32) {
    %c0_i32 = arith.constant 0 : i32
    %c0_i32_0 = arith.constant 0 : i32
    return %arg0, %c0_i32 : i32, i32
  }
  func.func @transform_1(%arg0: i32) -> (i32, i32) {
    %c0_i32 = arith.constant 0 : i32
    %c0_i32_0 = arith.constant 0 : i32
    %c0_i32_1 = arith.constant 0 : i32
    return %c0_i32, %c0_i32_0 : i32, i32
  }
  func.func @transform_2(%arg0: i32) -> (i32, i32) {
    %c0_i32 = arith.constant 0 : i32
    %c0_i32_0 = arith.constant 0 : i32
    %c0_i32_1 = arith.constant 0 : i32
    return %c0_i32, %c0_i32_0 : i32, i32
  }
  func.func @transform_3(%arg0: i32) -> (i32, i32) {
    %c0_i32 = arith.constant 0 : i32
    %c0_i32_0 = arith.constant 0 : i32
    return %arg0, %c0_i32 : i32, i32
  }
}

module attributes {stable_mosaic.version = 11 : i64} {
  func.func @_spectral_kernel(%arg0: i32, %arg1: memref<1x2x20x128xf32, #tpu.memory_space<vmem>>, %arg2: memref<1x2x20x128xf32, #tpu.memory_space<vmem>>, %arg3: memref<1x20x20x128xf32, #tpu.memory_space<vmem>>, %arg4: memref<1x20x20x128xf32, #tpu.memory_space<vmem>>, %arg5: memref<1x2x20x128xf32, #tpu.memory_space<vmem>>, %arg6: memref<1x2x20x128xf32, #tpu.memory_space<vmem>>) attributes {dimension_semantics = [#tpu.dimension_semantics<parallel>], iteration_bounds = array<i64: 4>, scalar_prefetch = 0 : i64, scratch_operands = 0 : i64, tpu.core_type = #tpu.core_type<tc>, window_params = [{transform_indices = @transform_0, window_bounds = array<i64: 1, 2, 20, 128>}, {transform_indices = @transform_1, window_bounds = array<i64: 1, 2, 20, 128>}, {transform_indices = @transform_2, window_bounds = array<i64: 1, 20, 20, 128>}, {transform_indices = @transform_3, window_bounds = array<i64: 1, 20, 20, 128>}, {transform_indices = @transform_4, window_bounds = array<i64: 1, 2, 20, 128>}, {transform_indices = @transform_5, window_bounds = array<i64: 1, 2, 20, 128>}]} {
    %c0 = arith.constant 0 : index
    %c0_0 = arith.constant 0 : index
    %c0_1 = arith.constant 0 : index
    %c0_2 = arith.constant 0 : index
    %0 = vector.load %arg1[%c0, %c0_0, %c0_1, %c0_2] : memref<1x2x20x128xf32, #tpu.memory_space<vmem>>, vector<1x2x20x128xf32>
    %1 = vector.shape_cast %0 : vector<1x2x20x128xf32> to vector<2x20x128xf32>
    %c0_3 = arith.constant 0 : index
    %c0_4 = arith.constant 0 : index
    %c0_5 = arith.constant 0 : index
    %c0_6 = arith.constant 0 : index
    %2 = vector.load %arg2[%c0_3, %c0_4, %c0_5, %c0_6] : memref<1x2x20x128xf32, #tpu.memory_space<vmem>>, vector<1x2x20x128xf32>
    %3 = vector.shape_cast %2 : vector<1x2x20x128xf32> to vector<2x20x128xf32>
    %cst = arith.constant 0.000000e+00 : f32
    %4 = vector.broadcast %cst : f32 to vector<2x20x128xf32>
    %cst_7 = arith.constant 0.000000e+00 : f32
    %5 = vector.broadcast %cst_7 : f32 to vector<2x20x128xf32>
    %6 = vector.extract_strided_slice %1 {offsets = [0, 0, 0], sizes = [2, 1, 128], strides = [1, 1, 1]} : vector<2x20x128xf32> to vector<2x1x128xf32>
    %7 = vector.extract_strided_slice %3 {offsets = [0, 0, 0], sizes = [2, 1, 128], strides = [1, 1, 1]} : vector<2x20x128xf32> to vector<2x1x128xf32>
    %c0_8 = arith.constant 0 : index
    %c0_9 = arith.constant 0 : index
    %c0_10 = arith.constant 0 : index
    %c0_11 = arith.constant 0 : index
    %8 = vector.load %arg3[%c0_8, %c0_9, %c0_10, %c0_11] : memref<1x20x20x128xf32, #tpu.memory_space<vmem>>, vector<1x1x20x128xf32>
    %9 = vector.shape_cast %8 : vector<1x1x20x128xf32> to vector<20x128xf32>
    %10 = vector.shape_cast %9 : vector<20x128xf32> to vector<1x20x128xf32>
    %c0_12 = arith.constant 0 : index
    %c0_13 = arith.constant 0 : index
    %c0_14 = arith.constant 0 : index
    %c0_15 = arith.constant 0 : index
    %11 = vector.load %arg4[%c0_12, %c0_13, %c0_14, %c0_15] : memref<1x20x20x128xf32, #tpu.memory_space<vmem>>, vector<1x1x20x128xf32>
    %12 = vector.shape_cast %11 : vector<1x1x20x128xf32> to vector<20x128xf32>
    %13 = vector.shape_cast %12 : vector<20x128xf32> to vector<1x20x128xf32>
    %14 = vector.broadcast %6 : vector<2x1x128xf32> to vector<2x20x128xf32>
    %15 = vector.broadcast %10 : vector<1x20x128xf32> to vector<2x20x128xf32>
    %16 = arith.mulf %14, %15 : vector<2x20x128xf32>
    %17 = arith.addf %4, %16 : vector<2x20x128xf32>
    %18 = vector.broadcast %7 : vector<2x1x128xf32> to vector<2x20x128xf32>
    %19 = vector.broadcast %13 : vector<1x20x128xf32> to vector<2x20x128xf32>
    %20 = arith.mulf %18, %19 : vector<2x20x128xf32>
    %21 = arith.subf %17, %20 : vector<2x20x128xf32>
    %22 = vector.broadcast %6 : vector<2x1x128xf32> to vector<2x20x128xf32>
    %23 = vector.broadcast %13 : vector<1x20x128xf32> to vector<2x20x128xf32>
    %24 = arith.mulf %22, %23 : vector<2x20x128xf32>
    %25 = arith.addf %5, %24 : vector<2x20x128xf32>
    %26 = vector.broadcast %7 : vector<2x1x128xf32> to vector<2x20x128xf32>
    %27 = vector.broadcast %10 : vector<1x20x128xf32> to vector<2x20x128xf32>
    %28 = arith.mulf %26, %27 : vector<2x20x128xf32>
    %29 = arith.addf %25, %28 : vector<2x20x128xf32>
    %30 = vector.extract_strided_slice %1 {offsets = [0, 1, 0], sizes = [2, 1, 128], strides = [1, 1, 1]} : vector<2x20x128xf32> to vector<2x1x128xf32>
    %31 = vector.extract_strided_slice %3 {offsets = [0, 1, 0], sizes = [2, 1, 128], strides = [1, 1, 1]} : vector<2x20x128xf32> to vector<2x1x128xf32>
    %c0_16 = arith.constant 0 : index
    %c1 = arith.constant 1 : index
    %c0_17 = arith.constant 0 : index
    %c0_18 = arith.constant 0 : index
    %32 = vector.load %arg3[%c0_16, %c1, %c0_17, %c0_18] : memref<1x20x20x128xf32, #tpu.memory_space<vmem>>, vector<1x1x20x128xf32>
    %33 = vector.shape_cast %32 : vector<1x1x20x128xf32> to vector<20x128xf32>
    %34 = vector.shape_cast %33 : vector<20x128xf32> to vector<1x20x128xf32>
    %c0_19 = arith.constant 0 : index
    %c1_20 = arith.constant 1 : index
    %c0_21 = arith.constant 0 : index
    %c0_22 = arith.constant 0 : index
    %35 = vector.load %arg4[%c0_19, %c1_20, %c0_21, %c0_22] : memref<1x20x20x128xf32, #tpu.memory_space<vmem>>, vector<1x1x20x128xf32>
    %36 = vector.shape_cast %35 : vector<1x1x20x128xf32> to vector<20x128xf32>
    %37 = vector.shape_cast %36 : vector<20x128xf32> to vector<1x20x128xf32>
    %38 = vector.broadcast %30 : vector<2x1x128xf32> to vector<2x20x128xf32>
    %39 = vector.broadcast %34 : vector<1x20x128xf32> to vector<2x20x128xf32>
    %40 = arith.mulf %38, %39 : vector<2x20x128xf32>
    %41 = arith.addf %21, %40 : vector<2x20x128xf32>
    %42 = vector.broadcast %31 : vector<2x1x128xf32> to vector<2x20x128xf32>
    %43 = vector.broadcast %37 : vector<1x20x128xf32> to vector<2x20x128xf32>
    %44 = arith.mulf %42, %43 : vector<2x20x128xf32>
    %45 = arith.subf %41, %44 : vector<2x20x128xf32>
    %46 = vector.broadcast %30 : vector<2x1x128xf32> to vector<2x20x128xf32>
    %47 = vector.broadcast %37 : vector<1x20x128xf32> to vector<2x20x128xf32>
    %48 = arith.mulf %46, %47 : vector<2x20x128xf32>
    %49 = arith.addf %29, %48 : vector<2x20x128xf32>
    %50 = vector.broadcast %31 : vector<2x1x128xf32> to vector<2x20x128xf32>
    %51 = vector.broadcast %34 : vector<1x20x128xf32> to vector<2x20x128xf32>
    %52 = arith.mulf %50, %51 : vector<2x20x128xf32>
    %53 = arith.addf %49, %52 : vector<2x20x128xf32>
    %54 = vector.extract_strided_slice %1 {offsets = [0, 2, 0], sizes = [2, 1, 128], strides = [1, 1, 1]} : vector<2x20x128xf32> to vector<2x1x128xf32>
    %55 = vector.extract_strided_slice %3 {offsets = [0, 2, 0], sizes = [2, 1, 128], strides = [1, 1, 1]} : vector<2x20x128xf32> to vector<2x1x128xf32>
    %c0_23 = arith.constant 0 : index
    %c2 = arith.constant 2 : index
    %c0_24 = arith.constant 0 : index
    %c0_25 = arith.constant 0 : index
    %56 = vector.load %arg3[%c0_23, %c2, %c0_24, %c0_25] : memref<1x20x20x128xf32, #tpu.memory_space<vmem>>, vector<1x1x20x128xf32>
    %57 = vector.shape_cast %56 : vector<1x1x20x128xf32> to vector<20x128xf32>
    %58 = vector.shape_cast %57 : vector<20x128xf32> to vector<1x20x128xf32>
    %c0_26 = arith.constant 0 : index
    %c2_27 = arith.constant 2 : index
    %c0_28 = arith.constant 0 : index
    %c0_29 = arith.constant 0 : index
    %59 = vector.load %arg4[%c0_26, %c2_27, %c0_28, %c0_29] : memref<1x20x20x128xf32, #tpu.memory_space<vmem>>, vector<1x1x20x128xf32>
    %60 = vector.shape_cast %59 : vector<1x1x20x128xf32> to vector<20x128xf32>
    %61 = vector.shape_cast %60 : vector<20x128xf32> to vector<1x20x128xf32>
    %62 = vector.broadcast %54 : vector<2x1x128xf32> to vector<2x20x128xf32>
    %63 = vector.broadcast %58 : vector<1x20x128xf32> to vector<2x20x128xf32>
    %64 = arith.mulf %62, %63 : vector<2x20x128xf32>
    %65 = arith.addf %45, %64 : vector<2x20x128xf32>
    %66 = vector.broadcast %55 : vector<2x1x128xf32> to vector<2x20x128xf32>
    %67 = vector.broadcast %61 : vector<1x20x128xf32> to vector<2x20x128xf32>
    %68 = arith.mulf %66, %67 : vector<2x20x128xf32>
    %69 = arith.subf %65, %68 : vector<2x20x128xf32>
    %70 = vector.broadcast %54 : vector<2x1x128xf32> to vector<2x20x128xf32>
    %71 = vector.broadcast %61 : vector<1x20x128xf32> to vector<2x20x128xf32>
    %72 = arith.mulf %70, %71 : vector<2x20x128xf32>
    %73 = arith.addf %53, %72 : vector<2x20x128xf32>
    %74 = vector.broadcast %55 : vector<2x1x128xf32> to vector<2x20x128xf32>
    %75 = vector.broadcast %58 : vector<1x20x128xf32> to vector<2x20x128xf32>
    %76 = arith.mulf %74, %75 : vector<2x20x128xf32>
    %77 = arith.addf %73, %76 : vector<2x20x128xf32>
    %78 = vector.extract_strided_slice %1 {offsets = [0, 3, 0], sizes = [2, 1, 128], strides = [1, 1, 1]} : vector<2x20x128xf32> to vector<2x1x128xf32>
    %79 = vector.extract_strided_slice %3 {offsets = [0, 3, 0], sizes = [2, 1, 128], strides = [1, 1, 1]} : vector<2x20x128xf32> to vector<2x1x128xf32>
    %c0_30 = arith.constant 0 : index
    %c3 = arith.constant 3 : index
    %c0_31 = arith.constant 0 : index
    %c0_32 = arith.constant 0 : index
    %80 = vector.load %arg3[%c0_30, %c3, %c0_31, %c0_32] : memref<1x20x20x128xf32, #tpu.memory_space<vmem>>, vector<1x1x20x128xf32>
    %81 = vector.shape_cast %80 : vector<1x1x20x128xf32> to vector<20x128xf32>
    %82 = vector.shape_cast %81 : vector<20x128xf32> to vector<1x20x128xf32>
    %c0_33 = arith.constant 0 : index
    %c3_34 = arith.constant 3 : index
    %c0_35 = arith.constant 0 : index
    %c0_36 = arith.constant 0 : index
    %83 = vector.load %arg4[%c0_33, %c3_34, %c0_35, %c0_36] : memref<1x20x20x128xf32, #tpu.memory_space<vmem>>, vector<1x1x20x128xf32>
    %84 = vector.shape_cast %83 : vector<1x1x20x128xf32> to vector<20x128xf32>
    %85 = vector.shape_cast %84 : vector<20x128xf32> to vector<1x20x128xf32>
    %86 = vector.broadcast %78 : vector<2x1x128xf32> to vector<2x20x128xf32>
    %87 = vector.broadcast %82 : vector<1x20x128xf32> to vector<2x20x128xf32>
    %88 = arith.mulf %86, %87 : vector<2x20x128xf32>
    %89 = arith.addf %69, %88 : vector<2x20x128xf32>
    %90 = vector.broadcast %79 : vector<2x1x128xf32> to vector<2x20x128xf32>
    %91 = vector.broadcast %85 : vector<1x20x128xf32> to vector<2x20x128xf32>
    %92 = arith.mulf %90, %91 : vector<2x20x128xf32>
    %93 = arith.subf %89, %92 : vector<2x20x128xf32>
    %94 = vector.broadcast %78 : vector<2x1x128xf32> to vector<2x20x128xf32>
    %95 = vector.broadcast %85 : vector<1x20x128xf32> to vector<2x20x128xf32>
    %96 = arith.mulf %94, %95 : vector<2x20x128xf32>
    %97 = arith.addf %77, %96 : vector<2x20x128xf32>
    %98 = vector.broadcast %79 : vector<2x1x128xf32> to vector<2x20x128xf32>
    %99 = vector.broadcast %82 : vector<1x20x128xf32> to vector<2x20x128xf32>
    %100 = arith.mulf %98, %99 : vector<2x20x128xf32>
    %101 = arith.addf %97, %100 : vector<2x20x128xf32>
    %102 = vector.extract_strided_slice %1 {offsets = [0, 4, 0], sizes = [2, 1, 128], strides = [1, 1, 1]} : vector<2x20x128xf32> to vector<2x1x128xf32>
    %103 = vector.extract_strided_slice %3 {offsets = [0, 4, 0], sizes = [2, 1, 128], strides = [1, 1, 1]} : vector<2x20x128xf32> to vector<2x1x128xf32>
    %c0_37 = arith.constant 0 : index
    %c4 = arith.constant 4 : index
    %c0_38 = arith.constant 0 : index
    %c0_39 = arith.constant 0 : index
    %104 = vector.load %arg3[%c0_37, %c4, %c0_38, %c0_39] : memref<1x20x20x128xf32, #tpu.memory_space<vmem>>, vector<1x1x20x128xf32>
    %105 = vector.shape_cast %104 : vector<1x1x20x128xf32> to vector<20x128xf32>
    %106 = vector.shape_cast %105 : vector<20x128xf32> to vector<1x20x128xf32>
    %c0_40 = arith.constant 0 : index
    %c4_41 = arith.constant 4 : index
    %c0_42 = arith.constant 0 : index
    %c0_43 = arith.constant 0 : index
    %107 = vector.load %arg4[%c0_40, %c4_41, %c0_42, %c0_43] : memref<1x20x20x128xf32, #tpu.memory_space<vmem>>, vector<1x1x20x128xf32>
    %108 = vector.shape_cast %107 : vector<1x1x20x128xf32> to vector<20x128xf32>
    %109 = vector.shape_cast %108 : vector<20x128xf32> to vector<1x20x128xf32>
    %110 = vector.broadcast %102 : vector<2x1x128xf32> to vector<2x20x128xf32>
    %111 = vector.broadcast %106 : vector<1x20x128xf32> to vector<2x20x128xf32>
    %112 = arith.mulf %110, %111 : vector<2x20x128xf32>
    %113 = arith.addf %93, %112 : vector<2x20x128xf32>
    %114 = vector.broadcast %103 : vector<2x1x128xf32> to vector<2x20x128xf32>
    %115 = vector.broadcast %109 : vector<1x20x128xf32> to vector<2x20x128xf32>
    %116 = arith.mulf %114, %115 : vector<2x20x128xf32>
    %117 = arith.subf %113, %116 : vector<2x20x128xf32>
    %118 = vector.broadcast %102 : vector<2x1x128xf32> to vector<2x20x128xf32>
    %119 = vector.broadcast %109 : vector<1x20x128xf32> to vector<2x20x128xf32>
    %120 = arith.mulf %118, %119 : vector<2x20x128xf32>
    %121 = arith.addf %101, %120 : vector<2x20x128xf32>
    %122 = vector.broadcast %103 : vector<2x1x128xf32> to vector<2x20x128xf32>
    %123 = vector.broadcast %106 : vector<1x20x128xf32> to vector<2x20x128xf32>
    %124 = arith.mulf %122, %123 : vector<2x20x128xf32>
    %125 = arith.addf %121, %124 : vector<2x20x128xf32>
    %126 = vector.extract_strided_slice %1 {offsets = [0, 5, 0], sizes = [2, 1, 128], strides = [1, 1, 1]} : vector<2x20x128xf32> to vector<2x1x128xf32>
    %127 = vector.extract_strided_slice %3 {offsets = [0, 5, 0], sizes = [2, 1, 128], strides = [1, 1, 1]} : vector<2x20x128xf32> to vector<2x1x128xf32>
    %c0_44 = arith.constant 0 : index
    %c5 = arith.constant 5 : index
    %c0_45 = arith.constant 0 : index
    %c0_46 = arith.constant 0 : index
    %128 = vector.load %arg3[%c0_44, %c5, %c0_45, %c0_46] : memref<1x20x20x128xf32, #tpu.memory_space<vmem>>, vector<1x1x20x128xf32>
    %129 = vector.shape_cast %128 : vector<1x1x20x128xf32> to vector<20x128xf32>
    %130 = vector.shape_cast %129 : vector<20x128xf32> to vector<1x20x128xf32>
    %c0_47 = arith.constant 0 : index
    %c5_48 = arith.constant 5 : index
    %c0_49 = arith.constant 0 : index
    %c0_50 = arith.constant 0 : index
    %131 = vector.load %arg4[%c0_47, %c5_48, %c0_49, %c0_50] : memref<1x20x20x128xf32, #tpu.memory_space<vmem>>, vector<1x1x20x128xf32>
    %132 = vector.shape_cast %131 : vector<1x1x20x128xf32> to vector<20x128xf32>
    %133 = vector.shape_cast %132 : vector<20x128xf32> to vector<1x20x128xf32>
    %134 = vector.broadcast %126 : vector<2x1x128xf32> to vector<2x20x128xf32>
    %135 = vector.broadcast %130 : vector<1x20x128xf32> to vector<2x20x128xf32>
    %136 = arith.mulf %134, %135 : vector<2x20x128xf32>
    %137 = arith.addf %117, %136 : vector<2x20x128xf32>
    %138 = vector.broadcast %127 : vector<2x1x128xf32> to vector<2x20x128xf32>
    %139 = vector.broadcast %133 : vector<1x20x128xf32> to vector<2x20x128xf32>
    %140 = arith.mulf %138, %139 : vector<2x20x128xf32>
    %141 = arith.subf %137, %140 : vector<2x20x128xf32>
    %142 = vector.broadcast %126 : vector<2x1x128xf32> to vector<2x20x128xf32>
    %143 = vector.broadcast %133 : vector<1x20x128xf32> to vector<2x20x128xf32>
    %144 = arith.mulf %142, %143 : vector<2x20x128xf32>
    %145 = arith.addf %125, %144 : vector<2x20x128xf32>
    %146 = vector.broadcast %127 : vector<2x1x128xf32> to vector<2x20x128xf32>
    %147 = vector.broadcast %130 : vector<1x20x128xf32> to vector<2x20x128xf32>
    %148 = arith.mulf %146, %147 : vector<2x20x128xf32>
    %149 = arith.addf %145, %148 : vector<2x20x128xf32>
    %150 = vector.extract_strided_slice %1 {offsets = [0, 6, 0], sizes = [2, 1, 128], strides = [1, 1, 1]} : vector<2x20x128xf32> to vector<2x1x128xf32>
    %151 = vector.extract_strided_slice %3 {offsets = [0, 6, 0], sizes = [2, 1, 128], strides = [1, 1, 1]} : vector<2x20x128xf32> to vector<2x1x128xf32>
    %c0_51 = arith.constant 0 : index
    %c6 = arith.constant 6 : index
    %c0_52 = arith.constant 0 : index
    %c0_53 = arith.constant 0 : index
    %152 = vector.load %arg3[%c0_51, %c6, %c0_52, %c0_53] : memref<1x20x20x128xf32, #tpu.memory_space<vmem>>, vector<1x1x20x128xf32>
    %153 = vector.shape_cast %152 : vector<1x1x20x128xf32> to vector<20x128xf32>
    %154 = vector.shape_cast %153 : vector<20x128xf32> to vector<1x20x128xf32>
    %c0_54 = arith.constant 0 : index
    %c6_55 = arith.constant 6 : index
    %c0_56 = arith.constant 0 : index
    %c0_57 = arith.constant 0 : index
    %155 = vector.load %arg4[%c0_54, %c6_55, %c0_56, %c0_57] : memref<1x20x20x128xf32, #tpu.memory_space<vmem>>, vector<1x1x20x128xf32>
    %156 = vector.shape_cast %155 : vector<1x1x20x128xf32> to vector<20x128xf32>
    %157 = vector.shape_cast %156 : vector<20x128xf32> to vector<1x20x128xf32>
    %158 = vector.broadcast %150 : vector<2x1x128xf32> to vector<2x20x128xf32>
    %159 = vector.broadcast %154 : vector<1x20x128xf32> to vector<2x20x128xf32>
    %160 = arith.mulf %158, %159 : vector<2x20x128xf32>
    %161 = arith.addf %141, %160 : vector<2x20x128xf32>
    %162 = vector.broadcast %151 : vector<2x1x128xf32> to vector<2x20x128xf32>
    %163 = vector.broadcast %157 : vector<1x20x128xf32> to vector<2x20x128xf32>
    %164 = arith.mulf %162, %163 : vector<2x20x128xf32>
    %165 = arith.subf %161, %164 : vector<2x20x128xf32>
    %166 = vector.broadcast %150 : vector<2x1x128xf32> to vector<2x20x128xf32>
    %167 = vector.broadcast %157 : vector<1x20x128xf32> to vector<2x20x128xf32>
    %168 = arith.mulf %166, %167 : vector<2x20x128xf32>
    %169 = arith.addf %149, %168 : vector<2x20x128xf32>
    %170 = vector.broadcast %151 : vector<2x1x128xf32> to vector<2x20x128xf32>
    %171 = vector.broadcast %154 : vector<1x20x128xf32> to vector<2x20x128xf32>
    %172 = arith.mulf %170, %171 : vector<2x20x128xf32>
    %173 = arith.addf %169, %172 : vector<2x20x128xf32>
    %174 = vector.extract_strided_slice %1 {offsets = [0, 7, 0], sizes = [2, 1, 128], strides = [1, 1, 1]} : vector<2x20x128xf32> to vector<2x1x128xf32>
    %175 = vector.extract_strided_slice %3 {offsets = [0, 7, 0], sizes = [2, 1, 128], strides = [1, 1, 1]} : vector<2x20x128xf32> to vector<2x1x128xf32>
    %c0_58 = arith.constant 0 : index
    %c7 = arith.constant 7 : index
    %c0_59 = arith.constant 0 : index
    %c0_60 = arith.constant 0 : index
    %176 = vector.load %arg3[%c0_58, %c7, %c0_59, %c0_60] : memref<1x20x20x128xf32, #tpu.memory_space<vmem>>, vector<1x1x20x128xf32>
    %177 = vector.shape_cast %176 : vector<1x1x20x128xf32> to vector<20x128xf32>
    %178 = vector.shape_cast %177 : vector<20x128xf32> to vector<1x20x128xf32>
    %c0_61 = arith.constant 0 : index
    %c7_62 = arith.constant 7 : index
    %c0_63 = arith.constant 0 : index
    %c0_64 = arith.constant 0 : index
    %179 = vector.load %arg4[%c0_61, %c7_62, %c0_63, %c0_64] : memref<1x20x20x128xf32, #tpu.memory_space<vmem>>, vector<1x1x20x128xf32>
    %180 = vector.shape_cast %179 : vector<1x1x20x128xf32> to vector<20x128xf32>
    %181 = vector.shape_cast %180 : vector<20x128xf32> to vector<1x20x128xf32>
    %182 = vector.broadcast %174 : vector<2x1x128xf32> to vector<2x20x128xf32>
    %183 = vector.broadcast %178 : vector<1x20x128xf32> to vector<2x20x128xf32>
    %184 = arith.mulf %182, %183 : vector<2x20x128xf32>
    %185 = arith.addf %165, %184 : vector<2x20x128xf32>
    %186 = vector.broadcast %175 : vector<2x1x128xf32> to vector<2x20x128xf32>
    %187 = vector.broadcast %181 : vector<1x20x128xf32> to vector<2x20x128xf32>
    %188 = arith.mulf %186, %187 : vector<2x20x128xf32>
    %189 = arith.subf %185, %188 : vector<2x20x128xf32>
    %190 = vector.broadcast %174 : vector<2x1x128xf32> to vector<2x20x128xf32>
    %191 = vector.broadcast %181 : vector<1x20x128xf32> to vector<2x20x128xf32>
    %192 = arith.mulf %190, %191 : vector<2x20x128xf32>
    %193 = arith.addf %173, %192 : vector<2x20x128xf32>
    %194 = vector.broadcast %175 : vector<2x1x128xf32> to vector<2x20x128xf32>
    %195 = vector.broadcast %178 : vector<1x20x128xf32> to vector<2x20x128xf32>
    %196 = arith.mulf %194, %195 : vector<2x20x128xf32>
    %197 = arith.addf %193, %196 : vector<2x20x128xf32>
    %198 = vector.extract_strided_slice %1 {offsets = [0, 8, 0], sizes = [2, 1, 128], strides = [1, 1, 1]} : vector<2x20x128xf32> to vector<2x1x128xf32>
    %199 = vector.extract_strided_slice %3 {offsets = [0, 8, 0], sizes = [2, 1, 128], strides = [1, 1, 1]} : vector<2x20x128xf32> to vector<2x1x128xf32>
    %c0_65 = arith.constant 0 : index
    %c8 = arith.constant 8 : index
    %c0_66 = arith.constant 0 : index
    %c0_67 = arith.constant 0 : index
    %200 = vector.load %arg3[%c0_65, %c8, %c0_66, %c0_67] : memref<1x20x20x128xf32, #tpu.memory_space<vmem>>, vector<1x1x20x128xf32>
    %201 = vector.shape_cast %200 : vector<1x1x20x128xf32> to vector<20x128xf32>
    %202 = vector.shape_cast %201 : vector<20x128xf32> to vector<1x20x128xf32>
    %c0_68 = arith.constant 0 : index
    %c8_69 = arith.constant 8 : index
    %c0_70 = arith.constant 0 : index
    %c0_71 = arith.constant 0 : index
    %203 = vector.load %arg4[%c0_68, %c8_69, %c0_70, %c0_71] : memref<1x20x20x128xf32, #tpu.memory_space<vmem>>, vector<1x1x20x128xf32>
    %204 = vector.shape_cast %203 : vector<1x1x20x128xf32> to vector<20x128xf32>
    %205 = vector.shape_cast %204 : vector<20x128xf32> to vector<1x20x128xf32>
    %206 = vector.broadcast %198 : vector<2x1x128xf32> to vector<2x20x128xf32>
    %207 = vector.broadcast %202 : vector<1x20x128xf32> to vector<2x20x128xf32>
    %208 = arith.mulf %206, %207 : vector<2x20x128xf32>
    %209 = arith.addf %189, %208 : vector<2x20x128xf32>
    %210 = vector.broadcast %199 : vector<2x1x128xf32> to vector<2x20x128xf32>
    %211 = vector.broadcast %205 : vector<1x20x128xf32> to vector<2x20x128xf32>
    %212 = arith.mulf %210, %211 : vector<2x20x128xf32>
    %213 = arith.subf %209, %212 : vector<2x20x128xf32>
    %214 = vector.broadcast %198 : vector<2x1x128xf32> to vector<2x20x128xf32>
    %215 = vector.broadcast %205 : vector<1x20x128xf32> to vector<2x20x128xf32>
    %216 = arith.mulf %214, %215 : vector<2x20x128xf32>
    %217 = arith.addf %197, %216 : vector<2x20x128xf32>
    %218 = vector.broadcast %199 : vector<2x1x128xf32> to vector<2x20x128xf32>
    %219 = vector.broadcast %202 : vector<1x20x128xf32> to vector<2x20x128xf32>
    %220 = arith.mulf %218, %219 : vector<2x20x128xf32>
    %221 = arith.addf %217, %220 : vector<2x20x128xf32>
    %222 = vector.extract_strided_slice %1 {offsets = [0, 9, 0], sizes = [2, 1, 128], strides = [1, 1, 1]} : vector<2x20x128xf32> to vector<2x1x128xf32>
    %223 = vector.extract_strided_slice %3 {offsets = [0, 9, 0], sizes = [2, 1, 128], strides = [1, 1, 1]} : vector<2x20x128xf32> to vector<2x1x128xf32>
    %c0_72 = arith.constant 0 : index
    %c9 = arith.constant 9 : index
    %c0_73 = arith.constant 0 : index
    %c0_74 = arith.constant 0 : index
    %224 = vector.load %arg3[%c0_72, %c9, %c0_73, %c0_74] : memref<1x20x20x128xf32, #tpu.memory_space<vmem>>, vector<1x1x20x128xf32>
    %225 = vector.shape_cast %224 : vector<1x1x20x128xf32> to vector<20x128xf32>
    %226 = vector.shape_cast %225 : vector<20x128xf32> to vector<1x20x128xf32>
    %c0_75 = arith.constant 0 : index
    %c9_76 = arith.constant 9 : index
    %c0_77 = arith.constant 0 : index
    %c0_78 = arith.constant 0 : index
    %227 = vector.load %arg4[%c0_75, %c9_76, %c0_77, %c0_78] : memref<1x20x20x128xf32, #tpu.memory_space<vmem>>, vector<1x1x20x128xf32>
    %228 = vector.shape_cast %227 : vector<1x1x20x128xf32> to vector<20x128xf32>
    %229 = vector.shape_cast %228 : vector<20x128xf32> to vector<1x20x128xf32>
    %230 = vector.broadcast %222 : vector<2x1x128xf32> to vector<2x20x128xf32>
    %231 = vector.broadcast %226 : vector<1x20x128xf32> to vector<2x20x128xf32>
    %232 = arith.mulf %230, %231 : vector<2x20x128xf32>
    %233 = arith.addf %213, %232 : vector<2x20x128xf32>
    %234 = vector.broadcast %223 : vector<2x1x128xf32> to vector<2x20x128xf32>
    %235 = vector.broadcast %229 : vector<1x20x128xf32> to vector<2x20x128xf32>
    %236 = arith.mulf %234, %235 : vector<2x20x128xf32>
    %237 = arith.subf %233, %236 : vector<2x20x128xf32>
    %238 = vector.broadcast %222 : vector<2x1x128xf32> to vector<2x20x128xf32>
    %239 = vector.broadcast %229 : vector<1x20x128xf32> to vector<2x20x128xf32>
    %240 = arith.mulf %238, %239 : vector<2x20x128xf32>
    %241 = arith.addf %221, %240 : vector<2x20x128xf32>
    %242 = vector.broadcast %223 : vector<2x1x128xf32> to vector<2x20x128xf32>
    %243 = vector.broadcast %226 : vector<1x20x128xf32> to vector<2x20x128xf32>
    %244 = arith.mulf %242, %243 : vector<2x20x128xf32>
    %245 = arith.addf %241, %244 : vector<2x20x128xf32>
    %246 = vector.extract_strided_slice %1 {offsets = [0, 10, 0], sizes = [2, 1, 128], strides = [1, 1, 1]} : vector<2x20x128xf32> to vector<2x1x128xf32>
    %247 = vector.extract_strided_slice %3 {offsets = [0, 10, 0], sizes = [2, 1, 128], strides = [1, 1, 1]} : vector<2x20x128xf32> to vector<2x1x128xf32>
    %c0_79 = arith.constant 0 : index
    %c10 = arith.constant 10 : index
    %c0_80 = arith.constant 0 : index
    %c0_81 = arith.constant 0 : index
    %248 = vector.load %arg3[%c0_79, %c10, %c0_80, %c0_81] : memref<1x20x20x128xf32, #tpu.memory_space<vmem>>, vector<1x1x20x128xf32>
    %249 = vector.shape_cast %248 : vector<1x1x20x128xf32> to vector<20x128xf32>
    %250 = vector.shape_cast %249 : vector<20x128xf32> to vector<1x20x128xf32>
    %c0_82 = arith.constant 0 : index
    %c10_83 = arith.constant 10 : index
    %c0_84 = arith.constant 0 : index
    %c0_85 = arith.constant 0 : index
    %251 = vector.load %arg4[%c0_82, %c10_83, %c0_84, %c0_85] : memref<1x20x20x128xf32, #tpu.memory_space<vmem>>, vector<1x1x20x128xf32>
    %252 = vector.shape_cast %251 : vector<1x1x20x128xf32> to vector<20x128xf32>
    %253 = vector.shape_cast %252 : vector<20x128xf32> to vector<1x20x128xf32>
    %254 = vector.broadcast %246 : vector<2x1x128xf32> to vector<2x20x128xf32>
    %255 = vector.broadcast %250 : vector<1x20x128xf32> to vector<2x20x128xf32>
    %256 = arith.mulf %254, %255 : vector<2x20x128xf32>
    %257 = arith.addf %237, %256 : vector<2x20x128xf32>
    %258 = vector.broadcast %247 : vector<2x1x128xf32> to vector<2x20x128xf32>
    %259 = vector.broadcast %253 : vector<1x20x128xf32> to vector<2x20x128xf32>
    %260 = arith.mulf %258, %259 : vector<2x20x128xf32>
    %261 = arith.subf %257, %260 : vector<2x20x128xf32>
    %262 = vector.broadcast %246 : vector<2x1x128xf32> to vector<2x20x128xf32>
    %263 = vector.broadcast %253 : vector<1x20x128xf32> to vector<2x20x128xf32>
    %264 = arith.mulf %262, %263 : vector<2x20x128xf32>
    %265 = arith.addf %245, %264 : vector<2x20x128xf32>
    %266 = vector.broadcast %247 : vector<2x1x128xf32> to vector<2x20x128xf32>
    %267 = vector.broadcast %250 : vector<1x20x128xf32> to vector<2x20x128xf32>
    %268 = arith.mulf %266, %267 : vector<2x20x128xf32>
    %269 = arith.addf %265, %268 : vector<2x20x128xf32>
    %270 = vector.extract_strided_slice %1 {offsets = [0, 11, 0], sizes = [2, 1, 128], strides = [1, 1, 1]} : vector<2x20x128xf32> to vector<2x1x128xf32>
    %271 = vector.extract_strided_slice %3 {offsets = [0, 11, 0], sizes = [2, 1, 128], strides = [1, 1, 1]} : vector<2x20x128xf32> to vector<2x1x128xf32>
    %c0_86 = arith.constant 0 : index
    %c11 = arith.constant 11 : index
    %c0_87 = arith.constant 0 : index
    %c0_88 = arith.constant 0 : index
    %272 = vector.load %arg3[%c0_86, %c11, %c0_87, %c0_88] : memref<1x20x20x128xf32, #tpu.memory_space<vmem>>, vector<1x1x20x128xf32>
    %273 = vector.shape_cast %272 : vector<1x1x20x128xf32> to vector<20x128xf32>
    %274 = vector.shape_cast %273 : vector<20x128xf32> to vector<1x20x128xf32>
    %c0_89 = arith.constant 0 : index
    %c11_90 = arith.constant 11 : index
    %c0_91 = arith.constant 0 : index
    %c0_92 = arith.constant 0 : index
    %275 = vector.load %arg4[%c0_89, %c11_90, %c0_91, %c0_92] : memref<1x20x20x128xf32, #tpu.memory_space<vmem>>, vector<1x1x20x128xf32>
    %276 = vector.shape_cast %275 : vector<1x1x20x128xf32> to vector<20x128xf32>
    %277 = vector.shape_cast %276 : vector<20x128xf32> to vector<1x20x128xf32>
    %278 = vector.broadcast %270 : vector<2x1x128xf32> to vector<2x20x128xf32>
    %279 = vector.broadcast %274 : vector<1x20x128xf32> to vector<2x20x128xf32>
    %280 = arith.mulf %278, %279 : vector<2x20x128xf32>
    %281 = arith.addf %261, %280 : vector<2x20x128xf32>
    %282 = vector.broadcast %271 : vector<2x1x128xf32> to vector<2x20x128xf32>
    %283 = vector.broadcast %277 : vector<1x20x128xf32> to vector<2x20x128xf32>
    %284 = arith.mulf %282, %283 : vector<2x20x128xf32>
    %285 = arith.subf %281, %284 : vector<2x20x128xf32>
    %286 = vector.broadcast %270 : vector<2x1x128xf32> to vector<2x20x128xf32>
    %287 = vector.broadcast %277 : vector<1x20x128xf32> to vector<2x20x128xf32>
    %288 = arith.mulf %286, %287 : vector<2x20x128xf32>
    %289 = arith.addf %269, %288 : vector<2x20x128xf32>
    %290 = vector.broadcast %271 : vector<2x1x128xf32> to vector<2x20x128xf32>
    %291 = vector.broadcast %274 : vector<1x20x128xf32> to vector<2x20x128xf32>
    %292 = arith.mulf %290, %291 : vector<2x20x128xf32>
    %293 = arith.addf %289, %292 : vector<2x20x128xf32>
    %294 = vector.extract_strided_slice %1 {offsets = [0, 12, 0], sizes = [2, 1, 128], strides = [1, 1, 1]} : vector<2x20x128xf32> to vector<2x1x128xf32>
    %295 = vector.extract_strided_slice %3 {offsets = [0, 12, 0], sizes = [2, 1, 128], strides = [1, 1, 1]} : vector<2x20x128xf32> to vector<2x1x128xf32>
    %c0_93 = arith.constant 0 : index
    %c12 = arith.constant 12 : index
    %c0_94 = arith.constant 0 : index
    %c0_95 = arith.constant 0 : index
    %296 = vector.load %arg3[%c0_93, %c12, %c0_94, %c0_95] : memref<1x20x20x128xf32, #tpu.memory_space<vmem>>, vector<1x1x20x128xf32>
    %297 = vector.shape_cast %296 : vector<1x1x20x128xf32> to vector<20x128xf32>
    %298 = vector.shape_cast %297 : vector<20x128xf32> to vector<1x20x128xf32>
    %c0_96 = arith.constant 0 : index
    %c12_97 = arith.constant 12 : index
    %c0_98 = arith.constant 0 : index
    %c0_99 = arith.constant 0 : index
    %299 = vector.load %arg4[%c0_96, %c12_97, %c0_98, %c0_99] : memref<1x20x20x128xf32, #tpu.memory_space<vmem>>, vector<1x1x20x128xf32>
    %300 = vector.shape_cast %299 : vector<1x1x20x128xf32> to vector<20x128xf32>
    %301 = vector.shape_cast %300 : vector<20x128xf32> to vector<1x20x128xf32>
    %302 = vector.broadcast %294 : vector<2x1x128xf32> to vector<2x20x128xf32>
    %303 = vector.broadcast %298 : vector<1x20x128xf32> to vector<2x20x128xf32>
    %304 = arith.mulf %302, %303 : vector<2x20x128xf32>
    %305 = arith.addf %285, %304 : vector<2x20x128xf32>
    %306 = vector.broadcast %295 : vector<2x1x128xf32> to vector<2x20x128xf32>
    %307 = vector.broadcast %301 : vector<1x20x128xf32> to vector<2x20x128xf32>
    %308 = arith.mulf %306, %307 : vector<2x20x128xf32>
    %309 = arith.subf %305, %308 : vector<2x20x128xf32>
    %310 = vector.broadcast %294 : vector<2x1x128xf32> to vector<2x20x128xf32>
    %311 = vector.broadcast %301 : vector<1x20x128xf32> to vector<2x20x128xf32>
    %312 = arith.mulf %310, %311 : vector<2x20x128xf32>
    %313 = arith.addf %293, %312 : vector<2x20x128xf32>
    %314 = vector.broadcast %295 : vector<2x1x128xf32> to vector<2x20x128xf32>
    %315 = vector.broadcast %298 : vector<1x20x128xf32> to vector<2x20x128xf32>
    %316 = arith.mulf %314, %315 : vector<2x20x128xf32>
    %317 = arith.addf %313, %316 : vector<2x20x128xf32>
    %318 = vector.extract_strided_slice %1 {offsets = [0, 13, 0], sizes = [2, 1, 128], strides = [1, 1, 1]} : vector<2x20x128xf32> to vector<2x1x128xf32>
    %319 = vector.extract_strided_slice %3 {offsets = [0, 13, 0], sizes = [2, 1, 128], strides = [1, 1, 1]} : vector<2x20x128xf32> to vector<2x1x128xf32>
    %c0_100 = arith.constant 0 : index
    %c13 = arith.constant 13 : index
    %c0_101 = arith.constant 0 : index
    %c0_102 = arith.constant 0 : index
    %320 = vector.load %arg3[%c0_100, %c13, %c0_101, %c0_102] : memref<1x20x20x128xf32, #tpu.memory_space<vmem>>, vector<1x1x20x128xf32>
    %321 = vector.shape_cast %320 : vector<1x1x20x128xf32> to vector<20x128xf32>
    %322 = vector.shape_cast %321 : vector<20x128xf32> to vector<1x20x128xf32>
    %c0_103 = arith.constant 0 : index
    %c13_104 = arith.constant 13 : index
    %c0_105 = arith.constant 0 : index
    %c0_106 = arith.constant 0 : index
    %323 = vector.load %arg4[%c0_103, %c13_104, %c0_105, %c0_106] : memref<1x20x20x128xf32, #tpu.memory_space<vmem>>, vector<1x1x20x128xf32>
    %324 = vector.shape_cast %323 : vector<1x1x20x128xf32> to vector<20x128xf32>
    %325 = vector.shape_cast %324 : vector<20x128xf32> to vector<1x20x128xf32>
    %326 = vector.broadcast %318 : vector<2x1x128xf32> to vector<2x20x128xf32>
    %327 = vector.broadcast %322 : vector<1x20x128xf32> to vector<2x20x128xf32>
    %328 = arith.mulf %326, %327 : vector<2x20x128xf32>
    %329 = arith.addf %309, %328 : vector<2x20x128xf32>
    %330 = vector.broadcast %319 : vector<2x1x128xf32> to vector<2x20x128xf32>
    %331 = vector.broadcast %325 : vector<1x20x128xf32> to vector<2x20x128xf32>
    %332 = arith.mulf %330, %331 : vector<2x20x128xf32>
    %333 = arith.subf %329, %332 : vector<2x20x128xf32>
    %334 = vector.broadcast %318 : vector<2x1x128xf32> to vector<2x20x128xf32>
    %335 = vector.broadcast %325 : vector<1x20x128xf32> to vector<2x20x128xf32>
    %336 = arith.mulf %334, %335 : vector<2x20x128xf32>
    %337 = arith.addf %317, %336 : vector<2x20x128xf32>
    %338 = vector.broadcast %319 : vector<2x1x128xf32> to vector<2x20x128xf32>
    %339 = vector.broadcast %322 : vector<1x20x128xf32> to vector<2x20x128xf32>
    %340 = arith.mulf %338, %339 : vector<2x20x128xf32>
    %341 = arith.addf %337, %340 : vector<2x20x128xf32>
    %342 = vector.extract_strided_slice %1 {offsets = [0, 14, 0], sizes = [2, 1, 128], strides = [1, 1, 1]} : vector<2x20x128xf32> to vector<2x1x128xf32>
    %343 = vector.extract_strided_slice %3 {offsets = [0, 14, 0], sizes = [2, 1, 128], strides = [1, 1, 1]} : vector<2x20x128xf32> to vector<2x1x128xf32>
    %c0_107 = arith.constant 0 : index
    %c14 = arith.constant 14 : index
    %c0_108 = arith.constant 0 : index
    %c0_109 = arith.constant 0 : index
    %344 = vector.load %arg3[%c0_107, %c14, %c0_108, %c0_109] : memref<1x20x20x128xf32, #tpu.memory_space<vmem>>, vector<1x1x20x128xf32>
    %345 = vector.shape_cast %344 : vector<1x1x20x128xf32> to vector<20x128xf32>
    %346 = vector.shape_cast %345 : vector<20x128xf32> to vector<1x20x128xf32>
    %c0_110 = arith.constant 0 : index
    %c14_111 = arith.constant 14 : index
    %c0_112 = arith.constant 0 : index
    %c0_113 = arith.constant 0 : index
    %347 = vector.load %arg4[%c0_110, %c14_111, %c0_112, %c0_113] : memref<1x20x20x128xf32, #tpu.memory_space<vmem>>, vector<1x1x20x128xf32>
    %348 = vector.shape_cast %347 : vector<1x1x20x128xf32> to vector<20x128xf32>
    %349 = vector.shape_cast %348 : vector<20x128xf32> to vector<1x20x128xf32>
    %350 = vector.broadcast %342 : vector<2x1x128xf32> to vector<2x20x128xf32>
    %351 = vector.broadcast %346 : vector<1x20x128xf32> to vector<2x20x128xf32>
    %352 = arith.mulf %350, %351 : vector<2x20x128xf32>
    %353 = arith.addf %333, %352 : vector<2x20x128xf32>
    %354 = vector.broadcast %343 : vector<2x1x128xf32> to vector<2x20x128xf32>
    %355 = vector.broadcast %349 : vector<1x20x128xf32> to vector<2x20x128xf32>
    %356 = arith.mulf %354, %355 : vector<2x20x128xf32>
    %357 = arith.subf %353, %356 : vector<2x20x128xf32>
    %358 = vector.broadcast %342 : vector<2x1x128xf32> to vector<2x20x128xf32>
    %359 = vector.broadcast %349 : vector<1x20x128xf32> to vector<2x20x128xf32>
    %360 = arith.mulf %358, %359 : vector<2x20x128xf32>
    %361 = arith.addf %341, %360 : vector<2x20x128xf32>
    %362 = vector.broadcast %343 : vector<2x1x128xf32> to vector<2x20x128xf32>
    %363 = vector.broadcast %346 : vector<1x20x128xf32> to vector<2x20x128xf32>
    %364 = arith.mulf %362, %363 : vector<2x20x128xf32>
    %365 = arith.addf %361, %364 : vector<2x20x128xf32>
    %366 = vector.extract_strided_slice %1 {offsets = [0, 15, 0], sizes = [2, 1, 128], strides = [1, 1, 1]} : vector<2x20x128xf32> to vector<2x1x128xf32>
    %367 = vector.extract_strided_slice %3 {offsets = [0, 15, 0], sizes = [2, 1, 128], strides = [1, 1, 1]} : vector<2x20x128xf32> to vector<2x1x128xf32>
    %c0_114 = arith.constant 0 : index
    %c15 = arith.constant 15 : index
    %c0_115 = arith.constant 0 : index
    %c0_116 = arith.constant 0 : index
    %368 = vector.load %arg3[%c0_114, %c15, %c0_115, %c0_116] : memref<1x20x20x128xf32, #tpu.memory_space<vmem>>, vector<1x1x20x128xf32>
    %369 = vector.shape_cast %368 : vector<1x1x20x128xf32> to vector<20x128xf32>
    %370 = vector.shape_cast %369 : vector<20x128xf32> to vector<1x20x128xf32>
    %c0_117 = arith.constant 0 : index
    %c15_118 = arith.constant 15 : index
    %c0_119 = arith.constant 0 : index
    %c0_120 = arith.constant 0 : index
    %371 = vector.load %arg4[%c0_117, %c15_118, %c0_119, %c0_120] : memref<1x20x20x128xf32, #tpu.memory_space<vmem>>, vector<1x1x20x128xf32>
    %372 = vector.shape_cast %371 : vector<1x1x20x128xf32> to vector<20x128xf32>
    %373 = vector.shape_cast %372 : vector<20x128xf32> to vector<1x20x128xf32>
    %374 = vector.broadcast %366 : vector<2x1x128xf32> to vector<2x20x128xf32>
    %375 = vector.broadcast %370 : vector<1x20x128xf32> to vector<2x20x128xf32>
    %376 = arith.mulf %374, %375 : vector<2x20x128xf32>
    %377 = arith.addf %357, %376 : vector<2x20x128xf32>
    %378 = vector.broadcast %367 : vector<2x1x128xf32> to vector<2x20x128xf32>
    %379 = vector.broadcast %373 : vector<1x20x128xf32> to vector<2x20x128xf32>
    %380 = arith.mulf %378, %379 : vector<2x20x128xf32>
    %381 = arith.subf %377, %380 : vector<2x20x128xf32>
    %382 = vector.broadcast %366 : vector<2x1x128xf32> to vector<2x20x128xf32>
    %383 = vector.broadcast %373 : vector<1x20x128xf32> to vector<2x20x128xf32>
    %384 = arith.mulf %382, %383 : vector<2x20x128xf32>
    %385 = arith.addf %365, %384 : vector<2x20x128xf32>
    %386 = vector.broadcast %367 : vector<2x1x128xf32> to vector<2x20x128xf32>
    %387 = vector.broadcast %370 : vector<1x20x128xf32> to vector<2x20x128xf32>
    %388 = arith.mulf %386, %387 : vector<2x20x128xf32>
    %389 = arith.addf %385, %388 : vector<2x20x128xf32>
    %390 = vector.extract_strided_slice %1 {offsets = [0, 16, 0], sizes = [2, 1, 128], strides = [1, 1, 1]} : vector<2x20x128xf32> to vector<2x1x128xf32>
    %391 = vector.extract_strided_slice %3 {offsets = [0, 16, 0], sizes = [2, 1, 128], strides = [1, 1, 1]} : vector<2x20x128xf32> to vector<2x1x128xf32>
    %c0_121 = arith.constant 0 : index
    %c16 = arith.constant 16 : index
    %c0_122 = arith.constant 0 : index
    %c0_123 = arith.constant 0 : index
    %392 = vector.load %arg3[%c0_121, %c16, %c0_122, %c0_123] : memref<1x20x20x128xf32, #tpu.memory_space<vmem>>, vector<1x1x20x128xf32>
    %393 = vector.shape_cast %392 : vector<1x1x20x128xf32> to vector<20x128xf32>
    %394 = vector.shape_cast %393 : vector<20x128xf32> to vector<1x20x128xf32>
    %c0_124 = arith.constant 0 : index
    %c16_125 = arith.constant 16 : index
    %c0_126 = arith.constant 0 : index
    %c0_127 = arith.constant 0 : index
    %395 = vector.load %arg4[%c0_124, %c16_125, %c0_126, %c0_127] : memref<1x20x20x128xf32, #tpu.memory_space<vmem>>, vector<1x1x20x128xf32>
    %396 = vector.shape_cast %395 : vector<1x1x20x128xf32> to vector<20x128xf32>
    %397 = vector.shape_cast %396 : vector<20x128xf32> to vector<1x20x128xf32>
    %398 = vector.broadcast %390 : vector<2x1x128xf32> to vector<2x20x128xf32>
    %399 = vector.broadcast %394 : vector<1x20x128xf32> to vector<2x20x128xf32>
    %400 = arith.mulf %398, %399 : vector<2x20x128xf32>
    %401 = arith.addf %381, %400 : vector<2x20x128xf32>
    %402 = vector.broadcast %391 : vector<2x1x128xf32> to vector<2x20x128xf32>
    %403 = vector.broadcast %397 : vector<1x20x128xf32> to vector<2x20x128xf32>
    %404 = arith.mulf %402, %403 : vector<2x20x128xf32>
    %405 = arith.subf %401, %404 : vector<2x20x128xf32>
    %406 = vector.broadcast %390 : vector<2x1x128xf32> to vector<2x20x128xf32>
    %407 = vector.broadcast %397 : vector<1x20x128xf32> to vector<2x20x128xf32>
    %408 = arith.mulf %406, %407 : vector<2x20x128xf32>
    %409 = arith.addf %389, %408 : vector<2x20x128xf32>
    %410 = vector.broadcast %391 : vector<2x1x128xf32> to vector<2x20x128xf32>
    %411 = vector.broadcast %394 : vector<1x20x128xf32> to vector<2x20x128xf32>
    %412 = arith.mulf %410, %411 : vector<2x20x128xf32>
    %413 = arith.addf %409, %412 : vector<2x20x128xf32>
    %414 = vector.extract_strided_slice %1 {offsets = [0, 17, 0], sizes = [2, 1, 128], strides = [1, 1, 1]} : vector<2x20x128xf32> to vector<2x1x128xf32>
    %415 = vector.extract_strided_slice %3 {offsets = [0, 17, 0], sizes = [2, 1, 128], strides = [1, 1, 1]} : vector<2x20x128xf32> to vector<2x1x128xf32>
    %c0_128 = arith.constant 0 : index
    %c17 = arith.constant 17 : index
    %c0_129 = arith.constant 0 : index
    %c0_130 = arith.constant 0 : index
    %416 = vector.load %arg3[%c0_128, %c17, %c0_129, %c0_130] : memref<1x20x20x128xf32, #tpu.memory_space<vmem>>, vector<1x1x20x128xf32>
    %417 = vector.shape_cast %416 : vector<1x1x20x128xf32> to vector<20x128xf32>
    %418 = vector.shape_cast %417 : vector<20x128xf32> to vector<1x20x128xf32>
    %c0_131 = arith.constant 0 : index
    %c17_132 = arith.constant 17 : index
    %c0_133 = arith.constant 0 : index
    %c0_134 = arith.constant 0 : index
    %419 = vector.load %arg4[%c0_131, %c17_132, %c0_133, %c0_134] : memref<1x20x20x128xf32, #tpu.memory_space<vmem>>, vector<1x1x20x128xf32>
    %420 = vector.shape_cast %419 : vector<1x1x20x128xf32> to vector<20x128xf32>
    %421 = vector.shape_cast %420 : vector<20x128xf32> to vector<1x20x128xf32>
    %422 = vector.broadcast %414 : vector<2x1x128xf32> to vector<2x20x128xf32>
    %423 = vector.broadcast %418 : vector<1x20x128xf32> to vector<2x20x128xf32>
    %424 = arith.mulf %422, %423 : vector<2x20x128xf32>
    %425 = arith.addf %405, %424 : vector<2x20x128xf32>
    %426 = vector.broadcast %415 : vector<2x1x128xf32> to vector<2x20x128xf32>
    %427 = vector.broadcast %421 : vector<1x20x128xf32> to vector<2x20x128xf32>
    %428 = arith.mulf %426, %427 : vector<2x20x128xf32>
    %429 = arith.subf %425, %428 : vector<2x20x128xf32>
    %430 = vector.broadcast %414 : vector<2x1x128xf32> to vector<2x20x128xf32>
    %431 = vector.broadcast %421 : vector<1x20x128xf32> to vector<2x20x128xf32>
    %432 = arith.mulf %430, %431 : vector<2x20x128xf32>
    %433 = arith.addf %413, %432 : vector<2x20x128xf32>
    %434 = vector.broadcast %415 : vector<2x1x128xf32> to vector<2x20x128xf32>
    %435 = vector.broadcast %418 : vector<1x20x128xf32> to vector<2x20x128xf32>
    %436 = arith.mulf %434, %435 : vector<2x20x128xf32>
    %437 = arith.addf %433, %436 : vector<2x20x128xf32>
    %438 = vector.extract_strided_slice %1 {offsets = [0, 18, 0], sizes = [2, 1, 128], strides = [1, 1, 1]} : vector<2x20x128xf32> to vector<2x1x128xf32>
    %439 = vector.extract_strided_slice %3 {offsets = [0, 18, 0], sizes = [2, 1, 128], strides = [1, 1, 1]} : vector<2x20x128xf32> to vector<2x1x128xf32>
    %c0_135 = arith.constant 0 : index
    %c18 = arith.constant 18 : index
    %c0_136 = arith.constant 0 : index
    %c0_137 = arith.constant 0 : index
    %440 = vector.load %arg3[%c0_135, %c18, %c0_136, %c0_137] : memref<1x20x20x128xf32, #tpu.memory_space<vmem>>, vector<1x1x20x128xf32>
    %441 = vector.shape_cast %440 : vector<1x1x20x128xf32> to vector<20x128xf32>
    %442 = vector.shape_cast %441 : vector<20x128xf32> to vector<1x20x128xf32>
    %c0_138 = arith.constant 0 : index
    %c18_139 = arith.constant 18 : index
    %c0_140 = arith.constant 0 : index
    %c0_141 = arith.constant 0 : index
    %443 = vector.load %arg4[%c0_138, %c18_139, %c0_140, %c0_141] : memref<1x20x20x128xf32, #tpu.memory_space<vmem>>, vector<1x1x20x128xf32>
    %444 = vector.shape_cast %443 : vector<1x1x20x128xf32> to vector<20x128xf32>
    %445 = vector.shape_cast %444 : vector<20x128xf32> to vector<1x20x128xf32>
    %446 = vector.broadcast %438 : vector<2x1x128xf32> to vector<2x20x128xf32>
    %447 = vector.broadcast %442 : vector<1x20x128xf32> to vector<2x20x128xf32>
    %448 = arith.mulf %446, %447 : vector<2x20x128xf32>
    %449 = arith.addf %429, %448 : vector<2x20x128xf32>
    %450 = vector.broadcast %439 : vector<2x1x128xf32> to vector<2x20x128xf32>
    %451 = vector.broadcast %445 : vector<1x20x128xf32> to vector<2x20x128xf32>
    %452 = arith.mulf %450, %451 : vector<2x20x128xf32>
    %453 = arith.subf %449, %452 : vector<2x20x128xf32>
    %454 = vector.broadcast %438 : vector<2x1x128xf32> to vector<2x20x128xf32>
    %455 = vector.broadcast %445 : vector<1x20x128xf32> to vector<2x20x128xf32>
    %456 = arith.mulf %454, %455 : vector<2x20x128xf32>
    %457 = arith.addf %437, %456 : vector<2x20x128xf32>
    %458 = vector.broadcast %439 : vector<2x1x128xf32> to vector<2x20x128xf32>
    %459 = vector.broadcast %442 : vector<1x20x128xf32> to vector<2x20x128xf32>
    %460 = arith.mulf %458, %459 : vector<2x20x128xf32>
    %461 = arith.addf %457, %460 : vector<2x20x128xf32>
    %462 = vector.extract_strided_slice %1 {offsets = [0, 19, 0], sizes = [2, 1, 128], strides = [1, 1, 1]} : vector<2x20x128xf32> to vector<2x1x128xf32>
    %463 = vector.extract_strided_slice %3 {offsets = [0, 19, 0], sizes = [2, 1, 128], strides = [1, 1, 1]} : vector<2x20x128xf32> to vector<2x1x128xf32>
    %c0_142 = arith.constant 0 : index
    %c19 = arith.constant 19 : index
    %c0_143 = arith.constant 0 : index
    %c0_144 = arith.constant 0 : index
    %464 = vector.load %arg3[%c0_142, %c19, %c0_143, %c0_144] : memref<1x20x20x128xf32, #tpu.memory_space<vmem>>, vector<1x1x20x128xf32>
    %465 = vector.shape_cast %464 : vector<1x1x20x128xf32> to vector<20x128xf32>
    %466 = vector.shape_cast %465 : vector<20x128xf32> to vector<1x20x128xf32>
    %c0_145 = arith.constant 0 : index
    %c19_146 = arith.constant 19 : index
    %c0_147 = arith.constant 0 : index
    %c0_148 = arith.constant 0 : index
    %467 = vector.load %arg4[%c0_145, %c19_146, %c0_147, %c0_148] : memref<1x20x20x128xf32, #tpu.memory_space<vmem>>, vector<1x1x20x128xf32>
    %468 = vector.shape_cast %467 : vector<1x1x20x128xf32> to vector<20x128xf32>
    %469 = vector.shape_cast %468 : vector<20x128xf32> to vector<1x20x128xf32>
    %470 = vector.broadcast %462 : vector<2x1x128xf32> to vector<2x20x128xf32>
    %471 = vector.broadcast %466 : vector<1x20x128xf32> to vector<2x20x128xf32>
    %472 = arith.mulf %470, %471 : vector<2x20x128xf32>
    %473 = arith.addf %453, %472 : vector<2x20x128xf32>
    %474 = vector.broadcast %463 : vector<2x1x128xf32> to vector<2x20x128xf32>
    %475 = vector.broadcast %469 : vector<1x20x128xf32> to vector<2x20x128xf32>
    %476 = arith.mulf %474, %475 : vector<2x20x128xf32>
    %477 = arith.subf %473, %476 : vector<2x20x128xf32>
    %478 = vector.broadcast %462 : vector<2x1x128xf32> to vector<2x20x128xf32>
    %479 = vector.broadcast %469 : vector<1x20x128xf32> to vector<2x20x128xf32>
    %480 = arith.mulf %478, %479 : vector<2x20x128xf32>
    %481 = arith.addf %461, %480 : vector<2x20x128xf32>
    %482 = vector.broadcast %463 : vector<2x1x128xf32> to vector<2x20x128xf32>
    %483 = vector.broadcast %466 : vector<1x20x128xf32> to vector<2x20x128xf32>
    %484 = arith.mulf %482, %483 : vector<2x20x128xf32>
    %485 = arith.addf %481, %484 : vector<2x20x128xf32>
    %c0_149 = arith.constant 0 : index
    %c0_150 = arith.constant 0 : index
    %c0_151 = arith.constant 0 : index
    %c0_152 = arith.constant 0 : index
    %486 = vector.load %arg5[%c0_149, %c0_150, %c0_151, %c0_152] : memref<1x2x20x128xf32, #tpu.memory_space<vmem>>, vector<1x2x20x128xf32>
    %487 = vector.shape_cast %486 : vector<1x2x20x128xf32> to vector<2x20x128xf32>
    %488 = vector.shape_cast %477 : vector<2x20x128xf32> to vector<1x2x20x128xf32>
    tpu.vector_store %arg5[%c0_149, %c0_150, %c0_151, %c0_152], %488 {strides = array<i32>} : memref<1x2x20x128xf32, #tpu.memory_space<vmem>>, vector<1x2x20x128xf32>,
    %c0_153 = arith.constant 0 : index
    %c0_154 = arith.constant 0 : index
    %c0_155 = arith.constant 0 : index
    %c0_156 = arith.constant 0 : index
    %489 = vector.load %arg6[%c0_153, %c0_154, %c0_155, %c0_156] : memref<1x2x20x128xf32, #tpu.memory_space<vmem>>, vector<1x2x20x128xf32>
    %490 = vector.shape_cast %489 : vector<1x2x20x128xf32> to vector<2x20x128xf32>
    %491 = vector.shape_cast %485 : vector<2x20x128xf32> to vector<1x2x20x128xf32>
    tpu.vector_store %arg6[%c0_153, %c0_154, %c0_155, %c0_156], %491 {strides = array<i32>} : memref<1x2x20x128xf32, #tpu.memory_space<vmem>>, vector<1x2x20x128xf32>,
    return
  }
  func.func @transform_0(%arg0: i32) -> (i32, i32, i32, i32) {
    %c0_i32 = arith.constant 0 : i32
    %c0_i32_0 = arith.constant 0 : i32
    %c0_i32_1 = arith.constant 0 : i32
    %c0_i32_2 = arith.constant 0 : i32
    return %arg0, %c0_i32, %c0_i32_0, %c0_i32_1 : i32, i32, i32, i32
  }
  func.func @transform_1(%arg0: i32) -> (i32, i32, i32, i32) {
    %c0_i32 = arith.constant 0 : i32
    %c0_i32_0 = arith.constant 0 : i32
    %c0_i32_1 = arith.constant 0 : i32
    %c0_i32_2 = arith.constant 0 : i32
    return %arg0, %c0_i32, %c0_i32_0, %c0_i32_1 : i32, i32, i32, i32
  }
  func.func @transform_2(%arg0: i32) -> (i32, i32, i32, i32) {
    %c0_i32 = arith.constant 0 : i32
    %c0_i32_0 = arith.constant 0 : i32
    %c0_i32_1 = arith.constant 0 : i32
    %c0_i32_2 = arith.constant 0 : i32
    return %arg0, %c0_i32, %c0_i32_0, %c0_i32_1 : i32, i32, i32, i32
  }
  func.func @transform_3(%arg0: i32) -> (i32, i32, i32, i32) {
    %c0_i32 = arith.constant 0 : i32
    %c0_i32_0 = arith.constant 0 : i32
    %c0_i32_1 = arith.constant 0 : i32
    %c0_i32_2 = arith.constant 0 : i32
    return %arg0, %c0_i32, %c0_i32_0, %c0_i32_1 : i32, i32, i32, i32
  }
  func.func @transform_4(%arg0: i32) -> (i32, i32, i32, i32) {
    %c0_i32 = arith.constant 0 : i32
    %c0_i32_0 = arith.constant 0 : i32
    %c0_i32_1 = arith.constant 0 : i32
    %c0_i32_2 = arith.constant 0 : i32
    return %arg0, %c0_i32, %c0_i32_0, %c0_i32_1 : i32, i32, i32, i32
  }
  func.func @transform_5(%arg0: i32) -> (i32, i32, i32, i32) {
    %c0_i32 = arith.constant 0 : i32
    %c0_i32_0 = arith.constant 0 : i32
    %c0_i32_1 = arith.constant 0 : i32
    %c0_i32_2 = arith.constant 0 : i32
    return %arg0, %c0_i32, %c0_i32_0, %c0_i32_1 : i32, i32, i32, i32
  }
}

module attributes {stable_mosaic.version = 11 : i64} {
  func.func @_conv_res_stats_kernel(%arg0: i32, %arg1: memref<512x20xf32, #tpu.memory_space<vmem>>, %arg2: memref<20x20xf32, #tpu.memory_space<vmem>>, %arg3: memref<1x20xf32, #tpu.memory_space<vmem>>, %arg4: memref<512x20xf32, #tpu.memory_space<vmem>>, %arg5: memref<512x20xf32, #tpu.memory_space<vmem>>, %arg6: memref<1x20xf32, #tpu.memory_space<vmem>>, %arg7: memref<1x20xf32, #tpu.memory_space<vmem>>) attributes {dimension_semantics = [#tpu.dimension_semantics<arbitrary>], iteration_bounds = array<i64: 4>, scalar_prefetch = 0 : i64, scratch_operands = 0 : i64, tpu.core_type = #tpu.core_type<tc>, window_params = [{transform_indices = @transform_0, window_bounds = array<i64: 512, 20>}, {pipeline_mode = #tpu.pipeline_mode<synchronous>, transform_indices = @transform_1, window_bounds = array<i64: 20, 20>}, {pipeline_mode = #tpu.pipeline_mode<synchronous>, transform_indices = @transform_2, window_bounds = array<i64: 1, 20>}, {transform_indices = @transform_3, window_bounds = array<i64: 512, 20>}, {transform_indices = @transform_4, window_bounds = array<i64: 512, 20>}, {pipeline_mode = #tpu.pipeline_mode<synchronous>, transform_indices = @transform_5, window_bounds = array<i64: 1, 20>}, {pipeline_mode = #tpu.pipeline_mode<synchronous>, transform_indices = @transform_6, window_bounds = array<i64: 1, 20>}]} {
    %c0 = arith.constant 0 : index
    %c0_0 = arith.constant 0 : index
    %0 = vector.load %arg1[%c0, %c0_0] : memref<512x20xf32, #tpu.memory_space<vmem>>, vector<512x20xf32>
    %c0_1 = arith.constant 0 : index
    %c0_2 = arith.constant 0 : index
    %1 = vector.load %arg2[%c0_1, %c0_2] : memref<20x20xf32, #tpu.memory_space<vmem>>, vector<20x20xf32>
    %cst = arith.constant dense<0.000000e+00> : vector<512x20xf32>
    %2 = tpu.matmul %0, %1, %cst {dimension_numbers = #tpu.dot_dimension_numbers<[1], [0], [0], [1], [0, 0, 1, 1], [], []>} : vector<512x20xf32>, vector<20x20xf32>, vector<512x20xf32> -> vector<512x20xf32>
    %c0_3 = arith.constant 0 : index
    %c0_4 = arith.constant 0 : index
    %3 = vector.load %arg3[%c0_3, %c0_4] : memref<1x20xf32, #tpu.memory_space<vmem>>, vector<1x20xf32>
    %4 = vector.broadcast %3 : vector<1x20xf32> to vector<512x20xf32>
    %5 = arith.addf %2, %4 : vector<512x20xf32>
    %c0_5 = arith.constant 0 : index
    %c0_6 = arith.constant 0 : index
    %6 = vector.load %arg4[%c0_5, %c0_6] : memref<512x20xf32, #tpu.memory_space<vmem>>, vector<512x20xf32>
    %7 = arith.addf %5, %6 : vector<512x20xf32>
    %c0_7 = arith.constant 0 : index
    %c0_8 = arith.constant 0 : index
    %8 = vector.load %arg5[%c0_7, %c0_8] : memref<512x20xf32, #tpu.memory_space<vmem>>, vector<512x20xf32>
    tpu.vector_store %arg5[%c0_7, %c0_8], %7 {strides = array<i32>} : memref<512x20xf32, #tpu.memory_space<vmem>>, vector<512x20xf32>,
    %cst_9 = arith.constant dense<0.000000e+00> : vector<20xf32>
    %9 = vector.multi_reduction <add>, %7, %cst_9 [0] : vector<512x20xf32> to vector<20xf32>
    %10 = vector.shape_cast %9 : vector<20xf32> to vector<1x20xf32>
    %11 = arith.mulf %7, %7 : vector<512x20xf32>
    %cst_10 = arith.constant dense<0.000000e+00> : vector<20xf32>
    %12 = vector.multi_reduction <add>, %11, %cst_10 [0] : vector<512x20xf32> to vector<20xf32>
    %13 = vector.shape_cast %12 : vector<20xf32> to vector<1x20xf32>
    %c0_i32 = arith.constant 0 : i32
    %14 = arith.cmpi eq, %arg0, %c0_i32 : i32
    %15 = arith.extui %14 : i1 to i32
    %c0_i32_11 = arith.constant 0 : i32
    %16 = arith.cmpi ne, %15, %c0_i32_11 : i32
    scf.if %16 {
      %cst_20 = arith.constant 0.000000e+00 : f32
      %23 = vector.broadcast %cst_20 : f32 to vector<1x20xf32>
      %c0_21 = arith.constant 0 : index
      %c0_22 = arith.constant 0 : index
      %24 = vector.load %arg6[%c0_21, %c0_22] : memref<1x20xf32, #tpu.memory_space<vmem>>, vector<1x20xf32>
      tpu.vector_store %arg6[%c0_21, %c0_22], %23 {strides = array<i32>} : memref<1x20xf32, #tpu.memory_space<vmem>>, vector<1x20xf32>,
      %cst_23 = arith.constant 0.000000e+00 : f32
      %25 = vector.broadcast %cst_23 : f32 to vector<1x20xf32>
      %c0_24 = arith.constant 0 : index
      %c0_25 = arith.constant 0 : index
      %26 = vector.load %arg7[%c0_24, %c0_25] : memref<1x20xf32, #tpu.memory_space<vmem>>, vector<1x20xf32>
      tpu.vector_store %arg7[%c0_24, %c0_25], %25 {strides = array<i32>} : memref<1x20xf32, #tpu.memory_space<vmem>>, vector<1x20xf32>,
    } else {
    }
    %c0_12 = arith.constant 0 : index
    %c0_13 = arith.constant 0 : index
    %17 = vector.load %arg6[%c0_12, %c0_13] : memref<1x20xf32, #tpu.memory_space<vmem>>, vector<1x20xf32>
    %18 = arith.addf %17, %10 : vector<1x20xf32>
    %c0_14 = arith.constant 0 : index
    %c0_15 = arith.constant 0 : index
    %19 = vector.load %arg6[%c0_14, %c0_15] : memref<1x20xf32, #tpu.memory_space<vmem>>, vector<1x20xf32>
    tpu.vector_store %arg6[%c0_14, %c0_15], %18 {strides = array<i32>} : memref<1x20xf32, #tpu.memory_space<vmem>>, vector<1x20xf32>,
    %c0_16 = arith.constant 0 : index
    %c0_17 = arith.constant 0 : index
    %20 = vector.load %arg7[%c0_16, %c0_17] : memref<1x20xf32, #tpu.memory_space<vmem>>, vector<1x20xf32>
    %21 = arith.addf %20, %13 : vector<1x20xf32>
    %c0_18 = arith.constant 0 : index
    %c0_19 = arith.constant 0 : index
    %22 = vector.load %arg7[%c0_18, %c0_19] : memref<1x20xf32, #tpu.memory_space<vmem>>, vector<1x20xf32>
    tpu.vector_store %arg7[%c0_18, %c0_19], %21 {strides = array<i32>} : memref<1x20xf32, #tpu.memory_space<vmem>>, vector<1x20xf32>,
    return
  }
  func.func @transform_0(%arg0: i32) -> (i32, i32) {
    %c0_i32 = arith.constant 0 : i32
    %c0_i32_0 = arith.constant 0 : i32
    return %arg0, %c0_i32 : i32, i32
  }
  func.func @transform_1(%arg0: i32) -> (i32, i32) {
    %c0_i32 = arith.constant 0 : i32
    %c0_i32_0 = arith.constant 0 : i32
    %c0_i32_1 = arith.constant 0 : i32
    return %c0_i32, %c0_i32_0 : i32, i32
  }
  func.func @transform_2(%arg0: i32) -> (i32, i32) {
    %c0_i32 = arith.constant 0 : i32
    %c0_i32_0 = arith.constant 0 : i32
    %c0_i32_1 = arith.constant 0 : i32
    return %c0_i32, %c0_i32_0 : i32, i32
  }
  func.func @transform_3(%arg0: i32) -> (i32, i32) {
    %c0_i32 = arith.constant 0 : i32
    %c0_i32_0 = arith.constant 0 : i32
    return %arg0, %c0_i32 : i32, i32
  }
  func.func @transform_4(%arg0: i32) -> (i32, i32) {
    %c0_i32 = arith.constant 0 : i32
    %c0_i32_0 = arith.constant 0 : i32
    return %arg0, %c0_i32 : i32, i32
  }
  func.func @transform_5(%arg0: i32) -> (i32, i32) {
    %c0_i32 = arith.constant 0 : i32
    %c0_i32_0 = arith.constant 0 : i32
    %c0_i32_1 = arith.constant 0 : i32
    return %c0_i32, %c0_i32_0 : i32, i32
  }
  func.func @transform_6(%arg0: i32) -> (i32, i32) {
    %c0_i32 = arith.constant 0 : i32
    %c0_i32_0 = arith.constant 0 : i32
    %c0_i32_1 = arith.constant 0 : i32
    return %c0_i32, %c0_i32_0 : i32, i32
  }
}

module attributes {stable_mosaic.version = 11 : i64} {
  func.func @_bn_apply_kernel(%arg0: i32, %arg1: memref<512x20xf32, #tpu.memory_space<vmem>>, %arg2: memref<1x20xf32, #tpu.memory_space<vmem>>, %arg3: memref<1x20xf32, #tpu.memory_space<vmem>>, %arg4: memref<1x20xf32, #tpu.memory_space<vmem>>, %arg5: memref<1x20xf32, #tpu.memory_space<vmem>>, %arg6: memref<512x20xf32, #tpu.memory_space<vmem>>) attributes {dimension_semantics = [#tpu.dimension_semantics<parallel>], iteration_bounds = array<i64: 4>, scalar_prefetch = 0 : i64, scratch_operands = 0 : i64, tpu.core_type = #tpu.core_type<tc>, window_params = [{transform_indices = @transform_0, window_bounds = array<i64: 512, 20>}, {pipeline_mode = #tpu.pipeline_mode<synchronous>, transform_indices = @transform_1, window_bounds = array<i64: 1, 20>}, {pipeline_mode = #tpu.pipeline_mode<synchronous>, transform_indices = @transform_2, window_bounds = array<i64: 1, 20>}, {pipeline_mode = #tpu.pipeline_mode<synchronous>, transform_indices = @transform_3, window_bounds = array<i64: 1, 20>}, {pipeline_mode = #tpu.pipeline_mode<synchronous>, transform_indices = @transform_4, window_bounds = array<i64: 1, 20>}, {transform_indices = @transform_5, window_bounds = array<i64: 512, 20>}]} {
    %c0 = arith.constant 0 : index
    %c0_0 = arith.constant 0 : index
    %0 = vector.load %arg2[%c0, %c0_0] : memref<1x20xf32, #tpu.memory_space<vmem>>, vector<1x20xf32>
    %cst = arith.constant 4.8828125E-4 : f32
    %1 = vector.broadcast %cst : f32 to vector<1x20xf32>
    %2 = arith.mulf %0, %1 : vector<1x20xf32>
    %c0_1 = arith.constant 0 : index
    %c0_2 = arith.constant 0 : index
    %3 = vector.load %arg3[%c0_1, %c0_2] : memref<1x20xf32, #tpu.memory_space<vmem>>, vector<1x20xf32>
    %cst_3 = arith.constant 4.8828125E-4 : f32
    %4 = vector.broadcast %cst_3 : f32 to vector<1x20xf32>
    %5 = arith.mulf %3, %4 : vector<1x20xf32>
    %6 = arith.mulf %2, %2 : vector<1x20xf32>
    %7 = arith.subf %5, %6 : vector<1x20xf32>
    %c0_4 = arith.constant 0 : index
    %c0_5 = arith.constant 0 : index
    %8 = vector.load %arg4[%c0_4, %c0_5] : memref<1x20xf32, #tpu.memory_space<vmem>>, vector<1x20xf32>
    %cst_6 = arith.constant 9.99999974E-6 : f32
    %9 = vector.broadcast %cst_6 : f32 to vector<1x20xf32>
    %10 = arith.addf %7, %9 : vector<1x20xf32>
    %11 = math.rsqrt %10 : vector<1x20xf32>
    %12 = arith.mulf %8, %11 : vector<1x20xf32>
    %c0_7 = arith.constant 0 : index
    %c0_8 = arith.constant 0 : index
    %13 = vector.load %arg5[%c0_7, %c0_8] : memref<1x20xf32, #tpu.memory_space<vmem>>, vector<1x20xf32>
    %14 = arith.mulf %2, %12 : vector<1x20xf32>
    %15 = arith.subf %13, %14 : vector<1x20xf32>
    %c0_9 = arith.constant 0 : index
    %c0_10 = arith.constant 0 : index
    %16 = vector.load %arg1[%c0_9, %c0_10] : memref<512x20xf32, #tpu.memory_space<vmem>>, vector<512x20xf32>
    %17 = vector.broadcast %12 : vector<1x20xf32> to vector<512x20xf32>
    %18 = arith.mulf %16, %17 : vector<512x20xf32>
    %19 = vector.broadcast %15 : vector<1x20xf32> to vector<512x20xf32>
    %20 = arith.addf %18, %19 : vector<512x20xf32>
    %cst_11 = arith.constant 0.000000e+00 : f32
    %21 = vector.broadcast %cst_11 : f32 to vector<512x20xf32>
    %22 = arith.maximumf %20, %21 : vector<512x20xf32>
    %c0_12 = arith.constant 0 : index
    %c0_13 = arith.constant 0 : index
    %23 = vector.load %arg6[%c0_12, %c0_13] : memref<512x20xf32, #tpu.memory_space<vmem>>, vector<512x20xf32>
    tpu.vector_store %arg6[%c0_12, %c0_13], %22 {strides = array<i32>} : memref<512x20xf32, #tpu.memory_space<vmem>>, vector<512x20xf32>,
    return
  }
  func.func @transform_0(%arg0: i32) -> (i32, i32) {
    %c0_i32 = arith.constant 0 : i32
    %c0_i32_0 = arith.constant 0 : i32
    return %arg0, %c0_i32 : i32, i32
  }
  func.func @transform_1(%arg0: i32) -> (i32, i32) {
    %c0_i32 = arith.constant 0 : i32
    %c0_i32_0 = arith.constant 0 : i32
    %c0_i32_1 = arith.constant 0 : i32
    return %c0_i32, %c0_i32_0 : i32, i32
  }
  func.func @transform_2(%arg0: i32) -> (i32, i32) {
    %c0_i32 = arith.constant 0 : i32
    %c0_i32_0 = arith.constant 0 : i32
    %c0_i32_1 = arith.constant 0 : i32
    return %c0_i32, %c0_i32_0 : i32, i32
  }
  func.func @transform_3(%arg0: i32) -> (i32, i32) {
    %c0_i32 = arith.constant 0 : i32
    %c0_i32_0 = arith.constant 0 : i32
    %c0_i32_1 = arith.constant 0 : i32
    return %c0_i32, %c0_i32_0 : i32, i32
  }
  func.func @transform_4(%arg0: i32) -> (i32, i32) {
    %c0_i32 = arith.constant 0 : i32
    %c0_i32_0 = arith.constant 0 : i32
    %c0_i32_1 = arith.constant 0 : i32
    return %c0_i32, %c0_i32_0 : i32, i32
  }
  func.func @transform_5(%arg0: i32) -> (i32, i32) {
    %c0_i32 = arith.constant 0 : i32
    %c0_i32_0 = arith.constant 0 : i32
    return %arg0, %c0_i32 : i32, i32
  }
}

module attributes {stable_mosaic.version = 11 : i64} {
  func.func @_head_kernel(%arg0: i32, %arg1: memref<512x20xf32, #tpu.memory_space<vmem>>, %arg2: memref<20x128xf32, #tpu.memory_space<vmem>>, %arg3: memref<1x128xf32, #tpu.memory_space<vmem>>, %arg4: memref<128x1xf32, #tpu.memory_space<vmem>>, %arg5: memref<1x1xf32, #tpu.memory_space<vmem>>, %arg6: memref<512x1xf32, #tpu.memory_space<vmem>>) attributes {dimension_semantics = [#tpu.dimension_semantics<parallel>], iteration_bounds = array<i64: 4>, scalar_prefetch = 0 : i64, scratch_operands = 0 : i64, tpu.core_type = #tpu.core_type<tc>, window_params = [{transform_indices = @transform_0, window_bounds = array<i64: 512, 20>}, {pipeline_mode = #tpu.pipeline_mode<synchronous>, transform_indices = @transform_1, window_bounds = array<i64: 20, 128>}, {pipeline_mode = #tpu.pipeline_mode<synchronous>, transform_indices = @transform_2, window_bounds = array<i64: 1, 128>}, {pipeline_mode = #tpu.pipeline_mode<synchronous>, transform_indices = @transform_3, window_bounds = array<i64: 128, 1>}, {pipeline_mode = #tpu.pipeline_mode<synchronous>, transform_indices = @transform_4, window_bounds = array<i64: 1, 1>}, {transform_indices = @transform_5, window_bounds = array<i64: 512, 1>}]} {
    %c0 = arith.constant 0 : index
    %c0_0 = arith.constant 0 : index
    %0 = vector.load %arg1[%c0, %c0_0] : memref<512x20xf32, #tpu.memory_space<vmem>>, vector<512x20xf32>
    %c0_1 = arith.constant 0 : index
    %c0_2 = arith.constant 0 : index
    %1 = vector.load %arg2[%c0_1, %c0_2] : memref<20x128xf32, #tpu.memory_space<vmem>>, vector<20x128xf32>
    %cst = arith.constant dense<0.000000e+00> : vector<512x128xf32>
    %2 = tpu.matmul %0, %1, %cst {dimension_numbers = #tpu.dot_dimension_numbers<[1], [0], [0], [1], [0, 0, 1, 1], [], []>} : vector<512x20xf32>, vector<20x128xf32>, vector<512x128xf32> -> vector<512x128xf32>
    %c0_3 = arith.constant 0 : index
    %c0_4 = arith.constant 0 : index
    %3 = vector.load %arg3[%c0_3, %c0_4] : memref<1x128xf32, #tpu.memory_space<vmem>>, vector<1x128xf32>
    %4 = vector.broadcast %3 : vector<1x128xf32> to vector<512x128xf32>
    %5 = arith.addf %2, %4 : vector<512x128xf32>
    %cst_5 = arith.constant 0.000000e+00 : f32
    %6 = vector.broadcast %cst_5 : f32 to vector<512x128xf32>
    %7 = arith.maximumf %5, %6 : vector<512x128xf32>
    %c0_6 = arith.constant 0 : index
    %c0_7 = arith.constant 0 : index
    %8 = vector.load %arg4[%c0_6, %c0_7] : memref<128x1xf32, #tpu.memory_space<vmem>>, vector<128x1xf32>
    %cst_8 = arith.constant dense<0.000000e+00> : vector<512x1xf32>
    %9 = tpu.matmul %7, %8, %cst_8 {dimension_numbers = #tpu.dot_dimension_numbers<[1], [0], [0], [1], [0, 0, 1, 1], [], []>} : vector<512x128xf32>, vector<128x1xf32>, vector<512x1xf32> -> vector<512x1xf32>
    %c0_9 = arith.constant 0 : index
    %c0_10 = arith.constant 0 : index
    %10 = vector.load %arg5[%c0_9, %c0_10] : memref<1x1xf32, #tpu.memory_space<vmem>>, vector<1x1xf32>
    %11 = vector.broadcast %10 : vector<1x1xf32> to vector<512x1xf32>
    %12 = arith.addf %9, %11 : vector<512x1xf32>
    %c0_11 = arith.constant 0 : index
    %c0_12 = arith.constant 0 : index
    %13 = vector.load %arg6[%c0_11, %c0_12] : memref<512x1xf32, #tpu.memory_space<vmem>>, vector<512x1xf32>
    tpu.vector_store %arg6[%c0_11, %c0_12], %12 {strides = array<i32>} : memref<512x1xf32, #tpu.memory_space<vmem>>, vector<512x1xf32>,
    return
  }
  func.func @transform_0(%arg0: i32) -> (i32, i32) {
    %c0_i32 = arith.constant 0 : i32
    %c0_i32_0 = arith.constant 0 : i32
    return %arg0, %c0_i32 : i32, i32
  }
  func.func @transform_1(%arg0: i32) -> (i32, i32) {
    %c0_i32 = arith.constant 0 : i32
    %c0_i32_0 = arith.constant 0 : i32
    %c0_i32_1 = arith.constant 0 : i32
    return %c0_i32, %c0_i32_0 : i32, i32
  }
  func.func @transform_2(%arg0: i32) -> (i32, i32) {
    %c0_i32 = arith.constant 0 : i32
    %c0_i32_0 = arith.constant 0 : i32
    %c0_i32_1 = arith.constant 0 : i32
    return %c0_i32, %c0_i32_0 : i32, i32
  }
  func.func @transform_3(%arg0: i32) -> (i32, i32) {
    %c0_i32 = arith.constant 0 : i32
    %c0_i32_0 = arith.constant 0 : i32
    %c0_i32_1 = arith.constant 0 : i32
    return %c0_i32, %c0_i32_0 : i32, i32
  }
  func.func @transform_4(%arg0: i32) -> (i32, i32) {
    %c0_i32 = arith.constant 0 : i32
    %c0_i32_0 = arith.constant 0 : i32
    %c0_i32_1 = arith.constant 0 : i32
    return %c0_i32, %c0_i32_0 : i32, i32
  }
  func.func @transform_5(%arg0: i32) -> (i32, i32) {
    %c0_i32 = arith.constant 0 : i32
    %c0_i32_0 = arith.constant 0 : i32
    return %arg0, %c0_i32 : i32, i32
  }
}

module attributes {stable_mosaic.version = 11 : i64} {
  func.func @_bn_apply_kernel(%arg0: i32, %arg1: memref<512x20xf32, #tpu.memory_space<vmem>>, %arg2: memref<1x20xf32, #tpu.memory_space<vmem>>, %arg3: memref<1x20xf32, #tpu.memory_space<vmem>>, %arg4: memref<1x20xf32, #tpu.memory_space<vmem>>, %arg5: memref<1x20xf32, #tpu.memory_space<vmem>>, %arg6: memref<512x20xf32, #tpu.memory_space<vmem>>) attributes {dimension_semantics = [#tpu.dimension_semantics<parallel>], iteration_bounds = array<i64: 4>, scalar_prefetch = 0 : i64, scratch_operands = 0 : i64, tpu.core_type = #tpu.core_type<tc>, window_params = [{transform_indices = @transform_0, window_bounds = array<i64: 512, 20>}, {pipeline_mode = #tpu.pipeline_mode<synchronous>, transform_indices = @transform_1, window_bounds = array<i64: 1, 20>}, {pipeline_mode = #tpu.pipeline_mode<synchronous>, transform_indices = @transform_2, window_bounds = array<i64: 1, 20>}, {pipeline_mode = #tpu.pipeline_mode<synchronous>, transform_indices = @transform_3, window_bounds = array<i64: 1, 20>}, {pipeline_mode = #tpu.pipeline_mode<synchronous>, transform_indices = @transform_4, window_bounds = array<i64: 1, 20>}, {transform_indices = @transform_5, window_bounds = array<i64: 512, 20>}]} {
    %c0 = arith.constant 0 : index
    %c0_0 = arith.constant 0 : index
    %0 = vector.load %arg2[%c0, %c0_0] : memref<1x20xf32, #tpu.memory_space<vmem>>, vector<1x20xf32>
    %cst = arith.constant 4.8828125E-4 : f32
    %1 = vector.broadcast %cst : f32 to vector<1x20xf32>
    %2 = arith.mulf %0, %1 : vector<1x20xf32>
    %c0_1 = arith.constant 0 : index
    %c0_2 = arith.constant 0 : index
    %3 = vector.load %arg3[%c0_1, %c0_2] : memref<1x20xf32, #tpu.memory_space<vmem>>, vector<1x20xf32>
    %cst_3 = arith.constant 4.8828125E-4 : f32
    %4 = vector.broadcast %cst_3 : f32 to vector<1x20xf32>
    %5 = arith.mulf %3, %4 : vector<1x20xf32>
    %6 = arith.mulf %2, %2 : vector<1x20xf32>
    %7 = arith.subf %5, %6 : vector<1x20xf32>
    %c0_4 = arith.constant 0 : index
    %c0_5 = arith.constant 0 : index
    %8 = vector.load %arg4[%c0_4, %c0_5] : memref<1x20xf32, #tpu.memory_space<vmem>>, vector<1x20xf32>
    %cst_6 = arith.constant 9.99999974E-6 : f32
    %9 = vector.broadcast %cst_6 : f32 to vector<1x20xf32>
    %10 = arith.addf %7, %9 : vector<1x20xf32>
    %11 = math.rsqrt %10 : vector<1x20xf32>
    %12 = arith.mulf %8, %11 : vector<1x20xf32>
    %c0_7 = arith.constant 0 : index
    %c0_8 = arith.constant 0 : index
    %13 = vector.load %arg5[%c0_7, %c0_8] : memref<1x20xf32, #tpu.memory_space<vmem>>, vector<1x20xf32>
    %14 = arith.mulf %2, %12 : vector<1x20xf32>
    %15 = arith.subf %13, %14 : vector<1x20xf32>
    %c0_9 = arith.constant 0 : index
    %c0_10 = arith.constant 0 : index
    %16 = vector.load %arg1[%c0_9, %c0_10] : memref<512x20xf32, #tpu.memory_space<vmem>>, vector<512x20xf32>
    %17 = vector.broadcast %12 : vector<1x20xf32> to vector<512x20xf32>
    %18 = arith.mulf %16, %17 : vector<512x20xf32>
    %19 = vector.broadcast %15 : vector<1x20xf32> to vector<512x20xf32>
    %20 = arith.addf %18, %19 : vector<512x20xf32>
    %c0_11 = arith.constant 0 : index
    %c0_12 = arith.constant 0 : index
    %21 = vector.load %arg6[%c0_11, %c0_12] : memref<512x20xf32, #tpu.memory_space<vmem>>, vector<512x20xf32>
    tpu.vector_store %arg6[%c0_11, %c0_12], %20 {strides = array<i32>} : memref<512x20xf32, #tpu.memory_space<vmem>>, vector<512x20xf32>,
    return
  }
  func.func @transform_0(%arg0: i32) -> (i32, i32) {
    %c0_i32 = arith.constant 0 : i32
    %c0_i32_0 = arith.constant 0 : i32
    return %arg0, %c0_i32 : i32, i32
  }
  func.func @transform_1(%arg0: i32) -> (i32, i32) {
    %c0_i32 = arith.constant 0 : i32
    %c0_i32_0 = arith.constant 0 : i32
    %c0_i32_1 = arith.constant 0 : i32
    return %c0_i32, %c0_i32_0 : i32, i32
  }
  func.func @transform_2(%arg0: i32) -> (i32, i32) {
    %c0_i32 = arith.constant 0 : i32
    %c0_i32_0 = arith.constant 0 : i32
    %c0_i32_1 = arith.constant 0 : i32
    return %c0_i32, %c0_i32_0 : i32, i32
  }
  func.func @transform_3(%arg0: i32) -> (i32, i32) {
    %c0_i32 = arith.constant 0 : i32
    %c0_i32_0 = arith.constant 0 : i32
    %c0_i32_1 = arith.constant 0 : i32
    return %c0_i32, %c0_i32_0 : i32, i32
  }
  func.func @transform_4(%arg0: i32) -> (i32, i32) {
    %c0_i32 = arith.constant 0 : i32
    %c0_i32_0 = arith.constant 0 : i32
    %c0_i32_1 = arith.constant 0 : i32
    return %c0_i32, %c0_i32_0 : i32, i32
  }
  func.func @transform_5(%arg0: i32) -> (i32, i32) {
    %c0_i32 = arith.constant 0 : i32
    %c0_i32_0 = arith.constant 0 : i32
    return %arg0, %c0_i32 : i32, i32
  }
}

</mosaic_0001>

<bundles_post_ra>
// kernel: net3d_forward.14
= control target key start
LH: loop header
LB: loop body
LE: loop exit
PB: predicated region body
PF: predicated region fallthrough
CT: control target
= control target key end

     0   :  { %s1239_s12 = smov 0   ;;  %s1598_s0 = inlined_call_operand.vmem [shape: f32[2048,13], index: 0, kind: input, shape index: {}]   ;;  %s1599_s1 = inlined_call_operand.vmem [shape: f32[13,20], index: 1, kind: input, shape index: {}]   ;;  %s1600_s2 = inlined_call_operand.vmem [shape: f32[1,20], index: 2, kind: input, shape index: {}]   ;;  %s1601_s3 = inlined_call_operand.vmem [shape: f32[2048,20], index: 3, kind: output, shape index: {}]  }
   0x1 LB: > { %s950_s13 = sadd.s32 4294967295, %s1216_s12   ;;  %p954_p0 = scmp.ge.s32.totalorder %s1216_s12, 1  ;;  %s1216_s12 = sphi %s1239_s12, %s13_s12  }
   0x2   : > { %p138_p1 = scmp.lt.s32.totalorder %s1216_s12, 5 }
   0x4   : > { %p139_p2 = pnand %p954_p0, %p138_p1 }
   0x5   : > { %v238_v0 = vld [vmem:[%s1599_s1] sm:$0xff] (!%p139_p2)  ;;  %v239_v1 = vld [vmem:[%s1599_s1 + $0x8] sm:$0x1f] (!%p139_p2)  ;;  %vm440_vm0 = vcmask (!%p139_p2), 1044480   ;;  %s955_s18 = sshll.u32 (!%p139_p2), %s950_s13, 6  ;;  %vm1218_vm1 = vmmov (!%p139_p2), 1  }
   0x6   : > { %142 = sbr.rel (%p139_p2) target bundleno = 295 (0x127), region = 32  ;;  %v1193_v2 = vpack.c.bf16 (!%p139_p2), %v239_v1, %v238_v0  ;;  %vm1194_vm2 = vmpackc.low (!%p139_p2), %vm440_vm0, %vm1218_vm1  ;;  %p163_p3 = scmp.lt.s32.totalorder (!%p139_p2), %s955_s18, 255  ;;  %vm247_vm3 = vcmask (!%p139_p2), 105472   ;;  %vm829_vm4 = vcmask (!%p139_p2), 162816  }
   0x8   : > { %1195 = vmatprep.subr.msk.bf16.mxu0 (!%p139_p2), %vm1194_vm2, %v1193_v2  ;;  %1199 = vmatprep.subr.msk.bf16.mxu1 (!%p139_p2), %vm1194_vm2, %v1193_v2 }
   0x9   : > { %1198 = vmatpush3.bf16.msk.msra.mxu0 (!%p139_p2), %vm1194_vm2, %v1193_v2  ;;  %1200 = vmatpush3.bf16.msk.msra.mxu1 (!%p139_p2), %vm1194_vm2, %v1193_v2 }
   0xd   : > { %s1603_s18 = smov (!%p163_p3, %s955_s18), 255 }
   0xe   : > { %s956_s19 = sshll.u32 %s1603_s18, 3 }
   0xf   : > { %s1261_s22 = scalar_lea.vmem %s1598_s0, %s956_s19  ;;  %s1401_s27 = scalar_lea.vmem %s1601_s3, %s956_s19 }
  0x10   : > { %v174_v3 = vld [vmem:[%s1261_s22] sm:$0xff]  ;;  %v175_v5 = vld [vmem:[%s1261_s22 + $0x8] sm:$0xff]  ;;  %v176_v7 = vld [vmem:[%s1261_s22 + $0x10] sm:$0xff] }
  0x11   : > { %v206_v4 = vld [vmem:[%s1261_s22 + $0x100] sm:$0xff]  ;;  %1097 = vmatprep.mubr.msk.f32.mxu0 %vm247_vm3, %v174_v3  ;;  %v207_v6 = vld [vmem:[%s1261_s22 + $0x108] sm:$0xff]  ;;  %v208_v8 = vld [vmem:[%s1261_s22 + $0x110] sm:$0xff] }
  0x12   : > { %1145 = vmatprep.mubr.msk.f32.mxu1 %vm247_vm3, %v206_v4  ;;  %1098 = vmatmul.mubr.msk.f32.vlgmr.msra.gmra.mrb[0].mxu0 %vm247_vm3, %v175_v5  ;;  %v177_v9 = vld [vmem:[%s1261_s22 + $0x18] sm:$0xff]  ;;  %v178_v11 = vld [vmem:[%s1261_s22 + $0x20] sm:$0xff]  ;;  %v179_v13 = vld [vmem:[%s1261_s22 + $0x28] sm:$0xff] }
  0x13   : > { %1146 = vmatmul.mubr.msk.f32.vlgmr.msra.gmra.mrb[0].mxu1 %vm247_vm3, %v207_v6  ;;  %1100 = vmatprep.mubr.msk.f32.mxu0 %vm247_vm3, %v176_v7  ;;  %v209_v10 = vld [vmem:[%s1261_s22 + $0x118] sm:$0xff]  ;;  %v210_v12 = vld [vmem:[%s1261_s22 + $0x120] sm:$0xff]  ;;  %v211_v14 = vld [vmem:[%s1261_s22 + $0x128] sm:$0xff] }
  0x14   : > { %1148 = vmatprep.mubr.msk.f32.mxu1 %vm247_vm3, %v208_v8  ;;  %v180_v15 = vld [vmem:[%s1261_s22 + $0x30] sm:$0xff]  ;;  %v181_v17 = vld [vmem:[%s1261_s22 + $0x38] sm:$0xff]  ;;  %v182_v19 = vld [vmem:[%s1261_s22 + $0x40] sm:$0xff] }
  0x15   : > { %v212_v16 = vld [vmem:[%s1261_s22 + $0x130] sm:$0xff]  ;;  %v213_v18 = vld [vmem:[%s1261_s22 + $0x138] sm:$0xff]  ;;  %v214_v20 = vld [vmem:[%s1261_s22 + $0x140] sm:$0xff] }
  0x16   : > { %1101 = vmatmul.mubr.msk.f32.gmra.mrb[2].mxu0 %vm247_vm3, %v177_v9  ;;  %v183_v21 = vld [vmem:[%s1261_s22 + $0x48] sm:$0xff]  ;;  %v184_v23 = vld [vmem:[%s1261_s22 + $0x50] sm:$0xff]  ;;  %v185_v25 = vld [vmem:[%s1261_s22 + $0x58] sm:$0xff] }
  0x17   : > { %1149 = vmatmul.mubr.msk.f32.gmra.mrb[2].mxu1 %vm247_vm3, %v209_v10  ;;  %1103 = vmatprep.mubr.msk.f32.mxu0 %vm247_vm3, %v178_v11  ;;  %v215_v22 = vld [vmem:[%s1261_s22 + $0x148] sm:$0xff]  ;;  %v216_v24 = vld [vmem:[%s1261_s22 + $0x150] sm:$0xff]  ;;  %v217_v26 = vld [vmem:[%s1261_s22 + $0x158] sm:$0xff] }
  0x18   : > { %1151 = vmatprep.mubr.msk.f32.mxu1 %vm247_vm3, %v210_v12  ;;  %v186_v27 = vld [vmem:[%s1261_s22 + $0x60] sm:$0xff]  ;;  %v187_v29 = vld [vmem:[%s1261_s22 + $0x68] sm:$0xff]  ;;  %v188_v31 = vld [vmem:[%s1261_s22 + $0x70] sm:$0xff] }
  0x19   : > { %v218_v28 = vld [vmem:[%s1261_s22 + $0x160] sm:$0xff]  ;;  %v219_v30 = vld [vmem:[%s1261_s22 + $0x168] sm:$0xff]  ;;  %v220_v32 = vld [vmem:[%s1261_s22 + $0x170] sm:$0xff] }
  0x1a   : > { %1104 = vmatmul.mubr.msk.f32.gmra.mrb[4].mxu0 %vm247_vm3, %v179_v13  ;;  %v189_v33 = vld [vmem:[%s1261_s22 + $0x78] sm:$0xff]  ;;  %v190_v35 = vld [vmem:[%s1261_s22 + $0x80] sm:$0xff]  ;;  %v191_v37 = vld [vmem:[%s1261_s22 + $0x88] sm:$0xff] }
  0x1b   : > { %1152 = vmatmul.mubr.msk.f32.gmra.mrb[4].mxu1 %vm247_vm3, %v211_v14  ;;  %1106 = vmatprep.mubr.msk.f32.mxu0 %vm247_vm3, %v180_v15  ;;  %v221_v34 = vld [vmem:[%s1261_s22 + $0x178] sm:$0xff]  ;;  %v222_v36 = vld [vmem:[%s1261_s22 + $0x180] sm:$0xff]  ;;  %v223_v38 = vld [vmem:[%s1261_s22 + $0x188] sm:$0xff] }
  0x1c   : > { %1154 = vmatprep.mubr.msk.f32.mxu1 %vm247_vm3, %v212_v16  ;;  %v192_v39 = vld [vmem:[%s1261_s22 + $0x90] sm:$0xff]  ;;  %v193_v41 = vld [vmem:[%s1261_s22 + $0x98] sm:$0xff]  ;;  %v194_v43 = vld [vmem:[%s1261_s22 + $0xa0] sm:$0xff] }
  0x1d   : > { %v224_v40 = vld [vmem:[%s1261_s22 + $0x190] sm:$0xff]  ;;  %v225_v42 = vld [vmem:[%s1261_s22 + $0x198] sm:$0xff]  ;;  %v226_v44 = vld [vmem:[%s1261_s22 + $0x1a0] sm:$0xff] }
  0x1e   : > { %1107 = vmatmul.mubr.msk.f32.gmra.mrb[6].mxu0 %vm247_vm3, %v181_v17  ;;  %v195_v45 = vld [vmem:[%s1261_s22 + $0xa8] sm:$0xff]  ;;  %v196_v47 = vld [vmem:[%s1261_s22 + $0xb0] sm:$0xff]  ;;  %v197_v49 = vld [vmem:[%s1261_s22 + $0xb8] sm:$0xff] }
  0x1f   : > { %1155 = vmatmul.mubr.msk.f32.gmra.mrb[6].mxu1 %vm247_vm3, %v213_v18  ;;  %1109 = vmatprep.mubr.msk.f32.mxu0 %vm247_vm3, %v182_v19  ;;  %v227_v46 = vld [vmem:[%s1261_s22 + $0x1a8] sm:$0xff]  ;;  %v228_v48 = vld [vmem:[%s1261_s22 + $0x1b0] sm:$0xff]  ;;  %v229_v50 = vld [vmem:[%s1261_s22 + $0x1b8] sm:$0xff] }
  0x20   : > { %1157 = vmatprep.mubr.msk.f32.mxu1 %vm247_vm3, %v214_v20  ;;  %v198_v51 = vld [vmem:[%s1261_s22 + $0xc0] sm:$0xff]  ;;  %v199_v53 = vld [vmem:[%s1261_s22 + $0xc8] sm:$0xff]  ;;  %v200_v55 = vld [vmem:[%s1261_s22 + $0xd0] sm:$0xff] }
  0x21   : > { %v230_v52 = vld [vmem:[%s1261_s22 + $0x1c0] sm:$0xff]  ;;  %v231_v54 = vld [vmem:[%s1261_s22 + $0x1c8] sm:$0xff]  ;;  %v232_v56 = vld [vmem:[%s1261_s22 + $0x1d0] sm:$0xff] }
  0x22   : > { %1110 = vmatmul.mubr.msk.f32.gmra.mrb[8].mxu0 %vm247_vm3, %v183_v21  ;;  %v201_v57 = vld [vmem:[%s1261_s22 + $0xd8] sm:$0xff]  ;;  %v202_v59 = vld [vmem:[%s1261_s22 + $0xe0] sm:$0xff]  ;;  %v203_v61 = vld [vmem:[%s1261_s22 + $0xe8] sm:$0xff] }
  0x23   : > { %1158 = vmatmul.mubr.msk.f32.gmra.mrb[8].mxu1 %vm247_vm3, %v215_v22  ;;  %1112 = vmatprep.mubr.msk.f32.mxu0 %vm247_vm3, %v184_v23  ;;  %v233_v58 = vld [vmem:[%s1261_s22 + $0x1d8] sm:$0xff]  ;;  %v234_v60 = vld [vmem:[%s1261_s22 + $0x1e0] sm:$0xff]  ;;  %v235_v62 = vld [vmem:[%s1261_s22 + $0x1e8] sm:$0xff] }
  0x24   : > { %1160 = vmatprep.mubr.msk.f32.mxu1 %vm247_vm3, %v216_v24  ;;  %v204_v63 = vld [vmem:[%s1261_s22 + $0xf0] sm:$0xff]  ;;  %v205_v1 = vld [vmem:[%s1261_s22 + $0xf8] sm:$0xff]  ;;  %v1394_v3 = vld [vmem:[%s1600_s2] ss:$0 sm:$0xff] }
  0x25   : > { %v236_v0 = vld [vmem:[%s1261_s22 + $0x1f0] sm:$0xff]  ;;  %v237_v2 = vld [vmem:[%s1261_s22 + $0x1f8] sm:$0xff] }
  0x26   : > { %1113 = vmatmul.mubr.msk.f32.gmra.mrb[10].mxu0 %vm247_vm3, %v185_v25 }
  0x27   : > { %1161 = vmatmul.mubr.msk.f32.gmra.mrb[10].mxu1 %vm247_vm3, %v217_v26  ;;  %1115 = vmatprep.mubr.msk.f32.mxu0 %vm247_vm3, %v186_v27 }
  0x28   : > { %1163 = vmatprep.mubr.msk.f32.mxu1 %vm247_vm3, %v218_v28 }
  0x2a   : > { %1116 = vmatmul.mubr.msk.f32.gmra.mrb[12].mxu0 %vm247_vm3, %v187_v29 }
  0x2b   : > { %1164 = vmatmul.mubr.msk.f32.gmra.mrb[12].mxu1 %vm247_vm3, %v219_v30  ;;  %1118 = vmatprep.mubr.msk.f32.mxu0 %vm247_vm3, %v188_v31 }
  0x2c   : > { %1166 = vmatprep.mubr.msk.f32.mxu1 %vm247_vm3, %v220_v32 }
  0x2e   : > { %1119 = vmatmul.mubr.msk.f32.gmra.mrb[14].mxu0 %vm247_vm3, %v189_v33 }
  0x2f   : > { %1167 = vmatmul.mubr.msk.f32.gmra.mrb[14].mxu1 %vm247_vm3, %v221_v34  ;;  %1121 = vmatprep.mubr.msk.f32.mxu0 %vm247_vm3, %v190_v35 }
  0x30   : > { %1169 = vmatprep.mubr.msk.f32.mxu1 %vm247_vm3, %v222_v36 }
  0x32   : > { %1122 = vmatmul.mubr.msk.f32.gmra.mrb[16].mxu0 %vm247_vm3, %v191_v37 }
  0x33   : > { %1170 = vmatmul.mubr.msk.f32.gmra.mrb[16].mxu1 %vm247_vm3, %v223_v38  ;;  %1124 = vmatprep.mubr.msk.f32.mxu0 %vm247_vm3, %v192_v39 }
  0x34   : > { %1172 = vmatprep.mubr.msk.f32.mxu1 %vm247_vm3, %v224_v40 }
  0x36   : > { %1125 = vmatmul.mubr.msk.f32.gmra.mrb[18].mxu0 %vm247_vm3, %v193_v41 }
  0x37   : > { %1173 = vmatmul.mubr.msk.f32.gmra.mrb[18].mxu1 %vm247_vm3, %v225_v42  ;;  %1127 = vmatprep.mubr.msk.f32.mxu0 %vm247_vm3, %v194_v43 }
  0x38   : > { %1175 = vmatprep.mubr.msk.f32.mxu1 %vm247_vm3, %v226_v44 }
  0x3a   : > { %1128 = vmatmul.mubr.msk.f32.gmra.mrb[20].mxu0 %vm247_vm3, %v195_v45 }
  0x3b   : > { %1176 = vmatmul.mubr.msk.f32.gmra.mrb[20].mxu1 %vm247_vm3, %v227_v46  ;;  %1130 = vmatprep.mubr.msk.f32.mxu0 %vm247_vm3, %v196_v47 }
  0x3c   : > { %1178 = vmatprep.mubr.msk.f32.mxu1 %vm247_vm3, %v228_v48 }
  0x3e   : > { %1131 = vmatmul.mubr.msk.f32.gmra.mrb[22].mxu0 %vm247_vm3, %v197_v49 }
  0x3f   : > { %1179 = vmatmul.mubr.msk.f32.gmra.mrb[22].mxu1 %vm247_vm3, %v229_v50  ;;  %1133 = vmatprep.mubr.msk.f32.mxu0 %vm247_vm3, %v198_v51 }
  0x40   : > { %1181 = vmatprep.mubr.msk.f32.mxu1 %vm247_vm3, %v230_v52 }
  0x42   : > { %1134 = vmatmul.mubr.msk.f32.gmra.mrb[24].mxu0 %vm247_vm3, %v199_v53 }
  0x43   : > { %1182 = vmatmul.mubr.msk.f32.gmra.mrb[24].mxu1 %vm247_vm3, %v231_v54  ;;  %1136 = vmatprep.mubr.msk.f32.mxu0 %vm247_vm3, %v200_v55 }
  0x44   : > { %1184 = vmatprep.mubr.msk.f32.mxu1 %vm247_vm3, %v232_v56 }
  0x46   : > { %1137 = vmatmul.mubr.msk.f32.gmra.mrb[26].mxu0 %vm247_vm3, %v201_v57 }
  0x47   : > { %1185 = vmatmul.mubr.msk.f32.gmra.mrb[26].mxu1 %vm247_vm3, %v233_v58  ;;  %1139 = vmatprep.mubr.msk.f32.mxu0 %vm247_vm3, %v202_v59 }
  0x48   : > { %1187 = vmatprep.mubr.msk.f32.mxu1 %vm247_vm3, %v234_v60 }
  0x4a   : > { %1140 = vmatmul.mubr.msk.f32.gmra.mrb[28].mxu0 %vm247_vm3, %v203_v61 }
  0x4b   : > { %1188 = vmatmul.mubr.msk.f32.gmra.mrb[28].mxu1 %vm247_vm3, %v235_v62  ;;  %1142 = vmatprep.mubr.msk.f32.mxu0 %vm247_vm3, %v204_v63 }
  0x4c   : > { %1190 = vmatprep.mubr.msk.f32.mxu1 %vm247_vm3, %v236_v0 }
  0x4e   : > { %1143 = vmatmul.mubr.msk.f32.gmra.mrb[30].mxu0 %vm247_vm3, %v205_v1 }
  0x4f   : > { %1191 = vmatmul.mubr.msk.f32.gmra.mrb[30].mxu1 %vm247_vm3, %v237_v2 }
  0xe5   : > { %v1099_v4 = vpop.f32.mrb[0].mxu0 }
  0xe6   : > { %v1147_v5 = vpop.f32.mrb[0].mxu1  ;;  %v516_v6 = vadd.f32 %v1099_v4, %v1394_v3  ;;  %v510_v8 = vpop.f32.mrb[1].mxu0 }
  0xe7   : > { %v676_v7 = vadd.f32 %v1147_v5, %v1394_v3  ;;  %v670_v9 = vpop.f32.mrb[1].mxu1  ;;  %v511_v10 = vadd.f32 %v1394_v3, %v510_v8 }
  0xe8   : > { %v671_v11 = vadd.f32 %v1394_v3, %v670_v9  ;;  %831 = vst.msk [vmem:[%s1401_s27 + $0x8] sm:$0xff] %vm829_vm4, %v516_v6 }
  0xe9   : > { %863 = vst.msk [vmem:[%s1401_s27 + $0x108] sm:$0xff] %vm829_vm4, %v676_v7  ;;  %830 = vst.msk [vmem:[%s1401_s27] sm:$0xff] %vm829_vm4, %v511_v10  ;;  %v1102_v12 = vpop.f32.mrb[2].mxu0 }
  0xea   : > { %862 = vst.msk [vmem:[%s1401_s27 + $0x100] sm:$0xff] %vm829_vm4, %v671_v11  ;;  %v1150_v13 = vpop.f32.mrb[2].mxu1  ;;  %v526_v14 = vadd.f32 %v1102_v12, %v1394_v3  ;;  %v520_v16 = vpop.f32.mrb[3].mxu0 }
  0xeb   : > { %v686_v15 = vadd.f32 %v1150_v13, %v1394_v3  ;;  %v680_v17 = vpop.f32.mrb[3].mxu1  ;;  %v521_v18 = vadd.f32 %v1394_v3, %v520_v16 }
  0xec   : > { %v681_v19 = vadd.f32 %v1394_v3, %v680_v17  ;;  %833 = vst.msk [vmem:[%s1401_s27 + $0x18] sm:$0xff] %vm829_vm4, %v526_v14 }
  0xed   : > { %865 = vst.msk [vmem:[%s1401_s27 + $0x118] sm:$0xff] %vm829_vm4, %v686_v15  ;;  %832 = vst.msk [vmem:[%s1401_s27 + $0x10] sm:$0xff] %vm829_vm4, %v521_v18  ;;  %v1105_v20 = vpop.f32.mrb[4].mxu0 }
  0xee   : > { %864 = vst.msk [vmem:[%s1401_s27 + $0x110] sm:$0xff] %vm829_vm4, %v681_v19  ;;  %v1153_v21 = vpop.f32.mrb[4].mxu1  ;;  %v536_v22 = vadd.f32 %v1105_v20, %v1394_v3  ;;  %v530_v24 = vpop.f32.mrb[5].mxu0 }
  0xef   : > { %v696_v23 = vadd.f32 %v1153_v21, %v1394_v3  ;;  %v690_v25 = vpop.f32.mrb[5].mxu1  ;;  %v531_v26 = vadd.f32 %v1394_v3, %v530_v24 }
  0xf0   : > { %v691_v27 = vadd.f32 %v1394_v3, %v690_v25  ;;  %835 = vst.msk [vmem:[%s1401_s27 + $0x28] sm:$0xff] %vm829_vm4, %v536_v22 }
  0xf1   : > { %867 = vst.msk [vmem:[%s1401_s27 + $0x128] sm:$0xff] %vm829_vm4, %v696_v23  ;;  %834 = vst.msk [vmem:[%s1401_s27 + $0x20] sm:$0xff] %vm829_vm4, %v531_v26  ;;  %v1108_v28 = vpop.f32.mrb[6].mxu0 }
  0xf2   : > { %866 = vst.msk [vmem:[%s1401_s27 + $0x120] sm:$0xff] %vm829_vm4, %v691_v27  ;;  %v1156_v29 = vpop.f32.mrb[6].mxu1  ;;  %v546_v30 = vadd.f32 %v1108_v28, %v1394_v3  ;;  %v540_v32 = vpop.f32.mrb[7].mxu0 }
  0xf3   : > { %v706_v31 = vadd.f32 %v1156_v29, %v1394_v3  ;;  %v700_v33 = vpop.f32.mrb[7].mxu1  ;;  %v541_v34 = vadd.f32 %v1394_v3, %v540_v32 }
  0xf4   : > { %v701_v35 = vadd.f32 %v1394_v3, %v700_v33  ;;  %837 = vst.msk [vmem:[%s1401_s27 + $0x38] sm:$0xff] %vm829_vm4, %v546_v30 }
  0xf5   : > { %869 = vst.msk [vmem:[%s1401_s27 + $0x138] sm:$0xff] %vm829_vm4, %v706_v31  ;;  %836 = vst.msk [vmem:[%s1401_s27 + $0x30] sm:$0xff] %vm829_vm4, %v541_v34  ;;  %v1111_v36 = vpop.f32.mrb[8].mxu0 }
  0xf6   : > { %868 = vst.msk [vmem:[%s1401_s27 + $0x130] sm:$0xff] %vm829_vm4, %v701_v35  ;;  %v1159_v37 = vpop.f32.mrb[8].mxu1  ;;  %v556_v38 = vadd.f32 %v1111_v36, %v1394_v3  ;;  %v550_v40 = vpop.f32.mrb[9].mxu0 }
  0xf7   : > { %v716_v39 = vadd.f32 %v1159_v37, %v1394_v3  ;;  %v710_v41 = vpop.f32.mrb[9].mxu1  ;;  %v551_v42 = vadd.f32 %v1394_v3, %v550_v40 }
  0xf8   : > { %v711_v43 = vadd.f32 %v1394_v3, %v710_v41  ;;  %839 = vst.msk [vmem:[%s1401_s27 + $0x48] sm:$0xff] %vm829_vm4, %v556_v38 }
  0xf9   : > { %871 = vst.msk [vmem:[%s1401_s27 + $0x148] sm:$0xff] %vm829_vm4, %v716_v39  ;;  %838 = vst.msk [vmem:[%s1401_s27 + $0x40] sm:$0xff] %vm829_vm4, %v551_v42  ;;  %v1114_v44 = vpop.f32.mrb[10].mxu0 }
  0xfa   : > { %870 = vst.msk [vmem:[%s1401_s27 + $0x140] sm:$0xff] %vm829_vm4, %v711_v43  ;;  %v1162_v45 = vpop.f32.mrb[10].mxu1  ;;  %v566_v46 = vadd.f32 %v1114_v44, %v1394_v3  ;;  %v560_v48 = vpop.f32.mrb[11].mxu0 }
  0xfb   : > { %v726_v47 = vadd.f32 %v1162_v45, %v1394_v3  ;;  %v720_v49 = vpop.f32.mrb[11].mxu1  ;;  %v561_v50 = vadd.f32 %v1394_v3, %v560_v48 }
  0xfc   : > { %v721_v51 = vadd.f32 %v1394_v3, %v720_v49  ;;  %841 = vst.msk [vmem:[%s1401_s27 + $0x58] sm:$0xff] %vm829_vm4, %v566_v46 }
  0xfd   : > { %873 = vst.msk [vmem:[%s1401_s27 + $0x158] sm:$0xff] %vm829_vm4, %v726_v47  ;;  %840 = vst.msk [vmem:[%s1401_s27 + $0x50] sm:$0xff] %vm829_vm4, %v561_v50  ;;  %v1117_v52 = vpop.f32.mrb[12].mxu0 }
  0xfe   : > { %872 = vst.msk [vmem:[%s1401_s27 + $0x150] sm:$0xff] %vm829_vm4, %v721_v51  ;;  %v1165_v53 = vpop.f32.mrb[12].mxu1  ;;  %v576_v54 = vadd.f32 %v1117_v52, %v1394_v3  ;;  %v570_v56 = vpop.f32.mrb[13].mxu0 }
  0xff   : > { %v736_v55 = vadd.f32 %v1165_v53, %v1394_v3  ;;  %v730_v57 = vpop.f32.mrb[13].mxu1  ;;  %v571_v58 = vadd.f32 %v1394_v3, %v570_v56 }
 0x100   : > { %v731_v59 = vadd.f32 %v1394_v3, %v730_v57  ;;  %843 = vst.msk [vmem:[%s1401_s27 + $0x68] sm:$0xff] %vm829_vm4, %v576_v54 }
 0x101   : > { %875 = vst.msk [vmem:[%s1401_s27 + $0x168] sm:$0xff] %vm829_vm4, %v736_v55  ;;  %842 = vst.msk [vmem:[%s1401_s27 + $0x60] sm:$0xff] %vm829_vm4, %v571_v58  ;;  %v1120_v60 = vpop.f32.mrb[14].mxu0 }
 0x102   : > { %874 = vst.msk [vmem:[%s1401_s27 + $0x160] sm:$0xff] %vm829_vm4, %v731_v59  ;;  %v1168_v61 = vpop.f32.mrb[14].mxu1  ;;  %v586_v62 = vadd.f32 %v1120_v60, %v1394_v3  ;;  %v580_v0 = vpop.f32.mrb[15].mxu0 }
 0x103   : > { %v746_v63 = vadd.f32 %v1168_v61, %v1394_v3  ;;  %v740_v1 = vpop.f32.mrb[15].mxu1  ;;  %v581_v2 = vadd.f32 %v1394_v3, %v580_v0 }
 0x104   : > { %v741_v4 = vadd.f32 %v1394_v3, %v740_v1  ;;  %845 = vst.msk [vmem:[%s1401_s27 + $0x78] sm:$0xff] %vm829_vm4, %v586_v62 }
 0x105   : > { %877 = vst.msk [vmem:[%s1401_s27 + $0x178] sm:$0xff] %vm829_vm4, %v746_v63  ;;  %844 = vst.msk [vmem:[%s1401_s27 + $0x70] sm:$0xff] %vm829_vm4, %v581_v2  ;;  %v1123_v5 = vpop.f32.mrb[16].mxu0 }
 0x106   : > { %876 = vst.msk [vmem:[%s1401_s27 + $0x170] sm:$0xff] %vm829_vm4, %v741_v4  ;;  %v1171_v6 = vpop.f32.mrb[16].mxu1  ;;  %v596_v7 = vadd.f32 %v1123_v5, %v1394_v3  ;;  %v590_v9 = vpop.f32.mrb[17].mxu0 }
 0x107   : > { %v756_v8 = vadd.f32 %v1171_v6, %v1394_v3  ;;  %v750_v10 = vpop.f32.mrb[17].mxu1  ;;  %v591_v11 = vadd.f32 %v1394_v3, %v590_v9 }
 0x108   : > { %v751_v12 = vadd.f32 %v1394_v3, %v750_v10  ;;  %847 = vst.msk [vmem:[%s1401_s27 + $0x88] sm:$0xff] %vm829_vm4, %v596_v7 }
 0x109   : > { %879 = vst.msk [vmem:[%s1401_s27 + $0x188] sm:$0xff] %vm829_vm4, %v756_v8  ;;  %846 = vst.msk [vmem:[%s1401_s27 + $0x80] sm:$0xff] %vm829_vm4, %v591_v11  ;;  %v1126_v13 = vpop.f32.mrb[18].mxu0 }
 0x10a   : > { %878 = vst.msk [vmem:[%s1401_s27 + $0x180] sm:$0xff] %vm829_vm4, %v751_v12  ;;  %v1174_v14 = vpop.f32.mrb[18].mxu1  ;;  %v606_v15 = vadd.f32 %v1126_v13, %v1394_v3  ;;  %v600_v17 = vpop.f32.mrb[19].mxu0 }
 0x10b   : > { %v766_v16 = vadd.f32 %v1174_v14, %v1394_v3  ;;  %v760_v18 = vpop.f32.mrb[19].mxu1  ;;  %v601_v19 = vadd.f32 %v1394_v3, %v600_v17 }
 0x10c   : > { %v761_v20 = vadd.f32 %v1394_v3, %v760_v18  ;;  %849 = vst.msk [vmem:[%s1401_s27 + $0x98] sm:$0xff] %vm829_vm4, %v606_v15 }
 0x10d   : > { %881 = vst.msk [vmem:[%s1401_s27 + $0x198] sm:$0xff] %vm829_vm4, %v766_v16  ;;  %848 = vst.msk [vmem:[%s1401_s27 + $0x90] sm:$0xff] %vm829_vm4, %v601_v19  ;;  %v1129_v21 = vpop.f32.mrb[20].mxu0 }
 0x10e   : > { %880 = vst.msk [vmem:[%s1401_s27 + $0x190] sm:$0xff] %vm829_vm4, %v761_v20  ;;  %v1177_v22 = vpop.f32.mrb[20].mxu1  ;;  %v616_v23 = vadd.f32 %v1129_v21, %v1394_v3  ;;  %v610_v25 = vpop.f32.mrb[21].mxu0 }
 0x10f   : > { %v776_v24 = vadd.f32 %v1177_v22, %v1394_v3  ;;  %v770_v26 = vpop.f32.mrb[21].mxu1  ;;  %v611_v27 = vadd.f32 %v1394_v3, %v610_v25 }
 0x110   : > { %v771_v28 = vadd.f32 %v1394_v3, %v770_v26  ;;  %851 = vst.msk [vmem:[%s1401_s27 + $0xa8] sm:$0xff] %vm829_vm4, %v616_v23 }
 0x111   : > { %883 = vst.msk [vmem:[%s1401_s27 + $0x1a8] sm:$0xff] %vm829_vm4, %v776_v24  ;;  %850 = vst.msk [vmem:[%s1401_s27 + $0xa0] sm:$0xff] %vm829_vm4, %v611_v27  ;;  %v1132_v29 = vpop.f32.mrb[22].mxu0 }
 0x112   : > { %882 = vst.msk [vmem:[%s1401_s27 + $0x1a0] sm:$0xff] %vm829_vm4, %v771_v28  ;;  %v1180_v30 = vpop.f32.mrb[22].mxu1  ;;  %v626_v31 = vadd.f32 %v1132_v29, %v1394_v3  ;;  %v620_v33 = vpop.f32.mrb[23].mxu0 }
 0x113   : > { %v786_v32 = vadd.f32 %v1180_v30, %v1394_v3  ;;  %v780_v34 = vpop.f32.mrb[23].mxu1  ;;  %v621_v35 = vadd.f32 %v1394_v3, %v620_v33 }
 0x114   : > { %v781_v36 = vadd.f32 %v1394_v3, %v780_v34  ;;  %853 = vst.msk [vmem:[%s1401_s27 + $0xb8] sm:$0xff] %vm829_vm4, %v626_v31 }
 0x115   : > { %885 = vst.msk [vmem:[%s1401_s27 + $0x1b8] sm:$0xff] %vm829_vm4, %v786_v32  ;;  %852 = vst.msk [vmem:[%s1401_s27 + $0xb0] sm:$0xff] %vm829_vm4, %v621_v35  ;;  %v1135_v37 = vpop.f32.mrb[24].mxu0 }
 0x116   : > { %884 = vst.msk [vmem:[%s1401_s27 + $0x1b0] sm:$0xff] %vm829_vm4, %v781_v36  ;;  %v1183_v38 = vpop.f32.mrb[24].mxu1  ;;  %v636_v39 = vadd.f32 %v1135_v37, %v1394_v3  ;;  %v630_v41 = vpop.f32.mrb[25].mxu0 }
 0x117   : > { %v796_v40 = vadd.f32 %v1183_v38, %v1394_v3  ;;  %v790_v42 = vpop.f32.mrb[25].mxu1  ;;  %v631_v43 = vadd.f32 %v1394_v3, %v630_v41 }
 0x118   : > { %v791_v44 = vadd.f32 %v1394_v3, %v790_v42  ;;  %855 = vst.msk [vmem:[%s1401_s27 + $0xc8] sm:$0xff] %vm829_vm4, %v636_v39 }
 0x119   : > { %887 = vst.msk [vmem:[%s1401_s27 + $0x1c8] sm:$0xff] %vm829_vm4, %v796_v40  ;;  %854 = vst.msk [vmem:[%s1401_s27 + $0xc0] sm:$0xff] %vm829_vm4, %v631_v43  ;;  %v1138_v45 = vpop.f32.mrb[26].mxu0 }
 0x11a   : > { %886 = vst.msk [vmem:[%s1401_s27 + $0x1c0] sm:$0xff] %vm829_vm4, %v791_v44  ;;  %v1186_v46 = vpop.f32.mrb[26].mxu1  ;;  %v646_v47 = vadd.f32 %v1138_v45, %v1394_v3  ;;  %v640_v49 = vpop.f32.mrb[27].mxu0 }
 0x11b   : > { %v806_v48 = vadd.f32 %v1186_v46, %v1394_v3  ;;  %v800_v50 = vpop.f32.mrb[27].mxu1  ;;  %v641_v51 = vadd.f32 %v1394_v3, %v640_v49 }
 0x11c   : > { %v801_v52 = vadd.f32 %v1394_v3, %v800_v50  ;;  %857 = vst.msk [vmem:[%s1401_s27 + $0xd8] sm:$0xff] %vm829_vm4, %v646_v47 }
 0x11d   : > { %889 = vst.msk [vmem:[%s1401_s27 + $0x1d8] sm:$0xff] %vm829_vm4, %v806_v48  ;;  %856 = vst.msk [vmem:[%s1401_s27 + $0xd0] sm:$0xff] %vm829_vm4, %v641_v51  ;;  %v1141_v53 = vpop.f32.mrb[28].mxu0 }
 0x11e   : > { %888 = vst.msk [vmem:[%s1401_s27 + $0x1d0] sm:$0xff] %vm829_vm4, %v801_v52  ;;  %v1189_v54 = vpop.f32.mrb[28].mxu1  ;;  %v656_v55 = vadd.f32 %v1141_v53, %v1394_v3  ;;  %v650_v57 = vpop.f32.mrb[29].mxu0 }
 0x11f   : > { %v816_v56 = vadd.f32 %v1189_v54, %v1394_v3  ;;  %v810_v58 = vpop.f32.mrb[29].mxu1  ;;  %v651_v59 = vadd.f32 %v1394_v3, %v650_v57 }
 0x120   : > { %v811_v60 = vadd.f32 %v1394_v3, %v810_v58  ;;  %859 = vst.msk [vmem:[%s1401_s27 + $0xe8] sm:$0xff] %vm829_vm4, %v656_v55 }
 0x121   : > { %891 = vst.msk [vmem:[%s1401_s27 + $0x1e8] sm:$0xff] %vm829_vm4, %v816_v56  ;;  %858 = vst.msk [vmem:[%s1401_s27 + $0xe0] sm:$0xff] %vm829_vm4, %v651_v59  ;;  %v1144_v61 = vpop.f32.mrb[30].mxu0 }
 0x122   : > { %890 = vst.msk [vmem:[%s1401_s27 + $0x1e0] sm:$0xff] %vm829_vm4, %v811_v60  ;;  %v1192_v62 = vpop.f32.mrb[30].mxu1  ;;  %v666_v63 = vadd.f32 %v1144_v61, %v1394_v3  ;;  %v660_v1 = vpop.f32.mrb[31].mxu0 }
 0x123   : > { %v826_v0 = vadd.f32 %v1192_v62, %v1394_v3  ;;  %v820_v2 = vpop.f32.mrb[31].mxu1  ;;  %v661_v4 = vadd.f32 %v1394_v3, %v660_v1 }
 0x124   : > { %v821_v5 = vadd.f32 %v1394_v3, %v820_v2  ;;  %861 = vst.msk [vmem:[%s1401_s27 + $0xf8] sm:$0xff] %vm829_vm4, %v666_v63 }
 0x125   : > { %893 = vst.msk [vmem:[%s1401_s27 + $0x1f8] sm:$0xff] %vm829_vm4, %v826_v0  ;;  %860 = vst.msk [vmem:[%s1401_s27 + $0xf0] sm:$0xff] %vm829_vm4, %v661_v4 }
 0x126   : > { %892 = vst.msk [vmem:[%s1401_s27 + $0x1f0] sm:$0xff] %vm829_vm4, %v821_v5 }
 0x127 PF: > { %s13_s12 = sadd.s32 1, %s1216_s12  }
 0x128   : > { %p10_p4 = scmp.ge.s32.totalorder %s13_s12, 6  }
 0x12a   :  { %12 = sbr.rel (!%p10_p4) target bundleno = 1 (0x1), region = 62 }

// kernel: net3d_forward.15
= control target key start
LH: loop header
LB: loop body
LE: loop exit
PB: predicated region body
PF: predicated region fallthrough
CT: control target
= control target key end

     0   :  { %s2059_s18 = smov 0   ;;  %s2590_s0 = inlined_call_operand.vmem [shape: f32[4,2,20,128], index: 0, kind: input, shape index: {}]   ;;  %s2591_s1 = inlined_call_operand.vmem [shape: f32[4,2,20,128], index: 1, kind: input, shape index: {}]   ;;  %s2592_s2 = inlined_call_operand.vmem [shape: f32[4,20,20,128], index: 2, kind: input, shape index: {}]   ;;  %s2593_s3 = inlined_call_operand.vmem [shape: f32[4,20,20,128], index: 3, kind: input, shape index: {}]   ;;  %s2594_s4 = inlined_call_operand.vmem [shape: f32[4,2,20,128], index: 4, kind: output, shape index: {0}]   ;;  %s2595_s5 = inlined_call_operand.vmem [shape: f32[4,2,20,128], index: 5, kind: output, shape index: {1}]  }
   0x1 LB: > { %s1884_s19 = sadd.s32 4294967295, %s2027_s18   ;;  %p1888_p0 = scmp.ge.s32.totalorder %s2027_s18, 1  ;;  %s2027_s18 = sphi %s2059_s18, %s16_s18  }
   0x2   : > { %p220_p1 = scmp.lt.s32.totalorder %s2027_s18, 5 }
   0x4   : > { %p221_p2 = pnand %p1888_p0, %p220_p1 }
   0x5   : > { %p268_p3 = scmp.lt.s32.totalorder (!%p221_p2), %s1884_s19, 3  ;;  %v316_v0 = vlaneseq (!%p221_p2) }
   0x6   : > { %224 = sbr.rel (%p221_p2) target bundleno = 279 (0x117), region = 36 }
   0x7   : > { %v317_v1 = vshrl.u32 (!%p221_p2), %v316_v0, 7 }
   0x9   : > { %v2069_v2 = vsub.s32 (!%p221_p2), 0, %v317_v1  ;;  %v2071_v3 = vsub.s32 (!%p221_p2), 1, %v317_v1  ;;  %v2073_v4 = vsub.s32 (!%p221_p2), 2, %v317_v1  ;;  %v2075_v5 = vsub.s32 (!%p221_p2), 3, %v317_v1 }
   0xa   : > { %v2092_v7 = vsub.s32 (!%p221_p2), 4, %v317_v1  ;;  %v2094_v8 = vsub.s32 (!%p221_p2), 5, %v317_v1  ;;  %v2096_v9 = vsub.s32 (!%p221_p2), 6, %v317_v1  ;;  %v2098_v10 = vsub.s32 (!%p221_p2), 7, %v317_v1 }
   0xd   : > { %s2597_s19 = smov (!%p268_p3, %s1884_s19), 3 }
   0xe   : > { %s2067_s20 = smul.u32 48, %s2597_s19 }
   0xf   : > { %s2012_s21 = smul.u32 480, %s2597_s19 }
  0x10   : > { %s2081_s24 = scalar_lea.vmem %s2590_s0, %s2067_s20  ;;  %s2087_s27 = scalar_lea.vmem %s2591_s1, %s2067_s20 }
  0x11   : > { %v2090_v6 = vld [vmem:[%s2081_s24] sm:$0xff]  ;;  %s2103_s30 = scalar_lea.vmem %s2592_s2, %s2012_s21  ;;  %v2106_v11 = vld [vmem:[%s2081_s24 + $0x18] sm:$0xff]  ;;  %s2125_s8 = scalar_lea.vmem %s2593_s3, %s2012_s21 }
  0x12   : > { %v319_v12 = vrot.slane %v2090_v6, %v2069_v2  ;;  %v2112_v13 = vrot.slane %v2090_v6, %v2071_v3  ;;  %v2116_v14 = vrot.slane %v2090_v6, %v2073_v4  ;;  %v2120_v15 = vrot.slane %v2090_v6, %v2075_v5  ;;  %v2128_v16 = vld [vmem:[%s2087_s27] sm:$0xff]  ;;  %v2145_v21 = vld [vmem:[%s2087_s27 + $0x18] sm:$0xff]  ;;  %v311_v27 = vld [vmem:[%s2103_s30 + $0x8] sm:$0xff]  ;;  %s292_s11 = scalar_lea.vmem %s2594_s4, %s2067_s20  ;;  %s297_s14 = scalar_lea.vmem %s2595_s5, %s2067_s20 }
  0x13   : > { %v323_v17 = vrot.slane %v2106_v11, %v2069_v2  ;;  %v2134_v18 = vrot.slane %v2106_v11, %v2071_v3  ;;  %v2138_v19 = vrot.slane %v2106_v11, %v2073_v4  ;;  %v2142_v20 = vrot.slane %v2106_v11, %v2075_v5  ;;  %v310_v26 = vld [vmem:[%s2103_s30] sm:$0xff]  ;;  %v312_v28 = vld [vmem:[%s2103_s30 + $0x10] sm:$0xf]  ;;  %v314_v34 = vld [vmem:[%s2125_s8 + $0x8] sm:$0xff] }
  0x14   : > { %v339_v22 = vrot.slane %v2128_v16, %v2069_v2  ;;  %v2151_v23 = vrot.slane %v2128_v16, %v2071_v3  ;;  %v2155_v24 = vrot.slane %v2128_v16, %v2073_v4  ;;  %v2159_v25 = vrot.slane %v2128_v16, %v2075_v5  ;;  %v313_v33 = vld [vmem:[%s2125_s8] sm:$0xff]  ;;  %v315_v35 = vld [vmem:[%s2125_s8 + $0x10] sm:$0xf]  ;;  %v2182_v56 = vld [vmem:[%s2103_s30 + $0x18] sm:$0xff] }
  0x15   : > { %v343_v29 = vrot.slane %v2145_v21, %v2069_v2  ;;  %v2168_v30 = vrot.slane %v2145_v21, %v2071_v3  ;;  %v2172_v31 = vrot.slane %v2145_v21, %v2073_v4  ;;  %v2176_v32 = vrot.slane %v2145_v21, %v2075_v5  ;;  %v2185_v57 = vld [vmem:[%s2103_s30 + $0x20] sm:$0xff] }
  0x16   : > { %v324_v36 = vmul.f32 %v319_v12, %v310_v26  ;;  %v325_v37 = vmul.f32 %v319_v12, %v311_v27  ;;  %v326_v38 = vmul.f32 %v319_v12, %v312_v28  ;;  %v327_v39 = vmul.f32 %v323_v17, %v310_v26 }
  0x17   : > { %v328_v40 = vmul.f32 %v323_v17, %v311_v27  ;;  %v329_v41 = vmul.f32 %v323_v17, %v312_v28  ;;  %v344_v42 = vmul.f32 %v339_v22, %v313_v33  ;;  %v345_v43 = vmul.f32 %v339_v22, %v314_v34 }
  0x18   : > { %v346_v44 = vmul.f32 %v339_v22, %v315_v35  ;;  %v347_v45 = vmul.f32 %v343_v29, %v313_v33  ;;  %v348_v46 = vmul.f32 %v343_v29, %v314_v34  ;;  %v349_v47 = vmul.f32 %v343_v29, %v315_v35 }
  0x19   : > { %v350_v48 = vsub.f32 %v324_v36, %v344_v42  ;;  %v351_v49 = vsub.f32 %v325_v37, %v345_v43  ;;  %v356_v50 = vmul.f32 %v319_v12, %v313_v33  ;;  %v357_v51 = vmul.f32 %v319_v12, %v314_v34  ;;  %v1897_v36 = vld [vmem:[%s2103_s30 + $0x28] sm:$0xf] }
  0x1a   : > { %v352_v52 = vsub.f32 %v326_v38, %v346_v44  ;;  %v353_v53 = vsub.f32 %v327_v39, %v347_v45  ;;  %v354_v54 = vsub.f32 %v328_v40, %v348_v46  ;;  %v355_v55 = vsub.f32 %v329_v41, %v349_v47  ;;  %v1900_v45 = vld [vmem:[%s2125_s8 + $0x28] sm:$0xf] }
  0x1b   : > { %v358_v58 = vmul.f32 %v319_v12, %v315_v35  ;;  %v359_v59 = vmul.f32 %v323_v17, %v313_v33  ;;  %v360_v60 = vmul.f32 %v323_v17, %v314_v34  ;;  %v361_v61 = vmul.f32 %v323_v17, %v315_v35 }
  0x1c   : > { %v368_v62 = vmul.f32 %v339_v22, %v310_v26  ;;  %v369_v63 = vmul.f32 %v339_v22, %v311_v27  ;;  %v370_v0 = vmul.f32 %v339_v22, %v312_v28  ;;  %v371_v1 = vmul.f32 %v343_v29, %v310_v26 }
  0x1d   : > { %v372_v37 = vmul.f32 %v343_v29, %v311_v27  ;;  %v373_v38 = vmul.f32 %v343_v29, %v312_v28  ;;  %v396_v39 = vmul.f32 %v2182_v56, %v2112_v13  ;;  %v397_v40 = vmul.f32 %v2185_v57, %v2112_v13  ;;  %v1898_v27 = vld [vmem:[%s2125_s8 + $0x18] sm:$0xff]  ;;  %v1899_v28 = vld [vmem:[%s2125_s8 + $0x20] sm:$0xff] }
  0x1e   : > { %v374_v12 = vadd.f32 %v368_v62, %v356_v50  ;;  %v375_v33 = vadd.f32 %v369_v63, %v357_v51  ;;  %v376_v34 = vadd.f32 %v370_v0, %v358_v58  ;;  %v377_v17 = vadd.f32 %v371_v1, %v359_v59 }
  0x1f   : > { %v378_v35 = vadd.f32 %v372_v37, %v360_v60  ;;  %v379_v41 = vadd.f32 %v373_v38, %v361_v61  ;;  %v398_v22 = vmul.f32 %v1897_v36, %v2112_v13  ;;  %v399_v26 = vmul.f32 %v2182_v56, %v2134_v18 }
  0x20   : > { %v400_v29 = vmul.f32 %v2185_v57, %v2134_v18  ;;  %v401_v42 = vmul.f32 %v1897_v36, %v2134_v18  ;;  %v402_v43 = vadd.f32 %v396_v39, %v350_v48  ;;  %v403_v44 = vadd.f32 %v397_v40, %v351_v49 }
  0x21   : > { %v404_v46 = vadd.f32 %v398_v22, %v352_v52  ;;  %v405_v47 = vadd.f32 %v399_v26, %v353_v53  ;;  %v416_v50 = vmul.f32 %v1898_v27, %v2151_v23  ;;  %v417_v51 = vmul.f32 %v1899_v28, %v2151_v23 }
  0x22   : > { %v406_v58 = vadd.f32 %v400_v29, %v354_v54  ;;  %v407_v59 = vadd.f32 %v401_v42, %v355_v55  ;;  %v418_v60 = vmul.f32 %v1900_v45, %v2151_v23  ;;  %v419_v61 = vmul.f32 %v1898_v27, %v2168_v30 }
  0x23   : > { %v420_v62 = vmul.f32 %v1899_v28, %v2168_v30  ;;  %v421_v63 = vmul.f32 %v1900_v45, %v2168_v30  ;;  %v422_v0 = vsub.f32 %v402_v43, %v416_v50  ;;  %v423_v48 = vsub.f32 %v403_v44, %v417_v51 }
  0x24   : > { %v424_v49 = vsub.f32 %v404_v46, %v418_v60  ;;  %v425_v52 = vsub.f32 %v405_v47, %v419_v61  ;;  %v428_v53 = vmul.f32 %v1898_v27, %v2112_v13  ;;  %v429_v1 = vmul.f32 %v1899_v28, %v2112_v13  ;;  %v1901_v46 = vld [vmem:[%s2103_s30 + $0x30] sm:$0xff]  ;;  %v1902_v47 = vld [vmem:[%s2103_s30 + $0x38] sm:$0xff] }
  0x25   : > { %v426_v54 = vsub.f32 %v406_v58, %v420_v62  ;;  %v427_v55 = vsub.f32 %v407_v59, %v421_v63  ;;  %v430_v37 = vmul.f32 %v1900_v45, %v2112_v13  ;;  %v431_v38 = vmul.f32 %v1898_v27, %v2134_v18  ;;  %v1904_v60 = vld [vmem:[%s2125_s8 + $0x30] sm:$0xff]  ;;  %v1905_v61 = vld [vmem:[%s2125_s8 + $0x38] sm:$0xff]  ;;  %v1906_v63 = vld [vmem:[%s2125_s8 + $0x40] sm:$0xf] }
  0x26   : > { %v432_v39 = vmul.f32 %v1899_v28, %v2134_v18  ;;  %v433_v40 = vmul.f32 %v1900_v45, %v2134_v18  ;;  %v434_v22 = vadd.f32 %v428_v53, %v374_v12  ;;  %v435_v26 = vadd.f32 %v429_v1, %v375_v33  ;;  %v1903_v12 = vld [vmem:[%s2103_s30 + $0x40] sm:$0xf] }
  0x27   : > { %v436_v29 = vadd.f32 %v430_v37, %v376_v34  ;;  %v437_v42 = vadd.f32 %v431_v38, %v377_v17  ;;  %v440_v43 = vmul.f32 %v2182_v56, %v2151_v23  ;;  %v441_v44 = vmul.f32 %v2185_v57, %v2151_v23 }
  0x28   : > { %v438_v13 = vadd.f32 %v432_v39, %v378_v35  ;;  %v439_v50 = vadd.f32 %v433_v40, %v379_v41  ;;  %v442_v27 = vmul.f32 %v1897_v36, %v2151_v23  ;;  %v443_v18 = vmul.f32 %v2182_v56, %v2168_v30 }
  0x29   : > { %v444_v33 = vmul.f32 %v2185_v57, %v2168_v30  ;;  %v445_v34 = vmul.f32 %v1897_v36, %v2168_v30  ;;  %v446_v17 = vadd.f32 %v440_v43, %v434_v22  ;;  %v447_v28 = vadd.f32 %v441_v44, %v435_v26 }
  0x2a   : > { %v448_v45 = vadd.f32 %v442_v27, %v436_v29  ;;  %v449_v51 = vadd.f32 %v443_v18, %v437_v42  ;;  %v468_v35 = vmul.f32 %v1901_v46, %v2116_v14  ;;  %v469_v41 = vmul.f32 %v1902_v47, %v2116_v14 }
  0x2b   : > { %v450_v23 = vadd.f32 %v444_v33, %v438_v13  ;;  %v451_v58 = vadd.f32 %v445_v34, %v439_v50  ;;  %v470_v59 = vmul.f32 %v1903_v12, %v2116_v14  ;;  %v471_v56 = vmul.f32 %v1901_v46, %v2138_v19 }
  0x2c   : > { %v472_v57 = vmul.f32 %v1902_v47, %v2138_v19  ;;  %v473_v30 = vmul.f32 %v1903_v12, %v2138_v19  ;;  %v474_v36 = vadd.f32 %v468_v35, %v422_v0  ;;  %v475_v62 = vadd.f32 %v469_v41, %v423_v48 }
  0x2d   : > { %v476_v53 = vadd.f32 %v470_v59, %v424_v49  ;;  %v477_v1 = vadd.f32 %v471_v56, %v425_v52  ;;  %v488_v37 = vmul.f32 %v1904_v60, %v2155_v24  ;;  %v489_v38 = vmul.f32 %v1905_v61, %v2155_v24 }
  0x2e   : > { %v478_v39 = vadd.f32 %v472_v57, %v426_v54  ;;  %v479_v40 = vadd.f32 %v473_v30, %v427_v55  ;;  %v490_v22 = vmul.f32 %v1906_v63, %v2155_v24  ;;  %v491_v26 = vmul.f32 %v1904_v60, %v2172_v31  ;;  %v1907_v57 = vld [vmem:[%s2103_s30 + $0x48] sm:$0xff]  ;;  %v1908_v30 = vld [vmem:[%s2103_s30 + $0x50] sm:$0xff] }
  0x2f   : > { %v492_v29 = vmul.f32 %v1905_v61, %v2172_v31  ;;  %v493_v42 = vmul.f32 %v1906_v63, %v2172_v31  ;;  %v494_v43 = vsub.f32 %v474_v36, %v488_v37  ;;  %v495_v0 = vsub.f32 %v475_v62, %v489_v38  ;;  %v1910_v37 = vld [vmem:[%s2125_s8 + $0x48] sm:$0xff]  ;;  %v1911_v38 = vld [vmem:[%s2125_s8 + $0x50] sm:$0xff] }
  0x30   : > { %v496_v48 = vsub.f32 %v476_v53, %v490_v22  ;;  %v497_v49 = vsub.f32 %v477_v1, %v491_v26  ;;  %v500_v52 = vmul.f32 %v1904_v60, %v2116_v14  ;;  %v501_v44 = vmul.f32 %v1905_v61, %v2116_v14 }
  0x31   : > { %v498_v54 = vsub.f32 %v478_v39, %v492_v29  ;;  %v499_v55 = vsub.f32 %v479_v40, %v493_v42  ;;  %v502_v13 = vmul.f32 %v1906_v63, %v2116_v14  ;;  %v503_v50 = vmul.f32 %v1904_v60, %v2138_v19  ;;  %v1912_v40 = vld [vmem:[%s2125_s8 + $0x58] sm:$0xf] }
  0x32   : > { %v504_v27 = vmul.f32 %v1905_v61, %v2138_v19  ;;  %v505_v18 = vmul.f32 %v1906_v63, %v2138_v19  ;;  %v506_v33 = vadd.f32 %v500_v52, %v446_v17  ;;  %v507_v34 = vadd.f32 %v501_v44, %v447_v28  ;;  %v1909_v61 = vld [vmem:[%s2103_s30 + $0x58] sm:$0xf] }
  0x33   : > { %v508_v35 = vadd.f32 %v502_v13, %v448_v45  ;;  %v509_v41 = vadd.f32 %v503_v50, %v449_v51  ;;  %v512_v59 = vmul.f32 %v1901_v46, %v2155_v24  ;;  %v513_v56 = vmul.f32 %v1902_v47, %v2155_v24 }
  0x34   : > { %v510_v36 = vadd.f32 %v504_v27, %v450_v23  ;;  %v511_v62 = vadd.f32 %v505_v18, %v451_v58  ;;  %v514_v14 = vmul.f32 %v1903_v12, %v2155_v24  ;;  %v515_v60 = vmul.f32 %v1901_v46, %v2172_v31 }
  0x35   : > { %v516_v19 = vmul.f32 %v1902_v47, %v2172_v31  ;;  %v517_v17 = vmul.f32 %v1903_v12, %v2172_v31  ;;  %v518_v28 = vadd.f32 %v512_v59, %v506_v33  ;;  %v519_v45 = vadd.f32 %v513_v56, %v507_v34 }
  0x36   : > { %v520_v51 = vadd.f32 %v514_v14, %v508_v35  ;;  %v521_v63 = vadd.f32 %v515_v60, %v509_v41  ;;  %v540_v53 = vmul.f32 %v1907_v57, %v2120_v15  ;;  %v541_v23 = vmul.f32 %v1908_v30, %v2120_v15 }
  0x37   : > { %v522_v58 = vadd.f32 %v516_v19, %v510_v36  ;;  %v523_v1 = vadd.f32 %v517_v17, %v511_v62  ;;  %v542_v24 = vmul.f32 %v1909_v61, %v2120_v15  ;;  %v543_v46 = vmul.f32 %v1907_v57, %v2142_v20 }
  0x38   : > { %v544_v47 = vmul.f32 %v1908_v30, %v2142_v20  ;;  %v545_v31 = vmul.f32 %v1909_v61, %v2142_v20  ;;  %v546_v12 = vadd.f32 %v540_v53, %v494_v43  ;;  %v547_v39 = vadd.f32 %v541_v23, %v495_v0 }
  0x39   : > { %v548_v22 = vadd.f32 %v542_v24, %v496_v48  ;;  %v549_v26 = vadd.f32 %v543_v46, %v497_v49  ;;  %v560_v29 = vmul.f32 %v1910_v37, %v2159_v25  ;;  %v561_v42 = vmul.f32 %v1911_v38, %v2159_v25 }
  0x3a   : > { %v550_v52 = vadd.f32 %v544_v47, %v498_v54  ;;  %v551_v44 = vadd.f32 %v545_v31, %v499_v55  ;;  %v562_v13 = vmul.f32 %v1912_v40, %v2159_v25  ;;  %v563_v50 = vmul.f32 %v1910_v37, %v2176_v32  ;;  %v1917_v31 = vld [vmem:[%s2125_s8 + $0x68] sm:$0xff] }
  0x3b   : > { %v564_v27 = vmul.f32 %v1911_v38, %v2176_v32  ;;  %v565_v18 = vmul.f32 %v1912_v40, %v2176_v32  ;;  %v566_v33 = vsub.f32 %v546_v12, %v560_v29  ;;  %v567_v43 = vsub.f32 %v547_v39, %v561_v42 }
  0x3c   : > { %v568_v0 = vsub.f32 %v548_v22, %v562_v13  ;;  %v569_v34 = vsub.f32 %v549_v26, %v563_v50  ;;  %v572_v48 = vmul.f32 %v1910_v37, %v2120_v15  ;;  %v573_v49 = vmul.f32 %v1911_v38, %v2120_v15 }
  0x3d   : > { %v570_v35 = vsub.f32 %v550_v52, %v564_v27  ;;  %v571_v41 = vsub.f32 %v551_v44, %v565_v18  ;;  %v574_v54 = vmul.f32 %v1912_v40, %v2120_v15  ;;  %v575_v55 = vmul.f32 %v1910_v37, %v2142_v20  ;;  %v1915_v37 = vld [vmem:[%s2103_s30 + $0x70] sm:$0xf] }
  0x3e   : > { %v576_v59 = vmul.f32 %v1911_v38, %v2142_v20  ;;  %v577_v56 = vmul.f32 %v1912_v40, %v2142_v20  ;;  %v578_v36 = vadd.f32 %v572_v48, %v518_v28  ;;  %v579_v62 = vadd.f32 %v573_v49, %v519_v45  ;;  %v1918_v44 = vld [vmem:[%s2125_s8 + $0x70] sm:$0xf] }
  0x3f   : > { %v580_v14 = vadd.f32 %v574_v54, %v520_v51  ;;  %v581_v60 = vadd.f32 %v575_v55, %v521_v63  ;;  %v584_v19 = vmul.f32 %v1907_v57, %v2159_v25  ;;  %v585_v17 = vmul.f32 %v1908_v30, %v2159_v25  ;;  %v1913_v51 = vld [vmem:[%s2103_s30 + $0x60] sm:$0xff]  ;;  %v1914_v63 = vld [vmem:[%s2103_s30 + $0x68] sm:$0xff] }
  0x40   : > { %v582_v53 = vadd.f32 %v576_v59, %v522_v58  ;;  %v583_v23 = vadd.f32 %v577_v56, %v523_v1  ;;  %v586_v15 = vmul.f32 %v1909_v61, %v2159_v25  ;;  %v587_v24 = vmul.f32 %v1907_v57, %v2176_v32 }
  0x41   : > { %v588_v46 = vmul.f32 %v1908_v30, %v2176_v32  ;;  %v589_v20 = vmul.f32 %v1909_v61, %v2176_v32  ;;  %v590_v28 = vadd.f32 %v584_v19, %v578_v36  ;;  %v591_v45 = vadd.f32 %v585_v17, %v579_v62  ;;  %v1916_v61 = vld [vmem:[%s2125_s8 + $0x60] sm:$0xff] }
  0x42   : > { %v592_v38 = vadd.f32 %v586_v15, %v580_v14  ;;  %v593_v47 = vadd.f32 %v587_v24, %v581_v60  ;;  %v607_v58 = vrot.slane %v2090_v6, %v2092_v7  ;;  %v611_v25 = vrot.slane %v2106_v11, %v2092_v7 }
  0x43   : > { %v594_v57 = vadd.f32 %v588_v46, %v582_v53  ;;  %v595_v1 = vadd.f32 %v589_v20, %v583_v23  ;;  %v627_v30 = vrot.slane %v2128_v16, %v2092_v7  ;;  %v631_v32 = vrot.slane %v2145_v21, %v2092_v7 }
  0x44   : > { %v612_v12 = vmul.f32 %v1913_v51, %v607_v58  ;;  %v613_v39 = vmul.f32 %v1914_v63, %v607_v58  ;;  %v614_v40 = vmul.f32 %v1915_v37, %v607_v58  ;;  %v615_v22 = vmul.f32 %v1913_v51, %v611_v25 }
  0x45   : > { %v616_v26 = vmul.f32 %v1914_v63, %v611_v25  ;;  %v617_v29 = vmul.f32 %v1915_v37, %v611_v25  ;;  %v632_v42 = vmul.f32 %v1916_v61, %v627_v30  ;;  %v633_v52 = vmul.f32 %v1917_v31, %v627_v30 }
  0x46   : > { %v618_v13 = vadd.f32 %v612_v12, %v566_v33  ;;  %v619_v50 = vadd.f32 %v613_v39, %v567_v43  ;;  %v620_v27 = vadd.f32 %v614_v40, %v568_v0  ;;  %v621_v18 = vadd.f32 %v615_v22, %v569_v34 }
  0x47   : > { %v622_v48 = vadd.f32 %v616_v26, %v570_v35  ;;  %v623_v49 = vadd.f32 %v617_v29, %v571_v41  ;;  %v634_v54 = vmul.f32 %v1918_v44, %v627_v30  ;;  %v635_v55 = vmul.f32 %v1916_v61, %v631_v32  ;;  %v1919_v29 = vld [vmem:[%s2103_s30 + $0x78] sm:$0xff] }
  0x48   : > { %v636_v59 = vmul.f32 %v1917_v31, %v631_v32  ;;  %v637_v56 = vmul.f32 %v1918_v44, %v631_v32  ;;  %v638_v36 = vsub.f32 %v618_v13, %v632_v42  ;;  %v639_v62 = vsub.f32 %v619_v50, %v633_v52  ;;  %v1921_v42 = vld [vmem:[%s2103_s30 + $0x88] sm:$0xf] }
  0x49   : > { %v640_v14 = vsub.f32 %v620_v27, %v634_v54  ;;  %v641_v60 = vsub.f32 %v621_v18, %v635_v55  ;;  %v644_v19 = vmul.f32 %v1916_v61, %v607_v58  ;;  %v645_v17 = vmul.f32 %v1917_v31, %v607_v58 }
  0x4a   : > { %v642_v53 = vsub.f32 %v622_v48, %v636_v59  ;;  %v643_v23 = vsub.f32 %v623_v49, %v637_v56  ;;  %v646_v15 = vmul.f32 %v1918_v44, %v607_v58  ;;  %v647_v24 = vmul.f32 %v1916_v61, %v611_v25  ;;  %v1924_v49 = vld [vmem:[%s2125_s8 + $0x88] sm:$0xf] }
  0x4b   : > { %v648_v33 = vmul.f32 %v1917_v31, %v611_v25  ;;  %v649_v43 = vmul.f32 %v1918_v44, %v611_v25  ;;  %v650_v0 = vadd.f32 %v644_v19, %v590_v28  ;;  %v651_v34 = vadd.f32 %v645_v17, %v591_v45  ;;  %v1920_v25 = vld [vmem:[%s2103_s30 + $0x80] sm:$0xff] }
  0x4c   : > { %v652_v35 = vadd.f32 %v646_v15, %v592_v38  ;;  %v653_v41 = vadd.f32 %v647_v24, %v593_v47  ;;  %v656_v46 = vmul.f32 %v1913_v51, %v627_v30  ;;  %v657_v20 = vmul.f32 %v1914_v63, %v627_v30 }
  0x4d   : > { %v654_v12 = vadd.f32 %v648_v33, %v594_v57  ;;  %v655_v39 = vadd.f32 %v649_v43, %v595_v1  ;;  %v658_v40 = vmul.f32 %v1915_v37, %v627_v30  ;;  %v659_v22 = vmul.f32 %v1913_v51, %v631_v32  ;;  %v1922_v57 = vld [vmem:[%s2125_s8 + $0x78] sm:$0xff]  ;;  %v1923_v1 = vld [vmem:[%s2125_s8 + $0x80] sm:$0xff] }
  0x4e   : > { %v660_v26 = vmul.f32 %v1914_v63, %v631_v32  ;;  %v661_v58 = vmul.f32 %v1915_v37, %v631_v32  ;;  %v662_v61 = vadd.f32 %v656_v46, %v650_v0  ;;  %v663_v31 = vadd.f32 %v657_v20, %v651_v34 }
  0x4f   : > { %v664_v28 = vadd.f32 %v658_v40, %v652_v35  ;;  %v665_v52 = vadd.f32 %v659_v22, %v653_v41  ;;  %v679_v45 = vrot.slane %v2090_v6, %v2094_v8  ;;  %v683_v38 = vrot.slane %v2106_v11, %v2094_v8 }
  0x50   : > { %v666_v47 = vadd.f32 %v660_v26, %v654_v12  ;;  %v667_v51 = vadd.f32 %v661_v58, %v655_v39  ;;  %v699_v63 = vrot.slane %v2128_v16, %v2094_v8  ;;  %v703_v37 = vrot.slane %v2145_v21, %v2094_v8 }
  0x51   : > { %v684_v30 = vmul.f32 %v1919_v29, %v679_v45  ;;  %v685_v32 = vmul.f32 %v1920_v25, %v679_v45  ;;  %v686_v44 = vmul.f32 %v1921_v42, %v679_v45  ;;  %v687_v13 = vmul.f32 %v1919_v29, %v683_v38 }
  0x52   : > { %v688_v50 = vmul.f32 %v1920_v25, %v683_v38  ;;  %v689_v27 = vmul.f32 %v1921_v42, %v683_v38  ;;  %v704_v18 = vmul.f32 %v1922_v57, %v699_v63  ;;  %v705_v48 = vmul.f32 %v1923_v1, %v699_v63 }
  0x53   : > { %v690_v54 = vadd.f32 %v684_v30, %v638_v36  ;;  %v691_v55 = vadd.f32 %v685_v32, %v639_v62  ;;  %v692_v59 = vadd.f32 %v686_v44, %v640_v14  ;;  %v693_v56 = vadd.f32 %v687_v13, %v641_v60 }
  0x54   : > { %v694_v19 = vadd.f32 %v688_v50, %v642_v53  ;;  %v695_v17 = vadd.f32 %v689_v27, %v643_v23  ;;  %v706_v15 = vmul.f32 %v1924_v49, %v699_v63  ;;  %v707_v24 = vmul.f32 %v1922_v57, %v703_v37  ;;  %v1925_v27 = vld [vmem:[%s2103_s30 + $0x90] sm:$0xff] }
  0x55   : > { %v708_v33 = vmul.f32 %v1923_v1, %v703_v37  ;;  %v709_v43 = vmul.f32 %v1924_v49, %v703_v37  ;;  %v710_v0 = vsub.f32 %v690_v54, %v704_v18  ;;  %v711_v34 = vsub.f32 %v691_v55, %v705_v48  ;;  %v1927_v18 = vld [vmem:[%s2103_s30 + $0xa0] sm:$0xf] }
  0x56   : > { %v712_v35 = vsub.f32 %v692_v59, %v706_v15  ;;  %v713_v41 = vsub.f32 %v693_v56, %v707_v24  ;;  %v716_v46 = vmul.f32 %v1922_v57, %v679_v45  ;;  %v717_v20 = vmul.f32 %v1923_v1, %v679_v45 }
  0x57   : > { %v714_v12 = vsub.f32 %v694_v19, %v708_v33  ;;  %v715_v39 = vsub.f32 %v695_v17, %v709_v43  ;;  %v718_v40 = vmul.f32 %v1924_v49, %v679_v45  ;;  %v719_v22 = vmul.f32 %v1922_v57, %v683_v38  ;;  %v1930_v17 = vld [vmem:[%s2125_s8 + $0xa0] sm:$0xf] }
  0x58   : > { %v720_v36 = vmul.f32 %v1923_v1, %v683_v38  ;;  %v721_v62 = vmul.f32 %v1924_v49, %v683_v38  ;;  %v722_v14 = vadd.f32 %v716_v46, %v662_v61  ;;  %v723_v60 = vadd.f32 %v717_v20, %v663_v31  ;;  %v1926_v38 = vld [vmem:[%s2103_s30 + $0x98] sm:$0xff] }
  0x59   : > { %v724_v53 = vadd.f32 %v718_v40, %v664_v28  ;;  %v725_v23 = vadd.f32 %v719_v22, %v665_v52  ;;  %v728_v26 = vmul.f32 %v1919_v29, %v699_v63  ;;  %v729_v58 = vmul.f32 %v1920_v25, %v699_v63 }
  0x5a   : > { %v726_v30 = vadd.f32 %v720_v36, %v666_v47  ;;  %v727_v32 = vadd.f32 %v721_v62, %v667_v51  ;;  %v730_v44 = vmul.f32 %v1921_v42, %v699_v63  ;;  %v731_v13 = vmul.f32 %v1919_v29, %v703_v37  ;;  %v1928_v47 = vld [vmem:[%s2125_s8 + $0x90] sm:$0xff]  ;;  %v1929_v51 = vld [vmem:[%s2125_s8 + $0x98] sm:$0xff] }
  0x5b   : > { %v732_v50 = vmul.f32 %v1920_v25, %v703_v37  ;;  %v733_v45 = vmul.f32 %v1921_v42, %v703_v37  ;;  %v734_v57 = vadd.f32 %v728_v26, %v722_v14  ;;  %v735_v1 = vadd.f32 %v729_v58, %v723_v60 }
  0x5c   : > { %v736_v61 = vadd.f32 %v730_v44, %v724_v53  ;;  %v737_v48 = vadd.f32 %v731_v13, %v725_v23  ;;  %v751_v31 = vrot.slane %v2090_v6, %v2096_v9  ;;  %v755_v28 = vrot.slane %v2106_v11, %v2096_v9 }
  0x5d   : > { %v738_v52 = vadd.f32 %v732_v50, %v726_v30  ;;  %v739_v29 = vadd.f32 %v733_v45, %v727_v32  ;;  %v771_v25 = vrot.slane %v2128_v16, %v2096_v9  ;;  %v775_v42 = vrot.slane %v2145_v21, %v2096_v9 }
  0x5e   : > { %v756_v63 = vmul.f32 %v1925_v27, %v751_v31  ;;  %v757_v37 = vmul.f32 %v1926_v38, %v751_v31  ;;  %v758_v49 = vmul.f32 %v1927_v18, %v751_v31  ;;  %v759_v54 = vmul.f32 %v1925_v27, %v755_v28 }
  0x5f   : > { %v760_v55 = vmul.f32 %v1926_v38, %v755_v28  ;;  %v761_v59 = vmul.f32 %v1927_v18, %v755_v28  ;;  %v776_v56 = vmul.f32 %v1928_v47, %v771_v25  ;;  %v777_v19 = vmul.f32 %v1929_v51, %v771_v25 }
  0x60   : > { %v762_v15 = vadd.f32 %v756_v63, %v710_v0  ;;  %v763_v24 = vadd.f32 %v757_v37, %v711_v34  ;;  %v764_v33 = vadd.f32 %v758_v49, %v712_v35  ;;  %v765_v43 = vadd.f32 %v759_v54, %v713_v41 }
  0x61   : > { %v766_v46 = vadd.f32 %v760_v55, %v714_v12  ;;  %v767_v20 = vadd.f32 %v761_v59, %v715_v39  ;;  %v778_v40 = vmul.f32 %v1930_v17, %v771_v25  ;;  %v779_v22 = vmul.f32 %v1928_v47, %v775_v42  ;;  %v1931_v59 = vld [vmem:[%s2103_s30 + $0xa8] sm:$0xff] }
  0x62   : > { %v780_v36 = vmul.f32 %v1929_v51, %v775_v42  ;;  %v781_v62 = vmul.f32 %v1930_v17, %v775_v42  ;;  %v782_v14 = vsub.f32 %v762_v15, %v776_v56  ;;  %v783_v60 = vsub.f32 %v763_v24, %v777_v19  ;;  %v1933_v56 = vld [vmem:[%s2103_s30 + $0xb8] sm:$0xf] }
  0x63   : > { %v784_v53 = vsub.f32 %v764_v33, %v778_v40  ;;  %v785_v23 = vsub.f32 %v765_v43, %v779_v22  ;;  %v788_v26 = vmul.f32 %v1928_v47, %v751_v31  ;;  %v789_v58 = vmul.f32 %v1929_v51, %v751_v31 }
  0x64   : > { %v786_v30 = vsub.f32 %v766_v46, %v780_v36  ;;  %v787_v32 = vsub.f32 %v767_v20, %v781_v62  ;;  %v790_v44 = vmul.f32 %v1930_v17, %v751_v31  ;;  %v791_v13 = vmul.f32 %v1928_v47, %v755_v28 }
  0x65   : > { %v792_v0 = vmul.f32 %v1929_v51, %v755_v28  ;;  %v793_v34 = vmul.f32 %v1930_v17, %v755_v28  ;;  %v794_v35 = vadd.f32 %v788_v26, %v734_v57  ;;  %v795_v41 = vadd.f32 %v789_v58, %v735_v1  ;;  %v1932_v28 = vld [vmem:[%s2103_s30 + $0xb0] sm:$0xff] }
  0x66   : > { %v796_v12 = vadd.f32 %v790_v44, %v736_v61  ;;  %v797_v39 = vadd.f32 %v791_v13, %v737_v48  ;;  %v800_v50 = vmul.f32 %v1925_v27, %v771_v25  ;;  %v801_v45 = vmul.f32 %v1926_v38, %v771_v25 }
  0x67   : > { %v798_v63 = vadd.f32 %v792_v0, %v738_v52  ;;  %v799_v37 = vadd.f32 %v793_v34, %v739_v29  ;;  %v802_v49 = vmul.f32 %v1927_v18, %v771_v25  ;;  %v803_v54 = vmul.f32 %v1925_v27, %v775_v42  ;;  %v1934_v52 = vld [vmem:[%s2125_s8 + $0xa8] sm:$0xff]  ;;  %v1935_v29 = vld [vmem:[%s2125_s8 + $0xb0] sm:$0xff] }
  0x68   : > { %v804_v55 = vmul.f32 %v1926_v38, %v775_v42  ;;  %v805_v31 = vmul.f32 %v1927_v18, %v775_v42  ;;  %v806_v47 = vadd.f32 %v800_v50, %v794_v35  ;;  %v807_v51 = vadd.f32 %v801_v45, %v795_v41  ;;  %v2364_v50 = vld [vmem:[%s2081_s24 + $0x8] sm:$0xff]  ;;  %v2367_v45 = vld [vmem:[%s2081_s24 + $0x20] sm:$0xff] }
  0x69   : > { %v808_v57 = vadd.f32 %v802_v49, %v796_v12  ;;  %v809_v19 = vadd.f32 %v803_v54, %v797_v39  ;;  %v823_v1 = vrot.slane %v2090_v6, %v2098_v10  ;;  %v827_v61 = vrot.slane %v2106_v11, %v2098_v10  ;;  %v1936_v11 = vld [vmem:[%s2125_s8 + $0xb8] sm:$0xf] }
  0x6a   : > { %v810_v48 = vadd.f32 %v804_v55, %v798_v63  ;;  %v811_v27 = vadd.f32 %v805_v31, %v799_v37  ;;  %v843_v38 = vrot.slane %v2128_v16, %v2098_v10  ;;  %v847_v18 = vrot.slane %v2145_v21, %v2098_v10  ;;  %v2370_v55 = vld [vmem:[%s2087_s27 + $0x8] sm:$0xff]  ;;  %v2373_v31 = vld [vmem:[%s2087_s27 + $0x20] sm:$0xff] }
  0x6b   : > { %v828_v25 = vmul.f32 %v1931_v59, %v823_v1  ;;  %v829_v42 = vmul.f32 %v1932_v28, %v823_v1  ;;  %v830_v17 = vmul.f32 %v1933_v56, %v823_v1  ;;  %v831_v15 = vmul.f32 %v1931_v59, %v827_v61 }
  0x6c   : > { %v832_v24 = vmul.f32 %v1932_v28, %v827_v61  ;;  %v833_v6 = vmul.f32 %v1933_v56, %v827_v61  ;;  %v2338_v33 = vmul.f32 %v1934_v52, %v843_v38  ;;  %v2340_v43 = vmul.f32 %v1935_v29, %v843_v38 }
  0x6d   : > { %v2343_v46 = vadd.f32 %v828_v25, %v782_v14  ;;  %v2345_v20 = vadd.f32 %v829_v42, %v783_v60  ;;  %v2347_v16 = vadd.f32 %v830_v17, %v784_v53  ;;  %v2349_v21 = vadd.f32 %v831_v15, %v785_v23  ;;  %v1937_v17 = vld [vmem:[%s2103_s30 + $0xc0] sm:$0xff]  ;;  %v1939_v15 = vld [vmem:[%s2103_s30 + $0xd0] sm:$0xf] }
  0x6e   : > { %v2351_v40 = vadd.f32 %v832_v24, %v786_v30  ;;  %v2353_v22 = vadd.f32 %v833_v6, %v787_v32  ;;  %v850_v36 = vmul.f32 %v1936_v11, %v843_v38  ;;  %v851_v62 = vmul.f32 %v1934_v52, %v847_v18 }
  0x6f   : > { %v852_v26 = vmul.f32 %v1935_v29, %v847_v18  ;;  %v853_v58 = vmul.f32 %v1936_v11, %v847_v18  ;;  %v854_v14 = vsub.f32 %v2343_v46, %v2338_v33  ;;  %v855_v60 = vsub.f32 %v2345_v20, %v2340_v43 }
  0x70   : > { %v856_v53 = vsub.f32 %v2347_v16, %v850_v36  ;;  %v857_v23 = vsub.f32 %v2349_v21, %v851_v62  ;;  %v860_v30 = vmul.f32 %v1934_v52, %v823_v1  ;;  %v861_v32 = vmul.f32 %v1935_v29, %v823_v1 }
  0x71   : > { %v858_v44 = vsub.f32 %v2351_v40, %v852_v26  ;;  %v859_v13 = vsub.f32 %v2353_v22, %v853_v58  ;;  %v862_v0 = vmul.f32 %v1936_v11, %v823_v1  ;;  %v863_v34 = vmul.f32 %v1934_v52, %v827_v61  ;;  %v1942_v22 = vld [vmem:[%s2125_s8 + $0xd0] sm:$0xf] }
  0x72   : > { %v864_v35 = vmul.f32 %v1935_v29, %v827_v61  ;;  %v865_v41 = vmul.f32 %v1936_v11, %v827_v61  ;;  %v866_v12 = vadd.f32 %v860_v30, %v806_v47  ;;  %v867_v39 = vadd.f32 %v861_v32, %v807_v51 }
  0x73   : > { %v868_v63 = vadd.f32 %v862_v0, %v808_v57  ;;  %v869_v37 = vadd.f32 %v863_v34, %v809_v19  ;;  %v872_v49 = vmul.f32 %v1931_v59, %v843_v38  ;;  %v873_v54 = vmul.f32 %v1932_v28, %v843_v38  ;;  %v1938_v57 = vld [vmem:[%s2103_s30 + $0xc8] sm:$0xff] }
  0x74   : > { %v870_v1 = vadd.f32 %v864_v35, %v810_v48  ;;  %v871_v52 = vadd.f32 %v865_v41, %v811_v27  ;;  %v874_v61 = vmul.f32 %v1933_v56, %v843_v38  ;;  %v875_v47 = vmul.f32 %v1931_v59, %v847_v18  ;;  %v1940_v38 = vld [vmem:[%s2125_s8 + $0xc0] sm:$0xff] }
  0x75   : > { %v876_v51 = vmul.f32 %v1932_v28, %v847_v18  ;;  %v877_v29 = vmul.f32 %v1933_v56, %v847_v18  ;;  %v878_v25 = vadd.f32 %v872_v49, %v866_v12  ;;  %v879_v42 = vadd.f32 %v873_v54, %v867_v39  ;;  %v1941_v18 = vld [vmem:[%s2125_s8 + $0xc8] sm:$0xff] }
  0x76   : > { %v880_v19 = vadd.f32 %v874_v61, %v868_v63  ;;  %v881_v24 = vadd.f32 %v875_v47, %v869_v37  ;;  %v895_v6 = vrot.slane %v2364_v50, %v2069_v2  ;;  %v899_v48 = vrot.slane %v2367_v45, %v2069_v2 }
  0x77   : > { %v882_v27 = vadd.f32 %v876_v51, %v870_v1  ;;  %v883_v59 = vadd.f32 %v877_v29, %v871_v52  ;;  %v915_v28 = vrot.slane %v2370_v55, %v2069_v2  ;;  %v919_v56 = vrot.slane %v2373_v31, %v2069_v2 }
  0x78   : > { %v900_v33 = vmul.f32 %v1937_v17, %v895_v6  ;;  %v901_v43 = vmul.f32 %v1938_v57, %v895_v6  ;;  %v902_v11 = vmul.f32 %v1939_v15, %v895_v6  ;;  %v903_v46 = vmul.f32 %v1937_v17, %v899_v48 }
  0x79   : > { %v904_v20 = vmul.f32 %v1938_v57, %v899_v48  ;;  %v905_v16 = vmul.f32 %v1939_v15, %v899_v48  ;;  %v920_v21 = vmul.f32 %v1940_v38, %v915_v28  ;;  %v921_v40 = vmul.f32 %v1941_v18, %v915_v28 }
  0x7a   : > { %v906_v36 = vadd.f32 %v900_v33, %v854_v14  ;;  %v907_v62 = vadd.f32 %v901_v43, %v855_v60  ;;  %v908_v26 = vadd.f32 %v902_v11, %v856_v53  ;;  %v909_v58 = vadd.f32 %v903_v46, %v857_v23 }
  0x7b   : > { %v910_v30 = vadd.f32 %v904_v20, %v858_v44  ;;  %v911_v32 = vadd.f32 %v905_v16, %v859_v13  ;;  %v922_v0 = vmul.f32 %v1942_v22, %v915_v28  ;;  %v923_v34 = vmul.f32 %v1940_v38, %v919_v56  ;;  %v1943_v16 = vld [vmem:[%s2103_s30 + $0xd8] sm:$0xff] }
  0x7c   : > { %v924_v35 = vmul.f32 %v1941_v18, %v919_v56  ;;  %v925_v41 = vmul.f32 %v1942_v22, %v919_v56  ;;  %v926_v12 = vsub.f32 %v906_v36, %v920_v21  ;;  %v927_v39 = vsub.f32 %v907_v62, %v921_v40  ;;  %v1945_v21 = vld [vmem:[%s2103_s30 + $0xe8] sm:$0xf] }
  0x7d   : > { %v928_v63 = vsub.f32 %v908_v26, %v922_v0  ;;  %v929_v37 = vsub.f32 %v909_v58, %v923_v34  ;;  %v932_v49 = vmul.f32 %v1940_v38, %v895_v6  ;;  %v933_v54 = vmul.f32 %v1941_v18, %v895_v6 }
  0x7e   : > { %v930_v1 = vsub.f32 %v910_v30, %v924_v35  ;;  %v931_v52 = vsub.f32 %v911_v32, %v925_v41  ;;  %v934_v61 = vmul.f32 %v1942_v22, %v895_v6  ;;  %v935_v47 = vmul.f32 %v1940_v38, %v899_v48  ;;  %v1948_v32 = vld [vmem:[%s2125_s8 + $0xe8] sm:$0xf] }
  0x7f   : > { %v936_v14 = vmul.f32 %v1941_v18, %v899_v48  ;;  %v937_v60 = vmul.f32 %v1942_v22, %v899_v48  ;;  %v938_v53 = vadd.f32 %v932_v49, %v878_v25  ;;  %v939_v23 = vadd.f32 %v933_v54, %v879_v42  ;;  %v1944_v48 = vld [vmem:[%s2103_s30 + $0xe0] sm:$0xff] }
  0x80   : > { %v940_v44 = vadd.f32 %v934_v61, %v880_v19  ;;  %v941_v13 = vadd.f32 %v935_v47, %v881_v24  ;;  %v944_v51 = vmul.f32 %v1937_v17, %v915_v28  ;;  %v945_v29 = vmul.f32 %v1938_v57, %v915_v28 }
  0x81   : > { %v942_v33 = vadd.f32 %v936_v14, %v882_v27  ;;  %v943_v43 = vadd.f32 %v937_v60, %v883_v59  ;;  %v946_v11 = vmul.f32 %v1939_v15, %v915_v28  ;;  %v947_v46 = vmul.f32 %v1937_v17, %v919_v56  ;;  %v1946_v27 = vld [vmem:[%s2125_s8 + $0xd8] sm:$0xff]  ;;  %v1947_v59 = vld [vmem:[%s2125_s8 + $0xe0] sm:$0xff] }
  0x82   : > { %v948_v20 = vmul.f32 %v1938_v57, %v919_v56  ;;  %v949_v6 = vmul.f32 %v1939_v15, %v919_v56  ;;  %v950_v38 = vadd.f32 %v944_v51, %v938_v53  ;;  %v951_v18 = vadd.f32 %v945_v29, %v939_v23 }
  0x83   : > { %v952_v25 = vadd.f32 %v946_v11, %v940_v44  ;;  %v953_v40 = vadd.f32 %v947_v46, %v941_v13  ;;  %v967_v42 = vrot.slane %v2364_v50, %v2071_v3  ;;  %v971_v19 = vrot.slane %v2367_v45, %v2071_v3 }
  0x84   : > { %v954_v24 = vadd.f32 %v948_v20, %v942_v33  ;;  %v955_v17 = vadd.f32 %v949_v6, %v943_v43  ;;  %v987_v57 = vrot.slane %v2370_v55, %v2071_v3  ;;  %v991_v15 = vrot.slane %v2373_v31, %v2071_v3 }
  0x85   : > { %v972_v28 = vmul.f32 %v1943_v16, %v967_v42  ;;  %v973_v56 = vmul.f32 %v1944_v48, %v967_v42  ;;  %v974_v22 = vmul.f32 %v1945_v21, %v967_v42  ;;  %v975_v36 = vmul.f32 %v1943_v16, %v971_v19 }
  0x86   : > { %v976_v62 = vmul.f32 %v1944_v48, %v971_v19  ;;  %v977_v26 = vmul.f32 %v1945_v21, %v971_v19  ;;  %v992_v58 = vmul.f32 %v1946_v27, %v987_v57  ;;  %v993_v30 = vmul.f32 %v1947_v59, %v987_v57 }
  0x87   : > { %v978_v0 = vadd.f32 %v972_v28, %v926_v12  ;;  %v979_v34 = vadd.f32 %v973_v56, %v927_v39  ;;  %v980_v35 = vadd.f32 %v974_v22, %v928_v63  ;;  %v981_v41 = vadd.f32 %v975_v36, %v929_v37 }
  0x88   : > { %v982_v49 = vadd.f32 %v976_v62, %v930_v1  ;;  %v983_v54 = vadd.f32 %v977_v26, %v931_v52  ;;  %v994_v61 = vmul.f32 %v1948_v32, %v987_v57  ;;  %v995_v47 = vmul.f32 %v1946_v27, %v991_v15  ;;  %v1949_v26 = vld [vmem:[%s2103_s30 + $0xf0] sm:$0xff] }
  0x89   : > { %v996_v14 = vmul.f32 %v1947_v59, %v991_v15  ;;  %v997_v60 = vmul.f32 %v1948_v32, %v991_v15  ;;  %v998_v53 = vsub.f32 %v978_v0, %v992_v58  ;;  %v999_v23 = vsub.f32 %v979_v34, %v993_v30  ;;  %v1951_v58 = vld [vmem:[%s2103_s30 + $0x100] sm:$0xf] }
  0x8a   : > { %v1000_v44 = vsub.f32 %v980_v35, %v994_v61  ;;  %v1001_v13 = vsub.f32 %v981_v41, %v995_v47  ;;  %v1004_v51 = vmul.f32 %v1946_v27, %v967_v42  ;;  %v1005_v29 = vmul.f32 %v1947_v59, %v967_v42 }
  0x8b   : > { %v1002_v33 = vsub.f32 %v982_v49, %v996_v14  ;;  %v1003_v43 = vsub.f32 %v983_v54, %v997_v60  ;;  %v1006_v11 = vmul.f32 %v1948_v32, %v967_v42  ;;  %v1007_v46 = vmul.f32 %v1946_v27, %v971_v19  ;;  %v1954_v54 = vld [vmem:[%s2125_s8 + $0x100] sm:$0xf] }
  0x8c   : > { %v1008_v12 = vmul.f32 %v1947_v59, %v971_v19  ;;  %v1009_v39 = vmul.f32 %v1948_v32, %v971_v19  ;;  %v1010_v63 = vadd.f32 %v1004_v51, %v950_v38  ;;  %v1011_v37 = vadd.f32 %v1005_v29, %v951_v18  ;;  %v1950_v19 = vld [vmem:[%s2103_s30 + $0xf8] sm:$0xff] }
  0x8d   : > { %v1012_v1 = vadd.f32 %v1006_v11, %v952_v25  ;;  %v1013_v52 = vadd.f32 %v1007_v46, %v953_v40  ;;  %v1016_v20 = vmul.f32 %v1943_v16, %v987_v57  ;;  %v1017_v6 = vmul.f32 %v1944_v48, %v987_v57 }
  0x8e   : > { %v1014_v28 = vadd.f32 %v1008_v12, %v954_v24  ;;  %v1015_v56 = vadd.f32 %v1009_v39, %v955_v17  ;;  %v1018_v22 = vmul.f32 %v1945_v21, %v987_v57  ;;  %v1019_v36 = vmul.f32 %v1943_v16, %v991_v15  ;;  %v1952_v24 = vld [vmem:[%s2125_s8 + $0xf0] sm:$0xff]  ;;  %v1953_v17 = vld [vmem:[%s2125_s8 + $0xf8] sm:$0xff] }
  0x8f   : > { %v1020_v62 = vmul.f32 %v1944_v48, %v991_v15  ;;  %v1021_v42 = vmul.f32 %v1945_v21, %v991_v15  ;;  %v1022_v27 = vadd.f32 %v1016_v20, %v1010_v63  ;;  %v1023_v59 = vadd.f32 %v1017_v6, %v1011_v37 }
  0x90   : > { %v1024_v38 = vadd.f32 %v1018_v22, %v1012_v1  ;;  %v1025_v30 = vadd.f32 %v1019_v36, %v1013_v52  ;;  %v1039_v18 = vrot.slane %v2364_v50, %v2073_v4  ;;  %v1043_v25 = vrot.slane %v2367_v45, %v2073_v4 }
  0x91   : > { %v1026_v40 = vadd.f32 %v1020_v62, %v1014_v28  ;;  %v1027_v16 = vadd.f32 %v1021_v42, %v1015_v56  ;;  %v1059_v48 = vrot.slane %v2370_v55, %v2073_v4  ;;  %v1063_v21 = vrot.slane %v2373_v31, %v2073_v4 }
  0x92   : > { %v1044_v57 = vmul.f32 %v1949_v26, %v1039_v18  ;;  %v1045_v15 = vmul.f32 %v1950_v19, %v1039_v18  ;;  %v1046_v32 = vmul.f32 %v1951_v58, %v1039_v18  ;;  %v1047_v0 = vmul.f32 %v1949_v26, %v1043_v25 }
  0x93   : > { %v1048_v34 = vmul.f32 %v1950_v19, %v1043_v25  ;;  %v1049_v35 = vmul.f32 %v1951_v58, %v1043_v25  ;;  %v1064_v41 = vmul.f32 %v1952_v24, %v1059_v48  ;;  %v1065_v49 = vmul.f32 %v1953_v17, %v1059_v48 }
  0x94   : > { %v1050_v61 = vadd.f32 %v1044_v57, %v998_v53  ;;  %v1051_v47 = vadd.f32 %v1045_v15, %v999_v23  ;;  %v1052_v14 = vadd.f32 %v1046_v32, %v1000_v44  ;;  %v1053_v60 = vadd.f32 %v1047_v0, %v1001_v13 }
  0x95   : > { %v1054_v51 = vadd.f32 %v1048_v34, %v1002_v33  ;;  %v1055_v29 = vadd.f32 %v1049_v35, %v1003_v43  ;;  %v1066_v11 = vmul.f32 %v1954_v54, %v1059_v48  ;;  %v1067_v46 = vmul.f32 %v1952_v24, %v1063_v21  ;;  %v1955_v35 = vld [vmem:[%s2103_s30 + $0x108] sm:$0xff] }
  0x96   : > { %v1068_v12 = vmul.f32 %v1953_v17, %v1063_v21  ;;  %v1069_v39 = vmul.f32 %v1954_v54, %v1063_v21  ;;  %v1070_v63 = vsub.f32 %v1050_v61, %v1064_v41  ;;  %v1071_v37 = vsub.f32 %v1051_v47, %v1065_v49  ;;  %v1957_v41 = vld [vmem:[%s2103_s30 + $0x118] sm:$0xf] }
  0x97   : > { %v1072_v1 = vsub.f32 %v1052_v14, %v1066_v11  ;;  %v1073_v52 = vsub.f32 %v1053_v60, %v1067_v46  ;;  %v1076_v20 = vmul.f32 %v1952_v24, %v1039_v18  ;;  %v1077_v6 = vmul.f32 %v1953_v17, %v1039_v18 }
  0x98   : > { %v1074_v28 = vsub.f32 %v1054_v51, %v1068_v12  ;;  %v1075_v56 = vsub.f32 %v1055_v29, %v1069_v39  ;;  %v1078_v22 = vmul.f32 %v1954_v54, %v1039_v18  ;;  %v1079_v36 = vmul.f32 %v1952_v24, %v1043_v25  ;;  %v1960_v29 = vld [vmem:[%s2125_s8 + $0x118] sm:$0xf] }
  0x99   : > { %v1080_v53 = vmul.f32 %v1953_v17, %v1043_v25  ;;  %v1081_v23 = vmul.f32 %v1954_v54, %v1043_v25  ;;  %v1082_v44 = vadd.f32 %v1076_v20, %v1022_v27  ;;  %v1083_v13 = vadd.f32 %v1077_v6, %v1023_v59  ;;  %v1956_v25 = vld [vmem:[%s2103_s30 + $0x110] sm:$0xff] }
  0x9a   : > { %v1084_v33 = vadd.f32 %v1078_v22, %v1024_v38  ;;  %v1085_v43 = vadd.f32 %v1079_v36, %v1025_v30  ;;  %v1088_v62 = vmul.f32 %v1949_v26, %v1059_v48  ;;  %v1089_v42 = vmul.f32 %v1950_v19, %v1059_v48 }
  0x9b   : > { %v1086_v57 = vadd.f32 %v1080_v53, %v1026_v40  ;;  %v1087_v15 = vadd.f32 %v1081_v23, %v1027_v16  ;;  %v1090_v32 = vmul.f32 %v1951_v58, %v1059_v48  ;;  %v1091_v0 = vmul.f32 %v1949_v26, %v1063_v21  ;;  %v1958_v40 = vld [vmem:[%s2125_s8 + $0x108] sm:$0xff]  ;;  %v1959_v16 = vld [vmem:[%s2125_s8 + $0x110] sm:$0xff] }
  0x9c   : > { %v1092_v34 = vmul.f32 %v1950_v19, %v1063_v21  ;;  %v1093_v18 = vmul.f32 %v1951_v58, %v1063_v21  ;;  %v1094_v24 = vadd.f32 %v1088_v62, %v1082_v44  ;;  %v1095_v17 = vadd.f32 %v1089_v42, %v1083_v13 }
  0x9d   : > { %v1096_v27 = vadd.f32 %v1090_v32, %v1084_v33  ;;  %v1097_v49 = vadd.f32 %v1091_v0, %v1085_v43  ;;  %v1111_v59 = vrot.slane %v2364_v50, %v2075_v5  ;;  %v1115_v38 = vrot.slane %v2367_v45, %v2075_v5 }
  0x9e   : > { %v1098_v30 = vadd.f32 %v1092_v34, %v1086_v57  ;;  %v1099_v26 = vadd.f32 %v1093_v18, %v1087_v15  ;;  %v1131_v19 = vrot.slane %v2370_v55, %v2075_v5  ;;  %v1135_v58 = vrot.slane %v2373_v31, %v2075_v5 }
  0x9f   : > { %v1116_v48 = vmul.f32 %v1955_v35, %v1111_v59  ;;  %v1117_v21 = vmul.f32 %v1956_v25, %v1111_v59  ;;  %v1118_v54 = vmul.f32 %v1957_v41, %v1111_v59  ;;  %v1119_v61 = vmul.f32 %v1955_v35, %v1115_v38 }
  0xa0   : > { %v1120_v47 = vmul.f32 %v1956_v25, %v1115_v38  ;;  %v1121_v14 = vmul.f32 %v1957_v41, %v1115_v38  ;;  %v1136_v60 = vmul.f32 %v1958_v40, %v1131_v19  ;;  %v1137_v51 = vmul.f32 %v1959_v16, %v1131_v19 }
  0xa1   : > { %v1122_v11 = vadd.f32 %v1116_v48, %v1070_v63  ;;  %v1123_v46 = vadd.f32 %v1117_v21, %v1071_v37  ;;  %v1124_v12 = vadd.f32 %v1118_v54, %v1072_v1  ;;  %v1125_v39 = vadd.f32 %v1119_v61, %v1073_v52 }
  0xa2   : > { %v1126_v20 = vadd.f32 %v1120_v47, %v1074_v28  ;;  %v1127_v6 = vadd.f32 %v1121_v14, %v1075_v56  ;;  %v1138_v22 = vmul.f32 %v1960_v29, %v1131_v19  ;;  %v1139_v36 = vmul.f32 %v1958_v40, %v1135_v58  ;;  %v1961_v14 = vld [vmem:[%s2103_s30 + $0x120] sm:$0xff] }
  0xa3   : > { %v1140_v53 = vmul.f32 %v1959_v16, %v1135_v58  ;;  %v1141_v23 = vmul.f32 %v1960_v29, %v1135_v58  ;;  %v1142_v44 = vsub.f32 %v1122_v11, %v1136_v60  ;;  %v1143_v13 = vsub.f32 %v1123_v46, %v1137_v51  ;;  %v1963_v60 = vld [vmem:[%s2103_s30 + $0x130] sm:$0xf] }
  0xa4   : > { %v1144_v33 = vsub.f32 %v1124_v12, %v1138_v22  ;;  %v1145_v43 = vsub.f32 %v1125_v39, %v1139_v36  ;;  %v1148_v62 = vmul.f32 %v1958_v40, %v1111_v59  ;;  %v1149_v42 = vmul.f32 %v1959_v16, %v1111_v59 }
  0xa5   : > { %v1146_v57 = vsub.f32 %v1126_v20, %v1140_v53  ;;  %v1147_v15 = vsub.f32 %v1127_v6, %v1141_v23  ;;  %v1150_v32 = vmul.f32 %v1960_v29, %v1111_v59  ;;  %v1151_v0 = vmul.f32 %v1958_v40, %v1115_v38  ;;  %v1966_v6 = vld [vmem:[%s2125_s8 + $0x130] sm:$0xf] }
  0xa6   : > { %v1152_v63 = vmul.f32 %v1959_v16, %v1115_v38  ;;  %v1153_v37 = vmul.f32 %v1960_v29, %v1115_v38  ;;  %v1154_v1 = vadd.f32 %v1148_v62, %v1094_v24  ;;  %v1155_v52 = vadd.f32 %v1149_v42, %v1095_v17  ;;  %v1962_v38 = vld [vmem:[%s2103_s30 + $0x128] sm:$0xff] }
  0xa7   : > { %v1156_v28 = vadd.f32 %v1150_v32, %v1096_v27  ;;  %v1157_v56 = vadd.f32 %v1151_v0, %v1097_v49  ;;  %v1160_v34 = vmul.f32 %v1955_v35, %v1131_v19  ;;  %v1161_v18 = vmul.f32 %v1956_v25, %v1131_v19 }
  0xa8   : > { %v1158_v48 = vadd.f32 %v1152_v63, %v1098_v30  ;;  %v1159_v21 = vadd.f32 %v1153_v37, %v1099_v26  ;;  %v1162_v54 = vmul.f32 %v1957_v41, %v1131_v19  ;;  %v1163_v61 = vmul.f32 %v1955_v35, %v1135_v58  ;;  %v1964_v30 = vld [vmem:[%s2125_s8 + $0x120] sm:$0xff]  ;;  %v1965_v26 = vld [vmem:[%s2125_s8 + $0x128] sm:$0xff] }
  0xa9   : > { %v1164_v47 = vmul.f32 %v1956_v25, %v1135_v58  ;;  %v1165_v59 = vmul.f32 %v1957_v41, %v1135_v58  ;;  %v1166_v40 = vadd.f32 %v1160_v34, %v1154_v1  ;;  %v1167_v16 = vadd.f32 %v1161_v18, %v1155_v52 }
  0xaa   : > { %v1168_v24 = vadd.f32 %v1162_v54, %v1156_v28  ;;  %v1169_v51 = vadd.f32 %v1163_v61, %v1157_v56  ;;  %v1183_v17 = vrot.slane %v2364_v50, %v2092_v7  ;;  %v1187_v27 = vrot.slane %v2367_v45, %v2092_v7 }
  0xab   : > { %v1170_v49 = vadd.f32 %v1164_v47, %v1158_v48  ;;  %v1171_v35 = vadd.f32 %v1165_v59, %v1159_v21  ;;  %v1203_v25 = vrot.slane %v2370_v55, %v2092_v7  ;;  %v1207_v41 = vrot.slane %v2373_v31, %v2092_v7 }
  0xac   : > { %v1188_v19 = vmul.f32 %v1961_v14, %v1183_v17  ;;  %v1189_v58 = vmul.f32 %v1962_v38, %v1183_v17  ;;  %v1190_v29 = vmul.f32 %v1963_v60, %v1183_v17  ;;  %v1191_v11 = vmul.f32 %v1961_v14, %v1187_v27 }
  0xad   : > { %v1192_v46 = vmul.f32 %v1962_v38, %v1187_v27  ;;  %v1193_v12 = vmul.f32 %v1963_v60, %v1187_v27  ;;  %v1208_v39 = vmul.f32 %v1964_v30, %v1203_v25  ;;  %v1209_v20 = vmul.f32 %v1965_v26, %v1203_v25 }
  0xae   : > { %v1194_v22 = vadd.f32 %v1188_v19, %v1142_v44  ;;  %v1195_v36 = vadd.f32 %v1189_v58, %v1143_v13  ;;  %v1196_v53 = vadd.f32 %v1190_v29, %v1144_v33  ;;  %v1197_v23 = vadd.f32 %v1191_v11, %v1145_v43 }
  0xaf   : > { %v1198_v62 = vadd.f32 %v1192_v46, %v1146_v57  ;;  %v1199_v42 = vadd.f32 %v1193_v12, %v1147_v15  ;;  %v1210_v32 = vmul.f32 %v1966_v6, %v1203_v25  ;;  %v1211_v0 = vmul.f32 %v1964_v30, %v1207_v41  ;;  %v1967_v46 = vld [vmem:[%s2103_s30 + $0x138] sm:$0xff]  ;;  %v1969_v12 = vld [vmem:[%s2103_s30 + $0x148] sm:$0xf] }
  0xb0   : > { %v1212_v7 = vmul.f32 %v1965_v26, %v1207_v41  ;;  %v1213_v63 = vmul.f32 %v1966_v6, %v1207_v41  ;;  %v1214_v37 = vsub.f32 %v1194_v22, %v1208_v39  ;;  %v1215_v1 = vsub.f32 %v1195_v36, %v1209_v20 }
  0xb1   : > { %v1216_v52 = vsub.f32 %v1196_v53, %v1210_v32  ;;  %v1217_v28 = vsub.f32 %v1197_v23, %v1211_v0  ;;  %v1220_v56 = vmul.f32 %v1964_v30, %v1183_v17  ;;  %v1221_v34 = vmul.f32 %v1965_v26, %v1183_v17 }
  0xb2   : > { %v1218_v18 = vsub.f32 %v1198_v62, %v1212_v7  ;;  %v1219_v48 = vsub.f32 %v1199_v42, %v1213_v63  ;;  %v1222_v21 = vmul.f32 %v1966_v6, %v1183_v17  ;;  %v1223_v54 = vmul.f32 %v1964_v30, %v1187_v27  ;;  %v1972_v62 = vld [vmem:[%s2125_s8 + $0x148] sm:$0xf] }
  0xb3   : > { %v1224_v44 = vmul.f32 %v1965_v26, %v1187_v27  ;;  %v1225_v13 = vmul.f32 %v1966_v6, %v1187_v27  ;;  %v1226_v33 = vadd.f32 %v1220_v56, %v1166_v40  ;;  %v1227_v43 = vadd.f32 %v1221_v34, %v1167_v16  ;;  %v1968_v27 = vld [vmem:[%s2103_s30 + $0x140] sm:$0xff] }
  0xb4   : > { %v1228_v57 = vadd.f32 %v1222_v21, %v1168_v24  ;;  %v1229_v15 = vadd.f32 %v1223_v54, %v1169_v51  ;;  %v1232_v61 = vmul.f32 %v1961_v14, %v1203_v25  ;;  %v1233_v47 = vmul.f32 %v1962_v38, %v1203_v25 }
  0xb5   : > { %v1230_v59 = vadd.f32 %v1224_v44, %v1170_v49  ;;  %v1231_v19 = vadd.f32 %v1225_v13, %v1171_v35  ;;  %v1234_v58 = vmul.f32 %v1963_v60, %v1203_v25  ;;  %v1235_v29 = vmul.f32 %v1961_v14, %v1207_v41  ;;  %v1970_v49 = vld [vmem:[%s2125_s8 + $0x138] sm:$0xff]  ;;  %v1971_v35 = vld [vmem:[%s2125_s8 + $0x140] sm:$0xff] }
  0xb6   : > { %v1236_v11 = vmul.f32 %v1962_v38, %v1207_v41  ;;  %v1237_v17 = vmul.f32 %v1963_v60, %v1207_v41  ;;  %v1238_v30 = vadd.f32 %v1232_v61, %v1226_v33  ;;  %v1239_v26 = vadd.f32 %v1233_v47, %v1227_v43 }
  0xb7   : > { %v1240_v40 = vadd.f32 %v1234_v58, %v1228_v57  ;;  %v1241_v39 = vadd.f32 %v1235_v29, %v1229_v15  ;;  %v1255_v16 = vrot.slane %v2364_v50, %v2094_v8  ;;  %v1259_v24 = vrot.slane %v2367_v45, %v2094_v8 }
  0xb8   : > { %v1242_v51 = vadd.f32 %v1236_v11, %v1230_v59  ;;  %v1243_v14 = vadd.f32 %v1237_v17, %v1231_v19  ;;  %v1275_v38 = vrot.slane %v2370_v55, %v2094_v8  ;;  %v1279_v60 = vrot.slane %v2373_v31, %v2094_v8 }
  0xb9   : > { %v1260_v25 = vmul.f32 %v1967_v46, %v1255_v16  ;;  %v1261_v41 = vmul.f32 %v1968_v27, %v1255_v16  ;;  %v1262_v20 = vmul.f32 %v1969_v12, %v1255_v16  ;;  %v1263_v6 = vmul.f32 %v1967_v46, %v1259_v24 }
  0xba   : > { %v1264_v22 = vmul.f32 %v1968_v27, %v1259_v24  ;;  %v1265_v36 = vmul.f32 %v1969_v12, %v1259_v24  ;;  %v1280_v53 = vmul.f32 %v1970_v49, %v1275_v38  ;;  %v1281_v23 = vmul.f32 %v1971_v35, %v1275_v38 }
  0xbb   : > { %v1266_v42 = vadd.f32 %v1260_v25, %v1214_v37  ;;  %v1267_v32 = vadd.f32 %v1261_v41, %v1215_v1  ;;  %v1268_v0 = vadd.f32 %v1262_v20, %v1216_v52  ;;  %v1269_v7 = vadd.f32 %v1263_v6, %v1217_v28  ;;  %v1973_v6 = vld [vmem:[%s2103_s30 + $0x150] sm:$0xff] }
  0xbc   : > { %v1270_v63 = vadd.f32 %v1264_v22, %v1218_v18  ;;  %v1271_v56 = vadd.f32 %v1265_v36, %v1219_v48  ;;  %v1282_v34 = vmul.f32 %v1972_v62, %v1275_v38  ;;  %v1283_v21 = vmul.f32 %v1970_v49, %v1279_v60  ;;  %v1975_v22 = vld [vmem:[%s2103_s30 + $0x160] sm:$0xf] }
  0xbd   : > { %v1284_v8 = vmul.f32 %v1971_v35, %v1279_v60  ;;  %v1285_v54 = vmul.f32 %v1972_v62, %v1279_v60  ;;  %v1286_v44 = vsub.f32 %v1266_v42, %v1280_v53  ;;  %v1287_v13 = vsub.f32 %v1267_v32, %v1281_v23 }
  0xbe   : > { %v1288_v33 = vsub.f32 %v1268_v0, %v1282_v34  ;;  %v1289_v43 = vsub.f32 %v1269_v7, %v1283_v21  ;;  %v1292_v57 = vmul.f32 %v1970_v49, %v1255_v16  ;;  %v1293_v15 = vmul.f32 %v1971_v35, %v1255_v16  ;;  %v1978_v7 = vld [vmem:[%s2125_s8 + $0x160] sm:$0xf] }
  0xbf   : > { %v1290_v61 = vsub.f32 %v1270_v63, %v1284_v8  ;;  %v1291_v47 = vsub.f32 %v1271_v56, %v1285_v54  ;;  %v1294_v59 = vmul.f32 %v1972_v62, %v1255_v16  ;;  %v1295_v19 = vmul.f32 %v1970_v49, %v1259_v24 }
  0xc0   : > { %v1296_v37 = vmul.f32 %v1971_v35, %v1259_v24  ;;  %v1297_v1 = vmul.f32 %v1972_v62, %v1259_v24  ;;  %v1298_v52 = vadd.f32 %v1292_v57, %v1238_v30  ;;  %v1299_v28 = vadd.f32 %v1293_v15, %v1239_v26  ;;  %v1974_v24 = vld [vmem:[%s2103_s30 + $0x158] sm:$0xff] }
  0xc1   : > { %v1300_v18 = vadd.f32 %v1294_v59, %v1240_v40  ;;  %v1301_v48 = vadd.f32 %v1295_v19, %v1241_v39  ;;  %v1304_v58 = vmul.f32 %v1967_v46, %v1275_v38  ;;  %v1305_v29 = vmul.f32 %v1968_v27, %v1275_v38 }
  0xc2   : > { %v1302_v11 = vadd.f32 %v1296_v37, %v1242_v51  ;;  %v1303_v17 = vadd.f32 %v1297_v1, %v1243_v14  ;;  %v1306_v25 = vmul.f32 %v1969_v12, %v1275_v38  ;;  %v1307_v41 = vmul.f32 %v1967_v46, %v1279_v60  ;;  %v1976_v51 = vld [vmem:[%s2125_s8 + $0x150] sm:$0xff]  ;;  %v1977_v14 = vld [vmem:[%s2125_s8 + $0x158] sm:$0xff] }
  0xc3   : > { %v1308_v20 = vmul.f32 %v1968_v27, %v1279_v60  ;;  %v1309_v16 = vmul.f32 %v1969_v12, %v1279_v60  ;;  %v1310_v49 = vadd.f32 %v1304_v58, %v1298_v52  ;;  %v1311_v35 = vadd.f32 %v1305_v29, %v1299_v28 }
  0xc4   : > { %v1312_v30 = vadd.f32 %v1306_v25, %v1300_v18  ;;  %v1313_v36 = vadd.f32 %v1307_v41, %v1301_v48  ;;  %v1327_v26 = vrot.slane %v2364_v50, %v2096_v9  ;;  %v1331_v40 = vrot.slane %v2367_v45, %v2096_v9 }
  0xc5   : > { %v1314_v39 = vadd.f32 %v1308_v20, %v1302_v11  ;;  %v1315_v46 = vadd.f32 %v1309_v16, %v1303_v17  ;;  %v1347_v27 = vrot.slane %v2370_v55, %v2096_v9  ;;  %v1351_v12 = vrot.slane %v2373_v31, %v2096_v9 }
  0xc6   : > { %v1332_v38 = vmul.f32 %v1973_v6, %v1327_v26  ;;  %v1333_v60 = vmul.f32 %v1974_v24, %v1327_v26  ;;  %v1334_v53 = vmul.f32 %v1975_v22, %v1327_v26  ;;  %v1335_v23 = vmul.f32 %v1973_v6, %v1331_v40 }
  0xc7   : > { %v1336_v62 = vmul.f32 %v1974_v24, %v1331_v40  ;;  %v1337_v42 = vmul.f32 %v1975_v22, %v1331_v40  ;;  %v1352_v32 = vmul.f32 %v1976_v51, %v1347_v27  ;;  %v1353_v0 = vmul.f32 %v1977_v14, %v1347_v27 }
  0xc8   : > { %v1338_v63 = vadd.f32 %v1332_v38, %v1286_v44  ;;  %v1339_v56 = vadd.f32 %v1333_v60, %v1287_v13  ;;  %v1340_v34 = vadd.f32 %v1334_v53, %v1288_v33  ;;  %v1341_v21 = vadd.f32 %v1335_v23, %v1289_v43  ;;  %v1979_v53 = vld [vmem:[%s2103_s30 + $0x168] sm:$0xff]  ;;  %v1981_v23 = vld [vmem:[%s2103_s30 + $0x178] sm:$0xf] }
  0xc9   : > { %v1342_v8 = vadd.f32 %v1336_v62, %v1290_v61  ;;  %v1343_v54 = vadd.f32 %v1337_v42, %v1291_v47  ;;  %v1354_v57 = vmul.f32 %v1978_v7, %v1347_v27  ;;  %v1355_v15 = vmul.f32 %v1976_v51, %v1351_v12 }
  0xca   : > { %v1356_v9 = vmul.f32 %v1977_v14, %v1351_v12  ;;  %v1357_v59 = vmul.f32 %v1978_v7, %v1351_v12  ;;  %v1358_v19 = vsub.f32 %v1338_v63, %v1352_v32  ;;  %v1359_v37 = vsub.f32 %v1339_v56, %v1353_v0 }
  0xcb   : > { %v1360_v1 = vsub.f32 %v1340_v34, %v1354_v57  ;;  %v1361_v52 = vsub.f32 %v1341_v21, %v1355_v15  ;;  %v1364_v28 = vmul.f32 %v1976_v51, %v1327_v26  ;;  %v1365_v18 = vmul.f32 %v1977_v14, %v1327_v26 }
  0xcc   : > { %v1362_v48 = vsub.f32 %v1342_v8, %v1356_v9  ;;  %v1363_v58 = vsub.f32 %v1343_v54, %v1357_v59  ;;  %v1366_v29 = vmul.f32 %v1978_v7, %v1327_v26  ;;  %v1367_v11 = vmul.f32 %v1976_v51, %v1331_v40 }
  0xcd   : > { %v1368_v44 = vmul.f32 %v1977_v14, %v1331_v40  ;;  %v1369_v13 = vmul.f32 %v1978_v7, %v1331_v40  ;;  %v1370_v33 = vadd.f32 %v1364_v28, %v1310_v49  ;;  %v1371_v43 = vadd.f32 %v1365_v18, %v1311_v35  ;;  %v1980_v40 = vld [vmem:[%s2103_s30 + $0x170] sm:$0xff] }
  0xce   : > { %v1372_v61 = vadd.f32 %v1366_v29, %v1312_v30  ;;  %v1373_v47 = vadd.f32 %v1367_v11, %v1313_v36  ;;  %v1376_v17 = vmul.f32 %v1973_v6, %v1347_v27  ;;  %v1377_v25 = vmul.f32 %v1974_v24, %v1347_v27 }
  0xcf   : > { %v1374_v41 = vadd.f32 %v1368_v44, %v1314_v39  ;;  %v1375_v20 = vadd.f32 %v1369_v13, %v1315_v46  ;;  %v1378_v16 = vmul.f32 %v1975_v22, %v1347_v27  ;;  %v1379_v38 = vmul.f32 %v1973_v6, %v1351_v12  ;;  %v1982_v39 = vld [vmem:[%s2125_s8 + $0x168] sm:$0xff]  ;;  %v1983_v46 = vld [vmem:[%s2125_s8 + $0x170] sm:$0xff] }
  0xd0   : > { %v1380_v60 = vmul.f32 %v1974_v24, %v1351_v12  ;;  %v1381_v26 = vmul.f32 %v1975_v22, %v1351_v12  ;;  %v1382_v51 = vadd.f32 %v1376_v17, %v1370_v33  ;;  %v1383_v14 = vadd.f32 %v1377_v25, %v1371_v43  ;;  %v2512_v33 = vld [vmem:[%s2081_s24 + $0x10] sm:$0xf]  ;;  %v2515_v43 = vld [vmem:[%s2081_s24 + $0x28] sm:$0xf] }
  0xd1   : > { %v1384_v49 = vadd.f32 %v1378_v16, %v1372_v61  ;;  %v1385_v62 = vadd.f32 %v1379_v38, %v1373_v47  ;;  %v1399_v35 = vrot.slane %v2364_v50, %v2098_v10  ;;  %v1403_v30 = vrot.slane %v2367_v45, %v2098_v10  ;;  %v1984_v45 = vld [vmem:[%s2125_s8 + $0x178] sm:$0xf] }
  0xd2   : > { %v1386_v36 = vadd.f32 %v1380_v60, %v1374_v41  ;;  %v1387_v6 = vadd.f32 %v1381_v26, %v1375_v20  ;;  %v1419_v24 = vrot.slane %v2370_v55, %v2098_v10  ;;  %v1423_v22 = vrot.slane %v2373_v31, %v2098_v10  ;;  %v2518_v41 = vld [vmem:[%s2087_s27 + $0x10] sm:$0xf]  ;;  %v2521_v20 = vld [vmem:[%s2087_s27 + $0x28] sm:$0xf] }
  0xd3   : > { %v1404_v27 = vmul.f32 %v1979_v53, %v1399_v35  ;;  %v1405_v12 = vmul.f32 %v1980_v40, %v1399_v35  ;;  %v1406_v42 = vmul.f32 %v1981_v23, %v1399_v35  ;;  %v1407_v32 = vmul.f32 %v1979_v53, %v1403_v30 }
  0xd4   : > { %v1408_v0 = vmul.f32 %v1980_v40, %v1403_v30  ;;  %v1409_v50 = vmul.f32 %v1981_v23, %v1403_v30  ;;  %v2486_v7 = vmul.f32 %v1982_v39, %v1419_v24  ;;  %v2488_v63 = vmul.f32 %v1983_v46, %v1419_v24 }
  0xd5   : > { %v2491_v56 = vadd.f32 %v1404_v27, %v1358_v19  ;;  %v2493_v34 = vadd.f32 %v1405_v12, %v1359_v37  ;;  %v2495_v55 = vadd.f32 %v1406_v42, %v1360_v1  ;;  %v2497_v10 = vadd.f32 %v1407_v32, %v1361_v52 }
  0xd6   : > { %v2499_v31 = vadd.f32 %v1408_v0, %v1362_v48  ;;  %v2501_v21 = vadd.f32 %v1409_v50, %v1363_v58  ;;  %v1426_v8 = vmul.f32 %v1984_v45, %v1419_v24  ;;  %v1427_v54 = vmul.f32 %v1982_v39, %v1423_v22 }
  0xd7   : > { %v1428_v57 = vmul.f32 %v1983_v46, %v1423_v22  ;;  %v1429_v15 = vmul.f32 %v1984_v45, %v1423_v22  ;;  %v1430_v9 = vsub.f32 %v2491_v56, %v2486_v7  ;;  %v1431_v59 = vsub.f32 %v2493_v34, %v2488_v63  ;;  %v1990_v34 = vld [vmem:[%s2125_s8 + $0x190] sm:$0xf] }
  0xd8   : > { %v1432_v19 = vsub.f32 %v2495_v55, %v1426_v8  ;;  %v1433_v37 = vsub.f32 %v2497_v10, %v1427_v54  ;;  %v1436_v1 = vmul.f32 %v1982_v39, %v1399_v35  ;;  %v1437_v52 = vmul.f32 %v1983_v46, %v1399_v35 }
  0xd9   : > { %v1434_v28 = vsub.f32 %v2499_v31, %v1428_v57  ;;  %v1435_v18 = vsub.f32 %v2501_v21, %v1429_v15  ;;  %v1438_v48 = vmul.f32 %v1984_v45, %v1399_v35  ;;  %v1439_v58 = vmul.f32 %v1982_v39, %v1403_v30  ;;  %v1985_v39 = vld [vmem:[%s2103_s30 + $0x180] sm:$0xff] }
  0xda   : > { %v1440_v29 = vmul.f32 %v1983_v46, %v1403_v30  ;;  %v1441_v11 = vmul.f32 %v1984_v45, %v1403_v30  ;;  %v1442_v44 = vadd.f32 %v1436_v1, %v1382_v51  ;;  %v1443_v13 = vadd.f32 %v1437_v52, %v1383_v14  ;;  %v1987_v46 = vld [vmem:[%s2103_s30 + $0x190] sm:$0xf] }
  0xdb   : > { %v1444_v61 = vadd.f32 %v1438_v48, %v1384_v49  ;;  %v1445_v47 = vadd.f32 %v1439_v58, %v1385_v62  ;;  %v1448_v17 = vmul.f32 %v1979_v53, %v1419_v24  ;;  %v1449_v25 = vmul.f32 %v1980_v40, %v1419_v24  ;;  %v1986_v49 = vld [vmem:[%s2103_s30 + $0x188] sm:$0xff] }
  0xdc   : > { %v1446_v16 = vadd.f32 %v1440_v29, %v1386_v36  ;;  %v1447_v38 = vadd.f32 %v1441_v11, %v1387_v6  ;;  %v1450_v60 = vmul.f32 %v1981_v23, %v1419_v24  ;;  %v1451_v26 = vmul.f32 %v1979_v53, %v1423_v22  ;;  %v1988_v24 = vld [vmem:[%s2125_s8 + $0x180] sm:$0xff] }
  0xdd   : > { %v1452_v51 = vmul.f32 %v1980_v40, %v1423_v22  ;;  %v1453_v14 = vmul.f32 %v1981_v23, %v1423_v22  ;;  %v1454_v35 = vadd.f32 %v1448_v17, %v1442_v44  ;;  %v1455_v30 = vadd.f32 %v1449_v25, %v1443_v13  ;;  %v1989_v22 = vld [vmem:[%s2125_s8 + $0x188] sm:$0xff] }
  0xde   : > { %v1456_v62 = vadd.f32 %v1450_v60, %v1444_v61  ;;  %v1457_v27 = vadd.f32 %v1451_v26, %v1445_v47  ;;  %v1471_v12 = vrot.slane %v2512_v33, %v2069_v2  ;;  %v1475_v36 = vrot.slane %v2515_v43, %v2069_v2 }
  0xdf   : > { %v1458_v6 = vadd.f32 %v1452_v51, %v1446_v16  ;;  %v1459_v53 = vadd.f32 %v1453_v14, %v1447_v38  ;;  %v1491_v40 = vrot.slane %v2518_v41, %v2069_v2  ;;  %v1495_v23 = vrot.slane %v2521_v20, %v2069_v2 }
  0xe0   : > { %v1476_v42 = vmul.f32 %v1985_v39, %v1471_v12  ;;  %v1477_v32 = vmul.f32 %v1986_v49, %v1471_v12  ;;  %v1478_v0 = vmul.f32 %v1987_v46, %v1471_v12  ;;  %v1479_v50 = vmul.f32 %v1985_v39, %v1475_v36 }
  0xe1   : > { %v1480_v7 = vmul.f32 %v1986_v49, %v1475_v36  ;;  %v1481_v63 = vmul.f32 %v1987_v46, %v1475_v36  ;;  %v1496_v45 = vmul.f32 %v1988_v24, %v1491_v40  ;;  %v1497_v56 = vmul.f32 %v1989_v22, %v1491_v40 }
  0xe2   : > { %v1482_v55 = vadd.f32 %v1476_v42, %v1430_v9  ;;  %v1483_v10 = vadd.f32 %v1477_v32, %v1431_v59  ;;  %v1484_v31 = vadd.f32 %v1478_v0, %v1432_v19  ;;  %v1485_v21 = vadd.f32 %v1479_v50, %v1433_v37  ;;  %v1991_v42 = vld [vmem:[%s2103_s30 + $0x198] sm:$0xff]  ;;  %v1993_v32 = vld [vmem:[%s2103_s30 + $0x1a8] sm:$0xf] }
  0xe3   : > { %v1486_v8 = vadd.f32 %v1480_v7, %v1434_v28  ;;  %v1487_v54 = vadd.f32 %v1481_v63, %v1435_v18  ;;  %v1498_v57 = vmul.f32 %v1990_v34, %v1491_v40  ;;  %v1499_v15 = vmul.f32 %v1988_v24, %v1495_v23 }
  0xe4   : > { %v1500_v2 = vmul.f32 %v1989_v22, %v1495_v23  ;;  %v1501_v1 = vmul.f32 %v1990_v34, %v1495_v23  ;;  %v1502_v52 = vsub.f32 %v1482_v55, %v1496_v45  ;;  %v1503_v48 = vsub.f32 %v1483_v10, %v1497_v56  ;;  %v1996_v55 = vld [vmem:[%s2125_s8 + $0x1a8] sm:$0xf] }
  0xe5   : > { %v1504_v58 = vsub.f32 %v1484_v31, %v1498_v57  ;;  %v1505_v29 = vsub.f32 %v1485_v21, %v1499_v15  ;;  %v1508_v11 = vmul.f32 %v1988_v24, %v1471_v12  ;;  %v1509_v44 = vmul.f32 %v1989_v22, %v1471_v12 }
  0xe6   : > { %v1506_v13 = vsub.f32 %v1486_v8, %v1500_v2  ;;  %v1507_v61 = vsub.f32 %v1487_v54, %v1501_v1  ;;  %v1510_v47 = vmul.f32 %v1990_v34, %v1471_v12  ;;  %v1511_v17 = vmul.f32 %v1988_v24, %v1475_v36 }
  0xe7   : > { %v1512_v9 = vmul.f32 %v1989_v22, %v1475_v36  ;;  %v1513_v59 = vmul.f32 %v1990_v34, %v1475_v36  ;;  %v1514_v19 = vadd.f32 %v1508_v11, %v1454_v35  ;;  %v1515_v37 = vadd.f32 %v1509_v44, %v1455_v30  ;;  %v1992_v36 = vld [vmem:[%s2103_s30 + $0x1a0] sm:$0xff] }
  0xe8   : > { %v1516_v28 = vadd.f32 %v1510_v47, %v1456_v62  ;;  %v1517_v18 = vadd.f32 %v1511_v17, %v1457_v27  ;;  %v1520_v25 = vmul.f32 %v1985_v39, %v1491_v40  ;;  %v1521_v16 = vmul.f32 %v1986_v49, %v1491_v40 }
  0xe9   : > { %v1518_v38 = vadd.f32 %v1512_v9, %v1458_v6  ;;  %v1519_v60 = vadd.f32 %v1513_v59, %v1459_v53  ;;  %v1522_v26 = vmul.f32 %v1987_v46, %v1491_v40  ;;  %v1523_v51 = vmul.f32 %v1985_v39, %v1495_v23  ;;  %v1994_v6 = vld [vmem:[%s2125_s8 + $0x198] sm:$0xff]  ;;  %v1995_v53 = vld [vmem:[%s2125_s8 + $0x1a0] sm:$0xff] }
  0xea   : > { %v1524_v14 = vmul.f32 %v1986_v49, %v1495_v23  ;;  %v1525_v12 = vmul.f32 %v1987_v46, %v1495_v23  ;;  %v1526_v24 = vadd.f32 %v1520_v25, %v1514_v19  ;;  %v1527_v22 = vadd.f32 %v1521_v16, %v1515_v37 }
  0xeb   : > { %v1528_v35 = vadd.f32 %v1522_v26, %v1516_v28  ;;  %v1529_v0 = vadd.f32 %v1523_v51, %v1517_v18  ;;  %v1543_v30 = vrot.slane %v2512_v33, %v2071_v3  ;;  %v1547_v62 = vrot.slane %v2515_v43, %v2071_v3 }
  0xec   : > { %v1530_v27 = vadd.f32 %v1524_v14, %v1518_v38  ;;  %v1531_v39 = vadd.f32 %v1525_v12, %v1519_v60  ;;  %v1563_v49 = vrot.slane %v2518_v41, %v2071_v3  ;;  %v1567_v46 = vrot.slane %v2521_v20, %v2071_v3 }
  0xed   : > { %v1548_v40 = vmul.f32 %v1991_v42, %v1543_v30  ;;  %v1549_v23 = vmul.f32 %v1992_v36, %v1543_v30  ;;  %v1550_v50 = vmul.f32 %v1993_v32, %v1543_v30  ;;  %v1551_v7 = vmul.f32 %v1991_v42, %v1547_v62 }
  0xee   : > { %v1552_v63 = vmul.f32 %v1992_v36, %v1547_v62  ;;  %v1553_v45 = vmul.f32 %v1993_v32, %v1547_v62  ;;  %v1568_v56 = vmul.f32 %v1994_v6, %v1563_v49  ;;  %v1569_v34 = vmul.f32 %v1995_v53, %v1563_v49 }
  0xef   : > { %v1554_v10 = vadd.f32 %v1548_v40, %v1502_v52  ;;  %v1555_v31 = vadd.f32 %v1549_v23, %v1503_v48  ;;  %v1556_v21 = vadd.f32 %v1550_v50, %v1504_v58  ;;  %v1557_v8 = vadd.f32 %v1551_v7, %v1505_v29  ;;  %v1999_v40 = vld [vmem:[%s2103_s30 + $0x1c0] sm:$0xf] }
  0xf0   : > { %v1558_v54 = vadd.f32 %v1552_v63, %v1506_v13  ;;  %v1559_v57 = vadd.f32 %v1553_v45, %v1507_v61  ;;  %v1570_v15 = vmul.f32 %v1996_v55, %v1563_v49  ;;  %v1571_v2 = vmul.f32 %v1994_v6, %v1567_v46 }
  0xf1   : > { %v1572_v3 = vmul.f32 %v1995_v53, %v1567_v46  ;;  %v1573_v1 = vmul.f32 %v1996_v55, %v1567_v46  ;;  %v1574_v11 = vsub.f32 %v1554_v10, %v1568_v56  ;;  %v1575_v44 = vsub.f32 %v1555_v31, %v1569_v34 }
  0xf2   : > { %v1576_v47 = vsub.f32 %v1556_v21, %v1570_v15  ;;  %v1577_v17 = vsub.f32 %v1557_v8, %v1571_v2  ;;  %v1580_v9 = vmul.f32 %v1994_v6, %v1543_v30  ;;  %v1581_v59 = vmul.f32 %v1995_v53, %v1543_v30 }
  0xf3   : > { %v1578_v19 = vsub.f32 %v1558_v54, %v1572_v3  ;;  %v1579_v37 = vsub.f32 %v1559_v57, %v1573_v1  ;;  %v1582_v28 = vmul.f32 %v1996_v55, %v1543_v30  ;;  %v1583_v18 = vmul.f32 %v1994_v6, %v1547_v62 }
  0xf4   : > { %v1584_v52 = vmul.f32 %v1995_v53, %v1547_v62  ;;  %v1585_v48 = vmul.f32 %v1996_v55, %v1547_v62  ;;  %v1586_v58 = vadd.f32 %v1580_v9, %v1526_v24  ;;  %v1587_v29 = vadd.f32 %v1581_v59, %v1527_v22  ;;  %v1997_v53 = vld [vmem:[%s2103_s30 + $0x1b0] sm:$0xff]  ;;  %v1998_v62 = vld [vmem:[%s2103_s30 + $0x1b8] sm:$0xff]  ;;  %v2002_v55 = vld [vmem:[%s2125_s8 + $0x1c0] sm:$0xf] }
  0xf5   : > { %v1588_v13 = vadd.f32 %v1582_v28, %v1528_v35  ;;  %v1589_v61 = vadd.f32 %v1583_v18, %v1529_v0  ;;  %v1592_v25 = vmul.f32 %v1991_v42, %v1563_v49  ;;  %v1593_v16 = vmul.f32 %v1992_v36, %v1563_v49 }
  0xf6   : > { %v1590_v38 = vadd.f32 %v1584_v52, %v1530_v27  ;;  %v1591_v60 = vadd.f32 %v1585_v48, %v1531_v39  ;;  %v1594_v26 = vmul.f32 %v1993_v32, %v1563_v49  ;;  %v1595_v51 = vmul.f32 %v1991_v42, %v1567_v46  ;;  %v2000_v27 = vld [vmem:[%s2125_s8 + $0x1b0] sm:$0xff]  ;;  %v2001_v39 = vld [vmem:[%s2125_s8 + $0x1b8] sm:$0xff] }
  0xf7   : > { %v1596_v14 = vmul.f32 %v1992_v36, %v1567_v46  ;;  %v1597_v12 = vmul.f32 %v1993_v32, %v1567_v46  ;;  %v1598_v30 = vadd.f32 %v1592_v25, %v1586_v58  ;;  %v1599_v6 = vadd.f32 %v1593_v16, %v1587_v29 }
  0xf8   : > { %v1600_v24 = vadd.f32 %v1594_v26, %v1588_v13  ;;  %v1601_v23 = vadd.f32 %v1595_v51, %v1589_v61  ;;  %v1615_v22 = vrot.slane %v2512_v33, %v2073_v4  ;;  %v1619_v35 = vrot.slane %v2515_v43, %v2073_v4 }
  0xf9   : > { %v1602_v0 = vadd.f32 %v1596_v14, %v1590_v38  ;;  %v1603_v42 = vadd.f32 %v1597_v12, %v1591_v60  ;;  %v1635_v36 = vrot.slane %v2518_v41, %v2073_v4  ;;  %v1639_v32 = vrot.slane %v2521_v20, %v2073_v4 }
  0xfa   : > { %v1620_v49 = vmul.f32 %v1997_v53, %v1615_v22  ;;  %v1621_v46 = vmul.f32 %v1998_v62, %v1615_v22  ;;  %v1622_v50 = vmul.f32 %v1999_v40, %v1615_v22  ;;  %v1623_v7 = vmul.f32 %v1997_v53, %v1619_v35 }
  0xfb   : > { %v1624_v63 = vmul.f32 %v1998_v62, %v1619_v35  ;;  %v1625_v45 = vmul.f32 %v1999_v40, %v1619_v35  ;;  %v1640_v56 = vmul.f32 %v2000_v27, %v1635_v36  ;;  %v1641_v34 = vmul.f32 %v2001_v39, %v1635_v36 }
  0xfc   : > { %v1626_v10 = vadd.f32 %v1620_v49, %v1574_v11  ;;  %v1627_v31 = vadd.f32 %v1621_v46, %v1575_v44  ;;  %v1628_v21 = vadd.f32 %v1622_v50, %v1576_v47  ;;  %v1629_v8 = vadd.f32 %v1623_v7, %v1577_v17 }
  0xfd   : > { %v1630_v54 = vadd.f32 %v1624_v63, %v1578_v19  ;;  %v1631_v57 = vadd.f32 %v1625_v45, %v1579_v37  ;;  %v1642_v15 = vmul.f32 %v2002_v55, %v1635_v36  ;;  %v1643_v2 = vmul.f32 %v2000_v27, %v1639_v32 }
  0xfe   : > { %v1644_v4 = vmul.f32 %v2001_v39, %v1639_v32  ;;  %v1645_v3 = vmul.f32 %v2002_v55, %v1639_v32  ;;  %v1646_v1 = vsub.f32 %v1626_v10, %v1640_v56  ;;  %v1647_v9 = vsub.f32 %v1627_v31, %v1641_v34 }
  0xff   : > { %v1648_v59 = vsub.f32 %v1628_v21, %v1642_v15  ;;  %v1649_v28 = vsub.f32 %v1629_v8, %v1643_v2  ;;  %v1652_v18 = vmul.f32 %v2000_v27, %v1615_v22  ;;  %v1653_v52 = vmul.f32 %v2001_v39, %v1615_v22 }
 0x100   : > { %v1650_v48 = vsub.f32 %v1630_v54, %v1644_v4  ;;  %v1651_v58 = vsub.f32 %v1631_v57, %v1645_v3  ;;  %v1654_v29 = vmul.f32 %v2002_v55, %v1615_v22  ;;  %v1655_v13 = vmul.f32 %v2000_v27, %v1619_v35  ;;  %v2003_v27 = vld [vmem:[%s2103_s30 + $0x1c8] sm:$0xff] }
 0x101   : > { %v1656_v11 = vmul.f32 %v2001_v39, %v1619_v35  ;;  %v1657_v44 = vmul.f32 %v2002_v55, %v1619_v35  ;;  %v1658_v47 = vadd.f32 %v1652_v18, %v1598_v30  ;;  %v1659_v17 = vadd.f32 %v1653_v52, %v1599_v6  ;;  %v2004_v35 = vld [vmem:[%s2103_s30 + $0x1d0] sm:$0xff]  ;;  %v2005_v39 = vld [vmem:[%s2103_s30 + $0x1d8] sm:$0xf] }
 0x102   : > { %v1660_v19 = vadd.f32 %v1654_v29, %v1600_v24  ;;  %v1661_v37 = vadd.f32 %v1655_v13, %v1601_v23  ;;  %v1664_v61 = vmul.f32 %v1997_v53, %v1635_v36  ;;  %v1665_v25 = vmul.f32 %v1998_v62, %v1635_v36 }
 0x103   : > { %v1662_v16 = vadd.f32 %v1656_v11, %v1602_v0  ;;  %v1663_v38 = vadd.f32 %v1657_v44, %v1603_v42  ;;  %v1666_v60 = vmul.f32 %v1999_v40, %v1635_v36  ;;  %v1667_v26 = vmul.f32 %v1997_v53, %v1639_v32  ;;  %v2006_v0 = vld [vmem:[%s2125_s8 + $0x1c8] sm:$0xff]  ;;  %v2007_v42 = vld [vmem:[%s2125_s8 + $0x1d0] sm:$0xff] }
 0x104   : > { %v1668_v51 = vmul.f32 %v1998_v62, %v1639_v32  ;;  %v1669_v14 = vmul.f32 %v1999_v40, %v1639_v32  ;;  %v1670_v12 = vadd.f32 %v1664_v61, %v1658_v47  ;;  %v1671_v22 = vadd.f32 %v1665_v25, %v1659_v17 }
 0x105   : > { %v1672_v30 = vadd.f32 %v1666_v60, %v1660_v19  ;;  %v1673_v49 = vadd.f32 %v1667_v26, %v1661_v37  ;;  %v1687_v6 = vrot.slane %v2512_v33, %v2075_v5  ;;  %v1691_v24 = vrot.slane %v2515_v43, %v2075_v5  ;;  %v2008_v43 = vld [vmem:[%s2125_s8 + $0x1d8] sm:$0xf] }
 0x106   : > { %v1674_v23 = vadd.f32 %v1668_v51, %v1662_v16  ;;  %v1675_v53 = vadd.f32 %v1669_v14, %v1663_v38  ;;  %v1707_v62 = vrot.slane %v2518_v41, %v2075_v5  ;;  %v1711_v40 = vrot.slane %v2521_v20, %v2075_v5 }
 0x107   : > { %v1692_v36 = vmul.f32 %v2003_v27, %v1687_v6  ;;  %v1693_v32 = vmul.f32 %v2004_v35, %v1687_v6  ;;  %v1694_v46 = vmul.f32 %v2005_v39, %v1687_v6  ;;  %v1695_v50 = vmul.f32 %v2003_v27, %v1691_v24 }
 0x108   : > { %v1696_v33 = vmul.f32 %v2004_v35, %v1691_v24  ;;  %v1697_v7 = vmul.f32 %v2005_v39, %v1691_v24  ;;  %v1712_v63 = vmul.f32 %v2006_v0, %v1707_v62  ;;  %v1713_v45 = vmul.f32 %v2007_v42, %v1707_v62 }
 0x109   : > { %v1698_v56 = vadd.f32 %v1692_v36, %v1646_v1  ;;  %v1699_v34 = vadd.f32 %v1693_v32, %v1647_v9  ;;  %v1700_v55 = vadd.f32 %v1694_v46, %v1648_v59  ;;  %v1701_v10 = vadd.f32 %v1695_v50, %v1649_v28 }
 0x10a   : > { %v1702_v5 = vadd.f32 %v1696_v33, %v1650_v48  ;;  %v1703_v41 = vadd.f32 %v1697_v7, %v1651_v58  ;;  %v1714_v20 = vmul.f32 %v2008_v43, %v1707_v62  ;;  %v1715_v31 = vmul.f32 %v2006_v0, %v1711_v40 }
 0x10b   : > { %v1716_v21 = vmul.f32 %v2007_v42, %v1711_v40  ;;  %v1717_v8 = vmul.f32 %v2008_v43, %v1711_v40  ;;  %v1718_v54 = vsub.f32 %v1698_v56, %v1712_v63  ;;  %v1719_v57 = vsub.f32 %v1699_v34, %v1713_v45 }
 0x10c   : > { %v1720_v15 = vsub.f32 %v1700_v55, %v1714_v20  ;;  %v1721_v2 = vsub.f32 %v1701_v10, %v1715_v31  ;;  %v1724_v4 = vmul.f32 %v2006_v0, %v1687_v6  ;;  %v1725_v3 = vmul.f32 %v2007_v42, %v1687_v6 }
 0x10d   : > { %v1722_v1 = vsub.f32 %v1702_v5, %v1716_v21  ;;  %v1723_v9 = vsub.f32 %v1703_v41, %v1717_v8  ;;  %v1726_v59 = vmul.f32 %v2008_v43, %v1687_v6  ;;  %v1727_v28 = vmul.f32 %v2006_v0, %v1691_v24  ;;  %1748 = vst [vmem:[%s292_s11] sm:$0xff] %v1718_v54 }
 0x10e   : > { %1749 = vst [vmem:[%s292_s11 + $0x8] sm:$0xff] %v1719_v57  ;;  %v1728_v18 = vmul.f32 %v2007_v42, %v1691_v24  ;;  %v1729_v52 = vmul.f32 %v2008_v43, %v1691_v24  ;;  %v1730_v48 = vadd.f32 %v1724_v4, %v1670_v12  ;;  %v1731_v58 = vadd.f32 %v1725_v3, %v1671_v22 }
 0x10f   : > { %1750 = vst [vmem:[%s292_s11 + $0x10] sm:$0xf] %v1720_v15  ;;  %1751 = vst [vmem:[%s292_s11 + $0x18] sm:$0xff] %v1721_v2  ;;  %v1732_v29 = vadd.f32 %v1726_v59, %v1672_v30  ;;  %v1733_v13 = vadd.f32 %v1727_v28, %v1673_v49  ;;  %v1736_v11 = vmul.f32 %v2003_v27, %v1707_v62 }
 0x110   : > { %v1737_v44 = vmul.f32 %v2004_v35, %v1707_v62  ;;  %1752 = vst [vmem:[%s292_s11 + $0x20] sm:$0xff] %v1722_v1  ;;  %1753 = vst [vmem:[%s292_s11 + $0x28] sm:$0xf] %v1723_v9  ;;  %v1734_v47 = vadd.f32 %v1728_v18, %v1674_v23  ;;  %v1735_v17 = vadd.f32 %v1729_v52, %v1675_v53 }
 0x111   : > { %v1738_v19 = vmul.f32 %v2005_v39, %v1707_v62  ;;  %v1739_v37 = vmul.f32 %v2003_v27, %v1711_v40  ;;  %v1740_v61 = vmul.f32 %v2004_v35, %v1711_v40  ;;  %v1741_v25 = vmul.f32 %v2005_v39, %v1711_v40 }
 0x112   : > { %v1742_v16 = vadd.f32 %v1736_v11, %v1730_v48  ;;  %v1743_v38 = vadd.f32 %v1737_v44, %v1731_v58 }
 0x113   : > { %v1744_v60 = vadd.f32 %v1738_v19, %v1732_v29  ;;  %v1745_v26 = vadd.f32 %v1739_v37, %v1733_v13  ;;  %v1746_v51 = vadd.f32 %v1740_v61, %v1734_v47  ;;  %v1747_v14 = vadd.f32 %v1741_v25, %v1735_v17 }
 0x114   : > { %1754 = vst [vmem:[%s297_s14] sm:$0xff] %v1742_v16  ;;  %1755 = vst [vmem:[%s297_s14 + $0x8] sm:$0xff] %v1743_v38 }
 0x115   : > { %1756 = vst [vmem:[%s297_s14 + $0x10] sm:$0xf] %v1744_v60  ;;  %1757 = vst [vmem:[%s297_s14 + $0x18] sm:$0xff] %v1745_v26 }
 0x116   : > { %1758 = vst [vmem:[%s297_s14 + $0x20] sm:$0xff] %v1746_v51  ;;  %1759 = vst [vmem:[%s297_s14 + $0x28] sm:$0xf] %v1747_v14 }
 0x117 PF: > { %s16_s18 = sadd.s32 1, %s2027_s18  }
 0x118   : > { %p13_p4 = scmp.ge.s32.totalorder %s16_s18, 6  }
 0x11a   :  { %15 = sbr.rel (!%p13_p4) target bundleno = 1 (0x1), region = 125 }

// kernel: reverse.8
= control target key start
LH: loop header
LB: loop body
LE: loop exit
PB: predicated region body
PF: predicated region fallthrough
CT: control target
= control target key end

     0   :  { %s1160_s0 = inlined_call_operand.vmem [shape: f32[2,2,20,8,8,3], index: 0, kind: input, shape index: {}]   ;;  %s1161_s1 = inlined_call_operand.vmem [shape: f32[2,2,20,8,8,3], index: 1, kind: output, shape index: {}]  }
   0x1   :  { %v384_v0 = vld [vmem:[%s1160_s0 + $0x80] sm:$0xff]  ;;  %v406_v12 = vld [vmem:[%s1160_s0 + $0x88] sm:$0xff]  ;;  %v430_v24 = vld [vmem:[%s1160_s0 + $0x90] sm:$0xff] }
   0x2   :  { %v385_v1 = vld [vmem:[%s1160_s0 + $0x200] sm:$0xff]  ;;  %4 = vst [vmem:[%s1161_s1] sm:$0xff] %v384_v0  ;;  %v408_v13 = vld [vmem:[%s1160_s0 + $0x208] sm:$0xff]  ;;  %407 = vst [vmem:[%s1161_s1 + $0x8] sm:$0xff] %v406_v12 }
   0x3   :  { %v387_v2 = vld [vmem:[%s1160_s0 + $0x140] sm:$0xff]  ;;  %386 = vst [vmem:[%s1161_s1 + $0x180] sm:$0xff] %v385_v1  ;;  %v410_v14 = vld [vmem:[%s1160_s0 + $0x148] sm:$0xff]  ;;  %409 = vst [vmem:[%s1161_s1 + $0x188] sm:$0xff] %v408_v13 }
   0x4   :  { %388 = vst [vmem:[%s1161_s1 + $0xc0] sm:$0xff] %v387_v2  ;;  %v389_v3 = vld [vmem:[%s1160_s0 + $0x2c0] sm:$0xff]  ;;  %411 = vst [vmem:[%s1161_s1 + $0xc8] sm:$0xff] %v410_v14  ;;  %v412_v15 = vld [vmem:[%s1160_s0 + $0x2c8] sm:$0xff] }
   0x5   :  { %v391_v4 = vld [vmem:[%s1160_s0 + $0x40] sm:$0xff]  ;;  %390 = vst [vmem:[%s1161_s1 + $0x240] sm:$0xff] %v389_v3  ;;  %v414_v16 = vld [vmem:[%s1160_s0 + $0x48] sm:$0xff]  ;;  %413 = vst [vmem:[%s1161_s1 + $0x248] sm:$0xff] %v412_v15 }
   0x6   :  { %v393_v5 = vld [vmem:[%s1160_s0 + $0x1c0] sm:$0xff]  ;;  %392 = vst [vmem:[%s1161_s1 + $0x40] sm:$0xff] %v391_v4  ;;  %v416_v17 = vld [vmem:[%s1160_s0 + $0x1c8] sm:$0xff]  ;;  %415 = vst [vmem:[%s1161_s1 + $0x48] sm:$0xff] %v414_v16 }
   0x7   :  { %394 = vst [vmem:[%s1161_s1 + $0x1c0] sm:$0xff] %v393_v5  ;;  %v395_v6 = vld [vmem:[%s1160_s0 + $0x100] sm:$0xff]  ;;  %417 = vst [vmem:[%s1161_s1 + $0x1c8] sm:$0xff] %v416_v17  ;;  %v418_v18 = vld [vmem:[%s1160_s0 + $0x108] sm:$0xff] }
   0x8   :  { %v397_v7 = vld [vmem:[%s1160_s0 + $0x280] sm:$0xff]  ;;  %396 = vst [vmem:[%s1161_s1 + $0x100] sm:$0xff] %v395_v6  ;;  %v420_v19 = vld [vmem:[%s1160_s0 + $0x288] sm:$0xff]  ;;  %419 = vst [vmem:[%s1161_s1 + $0x108] sm:$0xff] %v418_v18 }
   0x9   :  { %v33_v8 = vld [vmem:[%s1160_s0] sm:$0xff]  ;;  %398 = vst [vmem:[%s1161_s1 + $0x280] sm:$0xff] %v397_v7  ;;  %v422_v20 = vld [vmem:[%s1160_s0 + $0x8] sm:$0xff]  ;;  %421 = vst [vmem:[%s1161_s1 + $0x288] sm:$0xff] %v420_v19 }
   0xa   :  { %399 = vst [vmem:[%s1161_s1 + $0x80] sm:$0xff] %v33_v8  ;;  %v400_v9 = vld [vmem:[%s1160_s0 + $0x180] sm:$0xff]  ;;  %423 = vst [vmem:[%s1161_s1 + $0x88] sm:$0xff] %v422_v20  ;;  %v424_v21 = vld [vmem:[%s1160_s0 + $0x188] sm:$0xff] }
   0xb   :  { %v402_v10 = vld [vmem:[%s1160_s0 + $0xc0] sm:$0xff]  ;;  %401 = vst [vmem:[%s1161_s1 + $0x200] sm:$0xff] %v400_v9  ;;  %v426_v22 = vld [vmem:[%s1160_s0 + $0xc8] sm:$0xff]  ;;  %425 = vst [vmem:[%s1161_s1 + $0x208] sm:$0xff] %v424_v21 }
   0xc   :  { %v404_v11 = vld [vmem:[%s1160_s0 + $0x240] sm:$0xff]  ;;  %403 = vst [vmem:[%s1161_s1 + $0x140] sm:$0xff] %v402_v10  ;;  %v428_v23 = vld [vmem:[%s1160_s0 + $0x248] sm:$0xff]  ;;  %427 = vst [vmem:[%s1161_s1 + $0x148] sm:$0xff] %v426_v22 }
   0xd   :  { %405 = vst [vmem:[%s1161_s1 + $0x2c0] sm:$0xff] %v404_v11  ;;  %429 = vst [vmem:[%s1161_s1 + $0x2c8] sm:$0xff] %v428_v23  ;;  %v432_v25 = vld [vmem:[%s1160_s0 + $0x210] sm:$0xff]  ;;  %v454_v36 = vld [vmem:[%s1160_s0 + $0x98] sm:$0xff] }
   0xe   :  { %v434_v26 = vld [vmem:[%s1160_s0 + $0x150] sm:$0xff]  ;;  %431 = vst [vmem:[%s1161_s1 + $0x10] sm:$0xff] %v430_v24  ;;  %433 = vst [vmem:[%s1161_s1 + $0x190] sm:$0xff] %v432_v25  ;;  %v456_v37 = vld [vmem:[%s1160_s0 + $0x218] sm:$0xff] }
   0xf   :  { %435 = vst [vmem:[%s1161_s1 + $0xd0] sm:$0xff] %v434_v26  ;;  %v436_v27 = vld [vmem:[%s1160_s0 + $0x2d0] sm:$0xff]  ;;  %v458_v38 = vld [vmem:[%s1160_s0 + $0x158] sm:$0xff]  ;;  %455 = vst [vmem:[%s1161_s1 + $0x18] sm:$0xff] %v454_v36 }
  0x10   :  { %v438_v28 = vld [vmem:[%s1160_s0 + $0x50] sm:$0xff]  ;;  %437 = vst [vmem:[%s1161_s1 + $0x250] sm:$0xff] %v436_v27  ;;  %457 = vst [vmem:[%s1161_s1 + $0x198] sm:$0xff] %v456_v37  ;;  %v460_v39 = vld [vmem:[%s1160_s0 + $0x2d8] sm:$0xff] }
  0x11   :  { %v440_v29 = vld [vmem:[%s1160_s0 + $0x1d0] sm:$0xff]  ;;  %439 = vst [vmem:[%s1161_s1 + $0x50] sm:$0xff] %v438_v28  ;;  %459 = vst [vmem:[%s1161_s1 + $0xd8] sm:$0xff] %v458_v38  ;;  %v462_v40 = vld [vmem:[%s1160_s0 + $0x58] sm:$0xff] }
  0x12   :  { %441 = vst [vmem:[%s1161_s1 + $0x1d0] sm:$0xff] %v440_v29  ;;  %v442_v30 = vld [vmem:[%s1160_s0 + $0x110] sm:$0xff]  ;;  %v464_v41 = vld [vmem:[%s1160_s0 + $0x1d8] sm:$0xff]  ;;  %461 = vst [vmem:[%s1161_s1 + $0x258] sm:$0xff] %v460_v39 }
  0x13   :  { %v444_v31 = vld [vmem:[%s1160_s0 + $0x290] sm:$0xff]  ;;  %443 = vst [vmem:[%s1161_s1 + $0x110] sm:$0xff] %v442_v30  ;;  %463 = vst [vmem:[%s1161_s1 + $0x58] sm:$0xff] %v462_v40  ;;  %v466_v42 = vld [vmem:[%s1160_s0 + $0x118] sm:$0xff] }
  0x14   :  { %v446_v32 = vld [vmem:[%s1160_s0 + $0x10] sm:$0xff]  ;;  %445 = vst [vmem:[%s1161_s1 + $0x290] sm:$0xff] %v444_v31  ;;  %465 = vst [vmem:[%s1161_s1 + $0x1d8] sm:$0xff] %v464_v41  ;;  %v468_v43 = vld [vmem:[%s1160_s0 + $0x298] sm:$0xff] }
  0x15   :  { %447 = vst [vmem:[%s1161_s1 + $0x90] sm:$0xff] %v446_v32  ;;  %v448_v33 = vld [vmem:[%s1160_s0 + $0x190] sm:$0xff]  ;;  %v470_v44 = vld [vmem:[%s1160_s0 + $0x18] sm:$0xff]  ;;  %467 = vst [vmem:[%s1161_s1 + $0x118] sm:$0xff] %v466_v42 }
  0x16   :  { %v450_v34 = vld [vmem:[%s1160_s0 + $0xd0] sm:$0xff]  ;;  %449 = vst [vmem:[%s1161_s1 + $0x210] sm:$0xff] %v448_v33  ;;  %469 = vst [vmem:[%s1161_s1 + $0x298] sm:$0xff] %v468_v43  ;;  %v472_v45 = vld [vmem:[%s1160_s0 + $0x198] sm:$0xff] }
  0x17   :  { %v452_v35 = vld [vmem:[%s1160_s0 + $0x250] sm:$0xff]  ;;  %451 = vst [vmem:[%s1161_s1 + $0x150] sm:$0xff] %v450_v34  ;;  %471 = vst [vmem:[%s1161_s1 + $0x98] sm:$0xff] %v470_v44  ;;  %v474_v46 = vld [vmem:[%s1160_s0 + $0xd8] sm:$0xff] }
  0x18   :  { %453 = vst [vmem:[%s1161_s1 + $0x2d0] sm:$0xff] %v452_v35  ;;  %v476_v47 = vld [vmem:[%s1160_s0 + $0x258] sm:$0xff]  ;;  %473 = vst [vmem:[%s1161_s1 + $0x218] sm:$0xff] %v472_v45  ;;  %v478_v48 = vld [vmem:[%s1160_s0 + $0xa0] sm:$0xff] }
  0x19   :  { %475 = vst [vmem:[%s1161_s1 + $0x158] sm:$0xff] %v474_v46  ;;  %477 = vst [vmem:[%s1161_s1 + $0x2d8] sm:$0xff] %v476_v47  ;;  %v480_v49 = vld [vmem:[%s1160_s0 + $0x220] sm:$0xff]  ;;  %v502_v60 = vld [vmem:[%s1160_s0 + $0xa8] sm:$0xff] }
  0x1a   :  { %v482_v50 = vld [vmem:[%s1160_s0 + $0x160] sm:$0xff]  ;;  %479 = vst [vmem:[%s1161_s1 + $0x20] sm:$0xff] %v478_v48  ;;  %481 = vst [vmem:[%s1161_s1 + $0x1a0] sm:$0xff] %v480_v49  ;;  %v504_v61 = vld [vmem:[%s1160_s0 + $0x228] sm:$0xff] }
  0x1b   :  { %483 = vst [vmem:[%s1161_s1 + $0xe0] sm:$0xff] %v482_v50  ;;  %v484_v51 = vld [vmem:[%s1160_s0 + $0x2e0] sm:$0xff]  ;;  %v506_v62 = vld [vmem:[%s1160_s0 + $0x168] sm:$0xff]  ;;  %503 = vst [vmem:[%s1161_s1 + $0x28] sm:$0xff] %v502_v60 }
  0x1c   :  { %v486_v52 = vld [vmem:[%s1160_s0 + $0x60] sm:$0xff]  ;;  %485 = vst [vmem:[%s1161_s1 + $0x260] sm:$0xff] %v484_v51  ;;  %505 = vst [vmem:[%s1161_s1 + $0x1a8] sm:$0xff] %v504_v61  ;;  %v508_v63 = vld [vmem:[%s1160_s0 + $0x2e8] sm:$0xff] }
  0x1d   :  { %v488_v53 = vld [vmem:[%s1160_s0 + $0x1e0] sm:$0xff]  ;;  %487 = vst [vmem:[%s1161_s1 + $0x60] sm:$0xff] %v486_v52  ;;  %507 = vst [vmem:[%s1161_s1 + $0xe8] sm:$0xff] %v506_v62  ;;  %v510_v0 = vld [vmem:[%s1160_s0 + $0x68] sm:$0xff] }
  0x1e   :  { %489 = vst [vmem:[%s1161_s1 + $0x1e0] sm:$0xff] %v488_v53  ;;  %v490_v54 = vld [vmem:[%s1160_s0 + $0x120] sm:$0xff]  ;;  %v512_v1 = vld [vmem:[%s1160_s0 + $0x1e8] sm:$0xff]  ;;  %509 = vst [vmem:[%s1161_s1 + $0x268] sm:$0xff] %v508_v63 }
  0x1f   :  { %v492_v55 = vld [vmem:[%s1160_s0 + $0x2a0] sm:$0xff]  ;;  %491 = vst [vmem:[%s1161_s1 + $0x120] sm:$0xff] %v490_v54  ;;  %511 = vst [vmem:[%s1161_s1 + $0x68] sm:$0xff] %v510_v0  ;;  %v514_v2 = vld [vmem:[%s1160_s0 + $0x128] sm:$0xff] }
  0x20   :  { %v494_v56 = vld [vmem:[%s1160_s0 + $0x20] sm:$0xff]  ;;  %493 = vst [vmem:[%s1161_s1 + $0x2a0] sm:$0xff] %v492_v55  ;;  %513 = vst [vmem:[%s1161_s1 + $0x1e8] sm:$0xff] %v512_v1  ;;  %v516_v3 = vld [vmem:[%s1160_s0 + $0x2a8] sm:$0xff] }
  0x21   :  { %495 = vst [vmem:[%s1161_s1 + $0xa0] sm:$0xff] %v494_v56  ;;  %v496_v57 = vld [vmem:[%s1160_s0 + $0x1a0] sm:$0xff]  ;;  %v518_v4 = vld [vmem:[%s1160_s0 + $0x28] sm:$0xff]  ;;  %515 = vst [vmem:[%s1161_s1 + $0x128] sm:$0xff] %v514_v2 }
  0x22   :  { %v498_v58 = vld [vmem:[%s1160_s0 + $0xe0] sm:$0xff]  ;;  %497 = vst [vmem:[%s1161_s1 + $0x220] sm:$0xff] %v496_v57  ;;  %517 = vst [vmem:[%s1161_s1 + $0x2a8] sm:$0xff] %v516_v3  ;;  %v520_v5 = vld [vmem:[%s1160_s0 + $0x1a8] sm:$0xff] }
  0x23   :  { %v500_v59 = vld [vmem:[%s1160_s0 + $0x260] sm:$0xff]  ;;  %499 = vst [vmem:[%s1161_s1 + $0x160] sm:$0xff] %v498_v58  ;;  %519 = vst [vmem:[%s1161_s1 + $0xa8] sm:$0xff] %v518_v4  ;;  %v522_v6 = vld [vmem:[%s1160_s0 + $0xe8] sm:$0xff] }
  0x24   :  { %501 = vst [vmem:[%s1161_s1 + $0x2e0] sm:$0xff] %v500_v59  ;;  %v524_v7 = vld [vmem:[%s1160_s0 + $0x268] sm:$0xff]  ;;  %521 = vst [vmem:[%s1161_s1 + $0x228] sm:$0xff] %v520_v5  ;;  %v526_v8 = vld [vmem:[%s1160_s0 + $0xb0] sm:$0xff] }
  0x25   :  { %523 = vst [vmem:[%s1161_s1 + $0x168] sm:$0xff] %v522_v6  ;;  %525 = vst [vmem:[%s1161_s1 + $0x2e8] sm:$0xff] %v524_v7  ;;  %v528_v9 = vld [vmem:[%s1160_s0 + $0x230] sm:$0xff]  ;;  %v550_v20 = vld [vmem:[%s1160_s0 + $0xb8] sm:$0xff] }
  0x26   :  { %v530_v10 = vld [vmem:[%s1160_s0 + $0x170] sm:$0xff]  ;;  %527 = vst [vmem:[%s1161_s1 + $0x30] sm:$0xff] %v526_v8  ;;  %529 = vst [vmem:[%s1161_s1 + $0x1b0] sm:$0xff] %v528_v9  ;;  %v552_v21 = vld [vmem:[%s1160_s0 + $0x238] sm:$0xff] }
  0x27   :  { %531 = vst [vmem:[%s1161_s1 + $0xf0] sm:$0xff] %v530_v10  ;;  %v532_v11 = vld [vmem:[%s1160_s0 + $0x2f0] sm:$0xff]  ;;  %v554_v22 = vld [vmem:[%s1160_s0 + $0x178] sm:$0xff]  ;;  %551 = vst [vmem:[%s1161_s1 + $0x38] sm:$0xff] %v550_v20 }
  0x28   :  { %v534_v12 = vld [vmem:[%s1160_s0 + $0x70] sm:$0xff]  ;;  %533 = vst [vmem:[%s1161_s1 + $0x270] sm:$0xff] %v532_v11  ;;  %553 = vst [vmem:[%s1161_s1 + $0x1b8] sm:$0xff] %v552_v21  ;;  %v556_v23 = vld [vmem:[%s1160_s0 + $0x2f8] sm:$0xff] }
  0x29   :  { %v536_v13 = vld [vmem:[%s1160_s0 + $0x1f0] sm:$0xff]  ;;  %535 = vst [vmem:[%s1161_s1 + $0x70] sm:$0xff] %v534_v12  ;;  %555 = vst [vmem:[%s1161_s1 + $0xf8] sm:$0xff] %v554_v22  ;;  %v558_v24 = vld [vmem:[%s1160_s0 + $0x78] sm:$0xff] }
  0x2a   :  { %537 = vst [vmem:[%s1161_s1 + $0x1f0] sm:$0xff] %v536_v13  ;;  %v538_v14 = vld [vmem:[%s1160_s0 + $0x130] sm:$0xff]  ;;  %v560_v25 = vld [vmem:[%s1160_s0 + $0x1f8] sm:$0xff]  ;;  %557 = vst [vmem:[%s1161_s1 + $0x278] sm:$0xff] %v556_v23 }
  0x2b   :  { %v540_v15 = vld [vmem:[%s1160_s0 + $0x2b0] sm:$0xff]  ;;  %539 = vst [vmem:[%s1161_s1 + $0x130] sm:$0xff] %v538_v14  ;;  %559 = vst [vmem:[%s1161_s1 + $0x78] sm:$0xff] %v558_v24  ;;  %v562_v26 = vld [vmem:[%s1160_s0 + $0x138] sm:$0xff] }
  0x2c   :  { %v542_v16 = vld [vmem:[%s1160_s0 + $0x30] sm:$0xff]  ;;  %541 = vst [vmem:[%s1161_s1 + $0x2b0] sm:$0xff] %v540_v15  ;;  %561 = vst [vmem:[%s1161_s1 + $0x1f8] sm:$0xff] %v560_v25  ;;  %v564_v27 = vld [vmem:[%s1160_s0 + $0x2b8] sm:$0xff] }
  0x2d   :  { %543 = vst [vmem:[%s1161_s1 + $0xb0] sm:$0xff] %v542_v16  ;;  %v544_v17 = vld [vmem:[%s1160_s0 + $0x1b0] sm:$0xff]  ;;  %v566_v28 = vld [vmem:[%s1160_s0 + $0x38] sm:$0xff]  ;;  %563 = vst [vmem:[%s1161_s1 + $0x138] sm:$0xff] %v562_v26 }
  0x2e   :  { %v546_v18 = vld [vmem:[%s1160_s0 + $0xf0] sm:$0xff]  ;;  %545 = vst [vmem:[%s1161_s1 + $0x230] sm:$0xff] %v544_v17  ;;  %565 = vst [vmem:[%s1161_s1 + $0x2b8] sm:$0xff] %v564_v27  ;;  %v568_v29 = vld [vmem:[%s1160_s0 + $0x1b8] sm:$0xff] }
  0x2f   :  { %v548_v19 = vld [vmem:[%s1160_s0 + $0x270] sm:$0xff]  ;;  %547 = vst [vmem:[%s1161_s1 + $0x170] sm:$0xff] %v546_v18  ;;  %567 = vst [vmem:[%s1161_s1 + $0xb8] sm:$0xff] %v566_v28  ;;  %v570_v30 = vld [vmem:[%s1160_s0 + $0xf8] sm:$0xff] }
  0x30   :  { %549 = vst [vmem:[%s1161_s1 + $0x2f0] sm:$0xff] %v548_v19  ;;  %v572_v31 = vld [vmem:[%s1160_s0 + $0x278] sm:$0xff]  ;;  %569 = vst [vmem:[%s1161_s1 + $0x238] sm:$0xff] %v568_v29 }
  0x31   :  { %571 = vst [vmem:[%s1161_s1 + $0x178] sm:$0xff] %v570_v30  ;;  %573 = vst [vmem:[%s1161_s1 + $0x2f8] sm:$0xff] %v572_v31 }

// kernel: net3d_forward.16
= control target key start
LH: loop header
LB: loop body
LE: loop exit
PB: predicated region body
PF: predicated region fallthrough
CT: control target
= control target key end

     0   :  { %s1855_s21 = smov 0   ;;  %s2699_s0 = inlined_call_operand.vmem [shape: f32[2048,20], index: 0, kind: input, shape index: {}]   ;;  %s2700_s1 = inlined_call_operand.vmem [shape: f32[20,20], index: 1, kind: input, shape index: {}]   ;;  %s2701_s2 = inlined_call_operand.vmem [shape: f32[1,20], index: 2, kind: input, shape index: {}]   ;;  %s2702_s3 = inlined_call_operand.vmem [shape: f32[2048,20], index: 3, kind: input, shape index: {}]   ;;  %s2703_s4 = inlined_call_operand.vmem [shape: f32[2048,20], index: 4, kind: output, shape index: {0}]   ;;  %s2704_s5 = inlined_call_operand.vmem [shape: f32[1,20], index: 5, kind: output, shape index: {1}]   ;;  %s2705_s6 = inlined_call_operand.vmem [shape: f32[1,20], index: 6, kind: output, shape index: {2}]  }
   0x1 LB: > { %s1544_s22 = sadd.s32 4294967295, %s1817_s21   ;;  %p1548_p0 = scmp.ge.s32.totalorder %s1817_s21, 1  ;;  %s1817_s21 = sphi %s1855_s21, %s17_s21  }
   0x2   : > { %p219_p1 = scmp.lt.s32.totalorder %s1817_s21, 5 }
   0x4   : > { %p220_p2 = pnand %p1548_p0, %p219_p1 }
   0x5   : > { %v336_v0 = vld [vmem:[%s2700_s1] sm:$0xff] (!%p220_p2)  ;;  %v337_v1 = vld [vmem:[%s2700_s1 + $0x8] sm:$0xff] (!%p220_p2)  ;;  %s1549_s27 = sshll.u32 (!%p220_p2), %s1544_s22, 6  ;;  %v338_v3 = vld [vmem:[%s2700_s1 + $0x10] sm:$0xf] (!%p220_p2)  ;;  %vm539_vm0 = vcmask (!%p220_p2), 1043456  }
   0x6   : > { %223 = sbr.rel (%p220_p2) target bundleno = 382 (0x17e), region = 36  ;;  %v1793_v2 = vpack.c.bf16 (!%p220_p2), %v337_v1, %v336_v0  ;;  %p255_p3 = scmp.lt.s32.totalorder (!%p220_p2), %s1549_s27, 255  ;;  %vm346_vm1 = vcmask (!%p220_p2), 162816  }
   0x7   : > { %p1621_p4 = scmp.ne.s32.totalorder (!%p220_p2), %s1544_s22, 0 }
   0x8   : > { %1794 = vmatprep.subr.bf16.mxu0 (!%p220_p2), %v1793_v2  ;;  %1797 = vmatprep.subr.bf16.mxu1 (!%p220_p2), %v1793_v2 }
   0x9   : > { %1796 = vmatpush3.bf16.msra.mxu0 (!%p220_p2), %v1793_v2  ;;  %1799 = vmatpush3.bf16.msra.mxu1 (!%p220_p2), %v1793_v2 }
   0xa   : > { %1695 = vmatprep.subr.msk.mxu0 (!%p220_p2), %vm539_vm0, %v338_v3  ;;  %1798 = vmatprep.subr.msk.mxu1 (!%p220_p2), %vm539_vm0, %v338_v3 }
   0xd   : > { %s2707_s27 = smov (!%p255_p3, %s1549_s27), 255  ;;  %1696 = vmatpush3.msk.msra.mxu0 %vm539_vm0, %v338_v3  ;;  %1800 = vmatpush3.msk.msra.mxu1 %vm539_vm0, %v338_v3  ;;  %vm1454_vm2 = vcmask (!%p1621_p4), 155648  }
   0xe   : > { %s1875_s30 = sshll.u32 %s2707_s27, 3 }
   0xf   : > { %s1882_s9 = scalar_lea.vmem %s2699_s0, %s1875_s30  ;;  %s2018_s12 = scalar_lea.vmem %s2702_s3, %s1875_s30 }
  0x10   : > { %v272_v4 = vld [vmem:[%s1882_s9] sm:$0xff]  ;;  %v273_v5 = vld [vmem:[%s1882_s9 + $0x8] sm:$0xff]  ;;  %v274_v6 = vld [vmem:[%s1882_s9 + $0x10] sm:$0xff]  ;;  %s2032_s17 = scalar_lea.vmem %s2703_s4, %s1875_s30 }
  0x11   : > { %1697 = vmatprep.mubr.msk.f32.mxu0 %vm346_vm1, %v272_v4  ;;  %v275_v7 = vld [vmem:[%s1882_s9 + $0x18] sm:$0xff]  ;;  %v276_v8 = vld [vmem:[%s1882_s9 + $0x20] sm:$0xff]  ;;  %v277_v9 = vld [vmem:[%s1882_s9 + $0x28] sm:$0xff] }
  0x12   : > { %1698 = vmatmul.mubr.msk.f32.vlgmr.msra.gmra.mrb[0].mxu0 %vm346_vm1, %v273_v5  ;;  %v278_v10 = vld [vmem:[%s1882_s9 + $0x30] sm:$0xff]  ;;  %v304_v11 = vld [vmem:[%s1882_s9 + $0x100] sm:$0xff]  ;;  %v279_v12 = vld [vmem:[%s1882_s9 + $0x38] sm:$0xff] }
  0x13   : > { %1700 = vmatprep.mubr.msk.f32.mxu0 %vm346_vm1, %v274_v6  ;;  %1745 = vmatprep.mubr.msk.f32.mxu1 %vm346_vm1, %v304_v11  ;;  %v305_v13 = vld [vmem:[%s1882_s9 + $0x108] sm:$0xff]  ;;  %v306_v14 = vld [vmem:[%s1882_s9 + $0x110] sm:$0xff]  ;;  %v280_v15 = vld [vmem:[%s1882_s9 + $0x40] sm:$0xff] }
  0x14   : > { %1746 = vmatmul.mubr.msk.f32.vlgmr.msra.gmra.mrb[0].mxu1 %vm346_vm1, %v305_v13  ;;  %v307_v16 = vld [vmem:[%s1882_s9 + $0x118] sm:$0xff]  ;;  %v308_v17 = vld [vmem:[%s1882_s9 + $0x120] sm:$0xff]  ;;  %v281_v18 = vld [vmem:[%s1882_s9 + $0x48] sm:$0xff] }
  0x15   : > { %1748 = vmatprep.mubr.msk.f32.mxu1 %vm346_vm1, %v306_v14  ;;  %v282_v19 = vld [vmem:[%s1882_s9 + $0x50] sm:$0xff]  ;;  %v309_v20 = vld [vmem:[%s1882_s9 + $0x128] sm:$0xff]  ;;  %v283_v22 = vld [vmem:[%s1882_s9 + $0x58] sm:$0xff] }
  0x16   : > { %1701 = vmatmul.mubr.msk.f32.gmra.mrb[2].mxu0 %vm346_vm1, %v275_v7  ;;  %v310_v21 = vld [vmem:[%s1882_s9 + $0x130] sm:$0xff]  ;;  %v284_v23 = vld [vmem:[%s1882_s9 + $0x60] sm:$0xff]  ;;  %v311_v24 = vld [vmem:[%s1882_s9 + $0x138] sm:$0xff] }
  0x17   : > { %1703 = vmatprep.mubr.msk.f32.mxu0 %vm346_vm1, %v276_v8  ;;  %v312_v25 = vld [vmem:[%s1882_s9 + $0x140] sm:$0xff]  ;;  %v285_v26 = vld [vmem:[%s1882_s9 + $0x68] sm:$0xff]  ;;  %v286_v27 = vld [vmem:[%s1882_s9 + $0x70] sm:$0xff] }
  0x18   : > { %1749 = vmatmul.mubr.msk.f32.gmra.mrb[2].mxu1 %vm346_vm1, %v307_v16  ;;  %v313_v28 = vld [vmem:[%s1882_s9 + $0x148] sm:$0xff]  ;;  %v314_v29 = vld [vmem:[%s1882_s9 + $0x150] sm:$0xff]  ;;  %v287_v30 = vld [vmem:[%s1882_s9 + $0x78] sm:$0xff] }
  0x19   : > { %1751 = vmatprep.mubr.msk.f32.mxu1 %vm346_vm1, %v308_v17  ;;  %v288_v31 = vld [vmem:[%s1882_s9 + $0x80] sm:$0xff]  ;;  %v315_v32 = vld [vmem:[%s1882_s9 + $0x158] sm:$0xff]  ;;  %v289_v34 = vld [vmem:[%s1882_s9 + $0x88] sm:$0xff] }
  0x1a   : > { %1704 = vmatmul.mubr.msk.f32.gmra.mrb[4].mxu0 %vm346_vm1, %v277_v9  ;;  %v316_v33 = vld [vmem:[%s1882_s9 + $0x160] sm:$0xff]  ;;  %v290_v35 = vld [vmem:[%s1882_s9 + $0x90] sm:$0xff]  ;;  %v317_v36 = vld [vmem:[%s1882_s9 + $0x168] sm:$0xff] }
  0x1b   : > { %1706 = vmatprep.mubr.msk.f32.mxu0 %vm346_vm1, %v278_v10  ;;  %v318_v37 = vld [vmem:[%s1882_s9 + $0x170] sm:$0xff]  ;;  %v291_v38 = vld [vmem:[%s1882_s9 + $0x98] sm:$0xff]  ;;  %v292_v39 = vld [vmem:[%s1882_s9 + $0xa0] sm:$0xff] }
  0x1c   : > { %1752 = vmatmul.mubr.msk.f32.gmra.mrb[4].mxu1 %vm346_vm1, %v309_v20  ;;  %v319_v40 = vld [vmem:[%s1882_s9 + $0x178] sm:$0xff]  ;;  %v320_v41 = vld [vmem:[%s1882_s9 + $0x180] sm:$0xff]  ;;  %v293_v42 = vld [vmem:[%s1882_s9 + $0xa8] sm:$0xff] }
  0x1d   : > { %1754 = vmatprep.mubr.msk.f32.mxu1 %vm346_vm1, %v310_v21  ;;  %v294_v43 = vld [vmem:[%s1882_s9 + $0xb0] sm:$0xff]  ;;  %v321_v44 = vld [vmem:[%s1882_s9 + $0x188] sm:$0xff]  ;;  %v295_v46 = vld [vmem:[%s1882_s9 + $0xb8] sm:$0xff] }
  0x1e   : > { %1707 = vmatmul.mubr.msk.f32.gmra.mrb[6].mxu0 %vm346_vm1, %v279_v12  ;;  %v322_v45 = vld [vmem:[%s1882_s9 + $0x190] sm:$0xff]  ;;  %v296_v47 = vld [vmem:[%s1882_s9 + $0xc0] sm:$0xff]  ;;  %v323_v48 = vld [vmem:[%s1882_s9 + $0x198] sm:$0xff] }
  0x1f   : > { %1709 = vmatprep.mubr.msk.f32.mxu0 %vm346_vm1, %v280_v15  ;;  %v324_v49 = vld [vmem:[%s1882_s9 + $0x1a0] sm:$0xff]  ;;  %v297_v50 = vld [vmem:[%s1882_s9 + $0xc8] sm:$0xff]  ;;  %v298_v51 = vld [vmem:[%s1882_s9 + $0xd0] sm:$0xff] }
  0x20   : > { %1755 = vmatmul.mubr.msk.f32.gmra.mrb[6].mxu1 %vm346_vm1, %v311_v24  ;;  %v325_v52 = vld [vmem:[%s1882_s9 + $0x1a8] sm:$0xff]  ;;  %v326_v53 = vld [vmem:[%s1882_s9 + $0x1b0] sm:$0xff]  ;;  %v299_v54 = vld [vmem:[%s1882_s9 + $0xd8] sm:$0xff] }
  0x21   : > { %1757 = vmatprep.mubr.msk.f32.mxu1 %vm346_vm1, %v312_v25  ;;  %v300_v55 = vld [vmem:[%s1882_s9 + $0xe0] sm:$0xff]  ;;  %v327_v56 = vld [vmem:[%s1882_s9 + $0x1b8] sm:$0xff]  ;;  %v301_v58 = vld [vmem:[%s1882_s9 + $0xe8] sm:$0xff] }
  0x22   : > { %1710 = vmatmul.mubr.msk.f32.gmra.mrb[8].mxu0 %vm346_vm1, %v281_v18  ;;  %v328_v57 = vld [vmem:[%s1882_s9 + $0x1c0] sm:$0xff]  ;;  %v302_v59 = vld [vmem:[%s1882_s9 + $0xf0] sm:$0xff]  ;;  %v329_v60 = vld [vmem:[%s1882_s9 + $0x1c8] sm:$0xff] }
  0x23   : > { %1712 = vmatprep.mubr.msk.f32.mxu0 %vm346_vm1, %v282_v19  ;;  %v330_v61 = vld [vmem:[%s1882_s9 + $0x1d0] sm:$0xff]  ;;  %v303_v62 = vld [vmem:[%s1882_s9 + $0xf8] sm:$0xff]  ;;  %v332_v0 = vld [vmem:[%s1882_s9 + $0x1e0] sm:$0xff] }
  0x24   : > { %1758 = vmatmul.mubr.msk.f32.gmra.mrb[8].mxu1 %vm346_vm1, %v313_v28  ;;  %v331_v63 = vld [vmem:[%s1882_s9 + $0x1d8] sm:$0xff]  ;;  %v333_v1 = vld [vmem:[%s1882_s9 + $0x1e8] sm:$0xff]  ;;  %v334_v2 = vld [vmem:[%s1882_s9 + $0x1f0] sm:$0xff] }
  0x25   : > { %1760 = vmatprep.mubr.msk.f32.mxu1 %vm346_vm1, %v314_v29  ;;  %v335_v3 = vld [vmem:[%s1882_s9 + $0x1f8] sm:$0xff]  ;;  %v2023_v4 = vld [vmem:[%s2701_s2] ss:$0 sm:$0xff]  ;;  %v929_v6 = vld [vmem:[%s2018_s12 + $0x8] sm:$0xff] }
  0x26   : > { %1713 = vmatmul.mubr.msk.f32.gmra.mrb[10].mxu0 %vm346_vm1, %v283_v22  ;;  %v928_v9 = vld [vmem:[%s2018_s12] sm:$0xff]  ;;  %v931_v14 = vld [vmem:[%s2018_s12 + $0x18] sm:$0xff]  ;;  %v930_v19 = vld [vmem:[%s2018_s12 + $0x10] sm:$0xff] }
  0x27   : > { %1715 = vmatprep.mubr.msk.f32.mxu0 %vm346_vm1, %v284_v23  ;;  %v933_v29 = vld [vmem:[%s2018_s12 + $0x28] sm:$0xff] }
  0x28   : > { %1761 = vmatmul.mubr.msk.f32.gmra.mrb[10].mxu1 %vm346_vm1, %v315_v32 }
  0x29   : > { %1763 = vmatprep.mubr.msk.f32.mxu1 %vm346_vm1, %v316_v33 }
  0x2a   : > { %1716 = vmatmul.mubr.msk.f32.gmra.mrb[12].mxu0 %vm346_vm1, %v285_v26 }
  0x2b   : > { %1718 = vmatprep.mubr.msk.f32.mxu0 %vm346_vm1, %v286_v27 }
  0x2c   : > { %1764 = vmatmul.mubr.msk.f32.gmra.mrb[12].mxu1 %vm346_vm1, %v317_v36 }
  0x2d   : > { %1766 = vmatprep.mubr.msk.f32.mxu1 %vm346_vm1, %v318_v37 }
  0x2e   : > { %1719 = vmatmul.mubr.msk.f32.gmra.mrb[14].mxu0 %vm346_vm1, %v287_v30 }
  0x2f   : > { %1721 = vmatprep.mubr.msk.f32.mxu0 %vm346_vm1, %v288_v31 }
  0x30   : > { %1767 = vmatmul.mubr.msk.f32.gmra.mrb[14].mxu1 %vm346_vm1, %v319_v40 }
  0x31   : > { %1769 = vmatprep.mubr.msk.f32.mxu1 %vm346_vm1, %v320_v41 }
  0x32   : > { %1722 = vmatmul.mubr.msk.f32.gmra.mrb[16].mxu0 %vm346_vm1, %v289_v34  ;;  %v932_v34 = vld [vmem:[%s2018_s12 + $0x20] sm:$0xff] }
  0x33   : > { %1724 = vmatprep.mubr.msk.f32.mxu0 %vm346_vm1, %v290_v35 }
  0x34   : > { %1770 = vmatmul.mubr.msk.f32.gmra.mrb[16].mxu1 %vm346_vm1, %v321_v44 }
  0x35   : > { %1772 = vmatprep.mubr.msk.f32.mxu1 %vm346_vm1, %v322_v45 }
  0x36   : > { %1725 = vmatmul.mubr.msk.f32.gmra.mrb[18].mxu0 %vm346_vm1, %v291_v38 }
  0x37   : > { %1727 = vmatprep.mubr.msk.f32.mxu0 %vm346_vm1, %v292_v39 }
  0x38   : > { %1773 = vmatmul.mubr.msk.f32.gmra.mrb[18].mxu1 %vm346_vm1, %v323_v48 }
  0x39   : > { %1775 = vmatprep.mubr.msk.f32.mxu1 %vm346_vm1, %v324_v49 }
  0x3a   : > { %1728 = vmatmul.mubr.msk.f32.gmra.mrb[20].mxu0 %vm346_vm1, %v293_v42 }
  0x3b   : > { %1730 = vmatprep.mubr.msk.f32.mxu0 %vm346_vm1, %v294_v43 }
  0x3c   : > { %1776 = vmatmul.mubr.msk.f32.gmra.mrb[20].mxu1 %vm346_vm1, %v325_v52 }
  0x3d   : > { %1778 = vmatprep.mubr.msk.f32.mxu1 %vm346_vm1, %v326_v53  ;;  %v935_v53 = vld [vmem:[%s2018_s12 + $0x38] sm:$0xff] }
  0x3e   : > { %1731 = vmatmul.mubr.msk.f32.gmra.mrb[22].mxu0 %vm346_vm1, %v295_v46 }
  0x3f   : > { %1733 = vmatprep.mubr.msk.f32.mxu0 %vm346_vm1, %v296_v47  ;;  %v961_v47 = vld [vmem:[%s2018_s12 + $0x108] sm:$0xff] }
  0x40   : > { %1779 = vmatmul.mubr.msk.f32.gmra.mrb[22].mxu1 %vm346_vm1, %v327_v56  ;;  %v960_v56 = vld [vmem:[%s2018_s12 + $0x100] sm:$0xff] }
  0x41   : > { %1781 = vmatprep.mubr.msk.f32.mxu1 %vm346_vm1, %v328_v57 }
  0x42   : > { %1734 = vmatmul.mubr.msk.f32.gmra.mrb[24].mxu0 %vm346_vm1, %v297_v50 }
  0x43   : > { %1736 = vmatprep.mubr.msk.f32.mxu0 %vm346_vm1, %v298_v51 }
  0x44   : > { %1782 = vmatmul.mubr.msk.f32.gmra.mrb[24].mxu1 %vm346_vm1, %v329_v60 }
  0x45   : > { %1784 = vmatprep.mubr.msk.f32.mxu1 %vm346_vm1, %v330_v61 }
  0x46   : > { %1737 = vmatmul.mubr.msk.f32.gmra.mrb[26].mxu0 %vm346_vm1, %v299_v54 }
  0x47   : > { %1739 = vmatprep.mubr.msk.f32.mxu0 %vm346_vm1, %v300_v55  ;;  %v934_v55 = vld [vmem:[%s2018_s12 + $0x30] sm:$0xff] }
  0x48   : > { %1785 = vmatmul.mubr.msk.f32.gmra.mrb[26].mxu1 %vm346_vm1, %v331_v63 }
  0x49   : > { %1787 = vmatprep.mubr.msk.f32.mxu1 %vm346_vm1, %v332_v0 }
  0x4a   : > { %1740 = vmatmul.mubr.msk.f32.gmra.mrb[28].mxu0 %vm346_vm1, %v301_v58 }
  0x4b   : > { %1742 = vmatprep.mubr.msk.f32.mxu0 %vm346_vm1, %v302_v59 }
  0x4c   : > { %1788 = vmatmul.mubr.msk.f32.gmra.mrb[28].mxu1 %vm346_vm1, %v333_v1 }
  0x4d   : > { %1790 = vmatprep.mubr.msk.f32.mxu1 %vm346_vm1, %v334_v2 }
  0x4e   : > { %1743 = vmatmul.mubr.msk.f32.gmra.mrb[30].mxu0 %vm346_vm1, %v303_v62 }
  0x50   : > { %1791 = vmatmul.mubr.msk.f32.gmra.mrb[30].mxu1 %vm346_vm1, %v335_v3 }
  0xe5   : > { %v1699_v5 = vpop.f32.mrb[0].mxu0 }
  0xe6   : > { %v615_v7 = vadd.f32 %v1699_v5, %v2023_v4  ;;  %v609_v8 = vpop.f32.mrb[1].mxu0 }
  0xe7   : > { %v610_v10 = vadd.f32 %v2023_v4, %v609_v8  ;;  %v1747_v38 = vpop.f32.mrb[0].mxu1  ;;  %v937_v8 = vld [vmem:[%s2018_s12 + $0x48] sm:$0xff] }
  0xe8   : > { %v993_v11 = vadd.f32 %v929_v6, %v615_v7  ;;  %v775_v41 = vadd.f32 %v1747_v38, %v2023_v4  ;;  %v769_v42 = vpop.f32.mrb[1].mxu1 }
  0xe9   : > { %v992_v12 = vadd.f32 %v928_v9, %v610_v10  ;;  %v1702_v13 = vpop.f32.mrb[2].mxu0  ;;  %v770_v48 = vadd.f32 %v2023_v4, %v769_v42 }
  0xea   : > { %1057 = vst.msk [vmem:[%s2032_s17 + $0x8] sm:$0xff] %vm346_vm1, %v993_v11  ;;  %v1121_v15 = vsel %vm346_vm1, %v993_v11, 0.0  ;;  %v1254_v16 = vmul.f32 %v993_v11, %v993_v11  ;;  %v625_v17 = vadd.f32 %v1702_v13, %v2023_v4  ;;  %v619_v18 = vpop.f32.mrb[3].mxu0  ;;  %v2075_v1 = vadd.f32 %v961_v47, %v775_v41  ;;  %v941_v47 = vld [vmem:[%s2018_s12 + $0x68] sm:$0xff] }
  0xeb   : > { %1056 = vst.msk [vmem:[%s2032_s17] sm:$0xff] %vm346_vm1, %v992_v12  ;;  %v1120_v20 = vsel %vm346_vm1, %v992_v12, 0.0  ;;  %v1253_v21 = vmul.f32 %v992_v12, %v992_v12  ;;  %v620_v22 = vadd.f32 %v2023_v4, %v619_v18  ;;  %v2072_v61 = vpop.f32.mrb[2].mxu1  ;;  %v2081_v9 = vadd.f32 %v960_v56, %v770_v48  ;;  %v936_v18 = vld [vmem:[%s2018_s12 + $0x40] sm:$0xff] }
  0xec   : > { %v1318_v23 = vsel %vm346_vm1, %v1254_v16, 0.0  ;;  %v1122_v24 = vadd.f32 %v1121_v15, %v1120_v20  ;;  %v995_v25 = vadd.f32 %v931_v14, %v625_v17  ;;  %v2077_v2 = vpop.f32.mrb[3].mxu1  ;;  %1089 = vst.msk [vmem:[%s2032_s17 + $0x108] sm:$0xff] %vm346_vm1, %v2075_v1  ;;  %v940_v56 = vld [vmem:[%s2018_s12 + $0x60] sm:$0xff] }
  0xed   : > { %v1317_v26 = vsel %vm346_vm1, %v1253_v21, 0.0  ;;  %v994_v27 = vadd.f32 %v930_v19, %v620_v22  ;;  %v1705_v28 = vpop.f32.mrb[4].mxu0  ;;  %1088 = vst.msk [vmem:[%s2032_s17 + $0x100] sm:$0xff] %vm346_vm1, %v2081_v9 }
  0xee   : > { %v1319_v30 = vadd.f32 %v1318_v23, %v1317_v26  ;;  %1059 = vst.msk [vmem:[%s2032_s17 + $0x18] sm:$0xff] %vm346_vm1, %v995_v25  ;;  %v1256_v31 = vmul.f32 %v995_v25, %v995_v25  ;;  %v635_v32 = vadd.f32 %v1705_v28, %v2023_v4  ;;  %v629_v33 = vpop.f32.mrb[5].mxu0  ;;  %v1125_v43 = vsel %vm346_vm1, %v995_v25, 0.0 }
  0xef   : > { %1058 = vst.msk [vmem:[%s2032_s17 + $0x10] sm:$0xff] %vm346_vm1, %v994_v27  ;;  %v1123_v35 = vsel %vm346_vm1, %v994_v27, 0.0  ;;  %v1255_v36 = vmul.f32 %v994_v27, %v994_v27  ;;  %v630_v37 = vadd.f32 %v2023_v4, %v629_v33  ;;  %v2097_v19 = vpop.f32.mrb[4].mxu1  ;;  %v938_v33 = vld [vmem:[%s2018_s12 + $0x50] sm:$0xff] }
  0xf0   : > { %v1124_v39 = vadd.f32 %v1123_v35, %v1122_v24  ;;  %v997_v40 = vadd.f32 %v933_v29, %v635_v32  ;;  %v1322_v49 = vsel %vm346_vm1, %v1256_v31, 0.0  ;;  %v2100_v24 = vpop.f32.mrb[5].mxu1  ;;  %v939_v31 = vld [vmem:[%s2018_s12 + $0x58] sm:$0xff] }
  0xf1   : > { %v1320_v44 = vsel %vm346_vm1, %v1255_v36, 0.0  ;;  %v996_v45 = vadd.f32 %v932_v34, %v630_v37  ;;  %v1708_v46 = vpop.f32.mrb[6].mxu0 }
  0xf2   : > { %v1321_v50 = vadd.f32 %v1320_v44, %v1319_v30  ;;  %1061 = vst.msk [vmem:[%s2032_s17 + $0x28] sm:$0xff] %vm346_vm1, %v997_v40  ;;  %v1258_v51 = vmul.f32 %v997_v40, %v997_v40  ;;  %v1126_v52 = vadd.f32 %v1125_v43, %v1124_v39  ;;  %v639_v54 = vpop.f32.mrb[7].mxu0  ;;  %v645_v59 = vadd.f32 %v1708_v46, %v2023_v4 }
  0xf3   : > { %1060 = vst.msk [vmem:[%s2032_s17 + $0x20] sm:$0xff] %vm346_vm1, %v996_v45  ;;  %v1127_v57 = vsel %vm346_vm1, %v996_v45, 0.0  ;;  %v1257_v58 = vmul.f32 %v996_v45, %v996_v45  ;;  %v640_v60 = vadd.f32 %v2023_v4, %v639_v54  ;;  %v1129_v62 = vsel %vm346_vm1, %v997_v40, 0.0  ;;  %v2111_v38 = vpop.f32.mrb[6].mxu1 }
  0xf4   : > { %v1128_v63 = vadd.f32 %v1127_v57, %v1126_v52  ;;  %v1323_v0 = vadd.f32 %v1322_v49, %v1321_v50  ;;  %v999_v5 = vadd.f32 %v935_v53, %v645_v59  ;;  %v1326_v14 = vsel %vm346_vm1, %v1258_v51, 0.0  ;;  %v2116_v42 = vpop.f32.mrb[7].mxu1 }
  0xf5   : > { %v1324_v3 = vsel %vm346_vm1, %v1257_v58, 0.0  ;;  %v998_v6 = vadd.f32 %v934_v55, %v640_v60  ;;  %v1711_v7 = vpop.f32.mrb[8].mxu0  ;;  %v785_v57 = vadd.f32 %v2072_v61, %v2023_v4 }
  0xf6   : > { %v1325_v10 = vadd.f32 %v1324_v3, %v1323_v0  ;;  %v1130_v11 = vadd.f32 %v1129_v62, %v1128_v63  ;;  %v655_v12 = vadd.f32 %v1711_v7, %v2023_v4  ;;  %v649_v13 = vpop.f32.mrb[9].mxu0  ;;  %1063 = vst.msk [vmem:[%s2032_s17 + $0x38] sm:$0xff] %vm346_vm1, %v999_v5  ;;  %v1260_v15 = vmul.f32 %v999_v5, %v999_v5  ;;  %v963_v7 = vld [vmem:[%s2018_s12 + $0x118] sm:$0xff] }
  0xf7   : > { %1062 = vst.msk [vmem:[%s2032_s17 + $0x30] sm:$0xff] %vm346_vm1, %v998_v6  ;;  %v1131_v16 = vsel %vm346_vm1, %v998_v6, 0.0  ;;  %v1259_v17 = vmul.f32 %v998_v6, %v998_v6  ;;  %v650_v23 = vadd.f32 %v2023_v4, %v649_v13  ;;  %v1133_v27 = vsel %vm346_vm1, %v999_v5, 0.0  ;;  %v2130_v58 = vpop.f32.mrb[8].mxu1 }
  0xf8   : > { %v1132_v20 = vadd.f32 %v1131_v16, %v1130_v11  ;;  %v1327_v21 = vadd.f32 %v1326_v14, %v1325_v10  ;;  %v1001_v22 = vadd.f32 %v937_v8, %v655_v12  ;;  %v1330_v34 = vsel %vm346_vm1, %v1260_v15, 0.0  ;;  %v2134_v0 = vpop.f32.mrb[9].mxu1  ;;  %v943_v12 = vld [vmem:[%s2018_s12 + $0x78] sm:$0xff]  ;;  %v942_v14 = vld [vmem:[%s2018_s12 + $0x70] sm:$0xff] }
  0xf9   : > { %v1328_v25 = vsel %vm346_vm1, %v1259_v17, 0.0  ;;  %v1714_v26 = vpop.f32.mrb[10].mxu0  ;;  %v1000_v30 = vadd.f32 %v936_v18, %v650_v23 }
  0xfa   : > { %v1329_v28 = vadd.f32 %v1328_v25, %v1327_v21  ;;  %1065 = vst.msk [vmem:[%s2032_s17 + $0x48] sm:$0xff] %vm346_vm1, %v1001_v22  ;;  %v1262_v29 = vmul.f32 %v1001_v22, %v1001_v22  ;;  %v659_v32 = vpop.f32.mrb[11].mxu0  ;;  %v1134_v35 = vadd.f32 %v1133_v27, %v1132_v20  ;;  %v665_v36 = vadd.f32 %v1714_v26, %v2023_v4 }
  0xfb   : > { %v660_v37 = vadd.f32 %v2023_v4, %v659_v32  ;;  %1064 = vst.msk [vmem:[%s2032_s17 + $0x40] sm:$0xff] %vm346_vm1, %v1000_v30  ;;  %v1135_v39 = vsel %vm346_vm1, %v1000_v30, 0.0  ;;  %v1261_v40 = vmul.f32 %v1000_v30, %v1000_v30  ;;  %v1137_v48 = vsel %vm346_vm1, %v1001_v22, 0.0  ;;  %v2145_v20 = vpop.f32.mrb[10].mxu1  ;;  %v945_v32 = vld [vmem:[%s2018_s12 + $0x88] sm:$0xff] }
  0xfc   : > { %v1331_v41 = vadd.f32 %v1330_v34, %v1329_v28  ;;  %v1136_v43 = vadd.f32 %v1135_v39, %v1134_v35  ;;  %v1003_v44 = vadd.f32 %v939_v31, %v665_v36  ;;  %v1334_v49 = vsel %vm346_vm1, %v1262_v29, 0.0  ;;  %v2153_v26 = vpop.f32.mrb[11].mxu1 }
  0xfd   : > { %v1002_v45 = vadd.f32 %v938_v33, %v660_v37  ;;  %v1717_v46 = vpop.f32.mrb[12].mxu0  ;;  %v1332_v50 = vsel %vm346_vm1, %v1261_v40, 0.0  ;;  %v2151_v25 = vadd.f32 %v963_v7, %v785_v57  ;;  %v780_v37 = vadd.f32 %v2023_v4, %v2077_v2 }
  0xfe   : > { %v675_v51 = vadd.f32 %v1717_v46, %v2023_v4  ;;  %v669_v52 = vpop.f32.mrb[13].mxu0  ;;  %v1333_v53 = vadd.f32 %v1332_v50, %v1331_v41  ;;  %1067 = vst.msk [vmem:[%s2032_s17 + $0x58] sm:$0xff] %vm346_vm1, %v1003_v44  ;;  %v1264_v54 = vmul.f32 %v1003_v44, %v1003_v44  ;;  %v1138_v55 = vadd.f32 %v1137_v48, %v1136_v43 }
  0xff   : > { %1066 = vst.msk [vmem:[%s2032_s17 + $0x50] sm:$0xff] %vm346_vm1, %v1002_v45  ;;  %v1139_v59 = vsel %vm346_vm1, %v1002_v45, 0.0  ;;  %v1263_v60 = vmul.f32 %v1002_v45, %v1002_v45  ;;  %v670_v63 = vadd.f32 %v2023_v4, %v669_v52  ;;  %v1141_v8 = vsel %vm346_vm1, %v1003_v44, 0.0  ;;  %1091 = vst.msk [vmem:[%s2032_s17 + $0x118] sm:$0xff] %vm346_vm1, %v2151_v25  ;;  %v944_v44 = vld [vmem:[%s2018_s12 + $0x80] sm:$0xff]  ;;  %v2170_v45 = vpop.f32.mrb[12].mxu1 }
 0x100   : > { %v1005_v62 = vadd.f32 %v941_v47, %v675_v51  ;;  %v1140_v3 = vadd.f32 %v1139_v59, %v1138_v55  ;;  %v1335_v5 = vadd.f32 %v1334_v49, %v1333_v53  ;;  %v1338_v21 = vsel %vm346_vm1, %v1264_v54, 0.0  ;;  %v2174_v49 = vpop.f32.mrb[13].mxu1  ;;  %v962_v53 = vld [vmem:[%s2018_s12 + $0x110] sm:$0xff]  ;;  %v947_v59 = vld [vmem:[%s2018_s12 + $0x98] sm:$0xff] }
 0x101   : > { %v1720_v6 = vpop.f32.mrb[14].mxu0  ;;  %v1336_v61 = vsel %vm346_vm1, %v1263_v60, 0.0  ;;  %v1004_v11 = vadd.f32 %v940_v56, %v670_v63 }
 0x102   : > { %1069 = vst.msk [vmem:[%s2032_s17 + $0x68] sm:$0xff] %vm346_vm1, %v1005_v62  ;;  %v1266_v10 = vmul.f32 %v1005_v62, %v1005_v62  ;;  %v679_v13 = vpop.f32.mrb[15].mxu0  ;;  %v1337_v15 = vadd.f32 %v1336_v61, %v1335_v5  ;;  %v1142_v16 = vadd.f32 %v1141_v8, %v1140_v3  ;;  %v685_v17 = vadd.f32 %v1720_v6, %v2023_v4 }
 0x103   : > { %v680_v18 = vadd.f32 %v2023_v4, %v679_v13  ;;  %1068 = vst.msk [vmem:[%s2032_s17 + $0x60] sm:$0xff] %vm346_vm1, %v1004_v11  ;;  %v1143_v22 = vsel %vm346_vm1, %v1004_v11, 0.0  ;;  %v1265_v23 = vmul.f32 %v1004_v11, %v1004_v11  ;;  %v1145_v33 = vsel %vm346_vm1, %v1005_v62, 0.0  ;;  %v946_v62 = vld [vmem:[%s2018_s12 + $0x90] sm:$0xff]  ;;  %v2185_v7 = vpop.f32.mrb[14].mxu1 }
 0x104   : > { %v1144_v27 = vadd.f32 %v1143_v22, %v1142_v16  ;;  %v1339_v28 = vadd.f32 %v1338_v21, %v1337_v15  ;;  %v1007_v29 = vadd.f32 %v943_v12, %v685_v17  ;;  %v1342_v39 = vsel %vm346_vm1, %v1266_v10, 0.0  ;;  %v2193_v12 = vpop.f32.mrb[15].mxu1 }
 0x105   : > { %v1006_v30 = vadd.f32 %v942_v14, %v680_v18  ;;  %v1723_v31 = vpop.f32.mrb[16].mxu0  ;;  %v1340_v34 = vsel %vm346_vm1, %v1265_v23, 0.0  ;;  %v2191_v11 = vadd.f32 %v962_v53, %v780_v37  ;;  %v949_v18 = vld [vmem:[%s2018_s12 + $0xa8] sm:$0xff] }
 0x106   : > { %v695_v35 = vadd.f32 %v1723_v31, %v2023_v4  ;;  %v689_v36 = vpop.f32.mrb[17].mxu0  ;;  %v1341_v40 = vadd.f32 %v1340_v34, %v1339_v28  ;;  %1071 = vst.msk [vmem:[%s2032_s17 + $0x78] sm:$0xff] %vm346_vm1, %v1007_v29  ;;  %v1268_v41 = vmul.f32 %v1007_v29, %v1007_v29  ;;  %v1146_v43 = vadd.f32 %v1145_v33, %v1144_v27 }
 0x107   : > { %1070 = vst.msk [vmem:[%s2032_s17 + $0x70] sm:$0xff] %vm346_vm1, %v1006_v30  ;;  %v1147_v46 = vsel %vm346_vm1, %v1006_v30, 0.0  ;;  %v1267_v47 = vmul.f32 %v1006_v30, %v1006_v30  ;;  %v690_v48 = vadd.f32 %v2023_v4, %v689_v36  ;;  %v1149_v54 = vsel %vm346_vm1, %v1007_v29, 0.0  ;;  %1090 = vst.msk [vmem:[%s2032_s17 + $0x110] sm:$0xff] %vm346_vm1, %v2191_v11  ;;  %v2208_v33 = vpop.f32.mrb[16].mxu1 }
 0x108   : > { %v1009_v2 = vadd.f32 %v945_v32, %v695_v35  ;;  %v1148_v50 = vadd.f32 %v1147_v46, %v1146_v43  ;;  %v1343_v51 = vadd.f32 %v1342_v39, %v1341_v40  ;;  %v1346_v8 = vsel %vm346_vm1, %v1268_v41, 0.0  ;;  %v948_v32 = vld [vmem:[%s2018_s12 + $0xa0] sm:$0xff]  ;;  %v2212_v39 = vpop.f32.mrb[17].mxu1 }
 0x109   : > { %v1726_v52 = vpop.f32.mrb[18].mxu0  ;;  %v1344_v55 = vsel %vm346_vm1, %v1267_v47, 0.0  ;;  %v1008_v57 = vadd.f32 %v944_v44, %v690_v48  ;;  %v951_v48 = vld [vmem:[%s2018_s12 + $0xb8] sm:$0xff] }
 0x10a   : > { %1073 = vst.msk [vmem:[%s2032_s17 + $0x88] sm:$0xff] %vm346_vm1, %v1009_v2  ;;  %v1270_v56 = vmul.f32 %v1009_v2, %v1009_v2  ;;  %v699_v60 = vpop.f32.mrb[19].mxu0  ;;  %v1345_v63 = vadd.f32 %v1344_v55, %v1343_v51  ;;  %v1150_v3 = vadd.f32 %v1149_v54, %v1148_v50  ;;  %v705_v5 = vadd.f32 %v1726_v52, %v2023_v4  ;;  %v950_v51 = vld [vmem:[%s2018_s12 + $0xb0] sm:$0xff] }
 0x10b   : > { %v700_v6 = vadd.f32 %v2023_v4, %v699_v60  ;;  %1072 = vst.msk [vmem:[%s2032_s17 + $0x80] sm:$0xff] %vm346_vm1, %v1008_v57  ;;  %v1151_v61 = vsel %vm346_vm1, %v1008_v57, 0.0  ;;  %v1269_v10 = vmul.f32 %v1008_v57, %v1008_v57  ;;  %v1153_v21 = vsel %vm346_vm1, %v1009_v2, 0.0  ;;  %v2223_v57 = vpop.f32.mrb[18].mxu1 }
 0x10c   : > { %v1152_v13 = vadd.f32 %v1151_v61, %v1150_v3  ;;  %v1347_v14 = vadd.f32 %v1346_v8, %v1345_v63  ;;  %v1011_v15 = vadd.f32 %v947_v59, %v705_v5  ;;  %v1350_v28 = vsel %vm346_vm1, %v1270_v56, 0.0  ;;  %v965_v56 = vld [vmem:[%s2018_s12 + $0x128] sm:$0xff]  ;;  %v2231_v3 = vpop.f32.mrb[19].mxu1 }
 0x10d   : > { %v1010_v16 = vadd.f32 %v946_v62, %v700_v6  ;;  %v1729_v17 = vpop.f32.mrb[20].mxu0  ;;  %v1348_v22 = vsel %vm346_vm1, %v1269_v10, 0.0  ;;  %v795_v63 = vadd.f32 %v2097_v19, %v2023_v4 }
 0x10e   : > { %v715_v23 = vadd.f32 %v1729_v17, %v2023_v4  ;;  %v709_v27 = vpop.f32.mrb[21].mxu0  ;;  %v1349_v29 = vadd.f32 %v1348_v22, %v1347_v14  ;;  %1075 = vst.msk [vmem:[%s2032_s17 + $0x98] sm:$0xff] %vm346_vm1, %v1011_v15  ;;  %v1272_v30 = vmul.f32 %v1011_v15, %v1011_v15  ;;  %v1154_v31 = vadd.f32 %v1153_v21, %v1152_v13  ;;  %v953_v13 = vld [vmem:[%s2018_s12 + $0xc8] sm:$0xff] }
 0x10f   : > { %1074 = vst.msk [vmem:[%s2032_s17 + $0x90] sm:$0xff] %vm346_vm1, %v1010_v16  ;;  %v1155_v34 = vsel %vm346_vm1, %v1010_v16, 0.0  ;;  %v1271_v35 = vmul.f32 %v1010_v16, %v1010_v16  ;;  %v710_v37 = vadd.f32 %v2023_v4, %v709_v27  ;;  %v1157_v44 = vsel %vm346_vm1, %v1011_v15, 0.0  ;;  %v952_v27 = vld [vmem:[%s2018_s12 + $0xc0] sm:$0xff] }
 0x110   : > { %v1013_v36 = vadd.f32 %v949_v18, %v715_v23  ;;  %v1156_v40 = vadd.f32 %v1155_v34, %v1154_v31  ;;  %v1351_v41 = vadd.f32 %v1350_v28, %v1349_v29  ;;  %v1354_v59 = vsel %vm346_vm1, %v1272_v30, 0.0  ;;  %v2245_v28 = vpop.f32.mrb[20].mxu1 }
 0x111   : > { %v1732_v43 = vpop.f32.mrb[22].mxu0  ;;  %v1352_v46 = vsel %vm346_vm1, %v1271_v35, 0.0  ;;  %v1012_v2 = vadd.f32 %v948_v32, %v710_v37  ;;  %v2237_v18 = vadd.f32 %v965_v56, %v795_v63  ;;  %v2252_v34 = vpop.f32.mrb[21].mxu1 }
 0x112   : > { %1077 = vst.msk [vmem:[%s2032_s17 + $0xa8] sm:$0xff] %vm346_vm1, %v1013_v36  ;;  %v1274_v47 = vmul.f32 %v1013_v36, %v1013_v36  ;;  %v719_v50 = vpop.f32.mrb[23].mxu0  ;;  %v1353_v52 = vadd.f32 %v1352_v46, %v1351_v41  ;;  %v1158_v53 = vadd.f32 %v1157_v44, %v1156_v40  ;;  %v725_v54 = vadd.f32 %v1732_v43, %v2023_v4 }
 0x113   : > { %v720_v55 = vadd.f32 %v2023_v4, %v719_v50  ;;  %1076 = vst.msk [vmem:[%s2032_s17 + $0xa0] sm:$0xff] %vm346_vm1, %v1012_v2  ;;  %v1159_v60 = vsel %vm346_vm1, %v1012_v2, 0.0  ;;  %v1273_v62 = vmul.f32 %v1012_v2, %v1012_v2  ;;  %v1161_v14 = vsel %vm346_vm1, %v1013_v36, 0.0  ;;  %1093 = vst.msk [vmem:[%s2032_s17 + $0x128] sm:$0xff] %vm346_vm1, %v2237_v18 }
 0x114   : > { %v1160_v5 = vadd.f32 %v1159_v60, %v1158_v53  ;;  %v1355_v6 = vadd.f32 %v1354_v59, %v1353_v52  ;;  %v1015_v8 = vadd.f32 %v951_v48, %v725_v54  ;;  %v1358_v19 = vsel %vm346_vm1, %v1274_v47, 0.0  ;;  %v955_v47 = vld [vmem:[%s2018_s12 + $0xd8] sm:$0xff]  ;;  %v954_v48 = vld [vmem:[%s2018_s12 + $0xd0] sm:$0xff]  ;;  %v2265_v54 = vpop.f32.mrb[22].mxu1 }
 0x115   : > { %v1014_v61 = vadd.f32 %v950_v51, %v720_v55  ;;  %v1735_v10 = vpop.f32.mrb[24].mxu0  ;;  %v1356_v15 = vsel %vm346_vm1, %v1273_v62, 0.0  ;;  %v790_v40 = vadd.f32 %v2023_v4, %v2100_v24  ;;  %v964_v24 = vld [vmem:[%s2018_s12 + $0x120] sm:$0xff]  ;;  %v2271_v60 = vpop.f32.mrb[23].mxu1 }
 0x116   : > { %v735_v16 = vadd.f32 %v1735_v10, %v2023_v4  ;;  %v729_v17 = vpop.f32.mrb[25].mxu0  ;;  %v1357_v21 = vadd.f32 %v1356_v15, %v1355_v6  ;;  %1079 = vst.msk [vmem:[%s2032_s17 + $0xb8] sm:$0xff] %vm346_vm1, %v1015_v8  ;;  %v1276_v22 = vmul.f32 %v1015_v8, %v1015_v8  ;;  %v1162_v23 = vadd.f32 %v1161_v14, %v1160_v5 }
 0x117   : > { %1078 = vst.msk [vmem:[%s2032_s17 + $0xb0] sm:$0xff] %vm346_vm1, %v1014_v61  ;;  %v1163_v29 = vsel %vm346_vm1, %v1014_v61, 0.0  ;;  %v1275_v30 = vmul.f32 %v1014_v61, %v1014_v61  ;;  %v730_v32 = vadd.f32 %v2023_v4, %v729_v17  ;;  %v1165_v41 = vsel %vm346_vm1, %v1015_v8, 0.0  ;;  %v957_v61 = vld [vmem:[%s2018_s12 + $0xe8] sm:$0xff] }
 0x118   : > { %v1017_v31 = vadd.f32 %v953_v13, %v735_v16  ;;  %v1164_v35 = vadd.f32 %v1163_v29, %v1162_v23  ;;  %v1359_v36 = vadd.f32 %v1358_v19, %v1357_v21  ;;  %v1362_v55 = vsel %vm346_vm1, %v1276_v22, 0.0  ;;  %v956_v23 = vld [vmem:[%s2018_s12 + $0xe0] sm:$0xff] }
 0x119   : > { %v1738_v37 = vpop.f32.mrb[26].mxu0  ;;  %v1360_v43 = vsel %vm346_vm1, %v1275_v30, 0.0  ;;  %v1016_v46 = vadd.f32 %v952_v27, %v730_v32  ;;  %v2277_v16 = vadd.f32 %v964_v24, %v790_v40  ;;  %v2285_v27 = vpop.f32.mrb[24].mxu1 }
 0x11a   : > { %1081 = vst.msk [vmem:[%s2032_s17 + $0xc8] sm:$0xff] %vm346_vm1, %v1017_v31  ;;  %v1278_v44 = vmul.f32 %v1017_v31, %v1017_v31  ;;  %v739_v2 = vpop.f32.mrb[27].mxu0  ;;  %v1361_v50 = vadd.f32 %v1360_v43, %v1359_v36  ;;  %v1166_v51 = vadd.f32 %v1165_v41, %v1164_v35  ;;  %v745_v52 = vadd.f32 %v1738_v37, %v2023_v4  ;;  %v2292_v35 = vpop.f32.mrb[25].mxu1 }
 0x11b   : > { %v740_v53 = vadd.f32 %v2023_v4, %v739_v2  ;;  %1080 = vst.msk [vmem:[%s2032_s17 + $0xc0] sm:$0xff] %vm346_vm1, %v1016_v46  ;;  %v1167_v56 = vsel %vm346_vm1, %v1016_v46, 0.0  ;;  %v1277_v59 = vmul.f32 %v1016_v46, %v1016_v46  ;;  %v1169_v10 = vsel %vm346_vm1, %v1017_v31, 0.0  ;;  %1092 = vst.msk [vmem:[%s2032_s17 + $0x120] sm:$0xff] %vm346_vm1, %v2277_v16  ;;  %v2302_v24 = vpop.f32.mrb[26].mxu1 }
 0x11c   : > { %v1168_v62 = vadd.f32 %v1167_v56, %v1166_v51  ;;  %v1363_v63 = vadd.f32 %v1362_v55, %v1361_v50  ;;  %v1019_v5 = vadd.f32 %v955_v47, %v745_v52  ;;  %v1366_v17 = vsel %vm346_vm1, %v1278_v44, 0.0  ;;  %v959_v47 = vld [vmem:[%s2018_s12 + $0xf8] sm:$0xff] }
 0x11d   : > { %v1018_v6 = vadd.f32 %v954_v48, %v740_v53  ;;  %v1741_v8 = vpop.f32.mrb[28].mxu0  ;;  %v1364_v13 = vsel %vm346_vm1, %v1277_v59, 0.0  ;;  %v958_v48 = vld [vmem:[%s2018_s12 + $0xf0] sm:$0xff] }
 0x11e   : > { %v755_v14 = vadd.f32 %v1741_v8, %v2023_v4  ;;  %v749_v15 = vpop.f32.mrb[29].mxu0  ;;  %v1365_v19 = vadd.f32 %v1364_v13, %v1363_v63  ;;  %1083 = vst.msk [vmem:[%s2032_s17 + $0xd8] sm:$0xff] %vm346_vm1, %v1019_v5  ;;  %v1280_v21 = vmul.f32 %v1019_v5, %v1019_v5  ;;  %v1170_v22 = vadd.f32 %v1169_v10, %v1168_v62  ;;  %v2310_v63 = vpop.f32.mrb[27].mxu1  ;;  %v967_v10 = vld [vmem:[%s2018_s12 + $0x138] sm:$0xff]  ;;  %v966_v13 = vld [vmem:[%s2018_s12 + $0x130] sm:$0xff] }
 0x11f   : > { %1082 = vst.msk [vmem:[%s2032_s17 + $0xd0] sm:$0xff] %vm346_vm1, %v1018_v6  ;;  %v1171_v29 = vsel %vm346_vm1, %v1018_v6, 0.0  ;;  %v1279_v30 = vmul.f32 %v1018_v6, %v1018_v6  ;;  %v750_v32 = vadd.f32 %v2023_v4, %v749_v15  ;;  %v1173_v41 = vsel %vm346_vm1, %v1019_v5, 0.0 }
 0x120   : > { %v1021_v31 = vadd.f32 %v957_v61, %v755_v14  ;;  %v1172_v36 = vadd.f32 %v1171_v29, %v1170_v22  ;;  %v1367_v37 = vadd.f32 %v1366_v17, %v1365_v19  ;;  %v1370_v55 = vsel %vm346_vm1, %v1280_v21, 0.0 }
 0x121   : > { %v1744_v40 = vpop.f32.mrb[30].mxu0  ;;  %v1368_v43 = vsel %vm346_vm1, %v1279_v30, 0.0  ;;  %v1020_v46 = vadd.f32 %v956_v23, %v750_v32  ;;  %v1285_v62 = vmul.f32 %v2081_v9, %v2081_v9  ;;  %v805_v17 = vadd.f32 %v2111_v38, %v2023_v4  ;;  %v2325_v30 = vpop.f32.mrb[28].mxu1 }
 0x122   : > { %1085 = vst.msk [vmem:[%s2032_s17 + $0xe8] sm:$0xff] %vm346_vm1, %v1021_v31  ;;  %v1282_v44 = vmul.f32 %v1021_v31, %v1021_v31  ;;  %v759_v2 = vpop.f32.mrb[31].mxu0  ;;  %v1369_v50 = vadd.f32 %v1368_v43, %v1367_v37  ;;  %v1174_v51 = vadd.f32 %v1173_v41, %v1172_v36  ;;  %v765_v52 = vadd.f32 %v1744_v40, %v2023_v4  ;;  %v2333_v37 = vpop.f32.mrb[29].mxu1 }
 0x123   : > { %v760_v53 = vadd.f32 %v2023_v4, %v759_v2  ;;  %1084 = vst.msk [vmem:[%s2032_s17 + $0xe0] sm:$0xff] %vm346_vm1, %v1020_v46  ;;  %v1175_v56 = vsel %vm346_vm1, %v1020_v46, 0.0  ;;  %v1281_v59 = vmul.f32 %v1020_v46, %v1020_v46  ;;  %v1177_v14 = vsel %vm346_vm1, %v1021_v31, 0.0 }
 0x124   : > { %v1176_v5 = vadd.f32 %v1175_v56, %v1174_v51  ;;  %v1371_v6 = vadd.f32 %v1370_v55, %v1369_v50  ;;  %v1023_v8 = vadd.f32 %v959_v47, %v765_v52  ;;  %v800_v19 = vadd.f32 %v2023_v4, %v2116_v42  ;;  %v969_v42 = vld [vmem:[%s2018_s12 + $0x148] sm:$0xff]  ;;  %v971_v55 = vld [vmem:[%s2018_s12 + $0x158] sm:$0xff]  ;;  %v970_v56 = vld [vmem:[%s2018_s12 + $0x150] sm:$0xff] }
 0x125   : > { %v1022_v61 = vadd.f32 %v958_v48, %v760_v53  ;;  %v1372_v15 = vsel %vm346_vm1, %v1281_v59, 0.0  ;;  %v1374_v21 = vsel %vm346_vm1, %v1282_v44, 0.0  ;;  %v2328_v38 = vadd.f32 %v967_v10, %v805_v17  ;;  %v968_v53 = vld [vmem:[%s2018_s12 + $0x140] sm:$0xff] }
 0x126   : > { %v1373_v22 = vadd.f32 %v1372_v15, %v1371_v6  ;;  %1087 = vst.msk [vmem:[%s2032_s17 + $0xf8] sm:$0xff] %vm346_vm1, %v1023_v8  ;;  %v1284_v23 = vmul.f32 %v1023_v8, %v1023_v8  ;;  %v1178_v29 = vadd.f32 %v1177_v14, %v1176_v5  ;;  %v2330_v36 = vadd.f32 %v966_v13, %v800_v19  ;;  %v973_v19 = vld [vmem:[%s2018_s12 + $0x168] sm:$0xff] }
 0x127   : > { %1086 = vst.msk [vmem:[%s2032_s17 + $0xf0] sm:$0xff] %vm346_vm1, %v1022_v61  ;;  %v1179_v31 = vsel %vm346_vm1, %v1022_v61, 0.0  ;;  %v1283_v32 = vmul.f32 %v1022_v61, %v1022_v61  ;;  %v1286_v43 = vmul.f32 %v2075_v1, %v2075_v1  ;;  %v815_v44 = vadd.f32 %v2130_v58, %v2023_v4  ;;  %1095 = vst.msk [vmem:[%s2032_s17 + $0x138] sm:$0xff] %vm346_vm1, %v2328_v38 }
 0x128   : > { %v1180_v40 = vadd.f32 %v1179_v31, %v1178_v29  ;;  %v1375_v41 = vadd.f32 %v1374_v21, %v1373_v22  ;;  %v1181_v46 = vsel %vm346_vm1, %v1023_v8, 0.0  ;;  %v1183_v2 = vsel %vm346_vm1, %v2081_v9, 0.0  ;;  %1094 = vst.msk [vmem:[%s2032_s17 + $0x130] sm:$0xff] %vm346_vm1, %v2330_v36  ;;  %v2357_v9 = vpop.f32.mrb[30].mxu1  ;;  %v972_v22 = vld [vmem:[%s2018_s12 + $0x160] sm:$0xff] }
 0x129   : > { %v1376_v47 = vsel %vm346_vm1, %v1283_v32, 0.0  ;;  %v1380_v48 = vsel %vm346_vm1, %v1285_v62, 0.0  ;;  %v1287_v58 = vmul.f32 %v2191_v11, %v2191_v11  ;;  %v2352_v52 = vadd.f32 %v969_v42, %v815_v44  ;;  %v2366_v8 = vpop.f32.mrb[31].mxu1  ;;  %v975_v44 = vld [vmem:[%s2018_s12 + $0x178] sm:$0xff] }
 0x12a   : > { %v1377_v50 = vadd.f32 %v1376_v47, %v1375_v41  ;;  %v1182_v51 = vadd.f32 %v1181_v46, %v1180_v40  ;;  %v1378_v59 = vsel %vm346_vm1, %v1284_v23, 0.0  ;;  %v810_v62 = vadd.f32 %v2023_v4, %v2134_v0 }
 0x12b   : > { %v825_v5 = vadd.f32 %v2145_v20, %v2023_v4  ;;  %v820_v6 = vadd.f32 %v2023_v4, %v2153_v26  ;;  %v1185_v61 = vsel %vm346_vm1, %v2075_v1, 0.0  ;;  %1097 = vst.msk [vmem:[%s2032_s17 + $0x148] sm:$0xff] %vm346_vm1, %v2352_v52  ;;  %v1187_v0 = vsel %vm346_vm1, %v2191_v11, 0.0 }
 0x12c   : > { %v1184_v10 = vadd.f32 %v1183_v2, %v1182_v51  ;;  %v1379_v13 = vadd.f32 %v1378_v59, %v1377_v50  ;;  %v1032_v20 = vadd.f32 %v968_v53, %v810_v62  ;;  %v835_v1 = vadd.f32 %v2170_v45, %v2023_v4  ;;  %v976_v59 = vld [vmem:[%s2018_s12 + $0x180] sm:$0xff] }
 0x12d   : > { %v2375_v14 = vadd.f32 %v971_v55, %v825_v5  ;;  %v2377_v26 = vadd.f32 %v970_v56, %v820_v6  ;;  %v830_v21 = vadd.f32 %v2023_v4, %v2174_v49  ;;  %v1382_v23 = vsel %vm346_vm1, %v1286_v43, 0.0  ;;  %v977_v56 = vld [vmem:[%s2018_s12 + $0x188] sm:$0xff] }
 0x12e   : > { %v1381_v15 = vadd.f32 %v1380_v48, %v1379_v13  ;;  %v1186_v17 = vadd.f32 %v1185_v61, %v1184_v10  ;;  %v1288_v11 = vmul.f32 %v2151_v25, %v2151_v25  ;;  %v1384_v29 = vsel %vm346_vm1, %v1287_v58, 0.0  ;;  %1096 = vst.msk [vmem:[%s2032_s17 + $0x140] sm:$0xff] %vm346_vm1, %v1032_v20 }
 0x12f   : > { %v1289_v31 = vmul.f32 %v2277_v16, %v2277_v16  ;;  %1099 = vst.msk [vmem:[%s2032_s17 + $0x158] sm:$0xff] %vm346_vm1, %v2375_v14  ;;  %1098 = vst.msk [vmem:[%s2032_s17 + $0x150] sm:$0xff] %vm346_vm1, %v2377_v26  ;;  %v1290_v32 = vmul.f32 %v2237_v18, %v2237_v18  ;;  %v1189_v42 = vsel %vm346_vm1, %v2151_v25, 0.0  ;;  %v1191_v40 = vsel %vm346_vm1, %v2277_v16, 0.0 }
 0x130   : > { %v1188_v45 = vadd.f32 %v1187_v0, %v1186_v17  ;;  %v1383_v49 = vadd.f32 %v1382_v23, %v1381_v15  ;;  %v2405_v41 = vadd.f32 %v973_v19, %v835_v1  ;;  %v2407_v43 = vadd.f32 %v972_v22, %v830_v21  ;;  %v979_v19 = vld [vmem:[%s2018_s12 + $0x198] sm:$0xff]  ;;  %v978_v22 = vld [vmem:[%s2018_s12 + $0x190] sm:$0xff] }
 0x131   : > { %v1291_v2 = vmul.f32 %v2330_v36, %v2330_v36  ;;  %v845_v48 = vadd.f32 %v2185_v7, %v2023_v4  ;;  %v1386_v25 = vsel %vm346_vm1, %v1288_v11, 0.0  ;;  %v1193_v16 = vsel %vm346_vm1, %v2237_v18, 0.0  ;;  %v974_v7 = vld [vmem:[%s2018_s12 + $0x170] sm:$0xff] }
 0x132   : > { %v1385_v46 = vadd.f32 %v1384_v29, %v1383_v49  ;;  %v1190_v47 = vadd.f32 %v1189_v42, %v1188_v45  ;;  %v1388_v50 = vsel %vm346_vm1, %v1289_v31, 0.0  ;;  %1101 = vst.msk [vmem:[%s2032_s17 + $0x168] sm:$0xff] %vm346_vm1, %v2405_v41  ;;  %1100 = vst.msk [vmem:[%s2032_s17 + $0x160] sm:$0xff] %vm346_vm1, %v2407_v43  ;;  %v1390_v51 = vsel %vm346_vm1, %v1290_v32, 0.0  ;;  %v981_v32 = vld [vmem:[%s2018_s12 + $0x1a8] sm:$0xff] }
 0x133   : > { %v2425_v55 = vadd.f32 %v975_v44, %v845_v48  ;;  %v1195_v18 = vsel %vm346_vm1, %v2330_v36, 0.0  ;;  %v840_v62 = vadd.f32 %v2023_v4, %v2193_v12  ;;  %v855_v5 = vadd.f32 %v2208_v33, %v2023_v4 }
 0x134   : > { %v1192_v58 = vadd.f32 %v1191_v40, %v1190_v47  ;;  %v1387_v53 = vadd.f32 %v1386_v25, %v1385_v46  ;;  %v850_v6 = vadd.f32 %v2023_v4, %v2212_v39  ;;  %v1292_v10 = vmul.f32 %v2328_v38, %v2328_v38 }
 0x135   : > { %v1392_v0 = vsel %vm346_vm1, %v1291_v2, 0.0  ;;  %1103 = vst.msk [vmem:[%s2032_s17 + $0x178] sm:$0xff] %vm346_vm1, %v2425_v55  ;;  %v1293_v12 = vmul.f32 %v1032_v20, %v1032_v20  ;;  %v2444_v36 = vadd.f32 %v974_v7, %v840_v62  ;;  %v2446_v33 = vadd.f32 %v977_v56, %v855_v5 }
 0x136   : > { %v1389_v61 = vadd.f32 %v1388_v50, %v1387_v53  ;;  %v1194_v13 = vadd.f32 %v1193_v16, %v1192_v58  ;;  %v2448_v15 = vadd.f32 %v976_v59, %v850_v6  ;;  %v865_v1 = vadd.f32 %v2223_v57, %v2023_v4  ;;  %v980_v50 = vld [vmem:[%s2018_s12 + $0x1a0] sm:$0xff]  ;;  %v982_v58 = vld [vmem:[%s2018_s12 + $0x1b0] sm:$0xff] }
 0x137   : > { %v860_v21 = vadd.f32 %v2023_v4, %v2231_v3  ;;  %v1197_v23 = vsel %vm346_vm1, %v2328_v38, 0.0  ;;  %v1294_v11 = vmul.f32 %v2352_v52, %v2352_v52  ;;  %v1199_v29 = vsel %vm346_vm1, %v1032_v20, 0.0  ;;  %1102 = vst.msk [vmem:[%s2032_s17 + $0x170] sm:$0xff] %vm346_vm1, %v2444_v36  ;;  %1105 = vst.msk [vmem:[%s2032_s17 + $0x188] sm:$0xff] %vm346_vm1, %v2446_v33 }
 0x138   : > { %v1196_v39 = vadd.f32 %v1195_v18, %v1194_v13  ;;  %v1391_v17 = vadd.f32 %v1390_v51, %v1389_v61  ;;  %1104 = vst.msk [vmem:[%s2032_s17 + $0x180] sm:$0xff] %vm346_vm1, %v2448_v15  ;;  %v1295_v38 = vmul.f32 %v2377_v26, %v2377_v26  ;;  %v1394_v31 = vsel %vm346_vm1, %v1292_v10, 0.0  ;;  %v983_v51 = vld [vmem:[%s2018_s12 + $0x1b8] sm:$0xff]  ;;  %v985_v10 = vld [vmem:[%s2018_s12 + $0x1c8] sm:$0xff] }
 0x139   : > { %v1396_v20 = vsel %vm346_vm1, %v1293_v12, 0.0  ;;  %v2474_v45 = vadd.f32 %v979_v19, %v865_v1  ;;  %v2476_v49 = vadd.f32 %v978_v22, %v860_v21  ;;  %v875_v44 = vadd.f32 %v2245_v28, %v2023_v4 }
 0x13a   : > { %v1393_v57 = vadd.f32 %v1392_v0, %v1391_v17  ;;  %v1198_v3 = vadd.f32 %v1197_v23, %v1196_v39  ;;  %v1201_v46 = vsel %vm346_vm1, %v2352_v52, 0.0  ;;  %v1398_v47 = vsel %vm346_vm1, %v1294_v11, 0.0  ;;  %v984_v0 = vld [vmem:[%s2018_s12 + $0x1c0] sm:$0xff]  ;;  %v987_v23 = vld [vmem:[%s2018_s12 + $0x1d8] sm:$0xff] }
 0x13b   : > { %v1296_v2 = vmul.f32 %v2375_v14, %v2375_v14  ;;  %v1203_v48 = vsel %vm346_vm1, %v2377_v26, 0.0  ;;  %1107 = vst.msk [vmem:[%s2032_s17 + $0x198] sm:$0xff] %vm346_vm1, %v2474_v45  ;;  %1106 = vst.msk [vmem:[%s2032_s17 + $0x190] sm:$0xff] %vm346_vm1, %v2476_v49  ;;  %v1400_v16 = vsel %vm346_vm1, %v1295_v38, 0.0  ;;  %v2495_v52 = vadd.f32 %v981_v32, %v875_v44  ;;  %v989_v44 = vld [vmem:[%s2018_s12 + $0x1e8] sm:$0xff] }
 0x13c   : > { %v1200_v42 = vadd.f32 %v1199_v29, %v1198_v3  ;;  %v1395_v40 = vadd.f32 %v1394_v31, %v1393_v57  ;;  %v1297_v26 = vmul.f32 %v2407_v43, %v2407_v43  ;;  %v870_v53 = vadd.f32 %v2023_v4, %v2252_v34 }
 0x13d   : > { %v885_v7 = vadd.f32 %v2265_v54, %v2023_v4  ;;  %v880_v56 = vadd.f32 %v2023_v4, %v2271_v60  ;;  %v1205_v59 = vsel %vm346_vm1, %v2375_v14, 0.0  ;;  %1109 = vst.msk [vmem:[%s2032_s17 + $0x1a8] sm:$0xff] %vm346_vm1, %v2495_v52  ;;  %v1207_v34 = vsel %vm346_vm1, %v2407_v43, 0.0 }
 0x13e   : > { %v1397_v25 = vadd.f32 %v1396_v20, %v1395_v40  ;;  %v1202_v28 = vadd.f32 %v1201_v46, %v1200_v42  ;;  %v2515_v5 = vadd.f32 %v980_v50, %v870_v53  ;;  %v895_v14 = vadd.f32 %v2285_v27, %v2023_v4  ;;  %v988_v46 = vld [vmem:[%s2018_s12 + $0x1e0] sm:$0xff]  ;;  %v991_v53 = vld [vmem:[%s2018_s12 + $0x1f8] sm:$0xff] }
 0x13f   : > { %v2517_v54 = vadd.f32 %v983_v51, %v885_v7  ;;  %v2519_v6 = vadd.f32 %v982_v58, %v880_v56  ;;  %v890_v13 = vadd.f32 %v2023_v4, %v2292_v35  ;;  %v1402_v43 = vsel %vm346_vm1, %v1296_v2, 0.0  ;;  %v990_v56 = vld [vmem:[%s2018_s12 + $0x1f0] sm:$0xff] }
 0x140   : > { %v1204_v18 = vadd.f32 %v1203_v48, %v1202_v28  ;;  %v1399_v62 = vadd.f32 %v1398_v47, %v1397_v25  ;;  %v1298_v12 = vmul.f32 %v2405_v41, %v2405_v41  ;;  %v1404_v39 = vsel %vm346_vm1, %v1297_v26, 0.0  ;;  %1108 = vst.msk [vmem:[%s2032_s17 + $0x1a0] sm:$0xff] %vm346_vm1, %v2515_v5 }
 0x141   : > { %v1299_v17 = vmul.f32 %v2444_v36, %v2444_v36  ;;  %1111 = vst.msk [vmem:[%s2032_s17 + $0x1b8] sm:$0xff] %vm346_vm1, %v2517_v54  ;;  %1110 = vst.msk [vmem:[%s2032_s17 + $0x1b0] sm:$0xff] %vm346_vm1, %v2519_v6  ;;  %v1300_v35 = vmul.f32 %v2425_v55, %v2425_v55  ;;  %v1209_v1 = vsel %vm346_vm1, %v2405_v41, 0.0  ;;  %v1211_v19 = vsel %vm346_vm1, %v2444_v36, 0.0  ;;  %v1810_v41 = vld [vmem:[%s2701_s2] ss:$0 sm:$0xff] }
 0x142   : > { %v1401_v60 = vadd.f32 %v1400_v16, %v1399_v62  ;;  %v1206_v61 = vadd.f32 %v1205_v59, %v1204_v18  ;;  %v2548_v21 = vadd.f32 %v985_v10, %v895_v14  ;;  %v2550_v22 = vadd.f32 %v984_v0, %v890_v13 }
 0x143   : > { %v1301_v57 = vmul.f32 %v2448_v15, %v2448_v15  ;;  %v905_v3 = vadd.f32 %v1810_v41, %v2302_v24  ;;  %v1406_v36 = vsel %vm346_vm1, %v1298_v12, 0.0  ;;  %v1213_v38 = vsel %vm346_vm1, %v2425_v55, 0.0  ;;  %v986_v24 = vld [vmem:[%s2018_s12 + $0x1d0] sm:$0xff] }
 0x144   : > { %v1208_v4 = vadd.f32 %v1207_v34, %v1206_v61  ;;  %v1403_v27 = vadd.f32 %v1402_v43, %v1401_v60  ;;  %v1408_v31 = vsel %vm346_vm1, %v1299_v17, 0.0  ;;  %1113 = vst.msk [vmem:[%s2032_s17 + $0x1c8] sm:$0xff] %vm346_vm1, %v2548_v21  ;;  %1112 = vst.msk [vmem:[%s2032_s17 + $0x1c0] sm:$0xff] %vm346_vm1, %v2550_v22  ;;  %v1410_v20 = vsel %vm346_vm1, %v1300_v35, 0.0 }
 0x145   : > { %v2570_v40 = vadd.f32 %v987_v23, %v905_v3  ;;  %v1215_v55 = vsel %vm346_vm1, %v2448_v15, 0.0  ;;  %v900_v47 = vadd.f32 %v1810_v41, %v2310_v63  ;;  %v915_v2 = vadd.f32 %v1810_v41, %v2325_v30 }
 0x146   : > { %v1405_v11 = vadd.f32 %v1404_v39, %v1403_v27  ;;  %v1210_v29 = vadd.f32 %v1209_v1, %v1208_v4  ;;  %v910_v48 = vadd.f32 %v1810_v41, %v2333_v37  ;;  %v1302_v28 = vmul.f32 %v2446_v33, %v2446_v33 }
 0x147   : > { %v1412_v50 = vsel %vm346_vm1, %v1301_v57, 0.0  ;;  %1115 = vst.msk [vmem:[%s2032_s17 + $0x1d8] sm:$0xff] %vm346_vm1, %v2570_v40  ;;  %v1303_v63 = vmul.f32 %v2476_v49, %v2476_v49  ;;  %v1050_v30 = vadd.f32 %v986_v24, %v900_v47  ;;  %v2588_v15 = vadd.f32 %v989_v44, %v915_v2 }
 0x148   : > { %v1212_v32 = vadd.f32 %v1211_v19, %v1210_v29  ;;  %v1407_v42 = vadd.f32 %v1406_v36, %v1405_v11  ;;  %v2590_v37 = vadd.f32 %v988_v46, %v910_v48  ;;  %v925_v26 = vadd.f32 %v1810_v41, %v2357_v9 }
 0x149   : > { %v920_v7 = vadd.f32 %v1810_v41, %v2366_v8  ;;  %v1217_v59 = vsel %vm346_vm1, %v2446_v33, 0.0  ;;  %v1219_v18 = vsel %vm346_vm1, %v2476_v49, 0.0  ;;  %1114 = vst.msk [vmem:[%s2032_s17 + $0x1d0] sm:$0xff] %vm346_vm1, %v1050_v30  ;;  %1117 = vst.msk [vmem:[%s2032_s17 + $0x1e8] sm:$0xff] %vm346_vm1, %v2588_v15  ;;  %v1414_v9 = vsel %vm346_vm1, %v1302_v28, 0.0 }
 0x14a   : > { %v1409_v25 = vadd.f32 %v1408_v31, %v1407_v42  ;;  %v1214_v16 = vadd.f32 %v1213_v38, %v1212_v32  ;;  %1116 = vst.msk [vmem:[%s2032_s17 + $0x1e0] sm:$0xff] %vm346_vm1, %v2590_v37  ;;  %v1304_v62 = vmul.f32 %v2474_v45, %v2474_v45  ;;  %v1416_v34 = vsel %vm346_vm1, %v1303_v63, 0.0 }
 0x14b   : > { %v1305_v49 = vmul.f32 %v2515_v5, %v2515_v5  ;;  %v2614_v60 = vadd.f32 %v991_v53, %v925_v26  ;;  %v1054_v61 = vadd.f32 %v990_v56, %v920_v7  ;;  %v1221_v13 = vsel %vm346_vm1, %v2474_v45, 0.0 }
 0x14c   : > { %v1216_v51 = vadd.f32 %v1215_v55, %v1214_v16  ;;  %v1411_v58 = vadd.f32 %v1410_v20, %v1409_v25  ;;  %v1223_v0 = vsel %vm346_vm1, %v2515_v5, 0.0  ;;  %v1418_v39 = vsel %vm346_vm1, %v1304_v62, 0.0 }
 0x14d   : > { %1119 = vst.msk [vmem:[%s2032_s17 + $0x1f8] sm:$0xff] %vm346_vm1, %v2614_v60  ;;  %1118 = vst.msk [vmem:[%s2032_s17 + $0x1f0] sm:$0xff] %vm346_vm1, %v1054_v61  ;;  %v1306_v17 = vmul.f32 %v2495_v52, %v2495_v52  ;;  %v1420_v4 = vsel %vm346_vm1, %v1305_v49, 0.0  ;;  %v1307_v45 = vmul.f32 %v2519_v6, %v2519_v6  ;;  %v1225_v5 = vsel %vm346_vm1, %v2495_v52, 0.0 }
 0x14e   : > { %v1413_v8 = vadd.f32 %v1412_v50, %v1411_v58  ;;  %v1218_v33 = vadd.f32 %v1217_v59, %v1216_v51  ;;  %v1227_v1 = vsel %vm346_vm1, %v2519_v6, 0.0  ;;  %v1308_v29 = vmul.f32 %v2517_v54, %v2517_v54 }
 0x14f   : > { %v1422_v11 = vsel %vm346_vm1, %v1306_v17, 0.0  ;;  %v1424_v57 = vsel %vm346_vm1, %v1307_v45, 0.0  ;;  %v1309_v41 = vmul.f32 %v2550_v22, %v2550_v22  ;;  %v1229_v52 = vsel %vm346_vm1, %v2517_v54, 0.0 }
 0x150   : > { %v1220_v14 = vadd.f32 %v1219_v18, %v1218_v33  ;;  %v1415_v10 = vadd.f32 %v1414_v9, %v1413_v8  ;;  %v1231_v6 = vsel %vm346_vm1, %v2550_v22, 0.0  ;;  %v1426_v20 = vsel %vm346_vm1, %v1308_v29, 0.0 }
 0x151   : > { %v1310_v32 = vmul.f32 %v2548_v21, %v2548_v21  ;;  %v1428_v42 = vsel %vm346_vm1, %v1309_v41, 0.0  ;;  %v1311_v24 = vmul.f32 %v1050_v30, %v1050_v30  ;;  %v1233_v55 = vsel %vm346_vm1, %v2548_v21, 0.0 }
 0x152   : > { %v1417_v43 = vadd.f32 %v1416_v34, %v1415_v10  ;;  %v1222_v12 = vadd.f32 %v1221_v13, %v1220_v14  ;;  %v1235_v54 = vsel %vm346_vm1, %v1050_v30, 0.0  ;;  %v1312_v48 = vmul.f32 %v2570_v40, %v2570_v40 }
 0x153   : > { %v1430_v22 = vsel %vm346_vm1, %v1310_v32, 0.0  ;;  %v1432_v25 = vsel %vm346_vm1, %v1311_v24, 0.0  ;;  %v1313_v28 = vmul.f32 %v2590_v37, %v2590_v37  ;;  %v1237_v63 = vsel %vm346_vm1, %v2570_v40, 0.0 }
 0x154   : > { %v1224_v27 = vadd.f32 %v1223_v0, %v1222_v12  ;;  %v1419_v35 = vadd.f32 %v1418_v39, %v1417_v43  ;;  %v1239_v21 = vsel %vm346_vm1, %v2590_v37, 0.0  ;;  %v1434_v58 = vsel %vm346_vm1, %v1312_v48, 0.0 }
 0x155   : > { %v1314_v26 = vmul.f32 %v2588_v15, %v2588_v15  ;;  %v1436_v53 = vsel %vm346_vm1, %v1313_v28, 0.0  ;;  %v1315_v7 = vmul.f32 %v1054_v61, %v1054_v61  ;;  %v1241_v18 = vsel %vm346_vm1, %v2588_v15, 0.0 }
 0x156   : > { %v1421_v19 = vadd.f32 %v1420_v4, %v1419_v35  ;;  %v1226_v23 = vadd.f32 %v1225_v5, %v1224_v27  ;;  %v1243_v40 = vsel %vm346_vm1, %v1054_v61, 0.0  ;;  %v1316_v62 = vmul.f32 %v2614_v60, %v2614_v60 }
 0x157   : > { %v1438_v37 = vsel %vm346_vm1, %v1314_v26, 0.0  ;;  %v1440_v33 = vsel %vm346_vm1, %v1315_v7, 0.0  ;;  %v1245_v14 = vsel %vm346_vm1, %v2614_v60, 0.0  ;;  %v1819_v60 = vmov (!%p1621_p4), 0.0  }
 0x158   : > { %v1228_v3 = vadd.f32 %v1227_v1, %v1226_v23  ;;  %v1423_v36 = vadd.f32 %v1422_v11, %v1421_v19  ;;  %v1442_v15 = vsel %vm346_vm1, %v1316_v62, 0.0  ;;  %1455 = vst.msk [vmem:[%s2704_s5] sm:$0x1] (!%p1621_p4), %vm1454_vm2, %v1819_v60  ;;  %1456 = vst.msk [vmem:[%s2705_s6] sm:$0x1] (!%p1621_p4), %vm1454_vm2, %v1819_v60 }
 0x15a   : > { %v1425_v38 = vadd.f32 %v1424_v57, %v1423_v36  ;;  %v1230_v31 = vadd.f32 %v1229_v52, %v1228_v3 }
 0x15c   : > { %v1232_v44 = vadd.f32 %v1231_v6, %v1230_v31  ;;  %v1427_v46 = vadd.f32 %v1426_v20, %v1425_v38 }
 0x15e   : > { %v1429_v47 = vadd.f32 %v1428_v42, %v1427_v46  ;;  %v1234_v2 = vadd.f32 %v1233_v55, %v1232_v44 }
 0x160   : > { %v1236_v16 = vadd.f32 %v1235_v54, %v1234_v2  ;;  %v1431_v50 = vadd.f32 %v1430_v22, %v1429_v47 }
 0x162   : > { %v1433_v30 = vadd.f32 %v1432_v25, %v1431_v50  ;;  %v1238_v51 = vadd.f32 %v1237_v63, %v1236_v16 }
 0x164   : > { %v1240_v56 = vadd.f32 %v1239_v21, %v1238_v51  ;;  %v1435_v59 = vadd.f32 %v1434_v58, %v1433_v30 }
 0x166   : > { %v1437_v9 = vadd.f32 %v1436_v53, %v1435_v59  ;;  %v1242_v8 = vadd.f32 %v1241_v18, %v1240_v56 }
 0x168   : > { %v1244_v34 = vadd.f32 %v1243_v40, %v1242_v8  ;;  %v1439_v49 = vadd.f32 %v1438_v37, %v1437_v9 }
 0x16a   : > { %v1246_v10 = vadd.f32 %v1245_v14, %v1244_v34  ;;  %v1441_v13 = vadd.f32 %v1440_v33, %v1439_v49 }
 0x16c   : > { %v1247_v0 = vrot.slane %v1246_v10, 4  ;;  %v1443_v61 = vadd.f32 %v1442_v15, %v1441_v13 }
 0x16e   : > { %v1248_v43 = vadd.f32 %v1247_v0, %v1246_v10  ;;  %v1444_v12 = vrot.slane %v1443_v61, 4 }
 0x170   : > { %v1249_v39 = vrot.slane %v1248_v43, 2  ;;  %v1445_v17 = vadd.f32 %v1444_v12, %v1443_v61 }
 0x172   : > { %v1250_v4 = vadd.f32 %v1249_v39, %v1248_v43  ;;  %v1446_v45 = vrot.slane %v1445_v17, 2  ;;  %1453 = sbr.rel (%p1621_p4) target bundleno = 377 (0x179), region = 40 }
 0x174   : > { %v1251_v27 = vrot.slane %v1250_v4, 1  ;;  %v1447_v35 = vadd.f32 %v1446_v45, %v1445_v17 }
 0x176   : > { %v1252_v5 = vadd.f32 %v1251_v27, %v1250_v4  ;;  %v1448_v1 = vrot.slane %v1447_v35, 1 }
 0x178   : > { %v1449_v19 = vadd.f32 %v1448_v1, %v1447_v35 }
 0x179 PF: > { %v1457_v23 = vld [vmem:[%s2704_s5] sm:$0x1]  ;;  %vm1459_vm3 = vcmask 155648  }
 0x17a   : > { %v1461_v11 = vld [vmem:[%s2705_s6] sm:$0x1]  ;;  %v1458_v29 = vadd.f32 %v1457_v23, %v1252_v5 }
 0x17b   : > { %v1462_v57 = vadd.f32 %v1461_v11, %v1449_v19 }
 0x17c   : > { %1460 = vst.msk [vmem:[%s2704_s5] sm:$0x1] %vm1459_vm3, %v1458_v29 }
 0x17d   : > { %1463 = vst.msk [vmem:[%s2705_s6] sm:$0x1] %vm1459_vm3, %v1462_v57 }
 0x17e PF: > { %s17_s21 = sadd.s32 1, %s1817_s21  }
 0x17f   : > { %p14_p5 = scmp.ge.s32.totalorder %s17_s21, 6  }
 0x181   :  { %16 = sbr.rel (!%p14_p5) target bundleno = 1 (0x1), region = 89 }

// kernel: net3d_forward.17
= control target key start
LH: loop header
LB: loop body
LE: loop exit
PB: predicated region body
PF: predicated region fallthrough
CT: control target
= control target key end

     0   :  { %s689_s18 = smov 0   ;;  %s1053_s0 = inlined_call_operand.vmem [shape: f32[2048,20], index: 0, kind: input, shape index: {}]   ;;  %s1054_s1 = inlined_call_operand.vmem [shape: f32[1,20], index: 1, kind: input, shape index: {}]   ;;  %s1055_s2 = inlined_call_operand.vmem [shape: f32[1,20], index: 2, kind: input, shape index: {}]   ;;  %s1056_s3 = inlined_call_operand.vmem [shape: f32[1,20], index: 3, kind: input, shape index: {}]   ;;  %s1057_s4 = inlined_call_operand.vmem [shape: f32[1,20], index: 4, kind: input, shape index: {}]   ;;  %s1058_s5 = inlined_call_operand.vmem [shape: f32[2048,20], index: 5, kind: output, shape index: {}]  }
   0x1 LB: > { %s630_s19 = sadd.s32 4294967295, %s657_s18   ;;  %p634_p0 = scmp.ge.s32.totalorder %s657_s18, 1  ;;  %s657_s18 = sphi %s689_s18, %s15_s18  }
   0x2   : > { %p188_p1 = scmp.lt.s32.totalorder %s657_s18, 5 }
   0x4   : > { %p189_p2 = pnand %p634_p0, %p188_p1 }
   0x5   : > { %v228_v0 = vld [vmem:[%s1054_s1] sm:$0x1] (!%p189_p2)  ;;  %s635_s24 = sshll.u32 (!%p189_p2), %s630_s19, 6  ;;  %v306_v7 = vlaneseq (!%p189_p2)  ;;  %vm509_vm0 = vcmask (!%p189_p2), 162816  }
   0x6   : > { %192 = sbr.rel (%p189_p2) target bundleno = 83 (0x53), region = 40  ;;  %v230_v1 = vld [vmem:[%s1055_s2] sm:$0x1] (!%p189_p2)  ;;  %v229_v2 = vmul.f32 (!%p189_p2), 0.00048828125, %v228_v0  ;;  %p217_p3 = scmp.lt.s32.totalorder (!%p189_p2), %s635_s24, 255 }
   0x7   : > { %v231_v3 = vmul.f32 (!%p189_p2), 0.00048828125, %v230_v1  ;;  %v307_v8 = vshrl.u32 (!%p189_p2), %v306_v7, 7  ;;  %v234_v9 = vld [vmem:[%s1056_s3] sm:$0x1] (!%p189_p2) }
   0x8   : > { %v232_v4 = vmul.f32 (!%p189_p2), %v229_v2, %v229_v2  ;;  %v238_v13 = vld [vmem:[%s1057_s4] sm:$0x1] (!%p189_p2) }
   0x9   : > { %v308_v10 = vsub.s32 (!%p189_p2), 0, %v307_v8 }
   0xa   : > { %v233_v5 = vsub.f32 (!%p189_p2), %v231_v3, %v232_v4 }
   0xc   : > { %v235_v6 = vadd.f32 (!%p189_p2), 1e-05, %v233_v5 }
   0xd   : > { %s1060_s24 = smov (!%p217_p3, %s635_s24), 255 }
   0xe   : > { %649 = vrsqrt.f32 %v235_v6  ;;  %s636_s25 = sshll.u32 %s1060_s24, 3 }
   0xf   : > { %s711_s28 = scalar_lea.vmem %s1053_s0, %s636_s25  ;;  %s760_s10 = scalar_lea.vmem %s1058_s5, %s636_s25 }
  0x10   : > { %v241_v14 = vld [vmem:[%s711_s28] sm:$0xff]  ;;  %v242_v15 = vld [vmem:[%s711_s28 + $0x8] sm:$0xff]  ;;  %v243_v16 = vld [vmem:[%s711_s28 + $0x10] sm:$0xff] }
  0x11   : > { %v244_v17 = vld [vmem:[%s711_s28 + $0x18] sm:$0xff]  ;;  %v245_v18 = vld [vmem:[%s711_s28 + $0x20] sm:$0xff]  ;;  %v246_v21 = vld [vmem:[%s711_s28 + $0x28] sm:$0xff] }
  0x12   : > { %v247_v22 = vld [vmem:[%s711_s28 + $0x30] sm:$0xff]  ;;  %v248_v23 = vld [vmem:[%s711_s28 + $0x38] sm:$0xff]  ;;  %v249_v24 = vld [vmem:[%s711_s28 + $0x40] sm:$0xff] }
  0x13   : > { %v250_v25 = vld [vmem:[%s711_s28 + $0x48] sm:$0xff]  ;;  %v251_v26 = vld [vmem:[%s711_s28 + $0x50] sm:$0xff]  ;;  %v252_v31 = vld [vmem:[%s711_s28 + $0x58] sm:$0xff] }
  0x14   : > { %v253_v32 = vld [vmem:[%s711_s28 + $0x60] sm:$0xff]  ;;  %v254_v33 = vld [vmem:[%s711_s28 + $0x68] sm:$0xff]  ;;  %v255_v58 = vld [vmem:[%s711_s28 + $0x70] sm:$0xff] }
  0x15   : > { %v256_v59 = vld [vmem:[%s711_s28 + $0x78] sm:$0xff]  ;;  %v257_v4 = vld [vmem:[%s711_s28 + $0x80] sm:$0xff] }
  0x18   : > { %v650_v11 = vpop.eup %649 }
  0x19   : > { %v237_v12 = vmul.f32 %v650_v11, %v234_v9  ;;  %v258_v9 = vld [vmem:[%s711_s28 + $0x88] sm:$0xff]  ;;  %v260_v11 = vld [vmem:[%s711_s28 + $0x98] sm:$0xff] }
  0x1b   : > { %v239_v19 = vmul.f32 %v237_v12, %v229_v2  ;;  %v724_v20 = vrot.slane %v237_v12, %v308_v10 }
  0x1d   : > { %v240_v27 = vsub.f32 %v238_v13, %v239_v19  ;;  %v311_v28 = vmul.f32 %v724_v20, %v241_v14  ;;  %v312_v29 = vmul.f32 %v724_v20, %v242_v15  ;;  %v313_v30 = vmul.f32 %v724_v20, %v243_v16  ;;  %v261_v16 = vld [vmem:[%s711_s28 + $0xa0] sm:$0xff] }
  0x1e   : > { %v314_v34 = vmul.f32 %v724_v20, %v244_v17  ;;  %v315_v35 = vmul.f32 %v724_v20, %v245_v18  ;;  %v316_v36 = vmul.f32 %v724_v20, %v246_v21  ;;  %v317_v37 = vmul.f32 %v724_v20, %v247_v22  ;;  %v262_v17 = vld [vmem:[%s711_s28 + $0xa8] sm:$0xff] }
  0x1f   : > { %v742_v38 = vrot.slane %v240_v27, %v308_v10  ;;  %v318_v39 = vmul.f32 %v724_v20, %v248_v23  ;;  %v319_v40 = vmul.f32 %v724_v20, %v249_v24  ;;  %v320_v41 = vmul.f32 %v724_v20, %v250_v25  ;;  %v259_v10 = vld [vmem:[%s711_s28 + $0x90] sm:$0xff] }
  0x20   : > { %v321_v42 = vmul.f32 %v724_v20, %v251_v26  ;;  %v322_v43 = vmul.f32 %v724_v20, %v252_v31  ;;  %v323_v44 = vmul.f32 %v724_v20, %v253_v32  ;;  %v324_v45 = vmul.f32 %v724_v20, %v254_v33  ;;  %v263_v27 = vld [vmem:[%s711_s28 + $0xb0] sm:$0xff] }
  0x21   : > { %v381_v46 = vadd.f32 %v742_v38, %v311_v28  ;;  %v382_v47 = vadd.f32 %v742_v38, %v312_v29  ;;  %v383_v48 = vadd.f32 %v742_v38, %v313_v30  ;;  %v384_v49 = vadd.f32 %v742_v38, %v314_v34  ;;  %v264_v28 = vld [vmem:[%s711_s28 + $0xb8] sm:$0xff] }
  0x22   : > { %v385_v50 = vadd.f32 %v742_v38, %v315_v35  ;;  %v386_v51 = vadd.f32 %v742_v38, %v316_v36  ;;  %v387_v52 = vadd.f32 %v742_v38, %v317_v37  ;;  %v388_v53 = vadd.f32 %v742_v38, %v318_v39  ;;  %v265_v37 = vld [vmem:[%s711_s28 + $0xc0] sm:$0xff] }
  0x23   : > { %v445_v54 = vmax.f32 %v381_v46, 0.0  ;;  %v446_v55 = vmax.f32 %v382_v47, 0.0  ;;  %v447_v56 = vmax.f32 %v383_v48, 0.0  ;;  %v448_v57 = vmax.f32 %v384_v49, 0.0 }
  0x24   : > { %v449_v60 = vmax.f32 %v385_v50, 0.0  ;;  %v450_v61 = vmax.f32 %v386_v51, 0.0  ;;  %v451_v62 = vmax.f32 %v387_v52, 0.0  ;;  %v452_v63 = vmax.f32 %v388_v53, 0.0  ;;  %v269_v50 = vld [vmem:[%s711_s28 + $0xe0] sm:$0xff]  ;;  %v270_v51 = vld [vmem:[%s711_s28 + $0xe8] sm:$0xff] }
  0x25   : > { %510 = vst.msk [vmem:[%s760_s10] sm:$0xff] %vm509_vm0, %v445_v54  ;;  %511 = vst.msk [vmem:[%s760_s10 + $0x8] sm:$0xff] %vm509_vm0, %v446_v55  ;;  %v389_v0 = vadd.f32 %v742_v38, %v319_v40  ;;  %v390_v1 = vadd.f32 %v742_v38, %v320_v41  ;;  %v391_v2 = vadd.f32 %v742_v38, %v321_v42 }
  0x26   : > { %512 = vst.msk [vmem:[%s760_s10 + $0x10] sm:$0xff] %vm509_vm0, %v447_v56  ;;  %513 = vst.msk [vmem:[%s760_s10 + $0x18] sm:$0xff] %vm509_vm0, %v448_v57  ;;  %v392_v3 = vadd.f32 %v742_v38, %v322_v43  ;;  %v393_v5 = vadd.f32 %v742_v38, %v323_v44  ;;  %v394_v6 = vadd.f32 %v742_v38, %v324_v45  ;;  %v266_v43 = vld [vmem:[%s711_s28 + $0xc8] sm:$0xff]  ;;  %v267_v44 = vld [vmem:[%s711_s28 + $0xd0] sm:$0xff] }
  0x27   : > { %514 = vst.msk [vmem:[%s760_s10 + $0x20] sm:$0xff] %vm509_vm0, %v449_v60  ;;  %515 = vst.msk [vmem:[%s760_s10 + $0x28] sm:$0xff] %vm509_vm0, %v450_v61  ;;  %v325_v7 = vmul.f32 %v724_v20, %v255_v58  ;;  %v326_v8 = vmul.f32 %v724_v20, %v256_v59  ;;  %v453_v12 = vmax.f32 %v389_v0, 0.0  ;;  %v454_v13 = vmax.f32 %v390_v1, 0.0  ;;  %v268_v45 = vld [vmem:[%s711_s28 + $0xd8] sm:$0xff]  ;;  %v271_v60 = vld [vmem:[%s711_s28 + $0xf0] sm:$0xff] }
  0x28   : > { %516 = vst.msk [vmem:[%s760_s10 + $0x30] sm:$0xff] %vm509_vm0, %v451_v62  ;;  %517 = vst.msk [vmem:[%s760_s10 + $0x38] sm:$0xff] %vm509_vm0, %v452_v63  ;;  %v455_v14 = vmax.f32 %v391_v2, 0.0  ;;  %v456_v15 = vmax.f32 %v392_v3, 0.0  ;;  %v457_v18 = vmax.f32 %v393_v5, 0.0  ;;  %v458_v19 = vmax.f32 %v394_v6, 0.0 }
  0x29   : > { %v395_v21 = vadd.f32 %v742_v38, %v325_v7  ;;  %v396_v22 = vadd.f32 %v742_v38, %v326_v8  ;;  %518 = vst.msk [vmem:[%s760_s10 + $0x40] sm:$0xff] %vm509_vm0, %v453_v12  ;;  %519 = vst.msk [vmem:[%s760_s10 + $0x48] sm:$0xff] %vm509_vm0, %v454_v13  ;;  %v327_v23 = vmul.f32 %v724_v20, %v257_v4  ;;  %v272_v61 = vld [vmem:[%s711_s28 + $0xf8] sm:$0xff]  ;;  %v273_v6 = vld [vmem:[%s711_s28 + $0x100] sm:$0xff] }
  0x2a   : > { %520 = vst.msk [vmem:[%s760_s10 + $0x50] sm:$0xff] %vm509_vm0, %v455_v14  ;;  %521 = vst.msk [vmem:[%s760_s10 + $0x58] sm:$0xff] %vm509_vm0, %v456_v15  ;;  %v328_v24 = vmul.f32 %v724_v20, %v258_v9  ;;  %v329_v25 = vmul.f32 %v724_v20, %v259_v10  ;;  %v330_v26 = vmul.f32 %v724_v20, %v260_v11  ;;  %v274_v11 = vld [vmem:[%s711_s28 + $0x108] sm:$0xff]  ;;  %v275_v12 = vld [vmem:[%s711_s28 + $0x110] sm:$0xff] }
  0x2b   : > { %522 = vst.msk [vmem:[%s760_s10 + $0x60] sm:$0xff] %vm509_vm0, %v457_v18  ;;  %523 = vst.msk [vmem:[%s760_s10 + $0x68] sm:$0xff] %vm509_vm0, %v458_v19  ;;  %v459_v29 = vmax.f32 %v395_v21, 0.0  ;;  %v460_v30 = vmax.f32 %v396_v22, 0.0  ;;  %v331_v31 = vmul.f32 %v724_v20, %v261_v16  ;;  %v332_v32 = vmul.f32 %v724_v20, %v262_v17  ;;  %v276_v13 = vld [vmem:[%s711_s28 + $0x118] sm:$0xff]  ;;  %v277_v18 = vld [vmem:[%s711_s28 + $0x120] sm:$0xff] }
  0x2c   : > { %v397_v33 = vadd.f32 %v742_v38, %v327_v23  ;;  %v398_v34 = vadd.f32 %v742_v38, %v328_v24  ;;  %v399_v35 = vadd.f32 %v742_v38, %v329_v25  ;;  %v400_v36 = vadd.f32 %v742_v38, %v330_v26  ;;  %v278_v19 = vld [vmem:[%s711_s28 + $0x128] sm:$0xff] }
  0x2d   : > { %524 = vst.msk [vmem:[%s760_s10 + $0x70] sm:$0xff] %vm509_vm0, %v459_v29  ;;  %525 = vst.msk [vmem:[%s760_s10 + $0x78] sm:$0xff] %vm509_vm0, %v460_v30  ;;  %v401_v39 = vadd.f32 %v742_v38, %v331_v31  ;;  %v402_v40 = vadd.f32 %v742_v38, %v332_v32  ;;  %v333_v41 = vmul.f32 %v724_v20, %v263_v27  ;;  %v279_v29 = vld [vmem:[%s711_s28 + $0x130] sm:$0xff]  ;;  %v280_v30 = vld [vmem:[%s711_s28 + $0x138] sm:$0xff] }
  0x2e   : > { %v334_v42 = vmul.f32 %v724_v20, %v264_v28  ;;  %v461_v46 = vmax.f32 %v397_v33, 0.0  ;;  %v462_v47 = vmax.f32 %v398_v34, 0.0  ;;  %v463_v48 = vmax.f32 %v399_v35, 0.0 }
  0x2f   : > { %v464_v49 = vmax.f32 %v400_v36, 0.0  ;;  %v465_v52 = vmax.f32 %v401_v39, 0.0  ;;  %v466_v53 = vmax.f32 %v402_v40, 0.0  ;;  %v403_v54 = vadd.f32 %v742_v38, %v333_v41  ;;  %v281_v40 = vld [vmem:[%s711_s28 + $0x140] sm:$0xff] }
  0x30   : > { %v404_v55 = vadd.f32 %v742_v38, %v334_v42  ;;  %526 = vst.msk [vmem:[%s760_s10 + $0x80] sm:$0xff] %vm509_vm0, %v461_v46  ;;  %527 = vst.msk [vmem:[%s760_s10 + $0x88] sm:$0xff] %vm509_vm0, %v462_v47  ;;  %v335_v56 = vmul.f32 %v724_v20, %v265_v37  ;;  %v336_v57 = vmul.f32 %v724_v20, %v266_v43  ;;  %v283_v46 = vld [vmem:[%s711_s28 + $0x150] sm:$0xff]  ;;  %v284_v47 = vld [vmem:[%s711_s28 + $0x158] sm:$0xff] }
  0x31   : > { %528 = vst.msk [vmem:[%s760_s10 + $0x90] sm:$0xff] %vm509_vm0, %v463_v48  ;;  %529 = vst.msk [vmem:[%s760_s10 + $0x98] sm:$0xff] %vm509_vm0, %v464_v49  ;;  %v337_v58 = vmul.f32 %v724_v20, %v267_v44  ;;  %v338_v59 = vmul.f32 %v724_v20, %v268_v45  ;;  %v467_v62 = vmax.f32 %v403_v54, 0.0  ;;  %v339_v0 = vmul.f32 %v724_v20, %v269_v50  ;;  %v282_v45 = vld [vmem:[%s711_s28 + $0x148] sm:$0xff] }
  0x32   : > { %530 = vst.msk [vmem:[%s760_s10 + $0xa0] sm:$0xff] %vm509_vm0, %v465_v52  ;;  %531 = vst.msk [vmem:[%s760_s10 + $0xa8] sm:$0xff] %vm509_vm0, %v466_v53  ;;  %v468_v63 = vmax.f32 %v404_v55, 0.0  ;;  %v340_v1 = vmul.f32 %v724_v20, %v270_v51  ;;  %v405_v2 = vadd.f32 %v742_v38, %v335_v56  ;;  %v406_v3 = vadd.f32 %v742_v38, %v336_v57  ;;  %v285_v52 = vld [vmem:[%s711_s28 + $0x160] sm:$0xff]  ;;  %v286_v53 = vld [vmem:[%s711_s28 + $0x168] sm:$0xff] }
  0x33   : > { %v407_v4 = vadd.f32 %v742_v38, %v337_v58  ;;  %v408_v5 = vadd.f32 %v742_v38, %v338_v59  ;;  %532 = vst.msk [vmem:[%s760_s10 + $0xb0] sm:$0xff] %vm509_vm0, %v467_v62  ;;  %v409_v7 = vadd.f32 %v742_v38, %v339_v0  ;;  %v341_v9 = vmul.f32 %v724_v20, %v271_v60  ;;  %v287_v62 = vld [vmem:[%s711_s28 + $0x170] sm:$0xff] }
  0x34   : > { %533 = vst.msk [vmem:[%s760_s10 + $0xb8] sm:$0xff] %vm509_vm0, %v468_v63  ;;  %v410_v8 = vadd.f32 %v742_v38, %v340_v1  ;;  %v342_v10 = vmul.f32 %v724_v20, %v272_v61  ;;  %v469_v14 = vmax.f32 %v405_v2, 0.0  ;;  %v470_v15 = vmax.f32 %v406_v3, 0.0  ;;  %v288_v63 = vld [vmem:[%s711_s28 + $0x178] sm:$0xff] }
  0x35   : > { %v471_v16 = vmax.f32 %v407_v4, 0.0  ;;  %v472_v17 = vmax.f32 %v408_v5, 0.0  ;;  %v473_v21 = vmax.f32 %v409_v7, 0.0  ;;  %v411_v23 = vadd.f32 %v742_v38, %v341_v9 }
  0x36   : > { %v474_v22 = vmax.f32 %v410_v8, 0.0  ;;  %v412_v24 = vadd.f32 %v742_v38, %v342_v10  ;;  %534 = vst.msk [vmem:[%s760_s10 + $0xc0] sm:$0xff] %vm509_vm0, %v469_v14  ;;  %535 = vst.msk [vmem:[%s760_s10 + $0xc8] sm:$0xff] %vm509_vm0, %v470_v15  ;;  %v343_v25 = vmul.f32 %v724_v20, %v273_v6  ;;  %v344_v26 = vmul.f32 %v724_v20, %v274_v11  ;;  %v289_v8 = vld [vmem:[%s711_s28 + $0x180] sm:$0xff]  ;;  %v291_v14 = vld [vmem:[%s711_s28 + $0x190] sm:$0xff] }
  0x37   : > { %536 = vst.msk [vmem:[%s760_s10 + $0xd0] sm:$0xff] %vm509_vm0, %v471_v16  ;;  %537 = vst.msk [vmem:[%s760_s10 + $0xd8] sm:$0xff] %vm509_vm0, %v472_v17  ;;  %v345_v27 = vmul.f32 %v724_v20, %v275_v12  ;;  %v346_v28 = vmul.f32 %v724_v20, %v276_v13  ;;  %v475_v31 = vmax.f32 %v411_v23, 0.0  ;;  %v347_v33 = vmul.f32 %v724_v20, %v277_v18  ;;  %v290_v13 = vld [vmem:[%s711_s28 + $0x188] sm:$0xff]  ;;  %v292_v15 = vld [vmem:[%s711_s28 + $0x198] sm:$0xff] }
  0x38   : > { %538 = vst.msk [vmem:[%s760_s10 + $0xe0] sm:$0xff] %vm509_vm0, %v473_v21  ;;  %539 = vst.msk [vmem:[%s760_s10 + $0xe8] sm:$0xff] %vm509_vm0, %v474_v22  ;;  %v476_v32 = vmax.f32 %v412_v24, 0.0  ;;  %v348_v34 = vmul.f32 %v724_v20, %v278_v19  ;;  %v413_v35 = vadd.f32 %v742_v38, %v343_v25  ;;  %v414_v36 = vadd.f32 %v742_v38, %v344_v26  ;;  %v293_v21 = vld [vmem:[%s711_s28 + $0x1a0] sm:$0xff]  ;;  %v294_v22 = vld [vmem:[%s711_s28 + $0x1a8] sm:$0xff] }
  0x39   : > { %v415_v37 = vadd.f32 %v742_v38, %v345_v27  ;;  %v416_v39 = vadd.f32 %v742_v38, %v346_v28  ;;  %540 = vst.msk [vmem:[%s760_s10 + $0xf0] sm:$0xff] %vm509_vm0, %v475_v31  ;;  %v417_v41 = vadd.f32 %v742_v38, %v347_v33  ;;  %v349_v43 = vmul.f32 %v724_v20, %v279_v29  ;;  %v295_v31 = vld [vmem:[%s711_s28 + $0x1b0] sm:$0xff] }
  0x3a   : > { %541 = vst.msk [vmem:[%s760_s10 + $0xf8] sm:$0xff] %vm509_vm0, %v476_v32  ;;  %v418_v42 = vadd.f32 %v742_v38, %v348_v34  ;;  %v350_v44 = vmul.f32 %v724_v20, %v280_v30  ;;  %v477_v48 = vmax.f32 %v413_v35, 0.0  ;;  %v478_v49 = vmax.f32 %v414_v36, 0.0  ;;  %v296_v32 = vld [vmem:[%s711_s28 + $0x1b8] sm:$0xff] }
  0x3b   : > { %v479_v50 = vmax.f32 %v415_v37, 0.0  ;;  %v480_v51 = vmax.f32 %v416_v39, 0.0  ;;  %v481_v54 = vmax.f32 %v417_v41, 0.0  ;;  %v419_v56 = vadd.f32 %v742_v38, %v349_v43 }
  0x3c   : > { %v482_v55 = vmax.f32 %v418_v42, 0.0  ;;  %v420_v57 = vadd.f32 %v742_v38, %v350_v44  ;;  %542 = vst.msk [vmem:[%s760_s10 + $0x100] sm:$0xff] %vm509_vm0, %v477_v48  ;;  %543 = vst.msk [vmem:[%s760_s10 + $0x108] sm:$0xff] %vm509_vm0, %v478_v49  ;;  %v351_v58 = vmul.f32 %v724_v20, %v281_v40  ;;  %v352_v59 = vmul.f32 %v724_v20, %v282_v45  ;;  %v297_v42 = vld [vmem:[%s711_s28 + $0x1c0] sm:$0xff]  ;;  %v299_v48 = vld [vmem:[%s711_s28 + $0x1d0] sm:$0xff] }
  0x3d   : > { %544 = vst.msk [vmem:[%s760_s10 + $0x110] sm:$0xff] %vm509_vm0, %v479_v50  ;;  %545 = vst.msk [vmem:[%s760_s10 + $0x118] sm:$0xff] %vm509_vm0, %v480_v51  ;;  %v353_v60 = vmul.f32 %v724_v20, %v283_v46  ;;  %v354_v61 = vmul.f32 %v724_v20, %v284_v47  ;;  %v483_v0 = vmax.f32 %v419_v56, 0.0  ;;  %v355_v2 = vmul.f32 %v724_v20, %v285_v52  ;;  %v298_v47 = vld [vmem:[%s711_s28 + $0x1c8] sm:$0xff]  ;;  %v300_v49 = vld [vmem:[%s711_s28 + $0x1d8] sm:$0xff] }
  0x3e   : > { %546 = vst.msk [vmem:[%s760_s10 + $0x120] sm:$0xff] %vm509_vm0, %v481_v54  ;;  %547 = vst.msk [vmem:[%s760_s10 + $0x128] sm:$0xff] %vm509_vm0, %v482_v55  ;;  %v484_v1 = vmax.f32 %v420_v57, 0.0  ;;  %v356_v3 = vmul.f32 %v724_v20, %v286_v53  ;;  %v421_v4 = vadd.f32 %v742_v38, %v351_v58  ;;  %v422_v5 = vadd.f32 %v742_v38, %v352_v59  ;;  %v301_v54 = vld [vmem:[%s711_s28 + $0x1e0] sm:$0xff]  ;;  %v302_v55 = vld [vmem:[%s711_s28 + $0x1e8] sm:$0xff] }
  0x3f   : > { %v423_v6 = vadd.f32 %v742_v38, %v353_v60  ;;  %v424_v7 = vadd.f32 %v742_v38, %v354_v61  ;;  %548 = vst.msk [vmem:[%s760_s10 + $0x130] sm:$0xff] %vm509_vm0, %v483_v0  ;;  %v425_v9 = vadd.f32 %v742_v38, %v355_v2  ;;  %v357_v11 = vmul.f32 %v724_v20, %v287_v62  ;;  %v303_v0 = vld [vmem:[%s711_s28 + $0x1f0] sm:$0xff] }
  0x40   : > { %549 = vst.msk [vmem:[%s760_s10 + $0x138] sm:$0xff] %vm509_vm0, %v484_v1  ;;  %v426_v10 = vadd.f32 %v742_v38, %v356_v3  ;;  %v358_v12 = vmul.f32 %v724_v20, %v288_v63  ;;  %v485_v16 = vmax.f32 %v421_v4, 0.0  ;;  %v486_v17 = vmax.f32 %v422_v5, 0.0  ;;  %v304_v1 = vld [vmem:[%s711_s28 + $0x1f8] sm:$0xff] }
  0x41   : > { %v487_v18 = vmax.f32 %v423_v6, 0.0  ;;  %v488_v19 = vmax.f32 %v424_v7, 0.0  ;;  %v489_v23 = vmax.f32 %v425_v9, 0.0  ;;  %v427_v25 = vadd.f32 %v742_v38, %v357_v11 }
  0x42   : > { %v490_v24 = vmax.f32 %v426_v10, 0.0  ;;  %v428_v26 = vadd.f32 %v742_v38, %v358_v12  ;;  %550 = vst.msk [vmem:[%s760_s10 + $0x140] sm:$0xff] %vm509_vm0, %v485_v16  ;;  %551 = vst.msk [vmem:[%s760_s10 + $0x148] sm:$0xff] %vm509_vm0, %v486_v17  ;;  %v359_v27 = vmul.f32 %v724_v20, %v289_v8  ;;  %v360_v28 = vmul.f32 %v724_v20, %v290_v13 }
  0x43   : > { %552 = vst.msk [vmem:[%s760_s10 + $0x150] sm:$0xff] %vm509_vm0, %v487_v18  ;;  %553 = vst.msk [vmem:[%s760_s10 + $0x158] sm:$0xff] %vm509_vm0, %v488_v19  ;;  %v361_v29 = vmul.f32 %v724_v20, %v291_v14  ;;  %v362_v30 = vmul.f32 %v724_v20, %v292_v15  ;;  %v491_v33 = vmax.f32 %v427_v25, 0.0  ;;  %v363_v35 = vmul.f32 %v724_v20, %v293_v21 }
  0x44   : > { %554 = vst.msk [vmem:[%s760_s10 + $0x160] sm:$0xff] %vm509_vm0, %v489_v23  ;;  %555 = vst.msk [vmem:[%s760_s10 + $0x168] sm:$0xff] %vm509_vm0, %v490_v24  ;;  %v492_v34 = vmax.f32 %v428_v26, 0.0  ;;  %v364_v36 = vmul.f32 %v724_v20, %v294_v22  ;;  %v429_v37 = vadd.f32 %v742_v38, %v359_v27  ;;  %v430_v39 = vadd.f32 %v742_v38, %v360_v28 }
  0x45   : > { %v431_v40 = vadd.f32 %v742_v38, %v361_v29  ;;  %v432_v41 = vadd.f32 %v742_v38, %v362_v30  ;;  %556 = vst.msk [vmem:[%s760_s10 + $0x170] sm:$0xff] %vm509_vm0, %v491_v33  ;;  %v433_v43 = vadd.f32 %v742_v38, %v363_v35  ;;  %v365_v45 = vmul.f32 %v724_v20, %v295_v31 }
  0x46   : > { %557 = vst.msk [vmem:[%s760_s10 + $0x178] sm:$0xff] %vm509_vm0, %v492_v34  ;;  %v434_v44 = vadd.f32 %v742_v38, %v364_v36  ;;  %v366_v46 = vmul.f32 %v724_v20, %v296_v32  ;;  %v493_v50 = vmax.f32 %v429_v37, 0.0  ;;  %v494_v51 = vmax.f32 %v430_v39, 0.0 }
  0x47   : > { %v495_v52 = vmax.f32 %v431_v40, 0.0  ;;  %v496_v53 = vmax.f32 %v432_v41, 0.0  ;;  %v497_v56 = vmax.f32 %v433_v43, 0.0  ;;  %v435_v58 = vadd.f32 %v742_v38, %v365_v45 }
  0x48   : > { %v498_v57 = vmax.f32 %v434_v44, 0.0  ;;  %v436_v59 = vadd.f32 %v742_v38, %v366_v46  ;;  %558 = vst.msk [vmem:[%s760_s10 + $0x180] sm:$0xff] %vm509_vm0, %v493_v50  ;;  %559 = vst.msk [vmem:[%s760_s10 + $0x188] sm:$0xff] %vm509_vm0, %v494_v51  ;;  %v367_v60 = vmul.f32 %v724_v20, %v297_v42  ;;  %v368_v61 = vmul.f32 %v724_v20, %v298_v47 }
  0x49   : > { %560 = vst.msk [vmem:[%s760_s10 + $0x190] sm:$0xff] %vm509_vm0, %v495_v52  ;;  %561 = vst.msk [vmem:[%s760_s10 + $0x198] sm:$0xff] %vm509_vm0, %v496_v53  ;;  %v369_v62 = vmul.f32 %v724_v20, %v299_v48  ;;  %v370_v63 = vmul.f32 %v724_v20, %v300_v49  ;;  %v499_v2 = vmax.f32 %v435_v58, 0.0  ;;  %v371_v4 = vmul.f32 %v724_v20, %v301_v54 }
  0x4a   : > { %562 = vst.msk [vmem:[%s760_s10 + $0x1a0] sm:$0xff] %vm509_vm0, %v497_v56  ;;  %563 = vst.msk [vmem:[%s760_s10 + $0x1a8] sm:$0xff] %vm509_vm0, %v498_v57  ;;  %v500_v3 = vmax.f32 %v436_v59, 0.0  ;;  %v372_v5 = vmul.f32 %v724_v20, %v302_v55  ;;  %v437_v6 = vadd.f32 %v742_v38, %v367_v60  ;;  %v438_v7 = vadd.f32 %v742_v38, %v368_v61 }
  0x4b   : > { %v439_v8 = vadd.f32 %v742_v38, %v369_v62  ;;  %v440_v9 = vadd.f32 %v742_v38, %v370_v63  ;;  %564 = vst.msk [vmem:[%s760_s10 + $0x1b0] sm:$0xff] %vm509_vm0, %v499_v2  ;;  %v441_v10 = vadd.f32 %v742_v38, %v371_v4  ;;  %v373_v12 = vmul.f32 %v724_v20, %v303_v0 }
  0x4c   : > { %565 = vst.msk [vmem:[%s760_s10 + $0x1b8] sm:$0xff] %vm509_vm0, %v500_v3  ;;  %v442_v11 = vadd.f32 %v742_v38, %v372_v5  ;;  %v374_v13 = vmul.f32 %v724_v20, %v304_v1  ;;  %v501_v14 = vmax.f32 %v437_v6, 0.0  ;;  %v502_v15 = vmax.f32 %v438_v7, 0.0 }
  0x4d   : > { %v503_v16 = vmax.f32 %v439_v8, 0.0  ;;  %v504_v17 = vmax.f32 %v440_v9, 0.0  ;;  %v505_v18 = vmax.f32 %v441_v10, 0.0  ;;  %v443_v21 = vadd.f32 %v742_v38, %v373_v12 }
  0x4e   : > { %v506_v19 = vmax.f32 %v442_v11, 0.0  ;;  %v444_v22 = vadd.f32 %v742_v38, %v374_v13  ;;  %566 = vst.msk [vmem:[%s760_s10 + $0x1c0] sm:$0xff] %vm509_vm0, %v501_v14  ;;  %567 = vst.msk [vmem:[%s760_s10 + $0x1c8] sm:$0xff] %vm509_vm0, %v502_v15 }
  0x4f   : > { %568 = vst.msk [vmem:[%s760_s10 + $0x1d0] sm:$0xff] %vm509_vm0, %v503_v16  ;;  %569 = vst.msk [vmem:[%s760_s10 + $0x1d8] sm:$0xff] %vm509_vm0, %v504_v17  ;;  %v507_v20 = vmax.f32 %v443_v21, 0.0 }
  0x50   : > { %570 = vst.msk [vmem:[%s760_s10 + $0x1e0] sm:$0xff] %vm509_vm0, %v505_v18  ;;  %571 = vst.msk [vmem:[%s760_s10 + $0x1e8] sm:$0xff] %vm509_vm0, %v506_v19  ;;  %v508_v23 = vmax.f32 %v444_v22, 0.0 }
  0x51   : > { %572 = vst.msk [vmem:[%s760_s10 + $0x1f0] sm:$0xff] %vm509_vm0, %v507_v20 }
  0x52   : > { %573 = vst.msk [vmem:[%s760_s10 + $0x1f8] sm:$0xff] %vm509_vm0, %v508_v23 }
  0x53 PF: > { %s15_s18 = sadd.s32 1, %s657_s18  }
  0x54   : > { %p12_p4 = scmp.ge.s32.totalorder %s15_s18, 6  }
  0x56   :  { %14 = sbr.rel (!%p12_p4) target bundleno = 1 (0x1), region = 70 }

// kernel: net3d_forward.27
= control target key start
LH: loop header
LB: loop body
LE: loop exit
PB: predicated region body
PF: predicated region fallthrough
CT: control target
= control target key end

     0   :  { %s2035_s20 = smov 0   ;;  %s2513_s0 = inlined_call_operand.vmem [shape: f32[2048,20], index: 0, kind: input, shape index: {}]   ;;  %s2514_s1 = inlined_call_operand.vmem [shape: f32[20,128], index: 1, kind: input, shape index: {}]   ;;  %s2515_s2 = inlined_call_operand.vmem [shape: f32[1,128], index: 2, kind: input, shape index: {}]   ;;  %s2516_s3 = inlined_call_operand.vmem [shape: f32[128,1], index: 3, kind: input, shape index: {}]   ;;  %s2517_s4 = inlined_call_operand.<no memory space> [shape: f32[1,1], index: 4, kind: input, shape index: {}]   ;;  %s2518_s5 = inlined_call_operand.vmem [shape: f32[2048,1], index: 5, kind: output, shape index: {}]  }
   0x1   :  { %v10_v0 = vstv %s2517_s4 }
   0x2   :  { %11 = vst [vmem:[#allocation2] sm:$0x1] %v10_v0 }
   0x3 LB: > { %s1479_s21 = sadd.s32 4294967295, %s2000_s20   ;;  %p1483_p0 = scmp.ge.s32.totalorder %s2000_s20, 1  ;;  %s2000_s20 = sphi %s2035_s20, %s17_s20  }
   0x4   : > { %p190_p1 = scmp.lt.s32.totalorder %s2000_s20, 5 }
   0x6   : > { %p191_p2 = pnand %p1483_p0, %p190_p1 }
   0x7   : > { %v294_v1 = vld [vmem:[%s2514_s1] sm:$0xff] (!%p191_p2)  ;;  %v295_v2 = vld [vmem:[%s2514_s1 + $0x8] sm:$0xff] (!%p191_p2)  ;;  %s1484_s25 = sshll.u32 (!%p191_p2), %s1479_s21, 6  ;;  %v296_v4 = vld [vmem:[%s2514_s1 + $0x10] sm:$0xf] (!%p191_p2)  ;;  %vm497_vm0 = vcmask (!%p191_p2), 1043456  }
   0x8   : > { %194 = sbr.rel (%p191_p2) target bundleno = 578 (0x242), region = 40  ;;  %v1934_v3 = vpack.c.bf16 (!%p191_p2), %v295_v2, %v294_v1  ;;  %p219_p3 = scmp.lt.s32.totalorder (!%p191_p2), %s1484_s25, 255  ;;  %vm304_vm1 = vcmask (!%p191_p2), 162816   ;;  %v950_v5 = vld [vmem:[%s2516_s3] sm:$0xff] (!%p191_p2)  ;;  %v951_v6 = vld [vmem:[%s2516_s3 + $0x8] sm:$0xff] (!%p191_p2)  ;;  %v952_v7 = vld [vmem:[%s2516_s3 + $0x10] sm:$0xff] (!%p191_p2) }
   0x9   : > { %v1938_v8 = vpack.c.bf16 (!%p191_p2), %v951_v6, %v950_v5  ;;  %v953_v9 = vld [vmem:[%s2516_s3 + $0x18] sm:$0xff] (!%p191_p2)  ;;  %v954_v14 = vld [vmem:[%s2516_s3 + $0x20] sm:$0xff] (!%p191_p2)  ;;  %v955_v15 = vld [vmem:[%s2516_s3 + $0x28] sm:$0xff] (!%p191_p2)  ;;  %vm1358_vm2 = vcmask (!%p191_p2), 7168  }
   0xa   : > { %1935 = vmatprep.subr.bf16.mxu0 (!%p191_p2), %v1934_v3  ;;  %v1942_v13 = vpack.c.bf16 (!%p191_p2), %v953_v9, %v952_v7  ;;  %v1946_v18 = vpack.c.bf16 (!%p191_p2), %v955_v15, %v954_v14  ;;  %v956_v27 = vld [vmem:[%s2516_s3 + $0x30] sm:$0xff] (!%p191_p2)  ;;  %v957_v28 = vld [vmem:[%s2516_s3 + $0x38] sm:$0xff] (!%p191_p2)  ;;  %v958_v30 = vld [vmem:[%s2516_s3 + $0x40] sm:$0xff] (!%p191_p2) }
   0xb   : > { %1937 = vmatpush3.bf16.msra.mxu0 (!%p191_p2), %v1934_v3  ;;  %1970 = vmatprep.subr.bf16.mxu1 (!%p191_p2), %v1938_v8  ;;  %v1950_v29 = vpack.c.bf16 (!%p191_p2), %v957_v28, %v956_v27  ;;  %v959_v31 = vld [vmem:[%s2516_s3 + $0x48] sm:$0xff] (!%p191_p2)  ;;  %v960_v34 = vld [vmem:[%s2516_s3 + $0x50] sm:$0xff] (!%p191_p2)  ;;  %v961_v35 = vld [vmem:[%s2516_s3 + $0x58] sm:$0xff] (!%p191_p2) }
   0xc   : > { %1708 = vmatprep.subr.msk.mxu0 (!%p191_p2), %vm497_vm0, %v296_v4  ;;  %1978 = vmatpush3.bf16.msra.mxu1 (!%p191_p2), %v1938_v8  ;;  %v1954_v33 = vpack.c.bf16 (!%p191_p2), %v959_v31, %v958_v30  ;;  %v1958_v37 = vpack.c.bf16 (!%p191_p2), %v961_v35, %v960_v34  ;;  %v962_v39 = vld [vmem:[%s2516_s3 + $0x60] sm:$0xff] (!%p191_p2)  ;;  %v963_v40 = vld [vmem:[%s2516_s3 + $0x68] sm:$0xff] (!%p191_p2)  ;;  %v964_v7 = vld [vmem:[%s2516_s3 + $0x70] sm:$0xff] (!%p191_p2) }
   0xd   : > { %1971 = vmatprep.subr.bf16.mxu1 (!%p191_p2), %v1942_v13  ;;  %v1962_v42 = vpack.c.bf16 (!%p191_p2), %v963_v40, %v962_v39 }
   0xf   : > { %s2520_s25 = smov (!%p219_p3, %s1484_s25), 255  ;;  %1709 = vmatpush3.msk.msra.mxu0 %vm497_vm0, %v296_v4 }
  0x10   : > { %s1485_s28 = sshll.u32 %s2520_s25, 3  ;;  %1939 = vmatprep.subr.bf16.mxu0 %v1938_v8  ;;  %1979 = vmatpush3.bf16.msra.mxu1 %v1942_v13 }
  0x11   : > { %s2070_s12 = scalar_lea.vmem %s2513_s0, %s1485_s28  ;;  %1972 = vmatprep.subr.bf16.mxu1 %v1946_v18  ;;  %s2316_s21 = scalar_lea.vmem %s2518_s5, %s1485_s28 }
  0x12   : > { %v230_v10 = vld [vmem:[%s2070_s12] sm:$0xff]  ;;  %v231_v11 = vld [vmem:[%s2070_s12 + $0x8] sm:$0xff]  ;;  %v232_v12 = vld [vmem:[%s2070_s12 + $0x10] sm:$0xff] }
  0x13   : > { %1710 = vmatprep.mubr.msk.f32.mxu0 %vm304_vm1, %v230_v10  ;;  %v233_v16 = vld [vmem:[%s2070_s12 + $0x18] sm:$0xff]  ;;  %v234_v17 = vld [vmem:[%s2070_s12 + $0x20] sm:$0xff]  ;;  %v235_v19 = vld [vmem:[%s2070_s12 + $0x28] sm:$0xff] }
  0x14   : > { %1711 = vmatmul.mubr.msk.f32.vlgmr.msra.gmra.mrb[0].mxu0 %vm304_vm1, %v231_v11  ;;  %v236_v20 = vld [vmem:[%s2070_s12 + $0x30] sm:$0xff]  ;;  %v237_v21 = vld [vmem:[%s2070_s12 + $0x38] sm:$0xff]  ;;  %v238_v22 = vld [vmem:[%s2070_s12 + $0x40] sm:$0xff]  ;;  %1980 = vmatpush3.bf16.msra.mxu1 %v1946_v18 }
  0x15   : > { %1713 = vmatprep.mubr.msk.f32.mxu0 %vm304_vm1, %v232_v12  ;;  %1941 = vmatpush3.bf16.msra.mxu0 %v1938_v8  ;;  %v239_v23 = vld [vmem:[%s2070_s12 + $0x48] sm:$0xff]  ;;  %v240_v24 = vld [vmem:[%s2070_s12 + $0x50] sm:$0xff]  ;;  %v241_v25 = vld [vmem:[%s2070_s12 + $0x58] sm:$0xff] }
  0x16   : > { %1943 = vmatprep.subr.bf16.mxu0 %v1942_v13  ;;  %v242_v26 = vld [vmem:[%s2070_s12 + $0x60] sm:$0xff]  ;;  %v243_v32 = vld [vmem:[%s2070_s12 + $0x68] sm:$0xff]  ;;  %v244_v36 = vld [vmem:[%s2070_s12 + $0x70] sm:$0xff]  ;;  %1973 = vmatprep.subr.bf16.mxu1 %v1950_v29 }
  0x17   : > { %v245_v38 = vld [vmem:[%s2070_s12 + $0x78] sm:$0xff]  ;;  %v246_v41 = vld [vmem:[%s2070_s12 + $0x80] sm:$0xff]  ;;  %v247_v43 = vld [vmem:[%s2070_s12 + $0x88] sm:$0xff] }
  0x18   : > { %1714 = vmatmul.mubr.msk.f32.gmra.mrb[2].mxu0 %vm304_vm1, %v233_v16  ;;  %1981 = vmatpush3.bf16.msra.mxu1 %v1950_v29  ;;  %v248_v44 = vld [vmem:[%s2070_s12 + $0x90] sm:$0xff]  ;;  %v249_v45 = vld [vmem:[%s2070_s12 + $0x98] sm:$0xff]  ;;  %v250_v46 = vld [vmem:[%s2070_s12 + $0xa0] sm:$0xff] }
  0x19   : > { %1716 = vmatprep.mubr.msk.f32.mxu0 %vm304_vm1, %v234_v17  ;;  %1945 = vmatpush3.bf16.msra.mxu0 %v1942_v13  ;;  %v251_v47 = vld [vmem:[%s2070_s12 + $0xa8] sm:$0xff]  ;;  %v252_v48 = vld [vmem:[%s2070_s12 + $0xb0] sm:$0xff]  ;;  %v253_v49 = vld [vmem:[%s2070_s12 + $0xb8] sm:$0xff] }
  0x1a   : > { %1947 = vmatprep.subr.bf16.mxu0 %v1946_v18  ;;  %1974 = vmatprep.subr.bf16.mxu1 %v1954_v33  ;;  %v254_v50 = vld [vmem:[%s2070_s12 + $0xc0] sm:$0xff]  ;;  %v255_v51 = vld [vmem:[%s2070_s12 + $0xc8] sm:$0xff]  ;;  %v256_v52 = vld [vmem:[%s2070_s12 + $0xd0] sm:$0xff] }
  0x1b   : > { %v257_v53 = vld [vmem:[%s2070_s12 + $0xd8] sm:$0xff]  ;;  %v258_v54 = vld [vmem:[%s2070_s12 + $0xe0] sm:$0xff]  ;;  %v259_v55 = vld [vmem:[%s2070_s12 + $0xe8] sm:$0xff] }
  0x1c   : > { %1717 = vmatmul.mubr.msk.f32.gmra.mrb[4].mxu0 %vm304_vm1, %v235_v19  ;;  %1982 = vmatpush3.bf16.msra.mxu1 %v1954_v33  ;;  %v260_v56 = vld [vmem:[%s2070_s12 + $0xf0] sm:$0xff]  ;;  %v261_v57 = vld [vmem:[%s2070_s12 + $0xf8] sm:$0xff]  ;;  %v262_v58 = vld [vmem:[%s2070_s12 + $0x100] sm:$0xff] }
  0x1d   : > { %1719 = vmatprep.mubr.msk.f32.mxu0 %vm304_vm1, %v236_v20  ;;  %1949 = vmatpush3.bf16.msra.mxu0 %v1946_v18  ;;  %v263_v59 = vld [vmem:[%s2070_s12 + $0x108] sm:$0xff]  ;;  %v264_v60 = vld [vmem:[%s2070_s12 + $0x110] sm:$0xff]  ;;  %v265_v61 = vld [vmem:[%s2070_s12 + $0x118] sm:$0xff] }
  0x1e   : > { %1951 = vmatprep.subr.bf16.mxu0 %v1950_v29  ;;  %1975 = vmatprep.subr.bf16.mxu1 %v1958_v37  ;;  %v266_v62 = vld [vmem:[%s2070_s12 + $0x120] sm:$0xff]  ;;  %v267_v63 = vld [vmem:[%s2070_s12 + $0x128] sm:$0xff]  ;;  %v268_v0 = vld [vmem:[%s2070_s12 + $0x130] sm:$0xff] }
  0x1f   : > { %v269_v1 = vld [vmem:[%s2070_s12 + $0x138] sm:$0xff]  ;;  %v270_v2 = vld [vmem:[%s2070_s12 + $0x140] sm:$0xff]  ;;  %v271_v3 = vld [vmem:[%s2070_s12 + $0x148] sm:$0xff] }
  0x20   : > { %1720 = vmatmul.mubr.msk.f32.gmra.mrb[6].mxu0 %vm304_vm1, %v237_v21  ;;  %1983 = vmatpush3.bf16.msra.mxu1 %v1958_v37  ;;  %v272_v4 = vld [vmem:[%s2070_s12 + $0x150] sm:$0xff]  ;;  %v273_v5 = vld [vmem:[%s2070_s12 + $0x158] sm:$0xff]  ;;  %v274_v6 = vld [vmem:[%s2070_s12 + $0x160] sm:$0xff] }
  0x21   : > { %1722 = vmatprep.mubr.msk.f32.mxu0 %vm304_vm1, %v238_v22  ;;  %1953 = vmatpush3.bf16.msra.mxu0 %v1950_v29  ;;  %v965_v8 = vld [vmem:[%s2516_s3 + $0x78] sm:$0xff]  ;;  %v275_v10 = vld [vmem:[%s2070_s12 + $0x168] sm:$0xff]  ;;  %v276_v11 = vld [vmem:[%s2070_s12 + $0x170] sm:$0xff] }
  0x22   : > { %1955 = vmatprep.subr.bf16.mxu0 %v1954_v33  ;;  %1976 = vmatprep.subr.bf16.mxu1 %v1962_v42  ;;  %v1966_v9 = vpack.c.bf16 %v965_v8, %v964_v7  ;;  %v277_v12 = vld [vmem:[%s2070_s12 + $0x178] sm:$0xff]  ;;  %v278_v13 = vld [vmem:[%s2070_s12 + $0x180] sm:$0xff]  ;;  %v279_v14 = vld [vmem:[%s2070_s12 + $0x188] sm:$0xff] }
  0x23   : > { %v280_v15 = vld [vmem:[%s2070_s12 + $0x190] sm:$0xff]  ;;  %v281_v16 = vld [vmem:[%s2070_s12 + $0x198] sm:$0xff]  ;;  %v282_v17 = vld [vmem:[%s2070_s12 + $0x1a0] sm:$0xff] }
  0x24   : > { %1723 = vmatmul.mubr.msk.f32.gmra.mrb[8].mxu0 %vm304_vm1, %v239_v23  ;;  %1984 = vmatpush3.bf16.msra.mxu1 %v1962_v42  ;;  %v283_v18 = vld [vmem:[%s2070_s12 + $0x1a8] sm:$0xff]  ;;  %v284_v19 = vld [vmem:[%s2070_s12 + $0x1b0] sm:$0xff]  ;;  %v285_v20 = vld [vmem:[%s2070_s12 + $0x1b8] sm:$0xff] }
  0x25   : > { %1725 = vmatprep.mubr.msk.f32.mxu0 %vm304_vm1, %v240_v24  ;;  %1957 = vmatpush3.bf16.msra.mxu0 %v1954_v33  ;;  %v286_v21 = vld [vmem:[%s2070_s12 + $0x1c0] sm:$0xff]  ;;  %v287_v22 = vld [vmem:[%s2070_s12 + $0x1c8] sm:$0xff]  ;;  %v288_v23 = vld [vmem:[%s2070_s12 + $0x1d0] sm:$0xff] }
  0x26   : > { %1959 = vmatprep.subr.bf16.mxu0 %v1958_v37  ;;  %1977 = vmatprep.subr.bf16.mxu1 %v1966_v9  ;;  %v289_v24 = vld [vmem:[%s2070_s12 + $0x1d8] sm:$0xff]  ;;  %v292_v27 = vld [vmem:[%s2070_s12 + $0x1f0] sm:$0xff]  ;;  %v2243_v29 = vld [vmem:[%s2515_s2] ss:$0 sm:$0xff] }
  0x27   : > { %v293_v28 = vld [vmem:[%s2070_s12 + $0x1f8] sm:$0xff] }
  0x28   : > { %1726 = vmatmul.mubr.msk.f32.gmra.mrb[10].mxu0 %vm304_vm1, %v241_v25  ;;  %1985 = vmatpush3.bf16.msra.mxu1 %v1966_v9  ;;  %v290_v25 = vld [vmem:[%s2070_s12 + $0x1e0] sm:$0xff] }
  0x29   : > { %1728 = vmatprep.mubr.msk.f32.mxu0 %vm304_vm1, %v242_v26  ;;  %1961 = vmatpush3.bf16.msra.mxu0 %v1958_v37  ;;  %v291_v26 = vld [vmem:[%s2070_s12 + $0x1e8] sm:$0xff] }
  0x2a   : > { %1963 = vmatprep.subr.bf16.mxu0 %v1962_v42 }
  0x2c   : > { %1729 = vmatmul.mubr.msk.f32.gmra.mrb[12].mxu0 %vm304_vm1, %v243_v32 }
  0x2d   : > { %1731 = vmatprep.mubr.msk.f32.mxu0 %vm304_vm1, %v244_v36  ;;  %1965 = vmatpush3.bf16.msra.mxu0 %v1962_v42 }
  0x2e   : > { %1967 = vmatprep.subr.bf16.mxu0 %v1966_v9 }
  0x30   : > { %1732 = vmatmul.mubr.msk.f32.gmra.mrb[14].mxu0 %vm304_vm1, %v245_v38 }
  0x31   : > { %1734 = vmatprep.mubr.msk.f32.mxu0 %vm304_vm1, %v246_v41  ;;  %1969 = vmatpush3.bf16.msra.mxu0 %v1966_v9 }
  0x34   : > { %1735 = vmatmul.mubr.msk.f32.gmra.mrb[16].mxu0 %vm304_vm1, %v247_v43 }
  0x35   : > { %1737 = vmatprep.mubr.msk.f32.mxu0 %vm304_vm1, %v248_v44 }
  0x38   : > { %1738 = vmatmul.mubr.msk.f32.gmra.mrb[18].mxu0 %vm304_vm1, %v249_v45 }
  0x39   : > { %1740 = vmatprep.mubr.msk.f32.mxu0 %vm304_vm1, %v250_v46 }
  0x3c   : > { %1741 = vmatmul.mubr.msk.f32.gmra.mrb[20].mxu0 %vm304_vm1, %v251_v47 }
  0x3d   : > { %1743 = vmatprep.mubr.msk.f32.mxu0 %vm304_vm1, %v252_v48 }
  0x40   : > { %1744 = vmatmul.mubr.msk.f32.gmra.mrb[22].mxu0 %vm304_vm1, %v253_v49 }
  0x41   : > { %1746 = vmatprep.mubr.msk.f32.mxu0 %vm304_vm1, %v254_v50 }
  0x44   : > { %1747 = vmatmul.mubr.msk.f32.gmra.mrb[24].mxu0 %vm304_vm1, %v255_v51 }
  0x45   : > { %1749 = vmatprep.mubr.msk.f32.mxu0 %vm304_vm1, %v256_v52 }
  0x48   : > { %1750 = vmatmul.mubr.msk.f32.gmra.mrb[26].mxu0 %vm304_vm1, %v257_v53 }
  0x49   : > { %1752 = vmatprep.mubr.msk.f32.mxu0 %vm304_vm1, %v258_v54 }
  0x4c   : > { %1753 = vmatmul.mubr.msk.f32.gmra.mrb[28].mxu0 %vm304_vm1, %v259_v55 }
  0x4d   : > { %1755 = vmatprep.mubr.msk.f32.mxu0 %vm304_vm1, %v260_v56 }
  0x50   : > { %1756 = vmatmul.mubr.msk.f32.gmra.mrb[30].mxu0 %vm304_vm1, %v261_v57 }
  0x51   : > { %1758 = vmatprep.mubr.msk.f32.mxu0 %vm304_vm1, %v262_v58 }
  0x54   : > { %1759 = vmatmul.mubr.msk.f32.gmra.mrb[32].mxu0 %vm304_vm1, %v263_v59 }
  0x55   : > { %1761 = vmatprep.mubr.msk.f32.mxu0 %vm304_vm1, %v264_v60 }
  0x58   : > { %1762 = vmatmul.mubr.msk.f32.gmra.mrb[34].mxu0 %vm304_vm1, %v265_v61 }
  0x59   : > { %1764 = vmatprep.mubr.msk.f32.mxu0 %vm304_vm1, %v266_v62 }
  0x5c   : > { %1765 = vmatmul.mubr.msk.f32.gmra.mrb[36].mxu0 %vm304_vm1, %v267_v63 }
  0x5d   : > { %1767 = vmatprep.mubr.msk.f32.mxu0 %vm304_vm1, %v268_v0 }
  0x60   : > { %1768 = vmatmul.mubr.msk.f32.gmra.mrb[38].mxu0 %vm304_vm1, %v269_v1 }
  0x61   : > { %1770 = vmatprep.mubr.msk.f32.mxu0 %vm304_vm1, %v270_v2 }
  0x64   : > { %1771 = vmatmul.mubr.msk.f32.gmra.mrb[40].mxu0 %vm304_vm1, %v271_v3 }
  0x65   : > { %1773 = vmatprep.mubr.msk.f32.mxu0 %vm304_vm1, %v272_v4 }
  0x68   : > { %1774 = vmatmul.mubr.msk.f32.gmra.mrb[42].mxu0 %vm304_vm1, %v273_v5 }
  0x69   : > { %1776 = vmatprep.mubr.msk.f32.mxu0 %vm304_vm1, %v274_v6 }
  0x6c   : > { %1777 = vmatmul.mubr.msk.f32.gmra.mrb[44].mxu0 %vm304_vm1, %v275_v10 }
  0x6d   : > { %1779 = vmatprep.mubr.msk.f32.mxu0 %vm304_vm1, %v276_v11 }
  0x70   : > { %1780 = vmatmul.mubr.msk.f32.gmra.mrb[46].mxu0 %vm304_vm1, %v277_v12 }
  0x71   : > { %1782 = vmatprep.mubr.msk.f32.mxu0 %vm304_vm1, %v278_v13 }
  0x74   : > { %1783 = vmatmul.mubr.msk.f32.gmra.mrb[48].mxu0 %vm304_vm1, %v279_v14 }
  0x75   : > { %1785 = vmatprep.mubr.msk.f32.mxu0 %vm304_vm1, %v280_v15 }
  0x78   : > { %1786 = vmatmul.mubr.msk.f32.gmra.mrb[50].mxu0 %vm304_vm1, %v281_v16 }
  0x79   : > { %1788 = vmatprep.mubr.msk.f32.mxu0 %vm304_vm1, %v282_v17 }
  0x7c   : > { %1789 = vmatmul.mubr.msk.f32.gmra.mrb[52].mxu0 %vm304_vm1, %v283_v18 }
  0x7d   : > { %1791 = vmatprep.mubr.msk.f32.mxu0 %vm304_vm1, %v284_v19 }
  0x80   : > { %1792 = vmatmul.mubr.msk.f32.gmra.mrb[54].mxu0 %vm304_vm1, %v285_v20 }
  0x81   : > { %1794 = vmatprep.mubr.msk.f32.mxu0 %vm304_vm1, %v286_v21 }
  0x84   : > { %1795 = vmatmul.mubr.msk.f32.gmra.mrb[56].mxu0 %vm304_vm1, %v287_v22 }
  0x85   : > { %1797 = vmatprep.mubr.msk.f32.mxu0 %vm304_vm1, %v288_v23 }
  0x88   : > { %1798 = vmatmul.mubr.msk.f32.gmra.mrb[58].mxu0 %vm304_vm1, %v289_v24 }
  0x89   : > { %1800 = vmatprep.mubr.msk.f32.mxu0 %vm304_vm1, %v290_v25 }
  0x8c   : > { %1801 = vmatmul.mubr.msk.f32.gmra.mrb[60].mxu0 %vm304_vm1, %v291_v26 }
  0x8d   : > { %1803 = vmatprep.mubr.msk.f32.mxu0 %vm304_vm1, %v292_v27 }
  0x90   : > { %1804 = vmatmul.mubr.msk.f32.gmra.mrb[62].mxu0 %vm304_vm1, %v293_v28 }
  0xe7   : > { %v1712_v30 = vpop.f32.mrb[0].mxu0 }
  0xe8   : > { %v573_v31 = vadd.f32 %v1712_v30, %v2243_v29  ;;  %v567_v32 = vpop.f32.mrb[1].mxu0 }
  0xe9   : > { %v568_v33 = vadd.f32 %v2243_v29, %v567_v32 }
  0xea   : > { %v887_v36 = vmax.f32 %v573_v31, 0.0 }
  0xeb   : > { %v886_v34 = vmax.f32 %v568_v33, 0.0  ;;  %v1715_v35 = vpop.f32.mrb[2].mxu0 }
  0xec   : > { %v583_v37 = vadd.f32 %v1715_v35, %v2243_v29  ;;  %v577_v38 = vpop.f32.mrb[3].mxu0 }
  0xed   : > { %v578_v39 = vadd.f32 %v2243_v29, %v577_v38  ;;  %1838 = vmatprep.mubr.f32.mxu0 %v886_v34 }
  0xee   : > { %1839 = vmatmul.mubr.f32.vlgmr.msra.gmra.mrb[64].mxu0 %v887_v36  ;;  %v889_v42 = vmax.f32 %v583_v37, 0.0 }
  0xef   : > { %v888_v40 = vmax.f32 %v578_v39, 0.0  ;;  %v1718_v41 = vpop.f32.mrb[4].mxu0 }
  0xf0   : > { %v593_v43 = vadd.f32 %v1718_v41, %v2243_v29  ;;  %v587_v44 = vpop.f32.mrb[5].mxu0 }
  0xf1   : > { %v588_v45 = vadd.f32 %v2243_v29, %v587_v44  ;;  %1841 = vmatprep.mubr.f32.mxu0 %v888_v40 }
  0xf2   : > { %1842 = vmatmul.mubr.f32.gmra.mrb[66].mxu0 %v889_v42  ;;  %v891_v48 = vmax.f32 %v593_v43, 0.0 }
  0xf3   : > { %v890_v46 = vmax.f32 %v588_v45, 0.0  ;;  %v1721_v47 = vpop.f32.mrb[6].mxu0 }
  0xf4   : > { %v603_v49 = vadd.f32 %v1721_v47, %v2243_v29  ;;  %v597_v50 = vpop.f32.mrb[7].mxu0 }
  0xf5   : > { %1844 = vmatprep.mubr.f32.mxu0 %v890_v46  ;;  %v598_v51 = vadd.f32 %v2243_v29, %v597_v50 }
  0xf6   : > { %1845 = vmatmul.mubr.f32.gmra.mrb[68].mxu0 %v891_v48  ;;  %v893_v54 = vmax.f32 %v603_v49, 0.0 }
  0xf7   : > { %v1724_v52 = vpop.f32.mrb[8].mxu0  ;;  %v892_v53 = vmax.f32 %v598_v51, 0.0 }
  0xf8   : > { %v613_v55 = vadd.f32 %v1724_v52, %v2243_v29  ;;  %v607_v56 = vpop.f32.mrb[9].mxu0 }
  0xf9   : > { %v608_v57 = vadd.f32 %v2243_v29, %v607_v56  ;;  %1847 = vmatprep.mubr.f32.mxu1 %v892_v53 }
  0xfa   : > { %1848 = vmatmul.mubr.f32.vlgmr.msra.gmra.mrb[0].mxu1 %v893_v54  ;;  %v895_v60 = vmax.f32 %v613_v55, 0.0 }
  0xfb   : > { %v894_v58 = vmax.f32 %v608_v57, 0.0  ;;  %v1727_v59 = vpop.f32.mrb[10].mxu0 }
  0xfc   : > { %v623_v61 = vadd.f32 %v1727_v59, %v2243_v29  ;;  %v617_v62 = vpop.f32.mrb[11].mxu0 }
  0xfd   : > { %v618_v63 = vadd.f32 %v2243_v29, %v617_v62  ;;  %1850 = vmatprep.mubr.f32.mxu1 %v894_v58 }
  0xfe   : > { %1851 = vmatmul.mubr.f32.gmra.mrb[2].mxu1 %v895_v60  ;;  %v897_v2 = vmax.f32 %v623_v61, 0.0 }
  0xff   : > { %v896_v0 = vmax.f32 %v618_v63, 0.0  ;;  %v1730_v1 = vpop.f32.mrb[12].mxu0 }
 0x100   : > { %v633_v3 = vadd.f32 %v1730_v1, %v2243_v29  ;;  %v627_v4 = vpop.f32.mrb[13].mxu0 }
 0x101   : > { %v628_v5 = vadd.f32 %v2243_v29, %v627_v4  ;;  %1853 = vmatprep.mubr.f32.mxu1 %v896_v0 }
 0x102   : > { %1854 = vmatmul.mubr.f32.gmra.mrb[4].mxu1 %v897_v2  ;;  %v899_v8 = vmax.f32 %v633_v3, 0.0 }
 0x103   : > { %v898_v6 = vmax.f32 %v628_v5, 0.0  ;;  %v1733_v7 = vpop.f32.mrb[14].mxu0 }
 0x104   : > { %v643_v9 = vadd.f32 %v1733_v7, %v2243_v29  ;;  %v637_v10 = vpop.f32.mrb[15].mxu0 }
 0x105   : > { %v638_v11 = vadd.f32 %v2243_v29, %v637_v10  ;;  %1856 = vmatprep.mubr.f32.mxu1 %v898_v6 }
 0x106   : > { %1857 = vmatmul.mubr.f32.gmra.mrb[6].mxu1 %v899_v8  ;;  %v901_v14 = vmax.f32 %v643_v9, 0.0 }
 0x107   : > { %v900_v12 = vmax.f32 %v638_v11, 0.0  ;;  %v1736_v13 = vpop.f32.mrb[16].mxu0 }
 0x108   : > { %v653_v15 = vadd.f32 %v1736_v13, %v2243_v29  ;;  %v647_v16 = vpop.f32.mrb[17].mxu0 }
 0x109   : > { %v648_v17 = vadd.f32 %v2243_v29, %v647_v16  ;;  %1859 = vmatprep.mubr.f32.mxu1 %v900_v12 }
 0x10a   : > { %1860 = vmatmul.mubr.f32.gmra.mrb[8].mxu1 %v901_v14  ;;  %v903_v20 = vmax.f32 %v653_v15, 0.0 }
 0x10b   : > { %v902_v18 = vmax.f32 %v648_v17, 0.0  ;;  %v1739_v19 = vpop.f32.mrb[18].mxu0 }
 0x10c   : > { %v663_v21 = vadd.f32 %v1739_v19, %v2243_v29  ;;  %v657_v22 = vpop.f32.mrb[19].mxu0 }
 0x10d   : > { %v658_v23 = vadd.f32 %v2243_v29, %v657_v22  ;;  %1862 = vmatprep.mubr.f32.mxu1 %v902_v18 }
 0x10e   : > { %1863 = vmatmul.mubr.f32.gmra.mrb[10].mxu1 %v903_v20  ;;  %v905_v26 = vmax.f32 %v663_v21, 0.0 }
 0x10f   : > { %v904_v24 = vmax.f32 %v658_v23, 0.0  ;;  %v1742_v25 = vpop.f32.mrb[20].mxu0 }
 0x110   : > { %v673_v27 = vadd.f32 %v1742_v25, %v2243_v29  ;;  %v667_v28 = vpop.f32.mrb[21].mxu0 }
 0x111   : > { %v668_v30 = vadd.f32 %v2243_v29, %v667_v28  ;;  %1865 = vmatprep.mubr.f32.mxu1 %v904_v24 }
 0x112   : > { %1866 = vmatmul.mubr.f32.gmra.mrb[12].mxu1 %v905_v26  ;;  %v907_v33 = vmax.f32 %v673_v27, 0.0 }
 0x113   : > { %v906_v31 = vmax.f32 %v668_v30, 0.0  ;;  %v1745_v32 = vpop.f32.mrb[22].mxu0 }
 0x114   : > { %v683_v34 = vadd.f32 %v1745_v32, %v2243_v29  ;;  %v677_v35 = vpop.f32.mrb[23].mxu0 }
 0x115   : > { %v678_v36 = vadd.f32 %v2243_v29, %v677_v35  ;;  %1868 = vmatprep.mubr.f32.mxu1 %v906_v31 }
 0x116   : > { %1869 = vmatmul.mubr.f32.gmra.mrb[14].mxu1 %v907_v33  ;;  %v909_v39 = vmax.f32 %v683_v34, 0.0 }
 0x117   : > { %v908_v37 = vmax.f32 %v678_v36, 0.0  ;;  %v1748_v38 = vpop.f32.mrb[24].mxu0 }
 0x118   : > { %v693_v40 = vadd.f32 %v1748_v38, %v2243_v29  ;;  %v687_v41 = vpop.f32.mrb[25].mxu0 }
 0x119   : > { %v688_v42 = vadd.f32 %v2243_v29, %v687_v41  ;;  %1871 = vmatprep.mubr.f32.mxu1 %v908_v37 }
 0x11a   : > { %1872 = vmatmul.mubr.f32.gmra.mrb[16].mxu1 %v909_v39  ;;  %v911_v45 = vmax.f32 %v693_v40, 0.0 }
 0x11b   : > { %v910_v43 = vmax.f32 %v688_v42, 0.0  ;;  %v1751_v44 = vpop.f32.mrb[26].mxu0 }
 0x11c   : > { %v703_v46 = vadd.f32 %v1751_v44, %v2243_v29  ;;  %v697_v47 = vpop.f32.mrb[27].mxu0 }
 0x11d   : > { %v698_v48 = vadd.f32 %v2243_v29, %v697_v47  ;;  %1874 = vmatprep.mubr.f32.mxu1 %v910_v43 }
 0x11e   : > { %1875 = vmatmul.mubr.f32.gmra.mrb[18].mxu1 %v911_v45  ;;  %v913_v51 = vmax.f32 %v703_v46, 0.0 }
 0x11f   : > { %v912_v49 = vmax.f32 %v698_v48, 0.0  ;;  %v1754_v50 = vpop.f32.mrb[28].mxu0 }
 0x120   : > { %v713_v52 = vadd.f32 %v1754_v50, %v2243_v29  ;;  %v707_v53 = vpop.f32.mrb[29].mxu0 }
 0x121   : > { %v708_v54 = vadd.f32 %v2243_v29, %v707_v53  ;;  %1877 = vmatprep.mubr.f32.mxu1 %v912_v49 }
 0x122   : > { %1878 = vmatmul.mubr.f32.gmra.mrb[20].mxu1 %v913_v51  ;;  %v915_v57 = vmax.f32 %v713_v52, 0.0 }
 0x123   : > { %v914_v55 = vmax.f32 %v708_v54, 0.0  ;;  %v1757_v56 = vpop.f32.mrb[30].mxu0 }
 0x124   : > { %v723_v58 = vadd.f32 %v1757_v56, %v2243_v29  ;;  %v717_v59 = vpop.f32.mrb[31].mxu0 }
 0x125   : > { %v718_v60 = vadd.f32 %v2243_v29, %v717_v59  ;;  %1880 = vmatprep.mubr.f32.mxu1 %v914_v55 }
 0x126   : > { %1881 = vmatmul.mubr.f32.gmra.mrb[22].mxu1 %v915_v57  ;;  %v917_v63 = vmax.f32 %v723_v58, 0.0 }
 0x127   : > { %v916_v61 = vmax.f32 %v718_v60, 0.0  ;;  %v1760_v62 = vpop.f32.mrb[32].mxu0 }
 0x128   : > { %v733_v0 = vadd.f32 %v1760_v62, %v2243_v29  ;;  %v727_v1 = vpop.f32.mrb[33].mxu0 }
 0x129   : > { %v728_v2 = vadd.f32 %v2243_v29, %v727_v1  ;;  %1883 = vmatprep.mubr.f32.mxu1 %v916_v61 }
 0x12a   : > { %1884 = vmatmul.mubr.f32.gmra.mrb[24].mxu1 %v917_v63  ;;  %v919_v5 = vmax.f32 %v733_v0, 0.0 }
 0x12b   : > { %v918_v3 = vmax.f32 %v728_v2, 0.0  ;;  %v1763_v4 = vpop.f32.mrb[34].mxu0 }
 0x12c   : > { %v743_v6 = vadd.f32 %v1763_v4, %v2243_v29  ;;  %v737_v7 = vpop.f32.mrb[35].mxu0 }
 0x12d   : > { %v738_v8 = vadd.f32 %v2243_v29, %v737_v7  ;;  %1886 = vmatprep.mubr.f32.mxu1 %v918_v3 }
 0x12e   : > { %1887 = vmatmul.mubr.f32.gmra.mrb[26].mxu1 %v919_v5  ;;  %v921_v11 = vmax.f32 %v743_v6, 0.0 }
 0x12f   : > { %v920_v9 = vmax.f32 %v738_v8, 0.0  ;;  %v1766_v10 = vpop.f32.mrb[36].mxu0 }
 0x130   : > { %v753_v12 = vadd.f32 %v1766_v10, %v2243_v29  ;;  %v747_v13 = vpop.f32.mrb[37].mxu0 }
 0x131   : > { %v748_v14 = vadd.f32 %v2243_v29, %v747_v13  ;;  %1889 = vmatprep.mubr.f32.mxu1 %v920_v9 }
 0x132   : > { %1890 = vmatmul.mubr.f32.gmra.mrb[28].mxu1 %v921_v11  ;;  %v923_v17 = vmax.f32 %v753_v12, 0.0 }
 0x133   : > { %v922_v15 = vmax.f32 %v748_v14, 0.0  ;;  %v1769_v16 = vpop.f32.mrb[38].mxu0 }
 0x134   : > { %v763_v18 = vadd.f32 %v1769_v16, %v2243_v29  ;;  %v757_v19 = vpop.f32.mrb[39].mxu0 }
 0x135   : > { %v758_v20 = vadd.f32 %v2243_v29, %v757_v19  ;;  %1892 = vmatprep.mubr.f32.mxu1 %v922_v15 }
 0x136   : > { %1893 = vmatmul.mubr.f32.gmra.mrb[30].mxu1 %v923_v17  ;;  %v925_v23 = vmax.f32 %v763_v18, 0.0 }
 0x137   : > { %v924_v21 = vmax.f32 %v758_v20, 0.0  ;;  %v1772_v22 = vpop.f32.mrb[40].mxu0 }
 0x138   : > { %v773_v24 = vadd.f32 %v1772_v22, %v2243_v29  ;;  %v767_v25 = vpop.f32.mrb[41].mxu0 }
 0x139   : > { %v768_v26 = vadd.f32 %v2243_v29, %v767_v25  ;;  %1895 = vmatprep.mubr.f32.mxu1 %v924_v21 }
 0x13a   : > { %1896 = vmatmul.mubr.f32.gmra.mrb[32].mxu1 %v925_v23  ;;  %v927_v30 = vmax.f32 %v773_v24, 0.0 }
 0x13b   : > { %v926_v27 = vmax.f32 %v768_v26, 0.0  ;;  %v1775_v28 = vpop.f32.mrb[42].mxu0 }
 0x13c   : > { %v783_v31 = vadd.f32 %v1775_v28, %v2243_v29  ;;  %v777_v32 = vpop.f32.mrb[43].mxu0 }
 0x13d   : > { %v778_v33 = vadd.f32 %v2243_v29, %v777_v32  ;;  %1898 = vmatprep.mubr.f32.mxu1 %v926_v27 }
 0x13e   : > { %1899 = vmatmul.mubr.f32.gmra.mrb[34].mxu1 %v927_v30  ;;  %v929_v36 = vmax.f32 %v783_v31, 0.0 }
 0x13f   : > { %v928_v34 = vmax.f32 %v778_v33, 0.0  ;;  %v1778_v35 = vpop.f32.mrb[44].mxu0  ;;  %v2309_v33 = vld [vmem:[#allocation2] ss:$0 sm:$0xff] }
 0x140   : > { %v793_v37 = vadd.f32 %v1778_v35, %v2243_v29  ;;  %v787_v38 = vpop.f32.mrb[45].mxu0 }
 0x141   : > { %v788_v39 = vadd.f32 %v2243_v29, %v787_v38  ;;  %1901 = vmatprep.mubr.f32.mxu1 %v928_v34 }
 0x142   : > { %1902 = vmatmul.mubr.f32.gmra.mrb[36].mxu1 %v929_v36  ;;  %v931_v42 = vmax.f32 %v793_v37, 0.0 }
 0x143   : > { %v930_v40 = vmax.f32 %v788_v39, 0.0  ;;  %v1781_v41 = vpop.f32.mrb[46].mxu0 }
 0x144   : > { %v803_v43 = vadd.f32 %v1781_v41, %v2243_v29  ;;  %v797_v44 = vpop.f32.mrb[47].mxu0 }
 0x145   : > { %v798_v45 = vadd.f32 %v2243_v29, %v797_v44  ;;  %1904 = vmatprep.mubr.f32.mxu1 %v930_v40 }
 0x146   : > { %1905 = vmatmul.mubr.f32.gmra.mrb[38].mxu1 %v931_v42  ;;  %v933_v48 = vmax.f32 %v803_v43, 0.0 }
 0x147   : > { %v932_v46 = vmax.f32 %v798_v45, 0.0  ;;  %v1784_v47 = vpop.f32.mrb[48].mxu0 }
 0x148   : > { %v813_v49 = vadd.f32 %v1784_v47, %v2243_v29  ;;  %v807_v50 = vpop.f32.mrb[49].mxu0 }
 0x149   : > { %v808_v51 = vadd.f32 %v2243_v29, %v807_v50  ;;  %1907 = vmatprep.mubr.f32.mxu1 %v932_v46 }
 0x14a   : > { %1908 = vmatmul.mubr.f32.gmra.mrb[40].mxu1 %v933_v48  ;;  %v935_v54 = vmax.f32 %v813_v49, 0.0 }
 0x14b   : > { %v934_v52 = vmax.f32 %v808_v51, 0.0  ;;  %v1787_v53 = vpop.f32.mrb[50].mxu0 }
 0x14c   : > { %v823_v55 = vadd.f32 %v1787_v53, %v2243_v29  ;;  %v817_v56 = vpop.f32.mrb[51].mxu0 }
 0x14d   : > { %v818_v57 = vadd.f32 %v2243_v29, %v817_v56  ;;  %1910 = vmatprep.mubr.f32.mxu1 %v934_v52 }
 0x14e   : > { %1911 = vmatmul.mubr.f32.gmra.mrb[42].mxu1 %v935_v54  ;;  %v937_v60 = vmax.f32 %v823_v55, 0.0 }
 0x14f   : > { %v936_v58 = vmax.f32 %v818_v57, 0.0  ;;  %v1790_v59 = vpop.f32.mrb[52].mxu0 }
 0x150   : > { %v833_v61 = vadd.f32 %v1790_v59, %v2243_v29  ;;  %v827_v62 = vpop.f32.mrb[53].mxu0 }
 0x151   : > { %v828_v63 = vadd.f32 %v2243_v29, %v827_v62  ;;  %1913 = vmatprep.mubr.f32.mxu1 %v936_v58 }
 0x152   : > { %1914 = vmatmul.mubr.f32.gmra.mrb[44].mxu1 %v937_v60  ;;  %v939_v2 = vmax.f32 %v833_v61, 0.0 }
 0x153   : > { %v938_v0 = vmax.f32 %v828_v63, 0.0  ;;  %v1793_v1 = vpop.f32.mrb[54].mxu0 }
 0x154   : > { %v843_v3 = vadd.f32 %v1793_v1, %v2243_v29  ;;  %v837_v4 = vpop.f32.mrb[55].mxu0 }
 0x155   : > { %v838_v5 = vadd.f32 %v2243_v29, %v837_v4  ;;  %1916 = vmatprep.mubr.f32.mxu1 %v938_v0 }
 0x156   : > { %1917 = vmatmul.mubr.f32.gmra.mrb[46].mxu1 %v939_v2  ;;  %v941_v8 = vmax.f32 %v843_v3, 0.0 }
 0x157   : > { %v940_v6 = vmax.f32 %v838_v5, 0.0  ;;  %v1796_v7 = vpop.f32.mrb[56].mxu0 }
 0x158   : > { %v853_v9 = vadd.f32 %v1796_v7, %v2243_v29  ;;  %v847_v10 = vpop.f32.mrb[57].mxu0 }
 0x159   : > { %v848_v11 = vadd.f32 %v2243_v29, %v847_v10  ;;  %1919 = vmatprep.mubr.f32.mxu1 %v940_v6 }
 0x15a   : > { %1920 = vmatmul.mubr.f32.gmra.mrb[48].mxu1 %v941_v8  ;;  %v943_v14 = vmax.f32 %v853_v9, 0.0 }
 0x15b   : > { %v942_v12 = vmax.f32 %v848_v11, 0.0  ;;  %v1799_v13 = vpop.f32.mrb[58].mxu0 }
 0x15c   : > { %v863_v15 = vadd.f32 %v1799_v13, %v2243_v29  ;;  %v857_v16 = vpop.f32.mrb[59].mxu0 }
 0x15d   : > { %v858_v17 = vadd.f32 %v2243_v29, %v857_v16  ;;  %1922 = vmatprep.mubr.f32.mxu1 %v942_v12 }
 0x15e   : > { %1923 = vmatmul.mubr.f32.gmra.mrb[50].mxu1 %v943_v14  ;;  %v945_v20 = vmax.f32 %v863_v15, 0.0 }
 0x15f   : > { %v944_v18 = vmax.f32 %v858_v17, 0.0  ;;  %v1802_v19 = vpop.f32.mrb[60].mxu0 }
 0x160   : > { %v873_v21 = vadd.f32 %v1802_v19, %v2243_v29  ;;  %v867_v22 = vpop.f32.mrb[61].mxu0 }
 0x161   : > { %v868_v23 = vadd.f32 %v2243_v29, %v867_v22  ;;  %1925 = vmatprep.mubr.f32.mxu1 %v944_v18 }
 0x162   : > { %1926 = vmatmul.mubr.f32.gmra.mrb[52].mxu1 %v945_v20  ;;  %v947_v26 = vmax.f32 %v873_v21, 0.0 }
 0x163   : > { %v946_v24 = vmax.f32 %v868_v23, 0.0  ;;  %v1805_v25 = vpop.f32.mrb[62].mxu0 }
 0x164   : > { %v883_v27 = vadd.f32 %v1805_v25, %v2243_v29  ;;  %v877_v28 = vpop.f32.mrb[63].mxu0 }
 0x165   : > { %v878_v30 = vadd.f32 %v2243_v29, %v877_v28  ;;  %1928 = vmatprep.mubr.f32.mxu1 %v946_v24 }
 0x166   : > { %1929 = vmatmul.mubr.f32.gmra.mrb[54].mxu1 %v947_v26  ;;  %v949_v32 = vmax.f32 %v883_v27, 0.0 }
 0x167   : > { %v948_v31 = vmax.f32 %v878_v30, 0.0 }
 0x169   : > { %1931 = vmatprep.mubr.f32.mxu1 %v948_v31 }
 0x16a   : > { %1932 = vmatmul.mubr.f32.gmra.mrb[56].mxu1 %v949_v32 }
 0x1c1   : > { %v1840_v34 = vpop.f32.mrb[64].mxu0 }
 0x1c2   : > { %v1045_v29 = vadd.f32 %v1840_v34, %v2309_v33  ;;  %v1039_v35 = vpop.f32.mrb[65].mxu0 }
 0x1c3   : > { %v1040_v36 = vadd.f32 %v2309_v33, %v1039_v35 }
 0x1c4   : > { %1360 = vst.msk [vmem:[%s2316_s21 + $0x8] sm:$0xff] %vm1358_vm2, %v1045_v29 }
 0x1c5   : > { %1359 = vst.msk [vmem:[%s2316_s21] sm:$0xff] %vm1358_vm2, %v1040_v36  ;;  %v1843_v37 = vpop.f32.mrb[66].mxu0 }
 0x1c6   : > { %v1055_v38 = vadd.f32 %v1843_v37, %v2309_v33  ;;  %v1049_v39 = vpop.f32.mrb[67].mxu0 }
 0x1c7   : > { %v1050_v40 = vadd.f32 %v2309_v33, %v1049_v39 }
 0x1c8   : > { %1362 = vst.msk [vmem:[%s2316_s21 + $0x18] sm:$0xff] %vm1358_vm2, %v1055_v38 }
 0x1c9   : > { %1361 = vst.msk [vmem:[%s2316_s21 + $0x10] sm:$0xff] %vm1358_vm2, %v1050_v40  ;;  %v1846_v41 = vpop.f32.mrb[68].mxu0 }
 0x1ca   : > { %v1065_v42 = vadd.f32 %v1846_v41, %v2309_v33  ;;  %v1059_v43 = vpop.f32.mrb[69].mxu0 }
 0x1cb   : > { %v1060_v44 = vadd.f32 %v2309_v33, %v1059_v43 }
 0x1cc   : > { %1364 = vst.msk [vmem:[%s2316_s21 + $0x28] sm:$0xff] %vm1358_vm2, %v1065_v42 }
 0x1cd   : > { %1363 = vst.msk [vmem:[%s2316_s21 + $0x20] sm:$0xff] %vm1358_vm2, %v1060_v44  ;;  %v1849_v45 = vpop.f32.mrb[0].mxu1 }
 0x1ce   : > { %v1075_v46 = vadd.f32 %v1849_v45, %v2309_v33  ;;  %v1069_v47 = vpop.f32.mrb[1].mxu1 }
 0x1cf   : > { %v1070_v48 = vadd.f32 %v2309_v33, %v1069_v47 }
 0x1d0   : > { %1366 = vst.msk [vmem:[%s2316_s21 + $0x38] sm:$0xff] %vm1358_vm2, %v1075_v46 }
 0x1d1   : > { %1365 = vst.msk [vmem:[%s2316_s21 + $0x30] sm:$0xff] %vm1358_vm2, %v1070_v48  ;;  %v1852_v49 = vpop.f32.mrb[2].mxu1 }
 0x1d2   : > { %v1085_v50 = vadd.f32 %v1852_v49, %v2309_v33  ;;  %v1079_v51 = vpop.f32.mrb[3].mxu1 }
 0x1d3   : > { %v1080_v52 = vadd.f32 %v2309_v33, %v1079_v51 }
 0x1d4   : > { %1368 = vst.msk [vmem:[%s2316_s21 + $0x48] sm:$0xff] %vm1358_vm2, %v1085_v50 }
 0x1d5   : > { %1367 = vst.msk [vmem:[%s2316_s21 + $0x40] sm:$0xff] %vm1358_vm2, %v1080_v52  ;;  %v1855_v53 = vpop.f32.mrb[4].mxu1 }
 0x1d6   : > { %v1095_v54 = vadd.f32 %v1855_v53, %v2309_v33  ;;  %v1089_v55 = vpop.f32.mrb[5].mxu1 }
 0x1d7   : > { %v1090_v56 = vadd.f32 %v2309_v33, %v1089_v55 }
 0x1d8   : > { %1370 = vst.msk [vmem:[%s2316_s21 + $0x58] sm:$0xff] %vm1358_vm2, %v1095_v54 }
 0x1d9   : > { %1369 = vst.msk [vmem:[%s2316_s21 + $0x50] sm:$0xff] %vm1358_vm2, %v1090_v56  ;;  %v1858_v57 = vpop.f32.mrb[6].mxu1 }
 0x1da   : > { %v1105_v58 = vadd.f32 %v1858_v57, %v2309_v33  ;;  %v1099_v59 = vpop.f32.mrb[7].mxu1 }
 0x1db   : > { %v1100_v60 = vadd.f32 %v2309_v33, %v1099_v59 }
 0x1dc   : > { %1372 = vst.msk [vmem:[%s2316_s21 + $0x68] sm:$0xff] %vm1358_vm2, %v1105_v58 }
 0x1dd   : > { %1371 = vst.msk [vmem:[%s2316_s21 + $0x60] sm:$0xff] %vm1358_vm2, %v1100_v60  ;;  %v1861_v61 = vpop.f32.mrb[8].mxu1 }
 0x1de   : > { %v1115_v62 = vadd.f32 %v1861_v61, %v2309_v33  ;;  %v1109_v63 = vpop.f32.mrb[9].mxu1 }
 0x1df   : > { %v1110_v0 = vadd.f32 %v2309_v33, %v1109_v63 }
 0x1e0   : > { %1374 = vst.msk [vmem:[%s2316_s21 + $0x78] sm:$0xff] %vm1358_vm2, %v1115_v62 }
 0x1e1   : > { %1373 = vst.msk [vmem:[%s2316_s21 + $0x70] sm:$0xff] %vm1358_vm2, %v1110_v0  ;;  %v1864_v1 = vpop.f32.mrb[10].mxu1 }
 0x1e2   : > { %v1125_v2 = vadd.f32 %v1864_v1, %v2309_v33  ;;  %v1119_v3 = vpop.f32.mrb[11].mxu1 }
 0x1e3   : > { %v1120_v4 = vadd.f32 %v2309_v33, %v1119_v3 }
 0x1e4   : > { %1376 = vst.msk [vmem:[%s2316_s21 + $0x88] sm:$0xff] %vm1358_vm2, %v1125_v2 }
 0x1e5   : > { %1375 = vst.msk [vmem:[%s2316_s21 + $0x80] sm:$0xff] %vm1358_vm2, %v1120_v4  ;;  %v1867_v5 = vpop.f32.mrb[12].mxu1 }
 0x1e6   : > { %v1135_v6 = vadd.f32 %v1867_v5, %v2309_v33  ;;  %v1129_v7 = vpop.f32.mrb[13].mxu1 }
 0x1e7   : > { %v1130_v8 = vadd.f32 %v2309_v33, %v1129_v7 }
 0x1e8   : > { %1378 = vst.msk [vmem:[%s2316_s21 + $0x98] sm:$0xff] %vm1358_vm2, %v1135_v6 }
 0x1e9   : > { %1377 = vst.msk [vmem:[%s2316_s21 + $0x90] sm:$0xff] %vm1358_vm2, %v1130_v8  ;;  %v1870_v9 = vpop.f32.mrb[14].mxu1 }
 0x1ea   : > { %v1145_v10 = vadd.f32 %v1870_v9, %v2309_v33  ;;  %v1139_v11 = vpop.f32.mrb[15].mxu1 }
 0x1eb   : > { %v1140_v12 = vadd.f32 %v2309_v33, %v1139_v11 }
 0x1ec   : > { %1380 = vst.msk [vmem:[%s2316_s21 + $0xa8] sm:$0xff] %vm1358_vm2, %v1145_v10 }
 0x1ed   : > { %1379 = vst.msk [vmem:[%s2316_s21 + $0xa0] sm:$0xff] %vm1358_vm2, %v1140_v12  ;;  %v1873_v13 = vpop.f32.mrb[16].mxu1 }
 0x1ee   : > { %v1155_v14 = vadd.f32 %v1873_v13, %v2309_v33  ;;  %v1149_v15 = vpop.f32.mrb[17].mxu1 }
 0x1ef   : > { %v1150_v16 = vadd.f32 %v2309_v33, %v1149_v15 }
 0x1f0   : > { %1382 = vst.msk [vmem:[%s2316_s21 + $0xb8] sm:$0xff] %vm1358_vm2, %v1155_v14 }
 0x1f1   : > { %1381 = vst.msk [vmem:[%s2316_s21 + $0xb0] sm:$0xff] %vm1358_vm2, %v1150_v16  ;;  %v1876_v17 = vpop.f32.mrb[18].mxu1 }
 0x1f2   : > { %v1165_v18 = vadd.f32 %v1876_v17, %v2309_v33  ;;  %v1159_v19 = vpop.f32.mrb[19].mxu1 }
 0x1f3   : > { %v1160_v20 = vadd.f32 %v2309_v33, %v1159_v19 }
 0x1f4   : > { %1384 = vst.msk [vmem:[%s2316_s21 + $0xc8] sm:$0xff] %vm1358_vm2, %v1165_v18 }
 0x1f5   : > { %1383 = vst.msk [vmem:[%s2316_s21 + $0xc0] sm:$0xff] %vm1358_vm2, %v1160_v20  ;;  %v1879_v21 = vpop.f32.mrb[20].mxu1 }
 0x1f6   : > { %v1175_v22 = vadd.f32 %v1879_v21, %v2309_v33  ;;  %v1169_v23 = vpop.f32.mrb[21].mxu1 }
 0x1f7   : > { %v1170_v24 = vadd.f32 %v2309_v33, %v1169_v23 }
 0x1f8   : > { %1386 = vst.msk [vmem:[%s2316_s21 + $0xd8] sm:$0xff] %vm1358_vm2, %v1175_v22 }
 0x1f9   : > { %1385 = vst.msk [vmem:[%s2316_s21 + $0xd0] sm:$0xff] %vm1358_vm2, %v1170_v24  ;;  %v1882_v25 = vpop.f32.mrb[22].mxu1 }
 0x1fa   : > { %v1185_v26 = vadd.f32 %v1882_v25, %v2309_v33  ;;  %v1179_v27 = vpop.f32.mrb[23].mxu1 }
 0x1fb   : > { %v1180_v28 = vadd.f32 %v2309_v33, %v1179_v27 }
 0x1fc   : > { %1388 = vst.msk [vmem:[%s2316_s21 + $0xe8] sm:$0xff] %vm1358_vm2, %v1185_v26 }
 0x1fd   : > { %1387 = vst.msk [vmem:[%s2316_s21 + $0xe0] sm:$0xff] %vm1358_vm2, %v1180_v28  ;;  %v1885_v30 = vpop.f32.mrb[24].mxu1 }
 0x1fe   : > { %v1195_v31 = vadd.f32 %v1885_v30, %v2309_v33  ;;  %v1189_v32 = vpop.f32.mrb[25].mxu1 }
 0x1ff   : > { %v1190_v34 = vadd.f32 %v2309_v33, %v1189_v32 }
 0x200   : > { %1390 = vst.msk [vmem:[%s2316_s21 + $0xf8] sm:$0xff] %vm1358_vm2, %v1195_v31 }
 0x201   : > { %1389 = vst.msk [vmem:[%s2316_s21 + $0xf0] sm:$0xff] %vm1358_vm2, %v1190_v34  ;;  %v1888_v29 = vpop.f32.mrb[26].mxu1 }
 0x202   : > { %v1205_v35 = vadd.f32 %v1888_v29, %v2309_v33  ;;  %v1199_v36 = vpop.f32.mrb[27].mxu1 }
 0x203   : > { %v1200_v37 = vadd.f32 %v2309_v33, %v1199_v36 }
 0x204   : > { %1392 = vst.msk [vmem:[%s2316_s21 + $0x108] sm:$0xff] %vm1358_vm2, %v1205_v35 }
 0x205   : > { %1391 = vst.msk [vmem:[%s2316_s21 + $0x100] sm:$0xff] %vm1358_vm2, %v1200_v37  ;;  %v1891_v38 = vpop.f32.mrb[28].mxu1 }
 0x206   : > { %v1215_v39 = vadd.f32 %v1891_v38, %v2309_v33  ;;  %v1209_v40 = vpop.f32.mrb[29].mxu1 }
 0x207   : > { %v1210_v41 = vadd.f32 %v2309_v33, %v1209_v40 }
 0x208   : > { %1394 = vst.msk [vmem:[%s2316_s21 + $0x118] sm:$0xff] %vm1358_vm2, %v1215_v39 }
 0x209   : > { %1393 = vst.msk [vmem:[%s2316_s21 + $0x110] sm:$0xff] %vm1358_vm2, %v1210_v41  ;;  %v1894_v42 = vpop.f32.mrb[30].mxu1 }
 0x20a   : > { %v1225_v43 = vadd.f32 %v1894_v42, %v2309_v33  ;;  %v1219_v44 = vpop.f32.mrb[31].mxu1 }
 0x20b   : > { %v1220_v45 = vadd.f32 %v2309_v33, %v1219_v44 }
 0x20c   : > { %1396 = vst.msk [vmem:[%s2316_s21 + $0x128] sm:$0xff] %vm1358_vm2, %v1225_v43 }
 0x20d   : > { %1395 = vst.msk [vmem:[%s2316_s21 + $0x120] sm:$0xff] %vm1358_vm2, %v1220_v45  ;;  %v1897_v46 = vpop.f32.mrb[32].mxu1 }
 0x20e   : > { %v1235_v47 = vadd.f32 %v1897_v46, %v2309_v33  ;;  %v1229_v48 = vpop.f32.mrb[33].mxu1 }
 0x20f   : > { %v1230_v49 = vadd.f32 %v2309_v33, %v1229_v48 }
 0x210   : > { %1398 = vst.msk [vmem:[%s2316_s21 + $0x138] sm:$0xff] %vm1358_vm2, %v1235_v47 }
 0x211   : > { %1397 = vst.msk [vmem:[%s2316_s21 + $0x130] sm:$0xff] %vm1358_vm2, %v1230_v49  ;;  %v1900_v50 = vpop.f32.mrb[34].mxu1 }
 0x212   : > { %v1245_v51 = vadd.f32 %v1900_v50, %v2309_v33  ;;  %v1239_v52 = vpop.f32.mrb[35].mxu1 }
 0x213   : > { %v1240_v53 = vadd.f32 %v2309_v33, %v1239_v52 }
 0x214   : > { %1400 = vst.msk [vmem:[%s2316_s21 + $0x148] sm:$0xff] %vm1358_vm2, %v1245_v51 }
 0x215   : > { %1399 = vst.msk [vmem:[%s2316_s21 + $0x140] sm:$0xff] %vm1358_vm2, %v1240_v53  ;;  %v1903_v54 = vpop.f32.mrb[36].mxu1 }
 0x216   : > { %v1255_v55 = vadd.f32 %v1903_v54, %v2309_v33  ;;  %v1249_v56 = vpop.f32.mrb[37].mxu1 }
 0x217   : > { %v1250_v57 = vadd.f32 %v2309_v33, %v1249_v56 }
 0x218   : > { %1402 = vst.msk [vmem:[%s2316_s21 + $0x158] sm:$0xff] %vm1358_vm2, %v1255_v55 }
 0x219   : > { %1401 = vst.msk [vmem:[%s2316_s21 + $0x150] sm:$0xff] %vm1358_vm2, %v1250_v57  ;;  %v1906_v58 = vpop.f32.mrb[38].mxu1 }
 0x21a   : > { %v1265_v59 = vadd.f32 %v1906_v58, %v2309_v33  ;;  %v1259_v60 = vpop.f32.mrb[39].mxu1 }
 0x21b   : > { %v1260_v61 = vadd.f32 %v2309_v33, %v1259_v60 }
 0x21c   : > { %1404 = vst.msk [vmem:[%s2316_s21 + $0x168] sm:$0xff] %vm1358_vm2, %v1265_v59 }
 0x21d   : > { %1403 = vst.msk [vmem:[%s2316_s21 + $0x160] sm:$0xff] %vm1358_vm2, %v1260_v61  ;;  %v1909_v62 = vpop.f32.mrb[40].mxu1 }
 0x21e   : > { %v1275_v63 = vadd.f32 %v1909_v62, %v2309_v33  ;;  %v1269_v0 = vpop.f32.mrb[41].mxu1 }
 0x21f   : > { %v1270_v1 = vadd.f32 %v2309_v33, %v1269_v0 }
 0x220   : > { %1406 = vst.msk [vmem:[%s2316_s21 + $0x178] sm:$0xff] %vm1358_vm2, %v1275_v63 }
 0x221   : > { %1405 = vst.msk [vmem:[%s2316_s21 + $0x170] sm:$0xff] %vm1358_vm2, %v1270_v1  ;;  %v1912_v2 = vpop.f32.mrb[42].mxu1 }
 0x222   : > { %v1285_v3 = vadd.f32 %v1912_v2, %v2309_v33  ;;  %v1279_v4 = vpop.f32.mrb[43].mxu1 }
 0x223   : > { %v1280_v5 = vadd.f32 %v2309_v33, %v1279_v4 }
 0x224   : > { %1408 = vst.msk [vmem:[%s2316_s21 + $0x188] sm:$0xff] %vm1358_vm2, %v1285_v3 }
 0x225   : > { %1407 = vst.msk [vmem:[%s2316_s21 + $0x180] sm:$0xff] %vm1358_vm2, %v1280_v5  ;;  %v1915_v6 = vpop.f32.mrb[44].mxu1 }
 0x226   : > { %v1295_v7 = vadd.f32 %v1915_v6, %v2309_v33  ;;  %v1289_v8 = vpop.f32.mrb[45].mxu1 }
 0x227   : > { %v1290_v9 = vadd.f32 %v2309_v33, %v1289_v8 }
 0x228   : > { %1410 = vst.msk [vmem:[%s2316_s21 + $0x198] sm:$0xff] %vm1358_vm2, %v1295_v7 }
 0x229   : > { %1409 = vst.msk [vmem:[%s2316_s21 + $0x190] sm:$0xff] %vm1358_vm2, %v1290_v9  ;;  %v1918_v10 = vpop.f32.mrb[46].mxu1 }
 0x22a   : > { %v1305_v11 = vadd.f32 %v1918_v10, %v2309_v33  ;;  %v1299_v12 = vpop.f32.mrb[47].mxu1 }
 0x22b   : > { %v1300_v13 = vadd.f32 %v2309_v33, %v1299_v12 }
 0x22c   : > { %1412 = vst.msk [vmem:[%s2316_s21 + $0x1a8] sm:$0xff] %vm1358_vm2, %v1305_v11 }
 0x22d   : > { %1411 = vst.msk [vmem:[%s2316_s21 + $0x1a0] sm:$0xff] %vm1358_vm2, %v1300_v13  ;;  %v1921_v14 = vpop.f32.mrb[48].mxu1 }
 0x22e   : > { %v1315_v15 = vadd.f32 %v1921_v14, %v2309_v33  ;;  %v1309_v16 = vpop.f32.mrb[49].mxu1 }
 0x22f   : > { %v1310_v17 = vadd.f32 %v2309_v33, %v1309_v16 }
 0x230   : > { %1414 = vst.msk [vmem:[%s2316_s21 + $0x1b8] sm:$0xff] %vm1358_vm2, %v1315_v15 }
 0x231   : > { %1413 = vst.msk [vmem:[%s2316_s21 + $0x1b0] sm:$0xff] %vm1358_vm2, %v1310_v17  ;;  %v1924_v18 = vpop.f32.mrb[50].mxu1 }
 0x232   : > { %v1325_v19 = vadd.f32 %v1924_v18, %v2309_v33  ;;  %v1319_v20 = vpop.f32.mrb[51].mxu1 }
 0x233   : > { %v1320_v21 = vadd.f32 %v2309_v33, %v1319_v20 }
 0x234   : > { %1416 = vst.msk [vmem:[%s2316_s21 + $0x1c8] sm:$0xff] %vm1358_vm2, %v1325_v19 }
 0x235   : > { %1415 = vst.msk [vmem:[%s2316_s21 + $0x1c0] sm:$0xff] %vm1358_vm2, %v1320_v21  ;;  %v1927_v22 = vpop.f32.mrb[52].mxu1 }
 0x236   : > { %v1335_v23 = vadd.f32 %v1927_v22, %v2309_v33  ;;  %v1329_v24 = vpop.f32.mrb[53].mxu1 }
 0x237   : > { %v1330_v25 = vadd.f32 %v2309_v33, %v1329_v24 }
 0x238   : > { %1418 = vst.msk [vmem:[%s2316_s21 + $0x1d8] sm:$0xff] %vm1358_vm2, %v1335_v23 }
 0x239   : > { %1417 = vst.msk [vmem:[%s2316_s21 + $0x1d0] sm:$0xff] %vm1358_vm2, %v1330_v25  ;;  %v1930_v26 = vpop.f32.mrb[54].mxu1 }
 0x23a   : > { %v1345_v27 = vadd.f32 %v1930_v26, %v2309_v33  ;;  %v1339_v28 = vpop.f32.mrb[55].mxu1 }
 0x23b   : > { %v1340_v30 = vadd.f32 %v2309_v33, %v1339_v28 }
 0x23c   : > { %1420 = vst.msk [vmem:[%s2316_s21 + $0x1e8] sm:$0xff] %vm1358_vm2, %v1345_v27 }
 0x23d   : > { %1419 = vst.msk [vmem:[%s2316_s21 + $0x1e0] sm:$0xff] %vm1358_vm2, %v1340_v30  ;;  %v1933_v31 = vpop.f32.mrb[56].mxu1 }
 0x23e   : > { %v1355_v32 = vadd.f32 %v1933_v31, %v2309_v33  ;;  %v1349_v34 = vpop.f32.mrb[57].mxu1 }
 0x23f   : > { %v1350_v29 = vadd.f32 %v2309_v33, %v1349_v34 }
 0x240   : > { %1422 = vst.msk [vmem:[%s2316_s21 + $0x1f8] sm:$0xff] %vm1358_vm2, %v1355_v32 }
 0x241   : > { %1421 = vst.msk [vmem:[%s2316_s21 + $0x1f0] sm:$0xff] %vm1358_vm2, %v1350_v29 }
 0x242 PF: > { %s17_s20 = sadd.s32 1, %s2000_s20  }
 0x243   : > { %p14_p4 = scmp.ge.s32.totalorder %s17_s20, 6  }
 0x245   :  { %16 = sbr.rel (!%p14_p4) target bundleno = 3 (0x3), region = 70 }

// kernel: net3d_forward.26
= control target key start
LH: loop header
LB: loop body
LE: loop exit
PB: predicated region body
PF: predicated region fallthrough
CT: control target
= control target key end

     0   :  { %s625_s18 = smov 0   ;;  %s989_s0 = inlined_call_operand.vmem [shape: f32[2048,20], index: 0, kind: input, shape index: {}]   ;;  %s990_s1 = inlined_call_operand.vmem [shape: f32[1,20], index: 1, kind: input, shape index: {}]   ;;  %s991_s2 = inlined_call_operand.vmem [shape: f32[1,20], index: 2, kind: input, shape index: {}]   ;;  %s992_s3 = inlined_call_operand.vmem [shape: f32[1,20], index: 3, kind: input, shape index: {}]   ;;  %s993_s4 = inlined_call_operand.vmem [shape: f32[1,20], index: 4, kind: input, shape index: {}]   ;;  %s994_s5 = inlined_call_operand.vmem [shape: f32[2048,20], index: 5, kind: output, shape index: {}]  }
   0x1 LB: > { %s566_s19 = sadd.s32 4294967295, %s593_s18   ;;  %p570_p0 = scmp.ge.s32.totalorder %s593_s18, 1  ;;  %s593_s18 = sphi %s625_s18, %s15_s18  }
   0x2   : > { %p188_p1 = scmp.lt.s32.totalorder %s593_s18, 5 }
   0x4   : > { %p189_p2 = pnand %p570_p0, %p188_p1 }
   0x5   : > { %v228_v0 = vld [vmem:[%s990_s1] sm:$0x1] (!%p189_p2)  ;;  %s571_s24 = sshll.u32 (!%p189_p2), %s566_s19, 6  ;;  %v306_v7 = vlaneseq (!%p189_p2)  ;;  %vm445_vm0 = vcmask (!%p189_p2), 162816  }
   0x6   : > { %192 = sbr.rel (%p189_p2) target bundleno = 72 (0x48), region = 40  ;;  %v230_v1 = vld [vmem:[%s991_s2] sm:$0x1] (!%p189_p2)  ;;  %v229_v2 = vmul.f32 (!%p189_p2), 0.00048828125, %v228_v0  ;;  %p217_p3 = scmp.lt.s32.totalorder (!%p189_p2), %s571_s24, 255 }
   0x7   : > { %v231_v3 = vmul.f32 (!%p189_p2), 0.00048828125, %v230_v1  ;;  %v307_v8 = vshrl.u32 (!%p189_p2), %v306_v7, 7  ;;  %v234_v9 = vld [vmem:[%s992_s3] sm:$0x1] (!%p189_p2) }
   0x8   : > { %v232_v4 = vmul.f32 (!%p189_p2), %v229_v2, %v229_v2  ;;  %v238_v13 = vld [vmem:[%s993_s4] sm:$0x1] (!%p189_p2) }
   0x9   : > { %v308_v10 = vsub.s32 (!%p189_p2), 0, %v307_v8 }
   0xa   : > { %v233_v5 = vsub.f32 (!%p189_p2), %v231_v3, %v232_v4 }
   0xc   : > { %v235_v6 = vadd.f32 (!%p189_p2), 1e-05, %v233_v5 }
   0xd   : > { %s996_s24 = smov (!%p217_p3, %s571_s24), 255 }
   0xe   : > { %585 = vrsqrt.f32 %v235_v6  ;;  %s572_s25 = sshll.u32 %s996_s24, 3 }
   0xf   : > { %s647_s28 = scalar_lea.vmem %s989_s0, %s572_s25  ;;  %s688_s10 = scalar_lea.vmem %s994_s5, %s572_s25 }
  0x10   : > { %v241_v14 = vld [vmem:[%s647_s28] sm:$0xff]  ;;  %v242_v15 = vld [vmem:[%s647_s28 + $0x8] sm:$0xff]  ;;  %v243_v16 = vld [vmem:[%s647_s28 + $0x10] sm:$0xff] }
  0x11   : > { %v244_v17 = vld [vmem:[%s647_s28 + $0x18] sm:$0xff]  ;;  %v245_v18 = vld [vmem:[%s647_s28 + $0x20] sm:$0xff]  ;;  %v246_v21 = vld [vmem:[%s647_s28 + $0x28] sm:$0xff] }
  0x12   : > { %v247_v22 = vld [vmem:[%s647_s28 + $0x30] sm:$0xff]  ;;  %v248_v23 = vld [vmem:[%s647_s28 + $0x38] sm:$0xff]  ;;  %v249_v24 = vld [vmem:[%s647_s28 + $0x40] sm:$0xff] }
  0x13   : > { %v250_v25 = vld [vmem:[%s647_s28 + $0x48] sm:$0xff]  ;;  %v251_v26 = vld [vmem:[%s647_s28 + $0x50] sm:$0xff]  ;;  %v252_v31 = vld [vmem:[%s647_s28 + $0x58] sm:$0xff] }
  0x14   : > { %v253_v32 = vld [vmem:[%s647_s28 + $0x60] sm:$0xff]  ;;  %v254_v33 = vld [vmem:[%s647_s28 + $0x68] sm:$0xff]  ;;  %v255_v50 = vld [vmem:[%s647_s28 + $0x70] sm:$0xff] }
  0x15   : > { %v256_v51 = vld [vmem:[%s647_s28 + $0x78] sm:$0xff]  ;;  %v257_v52 = vld [vmem:[%s647_s28 + $0x80] sm:$0xff]  ;;  %v258_v57 = vld [vmem:[%s647_s28 + $0x88] sm:$0xff] }
  0x16   : > { %v259_v58 = vld [vmem:[%s647_s28 + $0x90] sm:$0xff]  ;;  %v260_v59 = vld [vmem:[%s647_s28 + $0x98] sm:$0xff]  ;;  %v261_v0 = vld [vmem:[%s647_s28 + $0xa0] sm:$0xff] }
  0x17   : > { %v262_v1 = vld [vmem:[%s647_s28 + $0xa8] sm:$0xff] }
  0x18   : > { %v586_v11 = vpop.eup %585 }
  0x19   : > { %v237_v12 = vmul.f32 %v586_v11, %v234_v9  ;;  %v264_v11 = vld [vmem:[%s647_s28 + $0xb8] sm:$0xff] }
  0x1b   : > { %v239_v19 = vmul.f32 %v237_v12, %v229_v2  ;;  %v660_v20 = vrot.slane %v237_v12, %v308_v10  ;;  %v265_v12 = vld [vmem:[%s647_s28 + $0xc0] sm:$0xff] }
  0x1d   : > { %v240_v27 = vsub.f32 %v238_v13, %v239_v19  ;;  %v311_v28 = vmul.f32 %v660_v20, %v241_v14  ;;  %v312_v29 = vmul.f32 %v660_v20, %v242_v15  ;;  %v313_v30 = vmul.f32 %v660_v20, %v243_v16  ;;  %v268_v19 = vld [vmem:[%s647_s28 + $0xd8] sm:$0xff] }
  0x1e   : > { %v314_v34 = vmul.f32 %v660_v20, %v244_v17  ;;  %v315_v35 = vmul.f32 %v660_v20, %v245_v18  ;;  %v316_v36 = vmul.f32 %v660_v20, %v246_v21  ;;  %v317_v37 = vmul.f32 %v660_v20, %v247_v22  ;;  %v266_v17 = vld [vmem:[%s647_s28 + $0xc8] sm:$0xff]  ;;  %v267_v18 = vld [vmem:[%s647_s28 + $0xd0] sm:$0xff] }
  0x1f   : > { %v678_v38 = vrot.slane %v240_v27, %v308_v10  ;;  %v318_v39 = vmul.f32 %v660_v20, %v248_v23  ;;  %v319_v40 = vmul.f32 %v660_v20, %v249_v24  ;;  %v320_v41 = vmul.f32 %v660_v20, %v250_v25  ;;  %v263_v10 = vld [vmem:[%s647_s28 + $0xb0] sm:$0xff]  ;;  %v269_v25 = vld [vmem:[%s647_s28 + $0xe0] sm:$0xff] }
  0x20   : > { %v321_v42 = vmul.f32 %v660_v20, %v251_v26  ;;  %v322_v43 = vmul.f32 %v660_v20, %v252_v31  ;;  %v323_v44 = vmul.f32 %v660_v20, %v253_v32  ;;  %v324_v45 = vmul.f32 %v660_v20, %v254_v33  ;;  %v270_v26 = vld [vmem:[%s647_s28 + $0xe8] sm:$0xff] }
  0x21   : > { %v381_v46 = vadd.f32 %v678_v38, %v311_v28  ;;  %v382_v47 = vadd.f32 %v678_v38, %v312_v29  ;;  %v383_v48 = vadd.f32 %v678_v38, %v313_v30  ;;  %v384_v49 = vadd.f32 %v678_v38, %v314_v34 }
  0x22   : > { %v385_v53 = vadd.f32 %v678_v38, %v315_v35  ;;  %v386_v54 = vadd.f32 %v678_v38, %v316_v36  ;;  %v387_v55 = vadd.f32 %v678_v38, %v317_v37  ;;  %v388_v56 = vadd.f32 %v678_v38, %v318_v39  ;;  %v271_v35 = vld [vmem:[%s647_s28 + $0xf0] sm:$0xff]  ;;  %v272_v36 = vld [vmem:[%s647_s28 + $0xf8] sm:$0xff]  ;;  %v273_v37 = vld [vmem:[%s647_s28 + $0x100] sm:$0xff] }
  0x23   : > { %446 = vst.msk [vmem:[%s688_s10] sm:$0xff] %vm445_vm0, %v381_v46  ;;  %447 = vst.msk [vmem:[%s688_s10 + $0x8] sm:$0xff] %vm445_vm0, %v382_v47  ;;  %v389_v60 = vadd.f32 %v678_v38, %v319_v40  ;;  %v390_v61 = vadd.f32 %v678_v38, %v320_v41  ;;  %v391_v62 = vadd.f32 %v678_v38, %v321_v42 }
  0x24   : > { %448 = vst.msk [vmem:[%s688_s10 + $0x10] sm:$0xff] %vm445_vm0, %v383_v48  ;;  %449 = vst.msk [vmem:[%s688_s10 + $0x18] sm:$0xff] %vm445_vm0, %v384_v49  ;;  %v392_v63 = vadd.f32 %v678_v38, %v322_v43  ;;  %v393_v2 = vadd.f32 %v678_v38, %v323_v44  ;;  %v394_v3 = vadd.f32 %v678_v38, %v324_v45  ;;  %v274_v43 = vld [vmem:[%s647_s28 + $0x108] sm:$0xff]  ;;  %v275_v44 = vld [vmem:[%s647_s28 + $0x110] sm:$0xff] }
  0x25   : > { %450 = vst.msk [vmem:[%s688_s10 + $0x20] sm:$0xff] %vm445_vm0, %v385_v53  ;;  %451 = vst.msk [vmem:[%s688_s10 + $0x28] sm:$0xff] %vm445_vm0, %v386_v54  ;;  %v325_v4 = vmul.f32 %v660_v20, %v255_v50  ;;  %v326_v5 = vmul.f32 %v660_v20, %v256_v51  ;;  %v327_v6 = vmul.f32 %v660_v20, %v257_v52  ;;  %v276_v45 = vld [vmem:[%s647_s28 + $0x118] sm:$0xff]  ;;  %v277_v50 = vld [vmem:[%s647_s28 + $0x120] sm:$0xff] }
  0x26   : > { %452 = vst.msk [vmem:[%s688_s10 + $0x30] sm:$0xff] %vm445_vm0, %v387_v55  ;;  %453 = vst.msk [vmem:[%s688_s10 + $0x38] sm:$0xff] %vm445_vm0, %v388_v56  ;;  %v328_v7 = vmul.f32 %v660_v20, %v258_v57  ;;  %v329_v8 = vmul.f32 %v660_v20, %v259_v58  ;;  %v330_v9 = vmul.f32 %v660_v20, %v260_v59  ;;  %v278_v51 = vld [vmem:[%s647_s28 + $0x128] sm:$0xff] }
  0x27   : > { %454 = vst.msk [vmem:[%s688_s10 + $0x40] sm:$0xff] %vm445_vm0, %v389_v60  ;;  %455 = vst.msk [vmem:[%s688_s10 + $0x48] sm:$0xff] %vm445_vm0, %v390_v61  ;;  %v395_v13 = vadd.f32 %v678_v38, %v325_v4  ;;  %v396_v14 = vadd.f32 %v678_v38, %v326_v5  ;;  %v331_v15 = vmul.f32 %v660_v20, %v261_v0  ;;  %v279_v60 = vld [vmem:[%s647_s28 + $0x130] sm:$0xff]  ;;  %v280_v61 = vld [vmem:[%s647_s28 + $0x138] sm:$0xff] }
  0x28   : > { %456 = vst.msk [vmem:[%s688_s10 + $0x50] sm:$0xff] %vm445_vm0, %v391_v62  ;;  %457 = vst.msk [vmem:[%s688_s10 + $0x58] sm:$0xff] %vm445_vm0, %v392_v63  ;;  %v332_v16 = vmul.f32 %v660_v20, %v262_v1  ;;  %v397_v21 = vadd.f32 %v678_v38, %v327_v6  ;;  %v398_v22 = vadd.f32 %v678_v38, %v328_v7  ;;  %v281_v62 = vld [vmem:[%s647_s28 + $0x140] sm:$0xff]  ;;  %v283_v4 = vld [vmem:[%s647_s28 + $0x150] sm:$0xff] }
  0x29   : > { %458 = vst.msk [vmem:[%s688_s10 + $0x60] sm:$0xff] %vm445_vm0, %v393_v2  ;;  %459 = vst.msk [vmem:[%s688_s10 + $0x68] sm:$0xff] %vm445_vm0, %v394_v3  ;;  %v399_v23 = vadd.f32 %v678_v38, %v329_v8  ;;  %v400_v24 = vadd.f32 %v678_v38, %v330_v9  ;;  %v401_v27 = vadd.f32 %v678_v38, %v331_v15  ;;  %v282_v3 = vld [vmem:[%s647_s28 + $0x148] sm:$0xff]  ;;  %v284_v5 = vld [vmem:[%s647_s28 + $0x158] sm:$0xff] }
  0x2a   : > { %460 = vst.msk [vmem:[%s688_s10 + $0x70] sm:$0xff] %vm445_vm0, %v395_v13  ;;  %461 = vst.msk [vmem:[%s688_s10 + $0x78] sm:$0xff] %vm445_vm0, %v396_v14  ;;  %v402_v28 = vadd.f32 %v678_v38, %v332_v16  ;;  %v333_v29 = vmul.f32 %v660_v20, %v263_v10  ;;  %v334_v30 = vmul.f32 %v660_v20, %v264_v11  ;;  %v285_v10 = vld [vmem:[%s647_s28 + $0x160] sm:$0xff]  ;;  %v286_v11 = vld [vmem:[%s647_s28 + $0x168] sm:$0xff] }
  0x2b   : > { %462 = vst.msk [vmem:[%s688_s10 + $0x80] sm:$0xff] %vm445_vm0, %v397_v21  ;;  %463 = vst.msk [vmem:[%s688_s10 + $0x88] sm:$0xff] %vm445_vm0, %v398_v22  ;;  %v335_v31 = vmul.f32 %v660_v20, %v265_v12  ;;  %v336_v32 = vmul.f32 %v660_v20, %v266_v17  ;;  %v337_v33 = vmul.f32 %v660_v20, %v267_v18  ;;  %v287_v21 = vld [vmem:[%s647_s28 + $0x170] sm:$0xff]  ;;  %v288_v22 = vld [vmem:[%s647_s28 + $0x178] sm:$0xff] }
  0x2c   : > { %464 = vst.msk [vmem:[%s688_s10 + $0x90] sm:$0xff] %vm445_vm0, %v399_v23  ;;  %465 = vst.msk [vmem:[%s688_s10 + $0x98] sm:$0xff] %vm445_vm0, %v400_v24  ;;  %v338_v34 = vmul.f32 %v660_v20, %v268_v19  ;;  %v403_v39 = vadd.f32 %v678_v38, %v333_v29  ;;  %v404_v40 = vadd.f32 %v678_v38, %v334_v30  ;;  %v289_v23 = vld [vmem:[%s647_s28 + $0x180] sm:$0xff]  ;;  %v291_v29 = vld [vmem:[%s647_s28 + $0x190] sm:$0xff] }
  0x2d   : > { %466 = vst.msk [vmem:[%s688_s10 + $0xa0] sm:$0xff] %vm445_vm0, %v401_v27  ;;  %467 = vst.msk [vmem:[%s688_s10 + $0xa8] sm:$0xff] %vm445_vm0, %v402_v28  ;;  %v339_v41 = vmul.f32 %v660_v20, %v269_v25  ;;  %v340_v42 = vmul.f32 %v660_v20, %v270_v26  ;;  %v405_v46 = vadd.f32 %v678_v38, %v335_v31  ;;  %v290_v28 = vld [vmem:[%s647_s28 + $0x188] sm:$0xff]  ;;  %v292_v30 = vld [vmem:[%s647_s28 + $0x198] sm:$0xff] }
  0x2e   : > { %v406_v47 = vadd.f32 %v678_v38, %v336_v32  ;;  %v407_v48 = vadd.f32 %v678_v38, %v337_v33  ;;  %v408_v49 = vadd.f32 %v678_v38, %v338_v34  ;;  %468 = vst.msk [vmem:[%s688_s10 + $0xb0] sm:$0xff] %vm445_vm0, %v403_v39  ;;  %469 = vst.msk [vmem:[%s688_s10 + $0xb8] sm:$0xff] %vm445_vm0, %v404_v40 }
  0x2f   : > { %v409_v52 = vadd.f32 %v678_v38, %v339_v41  ;;  %v410_v53 = vadd.f32 %v678_v38, %v340_v42  ;;  %v341_v54 = vmul.f32 %v660_v20, %v271_v35  ;;  %v342_v55 = vmul.f32 %v660_v20, %v272_v36  ;;  %470 = vst.msk [vmem:[%s688_s10 + $0xc0] sm:$0xff] %vm445_vm0, %v405_v46  ;;  %v293_v35 = vld [vmem:[%s647_s28 + $0x1a0] sm:$0xff]  ;;  %v294_v36 = vld [vmem:[%s647_s28 + $0x1a8] sm:$0xff]  ;;  %v295_v46 = vld [vmem:[%s647_s28 + $0x1b0] sm:$0xff] }
  0x30   : > { %471 = vst.msk [vmem:[%s688_s10 + $0xc8] sm:$0xff] %vm445_vm0, %v406_v47  ;;  %472 = vst.msk [vmem:[%s688_s10 + $0xd0] sm:$0xff] %vm445_vm0, %v407_v48  ;;  %v343_v56 = vmul.f32 %v660_v20, %v273_v37  ;;  %v344_v57 = vmul.f32 %v660_v20, %v274_v43  ;;  %v345_v58 = vmul.f32 %v660_v20, %v275_v44  ;;  %v296_v47 = vld [vmem:[%s647_s28 + $0x1b8] sm:$0xff]  ;;  %v297_v48 = vld [vmem:[%s647_s28 + $0x1c0] sm:$0xff] }
  0x31   : > { %473 = vst.msk [vmem:[%s688_s10 + $0xd8] sm:$0xff] %vm445_vm0, %v408_v49  ;;  %v346_v59 = vmul.f32 %v660_v20, %v276_v45  ;;  %474 = vst.msk [vmem:[%s688_s10 + $0xe0] sm:$0xff] %vm445_vm0, %v409_v52  ;;  %v411_v63 = vadd.f32 %v678_v38, %v341_v54  ;;  %v412_v0 = vadd.f32 %v678_v38, %v342_v55  ;;  %v299_v54 = vld [vmem:[%s647_s28 + $0x1d0] sm:$0xff]  ;;  %v300_v55 = vld [vmem:[%s647_s28 + $0x1d8] sm:$0xff] }
  0x32   : > { %475 = vst.msk [vmem:[%s688_s10 + $0xe8] sm:$0xff] %vm445_vm0, %v410_v53  ;;  %v347_v1 = vmul.f32 %v660_v20, %v277_v50  ;;  %v348_v2 = vmul.f32 %v660_v20, %v278_v51  ;;  %v413_v6 = vadd.f32 %v678_v38, %v343_v56  ;;  %v414_v7 = vadd.f32 %v678_v38, %v344_v57  ;;  %v298_v53 = vld [vmem:[%s647_s28 + $0x1c8] sm:$0xff] }
  0x33   : > { %v415_v8 = vadd.f32 %v678_v38, %v345_v58  ;;  %v416_v9 = vadd.f32 %v678_v38, %v346_v59  ;;  %476 = vst.msk [vmem:[%s688_s10 + $0xf0] sm:$0xff] %vm445_vm0, %v411_v63  ;;  %477 = vst.msk [vmem:[%s688_s10 + $0xf8] sm:$0xff] %vm445_vm0, %v412_v0  ;;  %v349_v14 = vmul.f32 %v660_v20, %v279_v60  ;;  %v301_v60 = vld [vmem:[%s647_s28 + $0x1e0] sm:$0xff] }
  0x34   : > { %v417_v12 = vadd.f32 %v678_v38, %v347_v1  ;;  %v418_v13 = vadd.f32 %v678_v38, %v348_v2  ;;  %v350_v15 = vmul.f32 %v660_v20, %v280_v61  ;;  %478 = vst.msk [vmem:[%s688_s10 + $0x100] sm:$0xff] %vm445_vm0, %v413_v6  ;;  %479 = vst.msk [vmem:[%s688_s10 + $0x108] sm:$0xff] %vm445_vm0, %v414_v7  ;;  %v302_v61 = vld [vmem:[%s647_s28 + $0x1e8] sm:$0xff]  ;;  %v303_v6 = vld [vmem:[%s647_s28 + $0x1f0] sm:$0xff] }
  0x35   : > { %480 = vst.msk [vmem:[%s688_s10 + $0x110] sm:$0xff] %vm445_vm0, %v415_v8  ;;  %481 = vst.msk [vmem:[%s688_s10 + $0x118] sm:$0xff] %vm445_vm0, %v416_v9  ;;  %v351_v16 = vmul.f32 %v660_v20, %v281_v62  ;;  %v352_v17 = vmul.f32 %v660_v20, %v282_v3  ;;  %v353_v18 = vmul.f32 %v660_v20, %v283_v4  ;;  %v304_v7 = vld [vmem:[%s647_s28 + $0x1f8] sm:$0xff] }
  0x36   : > { %v354_v19 = vmul.f32 %v660_v20, %v284_v5  ;;  %482 = vst.msk [vmem:[%s688_s10 + $0x120] sm:$0xff] %vm445_vm0, %v417_v12  ;;  %483 = vst.msk [vmem:[%s688_s10 + $0x128] sm:$0xff] %vm445_vm0, %v418_v13  ;;  %v419_v24 = vadd.f32 %v678_v38, %v349_v14  ;;  %v420_v25 = vadd.f32 %v678_v38, %v350_v15 }
  0x37   : > { %v355_v26 = vmul.f32 %v660_v20, %v285_v10  ;;  %v356_v27 = vmul.f32 %v660_v20, %v286_v11  ;;  %v421_v31 = vadd.f32 %v678_v38, %v351_v16  ;;  %v422_v32 = vadd.f32 %v678_v38, %v352_v17 }
  0x38   : > { %v423_v33 = vadd.f32 %v678_v38, %v353_v18  ;;  %v424_v34 = vadd.f32 %v678_v38, %v354_v19  ;;  %484 = vst.msk [vmem:[%s688_s10 + $0x130] sm:$0xff] %vm445_vm0, %v419_v24  ;;  %485 = vst.msk [vmem:[%s688_s10 + $0x138] sm:$0xff] %vm445_vm0, %v420_v25  ;;  %v357_v40 = vmul.f32 %v660_v20, %v287_v21 }
  0x39   : > { %v425_v37 = vadd.f32 %v678_v38, %v355_v26  ;;  %v426_v39 = vadd.f32 %v678_v38, %v356_v27  ;;  %v358_v41 = vmul.f32 %v660_v20, %v288_v22  ;;  %486 = vst.msk [vmem:[%s688_s10 + $0x140] sm:$0xff] %vm445_vm0, %v421_v31  ;;  %487 = vst.msk [vmem:[%s688_s10 + $0x148] sm:$0xff] %vm445_vm0, %v422_v32 }
  0x3a   : > { %488 = vst.msk [vmem:[%s688_s10 + $0x150] sm:$0xff] %vm445_vm0, %v423_v33  ;;  %489 = vst.msk [vmem:[%s688_s10 + $0x158] sm:$0xff] %vm445_vm0, %v424_v34  ;;  %v359_v42 = vmul.f32 %v660_v20, %v289_v23  ;;  %v360_v43 = vmul.f32 %v660_v20, %v290_v28  ;;  %v361_v44 = vmul.f32 %v660_v20, %v291_v29 }
  0x3b   : > { %v362_v45 = vmul.f32 %v660_v20, %v292_v30  ;;  %490 = vst.msk [vmem:[%s688_s10 + $0x160] sm:$0xff] %vm445_vm0, %v425_v37  ;;  %491 = vst.msk [vmem:[%s688_s10 + $0x168] sm:$0xff] %vm445_vm0, %v426_v39  ;;  %v427_v49 = vadd.f32 %v678_v38, %v357_v40  ;;  %v428_v50 = vadd.f32 %v678_v38, %v358_v41 }
  0x3c   : > { %v363_v51 = vmul.f32 %v660_v20, %v293_v35  ;;  %v364_v52 = vmul.f32 %v660_v20, %v294_v36  ;;  %v429_v56 = vadd.f32 %v678_v38, %v359_v42  ;;  %v430_v57 = vadd.f32 %v678_v38, %v360_v43 }
  0x3d   : > { %v431_v58 = vadd.f32 %v678_v38, %v361_v44  ;;  %v432_v59 = vadd.f32 %v678_v38, %v362_v45  ;;  %492 = vst.msk [vmem:[%s688_s10 + $0x170] sm:$0xff] %vm445_vm0, %v427_v49  ;;  %493 = vst.msk [vmem:[%s688_s10 + $0x178] sm:$0xff] %vm445_vm0, %v428_v50  ;;  %v365_v0 = vmul.f32 %v660_v20, %v295_v46 }
  0x3e   : > { %v433_v62 = vadd.f32 %v678_v38, %v363_v51  ;;  %v434_v63 = vadd.f32 %v678_v38, %v364_v52  ;;  %v366_v1 = vmul.f32 %v660_v20, %v296_v47  ;;  %494 = vst.msk [vmem:[%s688_s10 + $0x180] sm:$0xff] %vm445_vm0, %v429_v56  ;;  %495 = vst.msk [vmem:[%s688_s10 + $0x188] sm:$0xff] %vm445_vm0, %v430_v57 }
  0x3f   : > { %496 = vst.msk [vmem:[%s688_s10 + $0x190] sm:$0xff] %vm445_vm0, %v431_v58  ;;  %497 = vst.msk [vmem:[%s688_s10 + $0x198] sm:$0xff] %vm445_vm0, %v432_v59  ;;  %v367_v2 = vmul.f32 %v660_v20, %v297_v48  ;;  %v368_v3 = vmul.f32 %v660_v20, %v298_v53  ;;  %v369_v4 = vmul.f32 %v660_v20, %v299_v54 }
  0x40   : > { %v370_v5 = vmul.f32 %v660_v20, %v300_v55  ;;  %498 = vst.msk [vmem:[%s688_s10 + $0x1a0] sm:$0xff] %vm445_vm0, %v433_v62  ;;  %499 = vst.msk [vmem:[%s688_s10 + $0x1a8] sm:$0xff] %vm445_vm0, %v434_v63  ;;  %v435_v8 = vadd.f32 %v678_v38, %v365_v0  ;;  %v436_v9 = vadd.f32 %v678_v38, %v366_v1 }
  0x41   : > { %v371_v10 = vmul.f32 %v660_v20, %v301_v60  ;;  %v372_v11 = vmul.f32 %v660_v20, %v302_v61  ;;  %v437_v12 = vadd.f32 %v678_v38, %v367_v2  ;;  %v438_v13 = vadd.f32 %v678_v38, %v368_v3 }
  0x42   : > { %v439_v14 = vadd.f32 %v678_v38, %v369_v4  ;;  %v440_v15 = vadd.f32 %v678_v38, %v370_v5  ;;  %500 = vst.msk [vmem:[%s688_s10 + $0x1b0] sm:$0xff] %vm445_vm0, %v435_v8  ;;  %501 = vst.msk [vmem:[%s688_s10 + $0x1b8] sm:$0xff] %vm445_vm0, %v436_v9  ;;  %v373_v18 = vmul.f32 %v660_v20, %v303_v6 }
  0x43   : > { %v441_v16 = vadd.f32 %v678_v38, %v371_v10  ;;  %v442_v17 = vadd.f32 %v678_v38, %v372_v11  ;;  %v374_v19 = vmul.f32 %v660_v20, %v304_v7  ;;  %502 = vst.msk [vmem:[%s688_s10 + $0x1c0] sm:$0xff] %vm445_vm0, %v437_v12  ;;  %503 = vst.msk [vmem:[%s688_s10 + $0x1c8] sm:$0xff] %vm445_vm0, %v438_v13 }
  0x44   : > { %504 = vst.msk [vmem:[%s688_s10 + $0x1d0] sm:$0xff] %vm445_vm0, %v439_v14  ;;  %505 = vst.msk [vmem:[%s688_s10 + $0x1d8] sm:$0xff] %vm445_vm0, %v440_v15  ;;  %v443_v21 = vadd.f32 %v678_v38, %v373_v18 }
  0x45   : > { %506 = vst.msk [vmem:[%s688_s10 + $0x1e0] sm:$0xff] %vm445_vm0, %v441_v16  ;;  %507 = vst.msk [vmem:[%s688_s10 + $0x1e8] sm:$0xff] %vm445_vm0, %v442_v17  ;;  %v444_v22 = vadd.f32 %v678_v38, %v374_v19 }
  0x46   : > { %508 = vst.msk [vmem:[%s688_s10 + $0x1f0] sm:$0xff] %vm445_vm0, %v443_v21 }
  0x47   : > { %509 = vst.msk [vmem:[%s688_s10 + $0x1f8] sm:$0xff] %vm445_vm0, %v444_v22 }
  0x48 PF: > { %s15_s18 = sadd.s32 1, %s593_s18  }
  0x49   : > { %p12_p4 = scmp.ge.s32.totalorder %s15_s18, 6  }
  0x4b   :  { %14 = sbr.rel (!%p12_p4) target bundleno = 1 (0x1), region = 70 }

</bundles_post_ra>
